<compile_context>
chip_gen: v6e
topology: v6e:2x2x1
jax: 0.10.0
libtpu: 0.0.40
codegen_flags: <defaults>
</compile_context>

<pallas_src>
import jax
import jax.numpy as jnp
from jax.experimental import pallas as pl
from jax.experimental.pallas import tpu as pltpu  # noqa: F401  (TPU backend)


# ----------------------------------------------------------------------------
# Pallas kernel: one fused bidirectional LSTM layer + fused time max-pool
# ----------------------------------------------------------------------------
def _bilstm_layer_kernel(xg_f_ref, xg_b_ref, m_ref, whh_f_ref, whh_b_ref,
                         out_f_ref, out_b_ref, pool_f_ref, pool_b_ref):
    """Sequential bidirectional LSTM recurrence for one layer.

    xg_*_ref : (T, B, 4H) precomputed input projections (+ bias), per direction
    m_ref    : (T, B, 1)  1.0 where t < length[b], else 0.0
    whh_*    : (H, 4H)    recurrent weights (PyTorch gate order i, f, g, o)
    out_*    : (T, B, H)  per-direction hidden outputs (0.0 at padded steps)
    pool_*   : (B, H)     max over the T (zero-padded) time steps
    """
    T, B, G = xg_f_ref.shape
    H = G // 4

    whh_f = whh_f_ref[...]
    whh_b = whh_b_ref[...]

    def cell(xg_t, h_prev, c_prev, w_hh):
        # single recurrent MXU push per step per direction
        gates = xg_t + jnp.dot(h_prev, w_hh, preferred_element_type=jnp.float32)
        i_g = jax.nn.sigmoid(gates[:, 0 * H:1 * H])
        f_g = jax.nn.sigmoid(gates[:, 1 * H:2 * H])
        g_g = jnp.tanh(gates[:, 2 * H:3 * H])
        o_g = jax.nn.sigmoid(gates[:, 3 * H:4 * H])
        c_new = f_g * c_prev + i_g * g_g
        h_new = o_g * jnp.tanh(c_new)
        return h_new, c_new

    zeros = jnp.zeros((B, H), jnp.float32)
    ninf = jnp.full((B, H), -jnp.inf, jnp.float32)
    h_f = zeros
    c_f = zeros
    h_b = zeros
    c_b = zeros
    p_f = ninf
    p_b = ninf

    # T is small and static: fully unroll the time loop (one kernel invocation,
    # recurrent state stays in vregs, no per-step grid/pipeline overhead).
    # TODO(synk): for large T switch to lax.fori_loop with VMEM-scratch state.
    for s in range(T):
        r = T - 1 - s

        # ---- forward direction, time step s ----
        v_f = m_ref[s] > 0.0                         # (B, 1)
        hf_new, cf_new = cell(xg_f_ref[s], h_f, c_f, whh_f)
        h_f = jnp.where(v_f, hf_new, h_f)            # padded step: keep state
        c_f = jnp.where(v_f, cf_new, c_f)
        of = jnp.where(v_f, hf_new, 0.0)             # padding_value = 0 output
        out_f_ref[s] = of
        p_f = jnp.maximum(p_f, of)

        # ---- backward direction, time step r = T-1-s ----
        # (starts from each sequence's last valid step; padded steps before the
        #  sequence end keep the zero initial state, matching packed semantics)
        v_b = m_ref[r] > 0.0
        hb_new, cb_new = cell(xg_b_ref[r], h_b, c_b, whh_b)
        h_b = jnp.where(v_b, hb_new, h_b)
        c_b = jnp.where(v_b, cb_new, c_b)
        ob = jnp.where(v_b, hb_new, 0.0)
        out_b_ref[r] = ob
        p_b = jnp.maximum(p_b, ob)

    # fused MaxPool1d over the zero-padded time axis
    pool_f_ref[...] = p_f
    pool_b_ref[...] = p_b


# ----------------------------------------------------------------------------
# Per-layer wrapper
# ----------------------------------------------------------------------------
def _bilstm_layer(x_tbd, mask_tb1, lp):
    """Bidirectional single-layer LSTM with packed-sequence semantics.

    x_tbd    : (T, B, D) time-major layer input
    mask_tb1 : (T, B, 1) float validity mask
    returns  : out_f (T,B,H), out_b (T,B,H), pool_f (B,H), pool_b (B,H)
    """
    T, B, _ = x_tbd.shape
    H = lp["w_hh_f"].shape[0]

    # Hoist the (parallel) input projection out of the sequential recurrence:
    # one batched matmul per direction over all T*B rows, bias folded in.
    xg_f = jnp.einsum("tbd,dg->tbg", x_tbd, lp["w_ih_f"],
                      preferred_element_type=jnp.float32) + lp["b_f"]
    xg_b = jnp.einsum("tbd,dg->tbg", x_tbd, lp["w_ih_b"],
                      preferred_element_type=jnp.float32) + lp["b_b"]

    out_f, out_b, pool_f, pool_b = pl.pallas_call(
        _bilstm_layer_kernel,
        out_shape=(
            jax.ShapeDtypeStruct((T, B, H), jnp.float32),
            jax.ShapeDtypeStruct((T, B, H), jnp.float32),
            jax.ShapeDtypeStruct((B, H), jnp.float32),
            jax.ShapeDtypeStruct((B, H), jnp.float32),
        ),
        # no grid / no blocking: whole operands are VMEM-resident (few KB here)
    )(xg_f, xg_b, mask_tb1, lp["w_hh_f"], lp["w_hh_b"])
    return out_f, out_b, pool_f, pool_b


# ----------------------------------------------------------------------------
# Parameters (deterministic synthetic init, PyTorch-like layout) and forward
# ----------------------------------------------------------------------------
def init_params(key, vocab_size, embedding_dim, hidden_size, num_lstm_layers):
    params = {}
    key, k_emb = jax.random.split(key)
    params["embedding"] = (
        jax.random.normal(k_emb, (vocab_size, embedding_dim), jnp.float32) * 0.1)

    out_size = 2 * hidden_size  # bidirectional
    in_sizes = [embedding_dim] + [embedding_dim + out_size] * (num_lstm_layers - 1)
    s = 1.0 / float(hidden_size) ** 0.5
    layers = []
    for d_in in in_sizes:
        lp = {}
        for sfx in ("f", "b"):          # forward / backward directions
            key, k1, k2, k3, k4 = jax.random.split(key, 5)
            w_ih = jax.random.uniform(k1, (4 * hidden_size, d_in), jnp.float32, -s, s)
            w_hh = jax.random.uniform(k2, (4 * hidden_size, hidden_size),
                                      jnp.float32, -s, s)
            b_ih = jax.random.uniform(k3, (4 * hidden_size,), jnp.float32, -s, s)
            b_hh = jax.random.uniform(k4, (4 * hidden_size,), jnp.float32, -s, s)
            lp[f"w_ih_{sfx}"] = jnp.transpose(w_ih)                  # (D, 4H)
            lp[f"w_hh_{sfx}"] = jnp.transpose(w_hh)                  # (H, 4H)
            lp[f"b_{sfx}"] = (b_ih + b_hh).reshape(1, 4 * hidden_size)
        layers.append(lp)
    params["layers"] = layers
    return params


def residual_stacked_encoder_forward(params, token_ids, lengths,
                                     max_sentence_length):
    """Forward pass. Requires num_lstm_layers >= 2 (as the reference module does)."""
    T = max_sentence_length                       # static -> jittable forward
    lengths = lengths.astype(jnp.int32)
    mask_tb1 = (jnp.arange(T)[:, None] < lengths[None, :]
                ).astype(jnp.float32)[:, :, None]                     # (T, B, 1)

    tok_tb = jnp.transpose(token_ids[:, :T])                          # (T, B)
    emb = params["embedding"][tok_tb]                                 # (T, B, E)
    emb = emb * mask_tb1           # pack/pad round trip: padding_value = 0.0
    embeds = emb
    x = emb

    n = len(params["layers"])
    lstm_sum = None
    pooled = None
    for i, lp in enumerate(params["layers"]):
        out_f, out_b, pool_f, pool_b = _bilstm_layer(x, mask_tb1, lp)
        if i == 0:
            lstm_out = jnp.concatenate([out_f, out_b], axis=2)        # (T, B, 2H)
            lstm_sum = lstm_out
            x = jnp.concatenate([lstm_out, x], axis=2)
        elif i == n - 1:
            # last layer: only the max over the zero-padded time axis is used;
            # it is fused into the kernel as a running max.
            pooled = jnp.concatenate([pool_f, pool_b], axis=1)        # (B, 2H)
        else:
            lstm_out = jnp.concatenate([out_f, out_b], axis=2)
            lstm_sum = lstm_sum + lstm_out
            x = jnp.concatenate([lstm_sum, embeds], axis=2)
    return pooled


if __name__ == "__main__":
    B = 2
    max_sentence_length = 10
    vocab_size = 20
    embedding_dim = 32
    hidden_size = 16          # bidirectional -> layer output size 32
    num_lstm_layers = 3
    padding_index = 0

    key = jax.random.PRNGKey(0)
    params = init_params(key, vocab_size, embedding_dim, hidden_size,
                         num_lstm_layers)

    k_tok, _ = jax.random.split(jax.random.PRNGKey(0))
    lengths = jnp.array([8, 5], dtype=jnp.int32)   # sorted descending (sort=True)
    token_ids = jax.random.randint(
        k_tok, (B, max_sentence_length), 1, vocab_size, jnp.int32)
    pos = jnp.arange(max_sentence_length)[None, :]
    token_ids = jnp.where(pos < lengths[:, None], token_ids, padding_index)

    fwd = jax.jit(residual_stacked_encoder_forward, static_argnums=(3,))
    out = fwd(params, token_ids, lengths, max_sentence_length)
    out = jax.block_until_ready(out)

    assert out.shape == (B, 2 * hidden_size), out.shape
    assert bool(jnp.all(jnp.isfinite(out)))
    print("KERNEL_OK")
</pallas_src>

<mosaic_0001>
module attributes {stable_mosaic.version = 11 : i64} {
  func.func @_bilstm_layer_kernel(%arg0: memref<10x2x64xf32, #tpu.memory_space<vmem>>, %arg1: memref<10x2x64xf32, #tpu.memory_space<vmem>>, %arg2: memref<10x2x1xf32, #tpu.memory_space<vmem>>, %arg3: memref<16x64xf32, #tpu.memory_space<vmem>>, %arg4: memref<16x64xf32, #tpu.memory_space<vmem>>, %arg5: memref<10x2x16xf32, #tpu.memory_space<vmem>>, %arg6: memref<10x2x16xf32, #tpu.memory_space<vmem>>, %arg7: memref<2x16xf32, #tpu.memory_space<vmem>>, %arg8: memref<2x16xf32, #tpu.memory_space<vmem>>) attributes {dimension_semantics = [], scalar_prefetch = 0 : i64, scratch_operands = 0 : i64, tpu.core_type = #tpu.core_type<tc>} {
    %c0 = arith.constant 0 : index
    %c0_0 = arith.constant 0 : index
    %0 = vector.load %arg3[%c0, %c0_0] : memref<16x64xf32, #tpu.memory_space<vmem>>, vector<16x64xf32>
    %c0_1 = arith.constant 0 : index
    %c0_2 = arith.constant 0 : index
    %1 = vector.load %arg4[%c0_1, %c0_2] : memref<16x64xf32, #tpu.memory_space<vmem>>, vector<16x64xf32>
    %cst = arith.constant 0.000000e+00 : f32
    %2 = vector.broadcast %cst : f32 to vector<2x16xf32>
    %cst_3 = arith.constant 0xFF800000 : f32
    %3 = vector.broadcast %cst_3 : f32 to vector<2x16xf32>
    %c0_4 = arith.constant 0 : index
    %c0_5 = arith.constant 0 : index
    %c0_6 = arith.constant 0 : index
    %4 = vector.load %arg2[%c0_4, %c0_5, %c0_6] : memref<10x2x1xf32, #tpu.memory_space<vmem>>, vector<1x2x1xf32>
    %5 = vector.shape_cast %4 : vector<1x2x1xf32> to vector<2x1xf32>
    %cst_7 = arith.constant 0.000000e+00 : f32
    %6 = vector.broadcast %cst_7 : f32 to vector<2x1xf32>
    %7 = arith.cmpf ogt, %5, %6 : vector<2x1xf32>
    %c0_8 = arith.constant 0 : index
    %c0_9 = arith.constant 0 : index
    %c0_10 = arith.constant 0 : index
    %8 = vector.load %arg0[%c0_8, %c0_9, %c0_10] : memref<10x2x64xf32, #tpu.memory_space<vmem>>, vector<1x2x64xf32>
    %9 = vector.shape_cast %8 : vector<1x2x64xf32> to vector<2x64xf32>
    %cst_11 = arith.constant dense<0.000000e+00> : vector<2x64xf32>
    %10 = tpu.matmul %2, %0, %cst_11 {dimension_numbers = #tpu.dot_dimension_numbers<[1], [0], [0], [1], [0, 0, 1, 1], [], []>} : vector<2x16xf32>, vector<16x64xf32>, vector<2x64xf32> -> vector<2x64xf32>
    %11 = arith.addf %9, %10 : vector<2x64xf32>
    %12 = vector.extract_strided_slice %11 {offsets = [0, 0], sizes = [2, 16], strides = [1, 1]} : vector<2x64xf32> to vector<2x16xf32>
    %13 = arith.negf %12 : vector<2x16xf32>
    %14 = math.exp %13 : vector<2x16xf32>
    %cst_12 = arith.constant 1.000000e+00 : f32
    %15 = vector.broadcast %cst_12 : f32 to vector<2x16xf32>
    %16 = arith.addf %15, %14 : vector<2x16xf32>
    %17 = arith.divf %15, %16 : vector<2x16xf32>
    %18 = vector.extract_strided_slice %11 {offsets = [0, 16], sizes = [2, 16], strides = [1, 1]} : vector<2x64xf32> to vector<2x16xf32>
    %19 = arith.negf %18 : vector<2x16xf32>
    %20 = math.exp %19 : vector<2x16xf32>
    %cst_13 = arith.constant 1.000000e+00 : f32
    %21 = vector.broadcast %cst_13 : f32 to vector<2x16xf32>
    %22 = arith.addf %21, %20 : vector<2x16xf32>
    %23 = arith.divf %21, %22 : vector<2x16xf32>
    %24 = vector.extract_strided_slice %11 {offsets = [0, 32], sizes = [2, 16], strides = [1, 1]} : vector<2x64xf32> to vector<2x16xf32>
    %25 = math.tanh %24 : vector<2x16xf32>
    %26 = vector.extract_strided_slice %11 {offsets = [0, 48], sizes = [2, 16], strides = [1, 1]} : vector<2x64xf32> to vector<2x16xf32>
    %27 = arith.negf %26 : vector<2x16xf32>
    %28 = math.exp %27 : vector<2x16xf32>
    %cst_14 = arith.constant 1.000000e+00 : f32
    %29 = vector.broadcast %cst_14 : f32 to vector<2x16xf32>
    %30 = arith.addf %29, %28 : vector<2x16xf32>
    %31 = arith.divf %29, %30 : vector<2x16xf32>
    %32 = arith.mulf %23, %2 : vector<2x16xf32>
    %33 = arith.mulf %17, %25 : vector<2x16xf32>
    %34 = arith.addf %32, %33 : vector<2x16xf32>
    %35 = math.tanh %34 : vector<2x16xf32>
    %36 = arith.mulf %31, %35 : vector<2x16xf32>
    %37 = vector.shape_cast %7 : vector<2x1xi1> to vector<2x1xi1>
    %38 = vector.broadcast %37 : vector<2x1xi1> to vector<2x16xi1>
    %39 = arith.select %38, %36, %2 : vector<2x16xi1>, vector<2x16xf32>
    %40 = vector.shape_cast %7 : vector<2x1xi1> to vector<2x1xi1>
    %41 = vector.broadcast %40 : vector<2x1xi1> to vector<2x16xi1>
    %42 = arith.select %41, %34, %2 : vector<2x16xi1>, vector<2x16xf32>
    %cst_15 = arith.constant 0.000000e+00 : f32
    %43 = vector.shape_cast %7 : vector<2x1xi1> to vector<2x1xi1>
    %44 = vector.broadcast %43 : vector<2x1xi1> to vector<2x16xi1>
    %45 = vector.broadcast %cst_15 : f32 to vector<2x16xf32>
    %46 = arith.select %44, %36, %45 : vector<2x16xi1>, vector<2x16xf32>
    %c0_16 = arith.constant 0 : index
    %c0_17 = arith.constant 0 : index
    %c0_18 = arith.constant 0 : index
    %47 = vector.load %arg5[%c0_16, %c0_17, %c0_18] : memref<10x2x16xf32, #tpu.memory_space<vmem>>, vector<1x2x16xf32>
    %48 = vector.shape_cast %47 : vector<1x2x16xf32> to vector<2x16xf32>
    %49 = vector.shape_cast %46 : vector<2x16xf32> to vector<1x2x16xf32>
    tpu.vector_store %arg5[%c0_16, %c0_17, %c0_18], %49 {strides = array<i32>} : memref<10x2x16xf32, #tpu.memory_space<vmem>>, vector<1x2x16xf32>,
    %50 = arith.maximumf %3, %46 : vector<2x16xf32>
    %c9 = arith.constant 9 : index
    %c0_19 = arith.constant 0 : index
    %c0_20 = arith.constant 0 : index
    %51 = vector.load %arg2[%c9, %c0_19, %c0_20] : memref<10x2x1xf32, #tpu.memory_space<vmem>>, vector<1x2x1xf32>
    %52 = vector.shape_cast %51 : vector<1x2x1xf32> to vector<2x1xf32>
    %cst_21 = arith.constant 0.000000e+00 : f32
    %53 = vector.broadcast %cst_21 : f32 to vector<2x1xf32>
    %54 = arith.cmpf ogt, %52, %53 : vector<2x1xf32>
    %c9_22 = arith.constant 9 : index
    %c0_23 = arith.constant 0 : index
    %c0_24 = arith.constant 0 : index
    %55 = vector.load %arg1[%c9_22, %c0_23, %c0_24] : memref<10x2x64xf32, #tpu.memory_space<vmem>>, vector<1x2x64xf32>
    %56 = vector.shape_cast %55 : vector<1x2x64xf32> to vector<2x64xf32>
    %cst_25 = arith.constant dense<0.000000e+00> : vector<2x64xf32>
    %57 = tpu.matmul %2, %1, %cst_25 {dimension_numbers = #tpu.dot_dimension_numbers<[1], [0], [0], [1], [0, 0, 1, 1], [], []>} : vector<2x16xf32>, vector<16x64xf32>, vector<2x64xf32> -> vector<2x64xf32>
    %58 = arith.addf %56, %57 : vector<2x64xf32>
    %59 = vector.extract_strided_slice %58 {offsets = [0, 0], sizes = [2, 16], strides = [1, 1]} : vector<2x64xf32> to vector<2x16xf32>
    %60 = arith.negf %59 : vector<2x16xf32>
    %61 = math.exp %60 : vector<2x16xf32>
    %cst_26 = arith.constant 1.000000e+00 : f32
    %62 = vector.broadcast %cst_26 : f32 to vector<2x16xf32>
    %63 = arith.addf %62, %61 : vector<2x16xf32>
    %64 = arith.divf %62, %63 : vector<2x16xf32>
    %65 = vector.extract_strided_slice %58 {offsets = [0, 16], sizes = [2, 16], strides = [1, 1]} : vector<2x64xf32> to vector<2x16xf32>
    %66 = arith.negf %65 : vector<2x16xf32>
    %67 = math.exp %66 : vector<2x16xf32>
    %cst_27 = arith.constant 1.000000e+00 : f32
    %68 = vector.broadcast %cst_27 : f32 to vector<2x16xf32>
    %69 = arith.addf %68, %67 : vector<2x16xf32>
    %70 = arith.divf %68, %69 : vector<2x16xf32>
    %71 = vector.extract_strided_slice %58 {offsets = [0, 32], sizes = [2, 16], strides = [1, 1]} : vector<2x64xf32> to vector<2x16xf32>
    %72 = math.tanh %71 : vector<2x16xf32>
    %73 = vector.extract_strided_slice %58 {offsets = [0, 48], sizes = [2, 16], strides = [1, 1]} : vector<2x64xf32> to vector<2x16xf32>
    %74 = arith.negf %73 : vector<2x16xf32>
    %75 = math.exp %74 : vector<2x16xf32>
    %cst_28 = arith.constant 1.000000e+00 : f32
    %76 = vector.broadcast %cst_28 : f32 to vector<2x16xf32>
    %77 = arith.addf %76, %75 : vector<2x16xf32>
    %78 = arith.divf %76, %77 : vector<2x16xf32>
    %79 = arith.mulf %70, %2 : vector<2x16xf32>
    %80 = arith.mulf %64, %72 : vector<2x16xf32>
    %81 = arith.addf %79, %80 : vector<2x16xf32>
    %82 = math.tanh %81 : vector<2x16xf32>
    %83 = arith.mulf %78, %82 : vector<2x16xf32>
    %84 = vector.shape_cast %54 : vector<2x1xi1> to vector<2x1xi1>
    %85 = vector.broadcast %84 : vector<2x1xi1> to vector<2x16xi1>
    %86 = arith.select %85, %83, %2 : vector<2x16xi1>, vector<2x16xf32>
    %87 = vector.shape_cast %54 : vector<2x1xi1> to vector<2x1xi1>
    %88 = vector.broadcast %87 : vector<2x1xi1> to vector<2x16xi1>
    %89 = arith.select %88, %81, %2 : vector<2x16xi1>, vector<2x16xf32>
    %cst_29 = arith.constant 0.000000e+00 : f32
    %90 = vector.shape_cast %54 : vector<2x1xi1> to vector<2x1xi1>
    %91 = vector.broadcast %90 : vector<2x1xi1> to vector<2x16xi1>
    %92 = vector.broadcast %cst_29 : f32 to vector<2x16xf32>
    %93 = arith.select %91, %83, %92 : vector<2x16xi1>, vector<2x16xf32>
    %c9_30 = arith.constant 9 : index
    %c0_31 = arith.constant 0 : index
    %c0_32 = arith.constant 0 : index
    %94 = vector.load %arg6[%c9_30, %c0_31, %c0_32] : memref<10x2x16xf32, #tpu.memory_space<vmem>>, vector<1x2x16xf32>
    %95 = vector.shape_cast %94 : vector<1x2x16xf32> to vector<2x16xf32>
    %96 = vector.shape_cast %93 : vector<2x16xf32> to vector<1x2x16xf32>
    tpu.vector_store %arg6[%c9_30, %c0_31, %c0_32], %96 {strides = array<i32>} : memref<10x2x16xf32, #tpu.memory_space<vmem>>, vector<1x2x16xf32>,
    %97 = arith.maximumf %3, %93 : vector<2x16xf32>
    %c1 = arith.constant 1 : index
    %c0_33 = arith.constant 0 : index
    %c0_34 = arith.constant 0 : index
    %98 = vector.load %arg2[%c1, %c0_33, %c0_34] : memref<10x2x1xf32, #tpu.memory_space<vmem>>, vector<1x2x1xf32>
    %99 = vector.shape_cast %98 : vector<1x2x1xf32> to vector<2x1xf32>
    %cst_35 = arith.constant 0.000000e+00 : f32
    %100 = vector.broadcast %cst_35 : f32 to vector<2x1xf32>
    %101 = arith.cmpf ogt, %99, %100 : vector<2x1xf32>
    %c1_36 = arith.constant 1 : index
    %c0_37 = arith.constant 0 : index
    %c0_38 = arith.constant 0 : index
    %102 = vector.load %arg0[%c1_36, %c0_37, %c0_38] : memref<10x2x64xf32, #tpu.memory_space<vmem>>, vector<1x2x64xf32>
    %103 = vector.shape_cast %102 : vector<1x2x64xf32> to vector<2x64xf32>
    %cst_39 = arith.constant dense<0.000000e+00> : vector<2x64xf32>
    %104 = tpu.matmul %39, %0, %cst_39 {dimension_numbers = #tpu.dot_dimension_numbers<[1], [0], [0], [1], [0, 0, 1, 1], [], []>} : vector<2x16xf32>, vector<16x64xf32>, vector<2x64xf32> -> vector<2x64xf32>
    %105 = arith.addf %103, %104 : vector<2x64xf32>
    %106 = vector.extract_strided_slice %105 {offsets = [0, 0], sizes = [2, 16], strides = [1, 1]} : vector<2x64xf32> to vector<2x16xf32>
    %107 = arith.negf %106 : vector<2x16xf32>
    %108 = math.exp %107 : vector<2x16xf32>
    %cst_40 = arith.constant 1.000000e+00 : f32
    %109 = vector.broadcast %cst_40 : f32 to vector<2x16xf32>
    %110 = arith.addf %109, %108 : vector<2x16xf32>
    %111 = arith.divf %109, %110 : vector<2x16xf32>
    %112 = vector.extract_strided_slice %105 {offsets = [0, 16], sizes = [2, 16], strides = [1, 1]} : vector<2x64xf32> to vector<2x16xf32>
    %113 = arith.negf %112 : vector<2x16xf32>
    %114 = math.exp %113 : vector<2x16xf32>
    %cst_41 = arith.constant 1.000000e+00 : f32
    %115 = vector.broadcast %cst_41 : f32 to vector<2x16xf32>
    %116 = arith.addf %115, %114 : vector<2x16xf32>
    %117 = arith.divf %115, %116 : vector<2x16xf32>
    %118 = vector.extract_strided_slice %105 {offsets = [0, 32], sizes = [2, 16], strides = [1, 1]} : vector<2x64xf32> to vector<2x16xf32>
    %119 = math.tanh %118 : vector<2x16xf32>
    %120 = vector.extract_strided_slice %105 {offsets = [0, 48], sizes = [2, 16], strides = [1, 1]} : vector<2x64xf32> to vector<2x16xf32>
    %121 = arith.negf %120 : vector<2x16xf32>
    %122 = math.exp %121 : vector<2x16xf32>
    %cst_42 = arith.constant 1.000000e+00 : f32
    %123 = vector.broadcast %cst_42 : f32 to vector<2x16xf32>
    %124 = arith.addf %123, %122 : vector<2x16xf32>
    %125 = arith.divf %123, %124 : vector<2x16xf32>
    %126 = arith.mulf %117, %42 : vector<2x16xf32>
    %127 = arith.mulf %111, %119 : vector<2x16xf32>
    %128 = arith.addf %126, %127 : vector<2x16xf32>
    %129 = math.tanh %128 : vector<2x16xf32>
    %130 = arith.mulf %125, %129 : vector<2x16xf32>
    %131 = vector.shape_cast %101 : vector<2x1xi1> to vector<2x1xi1>
    %132 = vector.broadcast %131 : vector<2x1xi1> to vector<2x16xi1>
    %133 = arith.select %132, %130, %39 : vector<2x16xi1>, vector<2x16xf32>
    %134 = vector.shape_cast %101 : vector<2x1xi1> to vector<2x1xi1>
    %135 = vector.broadcast %134 : vector<2x1xi1> to vector<2x16xi1>
    %136 = arith.select %135, %128, %42 : vector<2x16xi1>, vector<2x16xf32>
    %cst_43 = arith.constant 0.000000e+00 : f32
    %137 = vector.shape_cast %101 : vector<2x1xi1> to vector<2x1xi1>
    %138 = vector.broadcast %137 : vector<2x1xi1> to vector<2x16xi1>
    %139 = vector.broadcast %cst_43 : f32 to vector<2x16xf32>
    %140 = arith.select %138, %130, %139 : vector<2x16xi1>, vector<2x16xf32>
    %c1_44 = arith.constant 1 : index
    %c0_45 = arith.constant 0 : index
    %c0_46 = arith.constant 0 : index
    %141 = vector.load %arg5[%c1_44, %c0_45, %c0_46] : memref<10x2x16xf32, #tpu.memory_space<vmem>>, vector<1x2x16xf32>
    %142 = vector.shape_cast %141 : vector<1x2x16xf32> to vector<2x16xf32>
    %143 = vector.shape_cast %140 : vector<2x16xf32> to vector<1x2x16xf32>
    tpu.vector_store %arg5[%c1_44, %c0_45, %c0_46], %143 {strides = array<i32>} : memref<10x2x16xf32, #tpu.memory_space<vmem>>, vector<1x2x16xf32>,
    %144 = arith.maximumf %50, %140 : vector<2x16xf32>
    %c8 = arith.constant 8 : index
    %c0_47 = arith.constant 0 : index
    %c0_48 = arith.constant 0 : index
    %145 = vector.load %arg2[%c8, %c0_47, %c0_48] : memref<10x2x1xf32, #tpu.memory_space<vmem>>, vector<1x2x1xf32>
    %146 = vector.shape_cast %145 : vector<1x2x1xf32> to vector<2x1xf32>
    %cst_49 = arith.constant 0.000000e+00 : f32
    %147 = vector.broadcast %cst_49 : f32 to vector<2x1xf32>
    %148 = arith.cmpf ogt, %146, %147 : vector<2x1xf32>
    %c8_50 = arith.constant 8 : index
    %c0_51 = arith.constant 0 : index
    %c0_52 = arith.constant 0 : index
    %149 = vector.load %arg1[%c8_50, %c0_51, %c0_52] : memref<10x2x64xf32, #tpu.memory_space<vmem>>, vector<1x2x64xf32>
    %150 = vector.shape_cast %149 : vector<1x2x64xf32> to vector<2x64xf32>
    %cst_53 = arith.constant dense<0.000000e+00> : vector<2x64xf32>
    %151 = tpu.matmul %86, %1, %cst_53 {dimension_numbers = #tpu.dot_dimension_numbers<[1], [0], [0], [1], [0, 0, 1, 1], [], []>} : vector<2x16xf32>, vector<16x64xf32>, vector<2x64xf32> -> vector<2x64xf32>
    %152 = arith.addf %150, %151 : vector<2x64xf32>
    %153 = vector.extract_strided_slice %152 {offsets = [0, 0], sizes = [2, 16], strides = [1, 1]} : vector<2x64xf32> to vector<2x16xf32>
    %154 = arith.negf %153 : vector<2x16xf32>
    %155 = math.exp %154 : vector<2x16xf32>
    %cst_54 = arith.constant 1.000000e+00 : f32
    %156 = vector.broadcast %cst_54 : f32 to vector<2x16xf32>
    %157 = arith.addf %156, %155 : vector<2x16xf32>
    %158 = arith.divf %156, %157 : vector<2x16xf32>
    %159 = vector.extract_strided_slice %152 {offsets = [0, 16], sizes = [2, 16], strides = [1, 1]} : vector<2x64xf32> to vector<2x16xf32>
    %160 = arith.negf %159 : vector<2x16xf32>
    %161 = math.exp %160 : vector<2x16xf32>
    %cst_55 = arith.constant 1.000000e+00 : f32
    %162 = vector.broadcast %cst_55 : f32 to vector<2x16xf32>
    %163 = arith.addf %162, %161 : vector<2x16xf32>
    %164 = arith.divf %162, %163 : vector<2x16xf32>
    %165 = vector.extract_strided_slice %152 {offsets = [0, 32], sizes = [2, 16], strides = [1, 1]} : vector<2x64xf32> to vector<2x16xf32>
    %166 = math.tanh %165 : vector<2x16xf32>
    %167 = vector.extract_strided_slice %152 {offsets = [0, 48], sizes = [2, 16], strides = [1, 1]} : vector<2x64xf32> to vector<2x16xf32>
    %168 = arith.negf %167 : vector<2x16xf32>
    %169 = math.exp %168 : vector<2x16xf32>
    %cst_56 = arith.constant 1.000000e+00 : f32
    %170 = vector.broadcast %cst_56 : f32 to vector<2x16xf32>
    %171 = arith.addf %170, %169 : vector<2x16xf32>
    %172 = arith.divf %170, %171 : vector<2x16xf32>
    %173 = arith.mulf %164, %89 : vector<2x16xf32>
    %174 = arith.mulf %158, %166 : vector<2x16xf32>
    %175 = arith.addf %173, %174 : vector<2x16xf32>
    %176 = math.tanh %175 : vector<2x16xf32>
    %177 = arith.mulf %172, %176 : vector<2x16xf32>
    %178 = vector.shape_cast %148 : vector<2x1xi1> to vector<2x1xi1>
    %179 = vector.broadcast %178 : vector<2x1xi1> to vector<2x16xi1>
    %180 = arith.select %179, %177, %86 : vector<2x16xi1>, vector<2x16xf32>
    %181 = vector.shape_cast %148 : vector<2x1xi1> to vector<2x1xi1>
    %182 = vector.broadcast %181 : vector<2x1xi1> to vector<2x16xi1>
    %183 = arith.select %182, %175, %89 : vector<2x16xi1>, vector<2x16xf32>
    %cst_57 = arith.constant 0.000000e+00 : f32
    %184 = vector.shape_cast %148 : vector<2x1xi1> to vector<2x1xi1>
    %185 = vector.broadcast %184 : vector<2x1xi1> to vector<2x16xi1>
    %186 = vector.broadcast %cst_57 : f32 to vector<2x16xf32>
    %187 = arith.select %185, %177, %186 : vector<2x16xi1>, vector<2x16xf32>
    %c8_58 = arith.constant 8 : index
    %c0_59 = arith.constant 0 : index
    %c0_60 = arith.constant 0 : index
    %188 = vector.load %arg6[%c8_58, %c0_59, %c0_60] : memref<10x2x16xf32, #tpu.memory_space<vmem>>, vector<1x2x16xf32>
    %189 = vector.shape_cast %188 : vector<1x2x16xf32> to vector<2x16xf32>
    %190 = vector.shape_cast %187 : vector<2x16xf32> to vector<1x2x16xf32>
    tpu.vector_store %arg6[%c8_58, %c0_59, %c0_60], %190 {strides = array<i32>} : memref<10x2x16xf32, #tpu.memory_space<vmem>>, vector<1x2x16xf32>,
    %191 = arith.maximumf %97, %187 : vector<2x16xf32>
    %c2 = arith.constant 2 : index
    %c0_61 = arith.constant 0 : index
    %c0_62 = arith.constant 0 : index
    %192 = vector.load %arg2[%c2, %c0_61, %c0_62] : memref<10x2x1xf32, #tpu.memory_space<vmem>>, vector<1x2x1xf32>
    %193 = vector.shape_cast %192 : vector<1x2x1xf32> to vector<2x1xf32>
    %cst_63 = arith.constant 0.000000e+00 : f32
    %194 = vector.broadcast %cst_63 : f32 to vector<2x1xf32>
    %195 = arith.cmpf ogt, %193, %194 : vector<2x1xf32>
    %c2_64 = arith.constant 2 : index
    %c0_65 = arith.constant 0 : index
    %c0_66 = arith.constant 0 : index
    %196 = vector.load %arg0[%c2_64, %c0_65, %c0_66] : memref<10x2x64xf32, #tpu.memory_space<vmem>>, vector<1x2x64xf32>
    %197 = vector.shape_cast %196 : vector<1x2x64xf32> to vector<2x64xf32>
    %cst_67 = arith.constant dense<0.000000e+00> : vector<2x64xf32>
    %198 = tpu.matmul %133, %0, %cst_67 {dimension_numbers = #tpu.dot_dimension_numbers<[1], [0], [0], [1], [0, 0, 1, 1], [], []>} : vector<2x16xf32>, vector<16x64xf32>, vector<2x64xf32> -> vector<2x64xf32>
    %199 = arith.addf %197, %198 : vector<2x64xf32>
    %200 = vector.extract_strided_slice %199 {offsets = [0, 0], sizes = [2, 16], strides = [1, 1]} : vector<2x64xf32> to vector<2x16xf32>
    %201 = arith.negf %200 : vector<2x16xf32>
    %202 = math.exp %201 : vector<2x16xf32>
    %cst_68 = arith.constant 1.000000e+00 : f32
    %203 = vector.broadcast %cst_68 : f32 to vector<2x16xf32>
    %204 = arith.addf %203, %202 : vector<2x16xf32>
    %205 = arith.divf %203, %204 : vector<2x16xf32>
    %206 = vector.extract_strided_slice %199 {offsets = [0, 16], sizes = [2, 16], strides = [1, 1]} : vector<2x64xf32> to vector<2x16xf32>
    %207 = arith.negf %206 : vector<2x16xf32>
    %208 = math.exp %207 : vector<2x16xf32>
    %cst_69 = arith.constant 1.000000e+00 : f32
    %209 = vector.broadcast %cst_69 : f32 to vector<2x16xf32>
    %210 = arith.addf %209, %208 : vector<2x16xf32>
    %211 = arith.divf %209, %210 : vector<2x16xf32>
    %212 = vector.extract_strided_slice %199 {offsets = [0, 32], sizes = [2, 16], strides = [1, 1]} : vector<2x64xf32> to vector<2x16xf32>
    %213 = math.tanh %212 : vector<2x16xf32>
    %214 = vector.extract_strided_slice %199 {offsets = [0, 48], sizes = [2, 16], strides = [1, 1]} : vector<2x64xf32> to vector<2x16xf32>
    %215 = arith.negf %214 : vector<2x16xf32>
    %216 = math.exp %215 : vector<2x16xf32>
    %cst_70 = arith.constant 1.000000e+00 : f32
    %217 = vector.broadcast %cst_70 : f32 to vector<2x16xf32>
    %218 = arith.addf %217, %216 : vector<2x16xf32>
    %219 = arith.divf %217, %218 : vector<2x16xf32>
    %220 = arith.mulf %211, %136 : vector<2x16xf32>
    %221 = arith.mulf %205, %213 : vector<2x16xf32>
    %222 = arith.addf %220, %221 : vector<2x16xf32>
    %223 = math.tanh %222 : vector<2x16xf32>
    %224 = arith.mulf %219, %223 : vector<2x16xf32>
    %225 = vector.shape_cast %195 : vector<2x1xi1> to vector<2x1xi1>
    %226 = vector.broadcast %225 : vector<2x1xi1> to vector<2x16xi1>
    %227 = arith.select %226, %224, %133 : vector<2x16xi1>, vector<2x16xf32>
    %228 = vector.shape_cast %195 : vector<2x1xi1> to vector<2x1xi1>
    %229 = vector.broadcast %228 : vector<2x1xi1> to vector<2x16xi1>
    %230 = arith.select %229, %222, %136 : vector<2x16xi1>, vector<2x16xf32>
    %cst_71 = arith.constant 0.000000e+00 : f32
    %231 = vector.shape_cast %195 : vector<2x1xi1> to vector<2x1xi1>
    %232 = vector.broadcast %231 : vector<2x1xi1> to vector<2x16xi1>
    %233 = vector.broadcast %cst_71 : f32 to vector<2x16xf32>
    %234 = arith.select %232, %224, %233 : vector<2x16xi1>, vector<2x16xf32>
    %c2_72 = arith.constant 2 : index
    %c0_73 = arith.constant 0 : index
    %c0_74 = arith.constant 0 : index
    %235 = vector.load %arg5[%c2_72, %c0_73, %c0_74] : memref<10x2x16xf32, #tpu.memory_space<vmem>>, vector<1x2x16xf32>
    %236 = vector.shape_cast %235 : vector<1x2x16xf32> to vector<2x16xf32>
    %237 = vector.shape_cast %234 : vector<2x16xf32> to vector<1x2x16xf32>
    tpu.vector_store %arg5[%c2_72, %c0_73, %c0_74], %237 {strides = array<i32>} : memref<10x2x16xf32, #tpu.memory_space<vmem>>, vector<1x2x16xf32>,
    %238 = arith.maximumf %144, %234 : vector<2x16xf32>
    %c7 = arith.constant 7 : index
    %c0_75 = arith.constant 0 : index
    %c0_76 = arith.constant 0 : index
    %239 = vector.load %arg2[%c7, %c0_75, %c0_76] : memref<10x2x1xf32, #tpu.memory_space<vmem>>, vector<1x2x1xf32>
    %240 = vector.shape_cast %239 : vector<1x2x1xf32> to vector<2x1xf32>
    %cst_77 = arith.constant 0.000000e+00 : f32
    %241 = vector.broadcast %cst_77 : f32 to vector<2x1xf32>
    %242 = arith.cmpf ogt, %240, %241 : vector<2x1xf32>
    %c7_78 = arith.constant 7 : index
    %c0_79 = arith.constant 0 : index
    %c0_80 = arith.constant 0 : index
    %243 = vector.load %arg1[%c7_78, %c0_79, %c0_80] : memref<10x2x64xf32, #tpu.memory_space<vmem>>, vector<1x2x64xf32>
    %244 = vector.shape_cast %243 : vector<1x2x64xf32> to vector<2x64xf32>
    %cst_81 = arith.constant dense<0.000000e+00> : vector<2x64xf32>
    %245 = tpu.matmul %180, %1, %cst_81 {dimension_numbers = #tpu.dot_dimension_numbers<[1], [0], [0], [1], [0, 0, 1, 1], [], []>} : vector<2x16xf32>, vector<16x64xf32>, vector<2x64xf32> -> vector<2x64xf32>
    %246 = arith.addf %244, %245 : vector<2x64xf32>
    %247 = vector.extract_strided_slice %246 {offsets = [0, 0], sizes = [2, 16], strides = [1, 1]} : vector<2x64xf32> to vector<2x16xf32>
    %248 = arith.negf %247 : vector<2x16xf32>
    %249 = math.exp %248 : vector<2x16xf32>
    %cst_82 = arith.constant 1.000000e+00 : f32
    %250 = vector.broadcast %cst_82 : f32 to vector<2x16xf32>
    %251 = arith.addf %250, %249 : vector<2x16xf32>
    %252 = arith.divf %250, %251 : vector<2x16xf32>
    %253 = vector.extract_strided_slice %246 {offsets = [0, 16], sizes = [2, 16], strides = [1, 1]} : vector<2x64xf32> to vector<2x16xf32>
    %254 = arith.negf %253 : vector<2x16xf32>
    %255 = math.exp %254 : vector<2x16xf32>
    %cst_83 = arith.constant 1.000000e+00 : f32
    %256 = vector.broadcast %cst_83 : f32 to vector<2x16xf32>
    %257 = arith.addf %256, %255 : vector<2x16xf32>
    %258 = arith.divf %256, %257 : vector<2x16xf32>
    %259 = vector.extract_strided_slice %246 {offsets = [0, 32], sizes = [2, 16], strides = [1, 1]} : vector<2x64xf32> to vector<2x16xf32>
    %260 = math.tanh %259 : vector<2x16xf32>
    %261 = vector.extract_strided_slice %246 {offsets = [0, 48], sizes = [2, 16], strides = [1, 1]} : vector<2x64xf32> to vector<2x16xf32>
    %262 = arith.negf %261 : vector<2x16xf32>
    %263 = math.exp %262 : vector<2x16xf32>
    %cst_84 = arith.constant 1.000000e+00 : f32
    %264 = vector.broadcast %cst_84 : f32 to vector<2x16xf32>
    %265 = arith.addf %264, %263 : vector<2x16xf32>
    %266 = arith.divf %264, %265 : vector<2x16xf32>
    %267 = arith.mulf %258, %183 : vector<2x16xf32>
    %268 = arith.mulf %252, %260 : vector<2x16xf32>
    %269 = arith.addf %267, %268 : vector<2x16xf32>
    %270 = math.tanh %269 : vector<2x16xf32>
    %271 = arith.mulf %266, %270 : vector<2x16xf32>
    %272 = vector.shape_cast %242 : vector<2x1xi1> to vector<2x1xi1>
    %273 = vector.broadcast %272 : vector<2x1xi1> to vector<2x16xi1>
    %274 = arith.select %273, %271, %180 : vector<2x16xi1>, vector<2x16xf32>
    %275 = vector.shape_cast %242 : vector<2x1xi1> to vector<2x1xi1>
    %276 = vector.broadcast %275 : vector<2x1xi1> to vector<2x16xi1>
    %277 = arith.select %276, %269, %183 : vector<2x16xi1>, vector<2x16xf32>
    %cst_85 = arith.constant 0.000000e+00 : f32
    %278 = vector.shape_cast %242 : vector<2x1xi1> to vector<2x1xi1>
    %279 = vector.broadcast %278 : vector<2x1xi1> to vector<2x16xi1>
    %280 = vector.broadcast %cst_85 : f32 to vector<2x16xf32>
    %281 = arith.select %279, %271, %280 : vector<2x16xi1>, vector<2x16xf32>
    %c7_86 = arith.constant 7 : index
    %c0_87 = arith.constant 0 : index
    %c0_88 = arith.constant 0 : index
    %282 = vector.load %arg6[%c7_86, %c0_87, %c0_88] : memref<10x2x16xf32, #tpu.memory_space<vmem>>, vector<1x2x16xf32>
    %283 = vector.shape_cast %282 : vector<1x2x16xf32> to vector<2x16xf32>
    %284 = vector.shape_cast %281 : vector<2x16xf32> to vector<1x2x16xf32>
    tpu.vector_store %arg6[%c7_86, %c0_87, %c0_88], %284 {strides = array<i32>} : memref<10x2x16xf32, #tpu.memory_space<vmem>>, vector<1x2x16xf32>,
    %285 = arith.maximumf %191, %281 : vector<2x16xf32>
    %c3 = arith.constant 3 : index
    %c0_89 = arith.constant 0 : index
    %c0_90 = arith.constant 0 : index
    %286 = vector.load %arg2[%c3, %c0_89, %c0_90] : memref<10x2x1xf32, #tpu.memory_space<vmem>>, vector<1x2x1xf32>
    %287 = vector.shape_cast %286 : vector<1x2x1xf32> to vector<2x1xf32>
    %cst_91 = arith.constant 0.000000e+00 : f32
    %288 = vector.broadcast %cst_91 : f32 to vector<2x1xf32>
    %289 = arith.cmpf ogt, %287, %288 : vector<2x1xf32>
    %c3_92 = arith.constant 3 : index
    %c0_93 = arith.constant 0 : index
    %c0_94 = arith.constant 0 : index
    %290 = vector.load %arg0[%c3_92, %c0_93, %c0_94] : memref<10x2x64xf32, #tpu.memory_space<vmem>>, vector<1x2x64xf32>
    %291 = vector.shape_cast %290 : vector<1x2x64xf32> to vector<2x64xf32>
    %cst_95 = arith.constant dense<0.000000e+00> : vector<2x64xf32>
    %292 = tpu.matmul %227, %0, %cst_95 {dimension_numbers = #tpu.dot_dimension_numbers<[1], [0], [0], [1], [0, 0, 1, 1], [], []>} : vector<2x16xf32>, vector<16x64xf32>, vector<2x64xf32> -> vector<2x64xf32>
    %293 = arith.addf %291, %292 : vector<2x64xf32>
    %294 = vector.extract_strided_slice %293 {offsets = [0, 0], sizes = [2, 16], strides = [1, 1]} : vector<2x64xf32> to vector<2x16xf32>
    %295 = arith.negf %294 : vector<2x16xf32>
    %296 = math.exp %295 : vector<2x16xf32>
    %cst_96 = arith.constant 1.000000e+00 : f32
    %297 = vector.broadcast %cst_96 : f32 to vector<2x16xf32>
    %298 = arith.addf %297, %296 : vector<2x16xf32>
    %299 = arith.divf %297, %298 : vector<2x16xf32>
    %300 = vector.extract_strided_slice %293 {offsets = [0, 16], sizes = [2, 16], strides = [1, 1]} : vector<2x64xf32> to vector<2x16xf32>
    %301 = arith.negf %300 : vector<2x16xf32>
    %302 = math.exp %301 : vector<2x16xf32>
    %cst_97 = arith.constant 1.000000e+00 : f32
    %303 = vector.broadcast %cst_97 : f32 to vector<2x16xf32>
    %304 = arith.addf %303, %302 : vector<2x16xf32>
    %305 = arith.divf %303, %304 : vector<2x16xf32>
    %306 = vector.extract_strided_slice %293 {offsets = [0, 32], sizes = [2, 16], strides = [1, 1]} : vector<2x64xf32> to vector<2x16xf32>
    %307 = math.tanh %306 : vector<2x16xf32>
    %308 = vector.extract_strided_slice %293 {offsets = [0, 48], sizes = [2, 16], strides = [1, 1]} : vector<2x64xf32> to vector<2x16xf32>
    %309 = arith.negf %308 : vector<2x16xf32>
    %310 = math.exp %309 : vector<2x16xf32>
    %cst_98 = arith.constant 1.000000e+00 : f32
    %311 = vector.broadcast %cst_98 : f32 to vector<2x16xf32>
    %312 = arith.addf %311, %310 : vector<2x16xf32>
    %313 = arith.divf %311, %312 : vector<2x16xf32>
    %314 = arith.mulf %305, %230 : vector<2x16xf32>
    %315 = arith.mulf %299, %307 : vector<2x16xf32>
    %316 = arith.addf %314, %315 : vector<2x16xf32>
    %317 = math.tanh %316 : vector<2x16xf32>
    %318 = arith.mulf %313, %317 : vector<2x16xf32>
    %319 = vector.shape_cast %289 : vector<2x1xi1> to vector<2x1xi1>
    %320 = vector.broadcast %319 : vector<2x1xi1> to vector<2x16xi1>
    %321 = arith.select %320, %318, %227 : vector<2x16xi1>, vector<2x16xf32>
    %322 = vector.shape_cast %289 : vector<2x1xi1> to vector<2x1xi1>
    %323 = vector.broadcast %322 : vector<2x1xi1> to vector<2x16xi1>
    %324 = arith.select %323, %316, %230 : vector<2x16xi1>, vector<2x16xf32>
    %cst_99 = arith.constant 0.000000e+00 : f32
    %325 = vector.shape_cast %289 : vector<2x1xi1> to vector<2x1xi1>
    %326 = vector.broadcast %325 : vector<2x1xi1> to vector<2x16xi1>
    %327 = vector.broadcast %cst_99 : f32 to vector<2x16xf32>
    %328 = arith.select %326, %318, %327 : vector<2x16xi1>, vector<2x16xf32>
    %c3_100 = arith.constant 3 : index
    %c0_101 = arith.constant 0 : index
    %c0_102 = arith.constant 0 : index
    %329 = vector.load %arg5[%c3_100, %c0_101, %c0_102] : memref<10x2x16xf32, #tpu.memory_space<vmem>>, vector<1x2x16xf32>
    %330 = vector.shape_cast %329 : vector<1x2x16xf32> to vector<2x16xf32>
    %331 = vector.shape_cast %328 : vector<2x16xf32> to vector<1x2x16xf32>
    tpu.vector_store %arg5[%c3_100, %c0_101, %c0_102], %331 {strides = array<i32>} : memref<10x2x16xf32, #tpu.memory_space<vmem>>, vector<1x2x16xf32>,
    %332 = arith.maximumf %238, %328 : vector<2x16xf32>
    %c6 = arith.constant 6 : index
    %c0_103 = arith.constant 0 : index
    %c0_104 = arith.constant 0 : index
    %333 = vector.load %arg2[%c6, %c0_103, %c0_104] : memref<10x2x1xf32, #tpu.memory_space<vmem>>, vector<1x2x1xf32>
    %334 = vector.shape_cast %333 : vector<1x2x1xf32> to vector<2x1xf32>
    %cst_105 = arith.constant 0.000000e+00 : f32
    %335 = vector.broadcast %cst_105 : f32 to vector<2x1xf32>
    %336 = arith.cmpf ogt, %334, %335 : vector<2x1xf32>
    %c6_106 = arith.constant 6 : index
    %c0_107 = arith.constant 0 : index
    %c0_108 = arith.constant 0 : index
    %337 = vector.load %arg1[%c6_106, %c0_107, %c0_108] : memref<10x2x64xf32, #tpu.memory_space<vmem>>, vector<1x2x64xf32>
    %338 = vector.shape_cast %337 : vector<1x2x64xf32> to vector<2x64xf32>
    %cst_109 = arith.constant dense<0.000000e+00> : vector<2x64xf32>
    %339 = tpu.matmul %274, %1, %cst_109 {dimension_numbers = #tpu.dot_dimension_numbers<[1], [0], [0], [1], [0, 0, 1, 1], [], []>} : vector<2x16xf32>, vector<16x64xf32>, vector<2x64xf32> -> vector<2x64xf32>
    %340 = arith.addf %338, %339 : vector<2x64xf32>
    %341 = vector.extract_strided_slice %340 {offsets = [0, 0], sizes = [2, 16], strides = [1, 1]} : vector<2x64xf32> to vector<2x16xf32>
    %342 = arith.negf %341 : vector<2x16xf32>
    %343 = math.exp %342 : vector<2x16xf32>
    %cst_110 = arith.constant 1.000000e+00 : f32
    %344 = vector.broadcast %cst_110 : f32 to vector<2x16xf32>
    %345 = arith.addf %344, %343 : vector<2x16xf32>
    %346 = arith.divf %344, %345 : vector<2x16xf32>
    %347 = vector.extract_strided_slice %340 {offsets = [0, 16], sizes = [2, 16], strides = [1, 1]} : vector<2x64xf32> to vector<2x16xf32>
    %348 = arith.negf %347 : vector<2x16xf32>
    %349 = math.exp %348 : vector<2x16xf32>
    %cst_111 = arith.constant 1.000000e+00 : f32
    %350 = vector.broadcast %cst_111 : f32 to vector<2x16xf32>
    %351 = arith.addf %350, %349 : vector<2x16xf32>
    %352 = arith.divf %350, %351 : vector<2x16xf32>
    %353 = vector.extract_strided_slice %340 {offsets = [0, 32], sizes = [2, 16], strides = [1, 1]} : vector<2x64xf32> to vector<2x16xf32>
    %354 = math.tanh %353 : vector<2x16xf32>
    %355 = vector.extract_strided_slice %340 {offsets = [0, 48], sizes = [2, 16], strides = [1, 1]} : vector<2x64xf32> to vector<2x16xf32>
    %356 = arith.negf %355 : vector<2x16xf32>
    %357 = math.exp %356 : vector<2x16xf32>
    %cst_112 = arith.constant 1.000000e+00 : f32
    %358 = vector.broadcast %cst_112 : f32 to vector<2x16xf32>
    %359 = arith.addf %358, %357 : vector<2x16xf32>
    %360 = arith.divf %358, %359 : vector<2x16xf32>
    %361 = arith.mulf %352, %277 : vector<2x16xf32>
    %362 = arith.mulf %346, %354 : vector<2x16xf32>
    %363 = arith.addf %361, %362 : vector<2x16xf32>
    %364 = math.tanh %363 : vector<2x16xf32>
    %365 = arith.mulf %360, %364 : vector<2x16xf32>
    %366 = vector.shape_cast %336 : vector<2x1xi1> to vector<2x1xi1>
    %367 = vector.broadcast %366 : vector<2x1xi1> to vector<2x16xi1>
    %368 = arith.select %367, %365, %274 : vector<2x16xi1>, vector<2x16xf32>
    %369 = vector.shape_cast %336 : vector<2x1xi1> to vector<2x1xi1>
    %370 = vector.broadcast %369 : vector<2x1xi1> to vector<2x16xi1>
    %371 = arith.select %370, %363, %277 : vector<2x16xi1>, vector<2x16xf32>
    %cst_113 = arith.constant 0.000000e+00 : f32
    %372 = vector.shape_cast %336 : vector<2x1xi1> to vector<2x1xi1>
    %373 = vector.broadcast %372 : vector<2x1xi1> to vector<2x16xi1>
    %374 = vector.broadcast %cst_113 : f32 to vector<2x16xf32>
    %375 = arith.select %373, %365, %374 : vector<2x16xi1>, vector<2x16xf32>
    %c6_114 = arith.constant 6 : index
    %c0_115 = arith.constant 0 : index
    %c0_116 = arith.constant 0 : index
    %376 = vector.load %arg6[%c6_114, %c0_115, %c0_116] : memref<10x2x16xf32, #tpu.memory_space<vmem>>, vector<1x2x16xf32>
    %377 = vector.shape_cast %376 : vector<1x2x16xf32> to vector<2x16xf32>
    %378 = vector.shape_cast %375 : vector<2x16xf32> to vector<1x2x16xf32>
    tpu.vector_store %arg6[%c6_114, %c0_115, %c0_116], %378 {strides = array<i32>} : memref<10x2x16xf32, #tpu.memory_space<vmem>>, vector<1x2x16xf32>,
    %379 = arith.maximumf %285, %375 : vector<2x16xf32>
    %c4 = arith.constant 4 : index
    %c0_117 = arith.constant 0 : index
    %c0_118 = arith.constant 0 : index
    %380 = vector.load %arg2[%c4, %c0_117, %c0_118] : memref<10x2x1xf32, #tpu.memory_space<vmem>>, vector<1x2x1xf32>
    %381 = vector.shape_cast %380 : vector<1x2x1xf32> to vector<2x1xf32>
    %cst_119 = arith.constant 0.000000e+00 : f32
    %382 = vector.broadcast %cst_119 : f32 to vector<2x1xf32>
    %383 = arith.cmpf ogt, %381, %382 : vector<2x1xf32>
    %c4_120 = arith.constant 4 : index
    %c0_121 = arith.constant 0 : index
    %c0_122 = arith.constant 0 : index
    %384 = vector.load %arg0[%c4_120, %c0_121, %c0_122] : memref<10x2x64xf32, #tpu.memory_space<vmem>>, vector<1x2x64xf32>
    %385 = vector.shape_cast %384 : vector<1x2x64xf32> to vector<2x64xf32>
    %cst_123 = arith.constant dense<0.000000e+00> : vector<2x64xf32>
    %386 = tpu.matmul %321, %0, %cst_123 {dimension_numbers = #tpu.dot_dimension_numbers<[1], [0], [0], [1], [0, 0, 1, 1], [], []>} : vector<2x16xf32>, vector<16x64xf32>, vector<2x64xf32> -> vector<2x64xf32>
    %387 = arith.addf %385, %386 : vector<2x64xf32>
    %388 = vector.extract_strided_slice %387 {offsets = [0, 0], sizes = [2, 16], strides = [1, 1]} : vector<2x64xf32> to vector<2x16xf32>
    %389 = arith.negf %388 : vector<2x16xf32>
    %390 = math.exp %389 : vector<2x16xf32>
    %cst_124 = arith.constant 1.000000e+00 : f32
    %391 = vector.broadcast %cst_124 : f32 to vector<2x16xf32>
    %392 = arith.addf %391, %390 : vector<2x16xf32>
    %393 = arith.divf %391, %392 : vector<2x16xf32>
    %394 = vector.extract_strided_slice %387 {offsets = [0, 16], sizes = [2, 16], strides = [1, 1]} : vector<2x64xf32> to vector<2x16xf32>
    %395 = arith.negf %394 : vector<2x16xf32>
    %396 = math.exp %395 : vector<2x16xf32>
    %cst_125 = arith.constant 1.000000e+00 : f32
    %397 = vector.broadcast %cst_125 : f32 to vector<2x16xf32>
    %398 = arith.addf %397, %396 : vector<2x16xf32>
    %399 = arith.divf %397, %398 : vector<2x16xf32>
    %400 = vector.extract_strided_slice %387 {offsets = [0, 32], sizes = [2, 16], strides = [1, 1]} : vector<2x64xf32> to vector<2x16xf32>
    %401 = math.tanh %400 : vector<2x16xf32>
    %402 = vector.extract_strided_slice %387 {offsets = [0, 48], sizes = [2, 16], strides = [1, 1]} : vector<2x64xf32> to vector<2x16xf32>
    %403 = arith.negf %402 : vector<2x16xf32>
    %404 = math.exp %403 : vector<2x16xf32>
    %cst_126 = arith.constant 1.000000e+00 : f32
    %405 = vector.broadcast %cst_126 : f32 to vector<2x16xf32>
    %406 = arith.addf %405, %404 : vector<2x16xf32>
    %407 = arith.divf %405, %406 : vector<2x16xf32>
    %408 = arith.mulf %399, %324 : vector<2x16xf32>
    %409 = arith.mulf %393, %401 : vector<2x16xf32>
    %410 = arith.addf %408, %409 : vector<2x16xf32>
    %411 = math.tanh %410 : vector<2x16xf32>
    %412 = arith.mulf %407, %411 : vector<2x16xf32>
    %413 = vector.shape_cast %383 : vector<2x1xi1> to vector<2x1xi1>
    %414 = vector.broadcast %413 : vector<2x1xi1> to vector<2x16xi1>
    %415 = arith.select %414, %412, %321 : vector<2x16xi1>, vector<2x16xf32>
    %416 = vector.shape_cast %383 : vector<2x1xi1> to vector<2x1xi1>
    %417 = vector.broadcast %416 : vector<2x1xi1> to vector<2x16xi1>
    %418 = arith.select %417, %410, %324 : vector<2x16xi1>, vector<2x16xf32>
    %cst_127 = arith.constant 0.000000e+00 : f32
    %419 = vector.shape_cast %383 : vector<2x1xi1> to vector<2x1xi1>
    %420 = vector.broadcast %419 : vector<2x1xi1> to vector<2x16xi1>
    %421 = vector.broadcast %cst_127 : f32 to vector<2x16xf32>
    %422 = arith.select %420, %412, %421 : vector<2x16xi1>, vector<2x16xf32>
    %c4_128 = arith.constant 4 : index
    %c0_129 = arith.constant 0 : index
    %c0_130 = arith.constant 0 : index
    %423 = vector.load %arg5[%c4_128, %c0_129, %c0_130] : memref<10x2x16xf32, #tpu.memory_space<vmem>>, vector<1x2x16xf32>
    %424 = vector.shape_cast %423 : vector<1x2x16xf32> to vector<2x16xf32>
    %425 = vector.shape_cast %422 : vector<2x16xf32> to vector<1x2x16xf32>
    tpu.vector_store %arg5[%c4_128, %c0_129, %c0_130], %425 {strides = array<i32>} : memref<10x2x16xf32, #tpu.memory_space<vmem>>, vector<1x2x16xf32>,
    %426 = arith.maximumf %332, %422 : vector<2x16xf32>
    %c5 = arith.constant 5 : index
    %c0_131 = arith.constant 0 : index
    %c0_132 = arith.constant 0 : index
    %427 = vector.load %arg2[%c5, %c0_131, %c0_132] : memref<10x2x1xf32, #tpu.memory_space<vmem>>, vector<1x2x1xf32>
    %428 = vector.shape_cast %427 : vector<1x2x1xf32> to vector<2x1xf32>
    %cst_133 = arith.constant 0.000000e+00 : f32
    %429 = vector.broadcast %cst_133 : f32 to vector<2x1xf32>
    %430 = arith.cmpf ogt, %428, %429 : vector<2x1xf32>
    %c5_134 = arith.constant 5 : index
    %c0_135 = arith.constant 0 : index
    %c0_136 = arith.constant 0 : index
    %431 = vector.load %arg1[%c5_134, %c0_135, %c0_136] : memref<10x2x64xf32, #tpu.memory_space<vmem>>, vector<1x2x64xf32>
    %432 = vector.shape_cast %431 : vector<1x2x64xf32> to vector<2x64xf32>
    %cst_137 = arith.constant dense<0.000000e+00> : vector<2x64xf32>
    %433 = tpu.matmul %368, %1, %cst_137 {dimension_numbers = #tpu.dot_dimension_numbers<[1], [0], [0], [1], [0, 0, 1, 1], [], []>} : vector<2x16xf32>, vector<16x64xf32>, vector<2x64xf32> -> vector<2x64xf32>
    %434 = arith.addf %432, %433 : vector<2x64xf32>
    %435 = vector.extract_strided_slice %434 {offsets = [0, 0], sizes = [2, 16], strides = [1, 1]} : vector<2x64xf32> to vector<2x16xf32>
    %436 = arith.negf %435 : vector<2x16xf32>
    %437 = math.exp %436 : vector<2x16xf32>
    %cst_138 = arith.constant 1.000000e+00 : f32
    %438 = vector.broadcast %cst_138 : f32 to vector<2x16xf32>
    %439 = arith.addf %438, %437 : vector<2x16xf32>
    %440 = arith.divf %438, %439 : vector<2x16xf32>
    %441 = vector.extract_strided_slice %434 {offsets = [0, 16], sizes = [2, 16], strides = [1, 1]} : vector<2x64xf32> to vector<2x16xf32>
    %442 = arith.negf %441 : vector<2x16xf32>
    %443 = math.exp %442 : vector<2x16xf32>
    %cst_139 = arith.constant 1.000000e+00 : f32
    %444 = vector.broadcast %cst_139 : f32 to vector<2x16xf32>
    %445 = arith.addf %444, %443 : vector<2x16xf32>
    %446 = arith.divf %444, %445 : vector<2x16xf32>
    %447 = vector.extract_strided_slice %434 {offsets = [0, 32], sizes = [2, 16], strides = [1, 1]} : vector<2x64xf32> to vector<2x16xf32>
    %448 = math.tanh %447 : vector<2x16xf32>
    %449 = vector.extract_strided_slice %434 {offsets = [0, 48], sizes = [2, 16], strides = [1, 1]} : vector<2x64xf32> to vector<2x16xf32>
    %450 = arith.negf %449 : vector<2x16xf32>
    %451 = math.exp %450 : vector<2x16xf32>
    %cst_140 = arith.constant 1.000000e+00 : f32
    %452 = vector.broadcast %cst_140 : f32 to vector<2x16xf32>
    %453 = arith.addf %452, %451 : vector<2x16xf32>
    %454 = arith.divf %452, %453 : vector<2x16xf32>
    %455 = arith.mulf %446, %371 : vector<2x16xf32>
    %456 = arith.mulf %440, %448 : vector<2x16xf32>
    %457 = arith.addf %455, %456 : vector<2x16xf32>
    %458 = math.tanh %457 : vector<2x16xf32>
    %459 = arith.mulf %454, %458 : vector<2x16xf32>
    %460 = vector.shape_cast %430 : vector<2x1xi1> to vector<2x1xi1>
    %461 = vector.broadcast %460 : vector<2x1xi1> to vector<2x16xi1>
    %462 = arith.select %461, %459, %368 : vector<2x16xi1>, vector<2x16xf32>
    %463 = vector.shape_cast %430 : vector<2x1xi1> to vector<2x1xi1>
    %464 = vector.broadcast %463 : vector<2x1xi1> to vector<2x16xi1>
    %465 = arith.select %464, %457, %371 : vector<2x16xi1>, vector<2x16xf32>
    %cst_141 = arith.constant 0.000000e+00 : f32
    %466 = vector.shape_cast %430 : vector<2x1xi1> to vector<2x1xi1>
    %467 = vector.broadcast %466 : vector<2x1xi1> to vector<2x16xi1>
    %468 = vector.broadcast %cst_141 : f32 to vector<2x16xf32>
    %469 = arith.select %467, %459, %468 : vector<2x16xi1>, vector<2x16xf32>
    %c5_142 = arith.constant 5 : index
    %c0_143 = arith.constant 0 : index
    %c0_144 = arith.constant 0 : index
    %470 = vector.load %arg6[%c5_142, %c0_143, %c0_144] : memref<10x2x16xf32, #tpu.memory_space<vmem>>, vector<1x2x16xf32>
    %471 = vector.shape_cast %470 : vector<1x2x16xf32> to vector<2x16xf32>
    %472 = vector.shape_cast %469 : vector<2x16xf32> to vector<1x2x16xf32>
    tpu.vector_store %arg6[%c5_142, %c0_143, %c0_144], %472 {strides = array<i32>} : memref<10x2x16xf32, #tpu.memory_space<vmem>>, vector<1x2x16xf32>,
    %473 = arith.maximumf %379, %469 : vector<2x16xf32>
    %c5_145 = arith.constant 5 : index
    %c0_146 = arith.constant 0 : index
    %c0_147 = arith.constant 0 : index
    %474 = vector.load %arg2[%c5_145, %c0_146, %c0_147] : memref<10x2x1xf32, #tpu.memory_space<vmem>>, vector<1x2x1xf32>
    %475 = vector.shape_cast %474 : vector<1x2x1xf32> to vector<2x1xf32>
    %cst_148 = arith.constant 0.000000e+00 : f32
    %476 = vector.broadcast %cst_148 : f32 to vector<2x1xf32>
    %477 = arith.cmpf ogt, %475, %476 : vector<2x1xf32>
    %c5_149 = arith.constant 5 : index
    %c0_150 = arith.constant 0 : index
    %c0_151 = arith.constant 0 : index
    %478 = vector.load %arg0[%c5_149, %c0_150, %c0_151] : memref<10x2x64xf32, #tpu.memory_space<vmem>>, vector<1x2x64xf32>
    %479 = vector.shape_cast %478 : vector<1x2x64xf32> to vector<2x64xf32>
    %cst_152 = arith.constant dense<0.000000e+00> : vector<2x64xf32>
    %480 = tpu.matmul %415, %0, %cst_152 {dimension_numbers = #tpu.dot_dimension_numbers<[1], [0], [0], [1], [0, 0, 1, 1], [], []>} : vector<2x16xf32>, vector<16x64xf32>, vector<2x64xf32> -> vector<2x64xf32>
    %481 = arith.addf %479, %480 : vector<2x64xf32>
    %482 = vector.extract_strided_slice %481 {offsets = [0, 0], sizes = [2, 16], strides = [1, 1]} : vector<2x64xf32> to vector<2x16xf32>
    %483 = arith.negf %482 : vector<2x16xf32>
    %484 = math.exp %483 : vector<2x16xf32>
    %cst_153 = arith.constant 1.000000e+00 : f32
    %485 = vector.broadcast %cst_153 : f32 to vector<2x16xf32>
    %486 = arith.addf %485, %484 : vector<2x16xf32>
    %487 = arith.divf %485, %486 : vector<2x16xf32>
    %488 = vector.extract_strided_slice %481 {offsets = [0, 16], sizes = [2, 16], strides = [1, 1]} : vector<2x64xf32> to vector<2x16xf32>
    %489 = arith.negf %488 : vector<2x16xf32>
    %490 = math.exp %489 : vector<2x16xf32>
    %cst_154 = arith.constant 1.000000e+00 : f32
    %491 = vector.broadcast %cst_154 : f32 to vector<2x16xf32>
    %492 = arith.addf %491, %490 : vector<2x16xf32>
    %493 = arith.divf %491, %492 : vector<2x16xf32>
    %494 = vector.extract_strided_slice %481 {offsets = [0, 32], sizes = [2, 16], strides = [1, 1]} : vector<2x64xf32> to vector<2x16xf32>
    %495 = math.tanh %494 : vector<2x16xf32>
    %496 = vector.extract_strided_slice %481 {offsets = [0, 48], sizes = [2, 16], strides = [1, 1]} : vector<2x64xf32> to vector<2x16xf32>
    %497 = arith.negf %496 : vector<2x16xf32>
    %498 = math.exp %497 : vector<2x16xf32>
    %cst_155 = arith.constant 1.000000e+00 : f32
    %499 = vector.broadcast %cst_155 : f32 to vector<2x16xf32>
    %500 = arith.addf %499, %498 : vector<2x16xf32>
    %501 = arith.divf %499, %500 : vector<2x16xf32>
    %502 = arith.mulf %493, %418 : vector<2x16xf32>
    %503 = arith.mulf %487, %495 : vector<2x16xf32>
    %504 = arith.addf %502, %503 : vector<2x16xf32>
    %505 = math.tanh %504 : vector<2x16xf32>
    %506 = arith.mulf %501, %505 : vector<2x16xf32>
    %507 = vector.shape_cast %477 : vector<2x1xi1> to vector<2x1xi1>
    %508 = vector.broadcast %507 : vector<2x1xi1> to vector<2x16xi1>
    %509 = arith.select %508, %506, %415 : vector<2x16xi1>, vector<2x16xf32>
    %510 = vector.shape_cast %477 : vector<2x1xi1> to vector<2x1xi1>
    %511 = vector.broadcast %510 : vector<2x1xi1> to vector<2x16xi1>
    %512 = arith.select %511, %504, %418 : vector<2x16xi1>, vector<2x16xf32>
    %cst_156 = arith.constant 0.000000e+00 : f32
    %513 = vector.shape_cast %477 : vector<2x1xi1> to vector<2x1xi1>
    %514 = vector.broadcast %513 : vector<2x1xi1> to vector<2x16xi1>
    %515 = vector.broadcast %cst_156 : f32 to vector<2x16xf32>
    %516 = arith.select %514, %506, %515 : vector<2x16xi1>, vector<2x16xf32>
    %c5_157 = arith.constant 5 : index
    %c0_158 = arith.constant 0 : index
    %c0_159 = arith.constant 0 : index
    %517 = vector.load %arg5[%c5_157, %c0_158, %c0_159] : memref<10x2x16xf32, #tpu.memory_space<vmem>>, vector<1x2x16xf32>
    %518 = vector.shape_cast %517 : vector<1x2x16xf32> to vector<2x16xf32>
    %519 = vector.shape_cast %516 : vector<2x16xf32> to vector<1x2x16xf32>
    tpu.vector_store %arg5[%c5_157, %c0_158, %c0_159], %519 {strides = array<i32>} : memref<10x2x16xf32, #tpu.memory_space<vmem>>, vector<1x2x16xf32>,
    %520 = arith.maximumf %426, %516 : vector<2x16xf32>
    %c4_160 = arith.constant 4 : index
    %c0_161 = arith.constant 0 : index
    %c0_162 = arith.constant 0 : index
    %521 = vector.load %arg2[%c4_160, %c0_161, %c0_162] : memref<10x2x1xf32, #tpu.memory_space<vmem>>, vector<1x2x1xf32>
    %522 = vector.shape_cast %521 : vector<1x2x1xf32> to vector<2x1xf32>
    %cst_163 = arith.constant 0.000000e+00 : f32
    %523 = vector.broadcast %cst_163 : f32 to vector<2x1xf32>
    %524 = arith.cmpf ogt, %522, %523 : vector<2x1xf32>
    %c4_164 = arith.constant 4 : index
    %c0_165 = arith.constant 0 : index
    %c0_166 = arith.constant 0 : index
    %525 = vector.load %arg1[%c4_164, %c0_165, %c0_166] : memref<10x2x64xf32, #tpu.memory_space<vmem>>, vector<1x2x64xf32>
    %526 = vector.shape_cast %525 : vector<1x2x64xf32> to vector<2x64xf32>
    %cst_167 = arith.constant dense<0.000000e+00> : vector<2x64xf32>
    %527 = tpu.matmul %462, %1, %cst_167 {dimension_numbers = #tpu.dot_dimension_numbers<[1], [0], [0], [1], [0, 0, 1, 1], [], []>} : vector<2x16xf32>, vector<16x64xf32>, vector<2x64xf32> -> vector<2x64xf32>
    %528 = arith.addf %526, %527 : vector<2x64xf32>
    %529 = vector.extract_strided_slice %528 {offsets = [0, 0], sizes = [2, 16], strides = [1, 1]} : vector<2x64xf32> to vector<2x16xf32>
    %530 = arith.negf %529 : vector<2x16xf32>
    %531 = math.exp %530 : vector<2x16xf32>
    %cst_168 = arith.constant 1.000000e+00 : f32
    %532 = vector.broadcast %cst_168 : f32 to vector<2x16xf32>
    %533 = arith.addf %532, %531 : vector<2x16xf32>
    %534 = arith.divf %532, %533 : vector<2x16xf32>
    %535 = vector.extract_strided_slice %528 {offsets = [0, 16], sizes = [2, 16], strides = [1, 1]} : vector<2x64xf32> to vector<2x16xf32>
    %536 = arith.negf %535 : vector<2x16xf32>
    %537 = math.exp %536 : vector<2x16xf32>
    %cst_169 = arith.constant 1.000000e+00 : f32
    %538 = vector.broadcast %cst_169 : f32 to vector<2x16xf32>
    %539 = arith.addf %538, %537 : vector<2x16xf32>
    %540 = arith.divf %538, %539 : vector<2x16xf32>
    %541 = vector.extract_strided_slice %528 {offsets = [0, 32], sizes = [2, 16], strides = [1, 1]} : vector<2x64xf32> to vector<2x16xf32>
    %542 = math.tanh %541 : vector<2x16xf32>
    %543 = vector.extract_strided_slice %528 {offsets = [0, 48], sizes = [2, 16], strides = [1, 1]} : vector<2x64xf32> to vector<2x16xf32>
    %544 = arith.negf %543 : vector<2x16xf32>
    %545 = math.exp %544 : vector<2x16xf32>
    %cst_170 = arith.constant 1.000000e+00 : f32
    %546 = vector.broadcast %cst_170 : f32 to vector<2x16xf32>
    %547 = arith.addf %546, %545 : vector<2x16xf32>
    %548 = arith.divf %546, %547 : vector<2x16xf32>
    %549 = arith.mulf %540, %465 : vector<2x16xf32>
    %550 = arith.mulf %534, %542 : vector<2x16xf32>
    %551 = arith.addf %549, %550 : vector<2x16xf32>
    %552 = math.tanh %551 : vector<2x16xf32>
    %553 = arith.mulf %548, %552 : vector<2x16xf32>
    %554 = vector.shape_cast %524 : vector<2x1xi1> to vector<2x1xi1>
    %555 = vector.broadcast %554 : vector<2x1xi1> to vector<2x16xi1>
    %556 = arith.select %555, %553, %462 : vector<2x16xi1>, vector<2x16xf32>
    %557 = vector.shape_cast %524 : vector<2x1xi1> to vector<2x1xi1>
    %558 = vector.broadcast %557 : vector<2x1xi1> to vector<2x16xi1>
    %559 = arith.select %558, %551, %465 : vector<2x16xi1>, vector<2x16xf32>
    %cst_171 = arith.constant 0.000000e+00 : f32
    %560 = vector.shape_cast %524 : vector<2x1xi1> to vector<2x1xi1>
    %561 = vector.broadcast %560 : vector<2x1xi1> to vector<2x16xi1>
    %562 = vector.broadcast %cst_171 : f32 to vector<2x16xf32>
    %563 = arith.select %561, %553, %562 : vector<2x16xi1>, vector<2x16xf32>
    %c4_172 = arith.constant 4 : index
    %c0_173 = arith.constant 0 : index
    %c0_174 = arith.constant 0 : index
    %564 = vector.load %arg6[%c4_172, %c0_173, %c0_174] : memref<10x2x16xf32, #tpu.memory_space<vmem>>, vector<1x2x16xf32>
    %565 = vector.shape_cast %564 : vector<1x2x16xf32> to vector<2x16xf32>
    %566 = vector.shape_cast %563 : vector<2x16xf32> to vector<1x2x16xf32>
    tpu.vector_store %arg6[%c4_172, %c0_173, %c0_174], %566 {strides = array<i32>} : memref<10x2x16xf32, #tpu.memory_space<vmem>>, vector<1x2x16xf32>,
    %567 = arith.maximumf %473, %563 : vector<2x16xf32>
    %c6_175 = arith.constant 6 : index
    %c0_176 = arith.constant 0 : index
    %c0_177 = arith.constant 0 : index
    %568 = vector.load %arg2[%c6_175, %c0_176, %c0_177] : memref<10x2x1xf32, #tpu.memory_space<vmem>>, vector<1x2x1xf32>
    %569 = vector.shape_cast %568 : vector<1x2x1xf32> to vector<2x1xf32>
    %cst_178 = arith.constant 0.000000e+00 : f32
    %570 = vector.broadcast %cst_178 : f32 to vector<2x1xf32>
    %571 = arith.cmpf ogt, %569, %570 : vector<2x1xf32>
    %c6_179 = arith.constant 6 : index
    %c0_180 = arith.constant 0 : index
    %c0_181 = arith.constant 0 : index
    %572 = vector.load %arg0[%c6_179, %c0_180, %c0_181] : memref<10x2x64xf32, #tpu.memory_space<vmem>>, vector<1x2x64xf32>
    %573 = vector.shape_cast %572 : vector<1x2x64xf32> to vector<2x64xf32>
    %cst_182 = arith.constant dense<0.000000e+00> : vector<2x64xf32>
    %574 = tpu.matmul %509, %0, %cst_182 {dimension_numbers = #tpu.dot_dimension_numbers<[1], [0], [0], [1], [0, 0, 1, 1], [], []>} : vector<2x16xf32>, vector<16x64xf32>, vector<2x64xf32> -> vector<2x64xf32>
    %575 = arith.addf %573, %574 : vector<2x64xf32>
    %576 = vector.extract_strided_slice %575 {offsets = [0, 0], sizes = [2, 16], strides = [1, 1]} : vector<2x64xf32> to vector<2x16xf32>
    %577 = arith.negf %576 : vector<2x16xf32>
    %578 = math.exp %577 : vector<2x16xf32>
    %cst_183 = arith.constant 1.000000e+00 : f32
    %579 = vector.broadcast %cst_183 : f32 to vector<2x16xf32>
    %580 = arith.addf %579, %578 : vector<2x16xf32>
    %581 = arith.divf %579, %580 : vector<2x16xf32>
    %582 = vector.extract_strided_slice %575 {offsets = [0, 16], sizes = [2, 16], strides = [1, 1]} : vector<2x64xf32> to vector<2x16xf32>
    %583 = arith.negf %582 : vector<2x16xf32>
    %584 = math.exp %583 : vector<2x16xf32>
    %cst_184 = arith.constant 1.000000e+00 : f32
    %585 = vector.broadcast %cst_184 : f32 to vector<2x16xf32>
    %586 = arith.addf %585, %584 : vector<2x16xf32>
    %587 = arith.divf %585, %586 : vector<2x16xf32>
    %588 = vector.extract_strided_slice %575 {offsets = [0, 32], sizes = [2, 16], strides = [1, 1]} : vector<2x64xf32> to vector<2x16xf32>
    %589 = math.tanh %588 : vector<2x16xf32>
    %590 = vector.extract_strided_slice %575 {offsets = [0, 48], sizes = [2, 16], strides = [1, 1]} : vector<2x64xf32> to vector<2x16xf32>
    %591 = arith.negf %590 : vector<2x16xf32>
    %592 = math.exp %591 : vector<2x16xf32>
    %cst_185 = arith.constant 1.000000e+00 : f32
    %593 = vector.broadcast %cst_185 : f32 to vector<2x16xf32>
    %594 = arith.addf %593, %592 : vector<2x16xf32>
    %595 = arith.divf %593, %594 : vector<2x16xf32>
    %596 = arith.mulf %587, %512 : vector<2x16xf32>
    %597 = arith.mulf %581, %589 : vector<2x16xf32>
    %598 = arith.addf %596, %597 : vector<2x16xf32>
    %599 = math.tanh %598 : vector<2x16xf32>
    %600 = arith.mulf %595, %599 : vector<2x16xf32>
    %601 = vector.shape_cast %571 : vector<2x1xi1> to vector<2x1xi1>
    %602 = vector.broadcast %601 : vector<2x1xi1> to vector<2x16xi1>
    %603 = arith.select %602, %600, %509 : vector<2x16xi1>, vector<2x16xf32>
    %604 = vector.shape_cast %571 : vector<2x1xi1> to vector<2x1xi1>
    %605 = vector.broadcast %604 : vector<2x1xi1> to vector<2x16xi1>
    %606 = arith.select %605, %598, %512 : vector<2x16xi1>, vector<2x16xf32>
    %cst_186 = arith.constant 0.000000e+00 : f32
    %607 = vector.shape_cast %571 : vector<2x1xi1> to vector<2x1xi1>
    %608 = vector.broadcast %607 : vector<2x1xi1> to vector<2x16xi1>
    %609 = vector.broadcast %cst_186 : f32 to vector<2x16xf32>
    %610 = arith.select %608, %600, %609 : vector<2x16xi1>, vector<2x16xf32>
    %c6_187 = arith.constant 6 : index
    %c0_188 = arith.constant 0 : index
    %c0_189 = arith.constant 0 : index
    %611 = vector.load %arg5[%c6_187, %c0_188, %c0_189] : memref<10x2x16xf32, #tpu.memory_space<vmem>>, vector<1x2x16xf32>
    %612 = vector.shape_cast %611 : vector<1x2x16xf32> to vector<2x16xf32>
    %613 = vector.shape_cast %610 : vector<2x16xf32> to vector<1x2x16xf32>
    tpu.vector_store %arg5[%c6_187, %c0_188, %c0_189], %613 {strides = array<i32>} : memref<10x2x16xf32, #tpu.memory_space<vmem>>, vector<1x2x16xf32>,
    %614 = arith.maximumf %520, %610 : vector<2x16xf32>
    %c3_190 = arith.constant 3 : index
    %c0_191 = arith.constant 0 : index
    %c0_192 = arith.constant 0 : index
    %615 = vector.load %arg2[%c3_190, %c0_191, %c0_192] : memref<10x2x1xf32, #tpu.memory_space<vmem>>, vector<1x2x1xf32>
    %616 = vector.shape_cast %615 : vector<1x2x1xf32> to vector<2x1xf32>
    %cst_193 = arith.constant 0.000000e+00 : f32
    %617 = vector.broadcast %cst_193 : f32 to vector<2x1xf32>
    %618 = arith.cmpf ogt, %616, %617 : vector<2x1xf32>
    %c3_194 = arith.constant 3 : index
    %c0_195 = arith.constant 0 : index
    %c0_196 = arith.constant 0 : index
    %619 = vector.load %arg1[%c3_194, %c0_195, %c0_196] : memref<10x2x64xf32, #tpu.memory_space<vmem>>, vector<1x2x64xf32>
    %620 = vector.shape_cast %619 : vector<1x2x64xf32> to vector<2x64xf32>
    %cst_197 = arith.constant dense<0.000000e+00> : vector<2x64xf32>
    %621 = tpu.matmul %556, %1, %cst_197 {dimension_numbers = #tpu.dot_dimension_numbers<[1], [0], [0], [1], [0, 0, 1, 1], [], []>} : vector<2x16xf32>, vector<16x64xf32>, vector<2x64xf32> -> vector<2x64xf32>
    %622 = arith.addf %620, %621 : vector<2x64xf32>
    %623 = vector.extract_strided_slice %622 {offsets = [0, 0], sizes = [2, 16], strides = [1, 1]} : vector<2x64xf32> to vector<2x16xf32>
    %624 = arith.negf %623 : vector<2x16xf32>
    %625 = math.exp %624 : vector<2x16xf32>
    %cst_198 = arith.constant 1.000000e+00 : f32
    %626 = vector.broadcast %cst_198 : f32 to vector<2x16xf32>
    %627 = arith.addf %626, %625 : vector<2x16xf32>
    %628 = arith.divf %626, %627 : vector<2x16xf32>
    %629 = vector.extract_strided_slice %622 {offsets = [0, 16], sizes = [2, 16], strides = [1, 1]} : vector<2x64xf32> to vector<2x16xf32>
    %630 = arith.negf %629 : vector<2x16xf32>
    %631 = math.exp %630 : vector<2x16xf32>
    %cst_199 = arith.constant 1.000000e+00 : f32
    %632 = vector.broadcast %cst_199 : f32 to vector<2x16xf32>
    %633 = arith.addf %632, %631 : vector<2x16xf32>
    %634 = arith.divf %632, %633 : vector<2x16xf32>
    %635 = vector.extract_strided_slice %622 {offsets = [0, 32], sizes = [2, 16], strides = [1, 1]} : vector<2x64xf32> to vector<2x16xf32>
    %636 = math.tanh %635 : vector<2x16xf32>
    %637 = vector.extract_strided_slice %622 {offsets = [0, 48], sizes = [2, 16], strides = [1, 1]} : vector<2x64xf32> to vector<2x16xf32>
    %638 = arith.negf %637 : vector<2x16xf32>
    %639 = math.exp %638 : vector<2x16xf32>
    %cst_200 = arith.constant 1.000000e+00 : f32
    %640 = vector.broadcast %cst_200 : f32 to vector<2x16xf32>
    %641 = arith.addf %640, %639 : vector<2x16xf32>
    %642 = arith.divf %640, %641 : vector<2x16xf32>
    %643 = arith.mulf %634, %559 : vector<2x16xf32>
    %644 = arith.mulf %628, %636 : vector<2x16xf32>
    %645 = arith.addf %643, %644 : vector<2x16xf32>
    %646 = math.tanh %645 : vector<2x16xf32>
    %647 = arith.mulf %642, %646 : vector<2x16xf32>
    %648 = vector.shape_cast %618 : vector<2x1xi1> to vector<2x1xi1>
    %649 = vector.broadcast %648 : vector<2x1xi1> to vector<2x16xi1>
    %650 = arith.select %649, %647, %556 : vector<2x16xi1>, vector<2x16xf32>
    %651 = vector.shape_cast %618 : vector<2x1xi1> to vector<2x1xi1>
    %652 = vector.broadcast %651 : vector<2x1xi1> to vector<2x16xi1>
    %653 = arith.select %652, %645, %559 : vector<2x16xi1>, vector<2x16xf32>
    %cst_201 = arith.constant 0.000000e+00 : f32
    %654 = vector.shape_cast %618 : vector<2x1xi1> to vector<2x1xi1>
    %655 = vector.broadcast %654 : vector<2x1xi1> to vector<2x16xi1>
    %656 = vector.broadcast %cst_201 : f32 to vector<2x16xf32>
    %657 = arith.select %655, %647, %656 : vector<2x16xi1>, vector<2x16xf32>
    %c3_202 = arith.constant 3 : index
    %c0_203 = arith.constant 0 : index
    %c0_204 = arith.constant 0 : index
    %658 = vector.load %arg6[%c3_202, %c0_203, %c0_204] : memref<10x2x16xf32, #tpu.memory_space<vmem>>, vector<1x2x16xf32>
    %659 = vector.shape_cast %658 : vector<1x2x16xf32> to vector<2x16xf32>
    %660 = vector.shape_cast %657 : vector<2x16xf32> to vector<1x2x16xf32>
    tpu.vector_store %arg6[%c3_202, %c0_203, %c0_204], %660 {strides = array<i32>} : memref<10x2x16xf32, #tpu.memory_space<vmem>>, vector<1x2x16xf32>,
    %661 = arith.maximumf %567, %657 : vector<2x16xf32>
    %c7_205 = arith.constant 7 : index
    %c0_206 = arith.constant 0 : index
    %c0_207 = arith.constant 0 : index
    %662 = vector.load %arg2[%c7_205, %c0_206, %c0_207] : memref<10x2x1xf32, #tpu.memory_space<vmem>>, vector<1x2x1xf32>
    %663 = vector.shape_cast %662 : vector<1x2x1xf32> to vector<2x1xf32>
    %cst_208 = arith.constant 0.000000e+00 : f32
    %664 = vector.broadcast %cst_208 : f32 to vector<2x1xf32>
    %665 = arith.cmpf ogt, %663, %664 : vector<2x1xf32>
    %c7_209 = arith.constant 7 : index
    %c0_210 = arith.constant 0 : index
    %c0_211 = arith.constant 0 : index
    %666 = vector.load %arg0[%c7_209, %c0_210, %c0_211] : memref<10x2x64xf32, #tpu.memory_space<vmem>>, vector<1x2x64xf32>
    %667 = vector.shape_cast %666 : vector<1x2x64xf32> to vector<2x64xf32>
    %cst_212 = arith.constant dense<0.000000e+00> : vector<2x64xf32>
    %668 = tpu.matmul %603, %0, %cst_212 {dimension_numbers = #tpu.dot_dimension_numbers<[1], [0], [0], [1], [0, 0, 1, 1], [], []>} : vector<2x16xf32>, vector<16x64xf32>, vector<2x64xf32> -> vector<2x64xf32>
    %669 = arith.addf %667, %668 : vector<2x64xf32>
    %670 = vector.extract_strided_slice %669 {offsets = [0, 0], sizes = [2, 16], strides = [1, 1]} : vector<2x64xf32> to vector<2x16xf32>
    %671 = arith.negf %670 : vector<2x16xf32>
    %672 = math.exp %671 : vector<2x16xf32>
    %cst_213 = arith.constant 1.000000e+00 : f32
    %673 = vector.broadcast %cst_213 : f32 to vector<2x16xf32>
    %674 = arith.addf %673, %672 : vector<2x16xf32>
    %675 = arith.divf %673, %674 : vector<2x16xf32>
    %676 = vector.extract_strided_slice %669 {offsets = [0, 16], sizes = [2, 16], strides = [1, 1]} : vector<2x64xf32> to vector<2x16xf32>
    %677 = arith.negf %676 : vector<2x16xf32>
    %678 = math.exp %677 : vector<2x16xf32>
    %cst_214 = arith.constant 1.000000e+00 : f32
    %679 = vector.broadcast %cst_214 : f32 to vector<2x16xf32>
    %680 = arith.addf %679, %678 : vector<2x16xf32>
    %681 = arith.divf %679, %680 : vector<2x16xf32>
    %682 = vector.extract_strided_slice %669 {offsets = [0, 32], sizes = [2, 16], strides = [1, 1]} : vector<2x64xf32> to vector<2x16xf32>
    %683 = math.tanh %682 : vector<2x16xf32>
    %684 = vector.extract_strided_slice %669 {offsets = [0, 48], sizes = [2, 16], strides = [1, 1]} : vector<2x64xf32> to vector<2x16xf32>
    %685 = arith.negf %684 : vector<2x16xf32>
    %686 = math.exp %685 : vector<2x16xf32>
    %cst_215 = arith.constant 1.000000e+00 : f32
    %687 = vector.broadcast %cst_215 : f32 to vector<2x16xf32>
    %688 = arith.addf %687, %686 : vector<2x16xf32>
    %689 = arith.divf %687, %688 : vector<2x16xf32>
    %690 = arith.mulf %681, %606 : vector<2x16xf32>
    %691 = arith.mulf %675, %683 : vector<2x16xf32>
    %692 = arith.addf %690, %691 : vector<2x16xf32>
    %693 = math.tanh %692 : vector<2x16xf32>
    %694 = arith.mulf %689, %693 : vector<2x16xf32>
    %695 = vector.shape_cast %665 : vector<2x1xi1> to vector<2x1xi1>
    %696 = vector.broadcast %695 : vector<2x1xi1> to vector<2x16xi1>
    %697 = arith.select %696, %694, %603 : vector<2x16xi1>, vector<2x16xf32>
    %698 = vector.shape_cast %665 : vector<2x1xi1> to vector<2x1xi1>
    %699 = vector.broadcast %698 : vector<2x1xi1> to vector<2x16xi1>
    %700 = arith.select %699, %692, %606 : vector<2x16xi1>, vector<2x16xf32>
    %cst_216 = arith.constant 0.000000e+00 : f32
    %701 = vector.shape_cast %665 : vector<2x1xi1> to vector<2x1xi1>
    %702 = vector.broadcast %701 : vector<2x1xi1> to vector<2x16xi1>
    %703 = vector.broadcast %cst_216 : f32 to vector<2x16xf32>
    %704 = arith.select %702, %694, %703 : vector<2x16xi1>, vector<2x16xf32>
    %c7_217 = arith.constant 7 : index
    %c0_218 = arith.constant 0 : index
    %c0_219 = arith.constant 0 : index
    %705 = vector.load %arg5[%c7_217, %c0_218, %c0_219] : memref<10x2x16xf32, #tpu.memory_space<vmem>>, vector<1x2x16xf32>
    %706 = vector.shape_cast %705 : vector<1x2x16xf32> to vector<2x16xf32>
    %707 = vector.shape_cast %704 : vector<2x16xf32> to vector<1x2x16xf32>
    tpu.vector_store %arg5[%c7_217, %c0_218, %c0_219], %707 {strides = array<i32>} : memref<10x2x16xf32, #tpu.memory_space<vmem>>, vector<1x2x16xf32>,
    %708 = arith.maximumf %614, %704 : vector<2x16xf32>
    %c2_220 = arith.constant 2 : index
    %c0_221 = arith.constant 0 : index
    %c0_222 = arith.constant 0 : index
    %709 = vector.load %arg2[%c2_220, %c0_221, %c0_222] : memref<10x2x1xf32, #tpu.memory_space<vmem>>, vector<1x2x1xf32>
    %710 = vector.shape_cast %709 : vector<1x2x1xf32> to vector<2x1xf32>
    %cst_223 = arith.constant 0.000000e+00 : f32
    %711 = vector.broadcast %cst_223 : f32 to vector<2x1xf32>
    %712 = arith.cmpf ogt, %710, %711 : vector<2x1xf32>
    %c2_224 = arith.constant 2 : index
    %c0_225 = arith.constant 0 : index
    %c0_226 = arith.constant 0 : index
    %713 = vector.load %arg1[%c2_224, %c0_225, %c0_226] : memref<10x2x64xf32, #tpu.memory_space<vmem>>, vector<1x2x64xf32>
    %714 = vector.shape_cast %713 : vector<1x2x64xf32> to vector<2x64xf32>
    %cst_227 = arith.constant dense<0.000000e+00> : vector<2x64xf32>
    %715 = tpu.matmul %650, %1, %cst_227 {dimension_numbers = #tpu.dot_dimension_numbers<[1], [0], [0], [1], [0, 0, 1, 1], [], []>} : vector<2x16xf32>, vector<16x64xf32>, vector<2x64xf32> -> vector<2x64xf32>
    %716 = arith.addf %714, %715 : vector<2x64xf32>
    %717 = vector.extract_strided_slice %716 {offsets = [0, 0], sizes = [2, 16], strides = [1, 1]} : vector<2x64xf32> to vector<2x16xf32>
    %718 = arith.negf %717 : vector<2x16xf32>
    %719 = math.exp %718 : vector<2x16xf32>
    %cst_228 = arith.constant 1.000000e+00 : f32
    %720 = vector.broadcast %cst_228 : f32 to vector<2x16xf32>
    %721 = arith.addf %720, %719 : vector<2x16xf32>
    %722 = arith.divf %720, %721 : vector<2x16xf32>
    %723 = vector.extract_strided_slice %716 {offsets = [0, 16], sizes = [2, 16], strides = [1, 1]} : vector<2x64xf32> to vector<2x16xf32>
    %724 = arith.negf %723 : vector<2x16xf32>
    %725 = math.exp %724 : vector<2x16xf32>
    %cst_229 = arith.constant 1.000000e+00 : f32
    %726 = vector.broadcast %cst_229 : f32 to vector<2x16xf32>
    %727 = arith.addf %726, %725 : vector<2x16xf32>
    %728 = arith.divf %726, %727 : vector<2x16xf32>
    %729 = vector.extract_strided_slice %716 {offsets = [0, 32], sizes = [2, 16], strides = [1, 1]} : vector<2x64xf32> to vector<2x16xf32>
    %730 = math.tanh %729 : vector<2x16xf32>
    %731 = vector.extract_strided_slice %716 {offsets = [0, 48], sizes = [2, 16], strides = [1, 1]} : vector<2x64xf32> to vector<2x16xf32>
    %732 = arith.negf %731 : vector<2x16xf32>
    %733 = math.exp %732 : vector<2x16xf32>
    %cst_230 = arith.constant 1.000000e+00 : f32
    %734 = vector.broadcast %cst_230 : f32 to vector<2x16xf32>
    %735 = arith.addf %734, %733 : vector<2x16xf32>
    %736 = arith.divf %734, %735 : vector<2x16xf32>
    %737 = arith.mulf %728, %653 : vector<2x16xf32>
    %738 = arith.mulf %722, %730 : vector<2x16xf32>
    %739 = arith.addf %737, %738 : vector<2x16xf32>
    %740 = math.tanh %739 : vector<2x16xf32>
    %741 = arith.mulf %736, %740 : vector<2x16xf32>
    %742 = vector.shape_cast %712 : vector<2x1xi1> to vector<2x1xi1>
    %743 = vector.broadcast %742 : vector<2x1xi1> to vector<2x16xi1>
    %744 = arith.select %743, %741, %650 : vector<2x16xi1>, vector<2x16xf32>
    %745 = vector.shape_cast %712 : vector<2x1xi1> to vector<2x1xi1>
    %746 = vector.broadcast %745 : vector<2x1xi1> to vector<2x16xi1>
    %747 = arith.select %746, %739, %653 : vector<2x16xi1>, vector<2x16xf32>
    %cst_231 = arith.constant 0.000000e+00 : f32
    %748 = vector.shape_cast %712 : vector<2x1xi1> to vector<2x1xi1>
    %749 = vector.broadcast %748 : vector<2x1xi1> to vector<2x16xi1>
    %750 = vector.broadcast %cst_231 : f32 to vector<2x16xf32>
    %751 = arith.select %749, %741, %750 : vector<2x16xi1>, vector<2x16xf32>
    %c2_232 = arith.constant 2 : index
    %c0_233 = arith.constant 0 : index
    %c0_234 = arith.constant 0 : index
    %752 = vector.load %arg6[%c2_232, %c0_233, %c0_234] : memref<10x2x16xf32, #tpu.memory_space<vmem>>, vector<1x2x16xf32>
    %753 = vector.shape_cast %752 : vector<1x2x16xf32> to vector<2x16xf32>
    %754 = vector.shape_cast %751 : vector<2x16xf32> to vector<1x2x16xf32>
    tpu.vector_store %arg6[%c2_232, %c0_233, %c0_234], %754 {strides = array<i32>} : memref<10x2x16xf32, #tpu.memory_space<vmem>>, vector<1x2x16xf32>,
    %755 = arith.maximumf %661, %751 : vector<2x16xf32>
    %c8_235 = arith.constant 8 : index
    %c0_236 = arith.constant 0 : index
    %c0_237 = arith.constant 0 : index
    %756 = vector.load %arg2[%c8_235, %c0_236, %c0_237] : memref<10x2x1xf32, #tpu.memory_space<vmem>>, vector<1x2x1xf32>
    %757 = vector.shape_cast %756 : vector<1x2x1xf32> to vector<2x1xf32>
    %cst_238 = arith.constant 0.000000e+00 : f32
    %758 = vector.broadcast %cst_238 : f32 to vector<2x1xf32>
    %759 = arith.cmpf ogt, %757, %758 : vector<2x1xf32>
    %c8_239 = arith.constant 8 : index
    %c0_240 = arith.constant 0 : index
    %c0_241 = arith.constant 0 : index
    %760 = vector.load %arg0[%c8_239, %c0_240, %c0_241] : memref<10x2x64xf32, #tpu.memory_space<vmem>>, vector<1x2x64xf32>
    %761 = vector.shape_cast %760 : vector<1x2x64xf32> to vector<2x64xf32>
    %cst_242 = arith.constant dense<0.000000e+00> : vector<2x64xf32>
    %762 = tpu.matmul %697, %0, %cst_242 {dimension_numbers = #tpu.dot_dimension_numbers<[1], [0], [0], [1], [0, 0, 1, 1], [], []>} : vector<2x16xf32>, vector<16x64xf32>, vector<2x64xf32> -> vector<2x64xf32>
    %763 = arith.addf %761, %762 : vector<2x64xf32>
    %764 = vector.extract_strided_slice %763 {offsets = [0, 0], sizes = [2, 16], strides = [1, 1]} : vector<2x64xf32> to vector<2x16xf32>
    %765 = arith.negf %764 : vector<2x16xf32>
    %766 = math.exp %765 : vector<2x16xf32>
    %cst_243 = arith.constant 1.000000e+00 : f32
    %767 = vector.broadcast %cst_243 : f32 to vector<2x16xf32>
    %768 = arith.addf %767, %766 : vector<2x16xf32>
    %769 = arith.divf %767, %768 : vector<2x16xf32>
    %770 = vector.extract_strided_slice %763 {offsets = [0, 16], sizes = [2, 16], strides = [1, 1]} : vector<2x64xf32> to vector<2x16xf32>
    %771 = arith.negf %770 : vector<2x16xf32>
    %772 = math.exp %771 : vector<2x16xf32>
    %cst_244 = arith.constant 1.000000e+00 : f32
    %773 = vector.broadcast %cst_244 : f32 to vector<2x16xf32>
    %774 = arith.addf %773, %772 : vector<2x16xf32>
    %775 = arith.divf %773, %774 : vector<2x16xf32>
    %776 = vector.extract_strided_slice %763 {offsets = [0, 32], sizes = [2, 16], strides = [1, 1]} : vector<2x64xf32> to vector<2x16xf32>
    %777 = math.tanh %776 : vector<2x16xf32>
    %778 = vector.extract_strided_slice %763 {offsets = [0, 48], sizes = [2, 16], strides = [1, 1]} : vector<2x64xf32> to vector<2x16xf32>
    %779 = arith.negf %778 : vector<2x16xf32>
    %780 = math.exp %779 : vector<2x16xf32>
    %cst_245 = arith.constant 1.000000e+00 : f32
    %781 = vector.broadcast %cst_245 : f32 to vector<2x16xf32>
    %782 = arith.addf %781, %780 : vector<2x16xf32>
    %783 = arith.divf %781, %782 : vector<2x16xf32>
    %784 = arith.mulf %775, %700 : vector<2x16xf32>
    %785 = arith.mulf %769, %777 : vector<2x16xf32>
    %786 = arith.addf %784, %785 : vector<2x16xf32>
    %787 = math.tanh %786 : vector<2x16xf32>
    %788 = arith.mulf %783, %787 : vector<2x16xf32>
    %789 = vector.shape_cast %759 : vector<2x1xi1> to vector<2x1xi1>
    %790 = vector.broadcast %789 : vector<2x1xi1> to vector<2x16xi1>
    %791 = arith.select %790, %788, %697 : vector<2x16xi1>, vector<2x16xf32>
    %792 = vector.shape_cast %759 : vector<2x1xi1> to vector<2x1xi1>
    %793 = vector.broadcast %792 : vector<2x1xi1> to vector<2x16xi1>
    %794 = arith.select %793, %786, %700 : vector<2x16xi1>, vector<2x16xf32>
    %cst_246 = arith.constant 0.000000e+00 : f32
    %795 = vector.shape_cast %759 : vector<2x1xi1> to vector<2x1xi1>
    %796 = vector.broadcast %795 : vector<2x1xi1> to vector<2x16xi1>
    %797 = vector.broadcast %cst_246 : f32 to vector<2x16xf32>
    %798 = arith.select %796, %788, %797 : vector<2x16xi1>, vector<2x16xf32>
    %c8_247 = arith.constant 8 : index
    %c0_248 = arith.constant 0 : index
    %c0_249 = arith.constant 0 : index
    %799 = vector.load %arg5[%c8_247, %c0_248, %c0_249] : memref<10x2x16xf32, #tpu.memory_space<vmem>>, vector<1x2x16xf32>
    %800 = vector.shape_cast %799 : vector<1x2x16xf32> to vector<2x16xf32>
    %801 = vector.shape_cast %798 : vector<2x16xf32> to vector<1x2x16xf32>
    tpu.vector_store %arg5[%c8_247, %c0_248, %c0_249], %801 {strides = array<i32>} : memref<10x2x16xf32, #tpu.memory_space<vmem>>, vector<1x2x16xf32>,
    %802 = arith.maximumf %708, %798 : vector<2x16xf32>
    %c1_250 = arith.constant 1 : index
    %c0_251 = arith.constant 0 : index
    %c0_252 = arith.constant 0 : index
    %803 = vector.load %arg2[%c1_250, %c0_251, %c0_252] : memref<10x2x1xf32, #tpu.memory_space<vmem>>, vector<1x2x1xf32>
    %804 = vector.shape_cast %803 : vector<1x2x1xf32> to vector<2x1xf32>
    %cst_253 = arith.constant 0.000000e+00 : f32
    %805 = vector.broadcast %cst_253 : f32 to vector<2x1xf32>
    %806 = arith.cmpf ogt, %804, %805 : vector<2x1xf32>
    %c1_254 = arith.constant 1 : index
    %c0_255 = arith.constant 0 : index
    %c0_256 = arith.constant 0 : index
    %807 = vector.load %arg1[%c1_254, %c0_255, %c0_256] : memref<10x2x64xf32, #tpu.memory_space<vmem>>, vector<1x2x64xf32>
    %808 = vector.shape_cast %807 : vector<1x2x64xf32> to vector<2x64xf32>
    %cst_257 = arith.constant dense<0.000000e+00> : vector<2x64xf32>
    %809 = tpu.matmul %744, %1, %cst_257 {dimension_numbers = #tpu.dot_dimension_numbers<[1], [0], [0], [1], [0, 0, 1, 1], [], []>} : vector<2x16xf32>, vector<16x64xf32>, vector<2x64xf32> -> vector<2x64xf32>
    %810 = arith.addf %808, %809 : vector<2x64xf32>
    %811 = vector.extract_strided_slice %810 {offsets = [0, 0], sizes = [2, 16], strides = [1, 1]} : vector<2x64xf32> to vector<2x16xf32>
    %812 = arith.negf %811 : vector<2x16xf32>
    %813 = math.exp %812 : vector<2x16xf32>
    %cst_258 = arith.constant 1.000000e+00 : f32
    %814 = vector.broadcast %cst_258 : f32 to vector<2x16xf32>
    %815 = arith.addf %814, %813 : vector<2x16xf32>
    %816 = arith.divf %814, %815 : vector<2x16xf32>
    %817 = vector.extract_strided_slice %810 {offsets = [0, 16], sizes = [2, 16], strides = [1, 1]} : vector<2x64xf32> to vector<2x16xf32>
    %818 = arith.negf %817 : vector<2x16xf32>
    %819 = math.exp %818 : vector<2x16xf32>
    %cst_259 = arith.constant 1.000000e+00 : f32
    %820 = vector.broadcast %cst_259 : f32 to vector<2x16xf32>
    %821 = arith.addf %820, %819 : vector<2x16xf32>
    %822 = arith.divf %820, %821 : vector<2x16xf32>
    %823 = vector.extract_strided_slice %810 {offsets = [0, 32], sizes = [2, 16], strides = [1, 1]} : vector<2x64xf32> to vector<2x16xf32>
    %824 = math.tanh %823 : vector<2x16xf32>
    %825 = vector.extract_strided_slice %810 {offsets = [0, 48], sizes = [2, 16], strides = [1, 1]} : vector<2x64xf32> to vector<2x16xf32>
    %826 = arith.negf %825 : vector<2x16xf32>
    %827 = math.exp %826 : vector<2x16xf32>
    %cst_260 = arith.constant 1.000000e+00 : f32
    %828 = vector.broadcast %cst_260 : f32 to vector<2x16xf32>
    %829 = arith.addf %828, %827 : vector<2x16xf32>
    %830 = arith.divf %828, %829 : vector<2x16xf32>
    %831 = arith.mulf %822, %747 : vector<2x16xf32>
    %832 = arith.mulf %816, %824 : vector<2x16xf32>
    %833 = arith.addf %831, %832 : vector<2x16xf32>
    %834 = math.tanh %833 : vector<2x16xf32>
    %835 = arith.mulf %830, %834 : vector<2x16xf32>
    %836 = vector.shape_cast %806 : vector<2x1xi1> to vector<2x1xi1>
    %837 = vector.broadcast %836 : vector<2x1xi1> to vector<2x16xi1>
    %838 = arith.select %837, %835, %744 : vector<2x16xi1>, vector<2x16xf32>
    %839 = vector.shape_cast %806 : vector<2x1xi1> to vector<2x1xi1>
    %840 = vector.broadcast %839 : vector<2x1xi1> to vector<2x16xi1>
    %841 = arith.select %840, %833, %747 : vector<2x16xi1>, vector<2x16xf32>
    %cst_261 = arith.constant 0.000000e+00 : f32
    %842 = vector.shape_cast %806 : vector<2x1xi1> to vector<2x1xi1>
    %843 = vector.broadcast %842 : vector<2x1xi1> to vector<2x16xi1>
    %844 = vector.broadcast %cst_261 : f32 to vector<2x16xf32>
    %845 = arith.select %843, %835, %844 : vector<2x16xi1>, vector<2x16xf32>
    %c1_262 = arith.constant 1 : index
    %c0_263 = arith.constant 0 : index
    %c0_264 = arith.constant 0 : index
    %846 = vector.load %arg6[%c1_262, %c0_263, %c0_264] : memref<10x2x16xf32, #tpu.memory_space<vmem>>, vector<1x2x16xf32>
    %847 = vector.shape_cast %846 : vector<1x2x16xf32> to vector<2x16xf32>
    %848 = vector.shape_cast %845 : vector<2x16xf32> to vector<1x2x16xf32>
    tpu.vector_store %arg6[%c1_262, %c0_263, %c0_264], %848 {strides = array<i32>} : memref<10x2x16xf32, #tpu.memory_space<vmem>>, vector<1x2x16xf32>,
    %849 = arith.maximumf %755, %845 : vector<2x16xf32>
    %c9_265 = arith.constant 9 : index
    %c0_266 = arith.constant 0 : index
    %c0_267 = arith.constant 0 : index
    %850 = vector.load %arg2[%c9_265, %c0_266, %c0_267] : memref<10x2x1xf32, #tpu.memory_space<vmem>>, vector<1x2x1xf32>
    %851 = vector.shape_cast %850 : vector<1x2x1xf32> to vector<2x1xf32>
    %cst_268 = arith.constant 0.000000e+00 : f32
    %852 = vector.broadcast %cst_268 : f32 to vector<2x1xf32>
    %853 = arith.cmpf ogt, %851, %852 : vector<2x1xf32>
    %c9_269 = arith.constant 9 : index
    %c0_270 = arith.constant 0 : index
    %c0_271 = arith.constant 0 : index
    %854 = vector.load %arg0[%c9_269, %c0_270, %c0_271] : memref<10x2x64xf32, #tpu.memory_space<vmem>>, vector<1x2x64xf32>
    %855 = vector.shape_cast %854 : vector<1x2x64xf32> to vector<2x64xf32>
    %cst_272 = arith.constant dense<0.000000e+00> : vector<2x64xf32>
    %856 = tpu.matmul %791, %0, %cst_272 {dimension_numbers = #tpu.dot_dimension_numbers<[1], [0], [0], [1], [0, 0, 1, 1], [], []>} : vector<2x16xf32>, vector<16x64xf32>, vector<2x64xf32> -> vector<2x64xf32>
    %857 = arith.addf %855, %856 : vector<2x64xf32>
    %858 = vector.extract_strided_slice %857 {offsets = [0, 0], sizes = [2, 16], strides = [1, 1]} : vector<2x64xf32> to vector<2x16xf32>
    %859 = arith.negf %858 : vector<2x16xf32>
    %860 = math.exp %859 : vector<2x16xf32>
    %cst_273 = arith.constant 1.000000e+00 : f32
    %861 = vector.broadcast %cst_273 : f32 to vector<2x16xf32>
    %862 = arith.addf %861, %860 : vector<2x16xf32>
    %863 = arith.divf %861, %862 : vector<2x16xf32>
    %864 = vector.extract_strided_slice %857 {offsets = [0, 16], sizes = [2, 16], strides = [1, 1]} : vector<2x64xf32> to vector<2x16xf32>
    %865 = arith.negf %864 : vector<2x16xf32>
    %866 = math.exp %865 : vector<2x16xf32>
    %cst_274 = arith.constant 1.000000e+00 : f32
    %867 = vector.broadcast %cst_274 : f32 to vector<2x16xf32>
    %868 = arith.addf %867, %866 : vector<2x16xf32>
    %869 = arith.divf %867, %868 : vector<2x16xf32>
    %870 = vector.extract_strided_slice %857 {offsets = [0, 32], sizes = [2, 16], strides = [1, 1]} : vector<2x64xf32> to vector<2x16xf32>
    %871 = math.tanh %870 : vector<2x16xf32>
    %872 = vector.extract_strided_slice %857 {offsets = [0, 48], sizes = [2, 16], strides = [1, 1]} : vector<2x64xf32> to vector<2x16xf32>
    %873 = arith.negf %872 : vector<2x16xf32>
    %874 = math.exp %873 : vector<2x16xf32>
    %cst_275 = arith.constant 1.000000e+00 : f32
    %875 = vector.broadcast %cst_275 : f32 to vector<2x16xf32>
    %876 = arith.addf %875, %874 : vector<2x16xf32>
    %877 = arith.divf %875, %876 : vector<2x16xf32>
    %878 = arith.mulf %869, %794 : vector<2x16xf32>
    %879 = arith.mulf %863, %871 : vector<2x16xf32>
    %880 = arith.addf %878, %879 : vector<2x16xf32>
    %881 = math.tanh %880 : vector<2x16xf32>
    %882 = arith.mulf %877, %881 : vector<2x16xf32>
    %cst_276 = arith.constant 0.000000e+00 : f32
    %883 = vector.shape_cast %853 : vector<2x1xi1> to vector<2x1xi1>
    %884 = vector.broadcast %883 : vector<2x1xi1> to vector<2x16xi1>
    %885 = vector.broadcast %cst_276 : f32 to vector<2x16xf32>
    %886 = arith.select %884, %882, %885 : vector<2x16xi1>, vector<2x16xf32>
    %c9_277 = arith.constant 9 : index
    %c0_278 = arith.constant 0 : index
    %c0_279 = arith.constant 0 : index
    %887 = vector.load %arg5[%c9_277, %c0_278, %c0_279] : memref<10x2x16xf32, #tpu.memory_space<vmem>>, vector<1x2x16xf32>
    %888 = vector.shape_cast %887 : vector<1x2x16xf32> to vector<2x16xf32>
    %889 = vector.shape_cast %886 : vector<2x16xf32> to vector<1x2x16xf32>
    tpu.vector_store %arg5[%c9_277, %c0_278, %c0_279], %889 {strides = array<i32>} : memref<10x2x16xf32, #tpu.memory_space<vmem>>, vector<1x2x16xf32>,
    %890 = arith.maximumf %802, %886 : vector<2x16xf32>
    %c0_280 = arith.constant 0 : index
    %c0_281 = arith.constant 0 : index
    %c0_282 = arith.constant 0 : index
    %891 = vector.load %arg2[%c0_280, %c0_281, %c0_282] : memref<10x2x1xf32, #tpu.memory_space<vmem>>, vector<1x2x1xf32>
    %892 = vector.shape_cast %891 : vector<1x2x1xf32> to vector<2x1xf32>
    %cst_283 = arith.constant 0.000000e+00 : f32
    %893 = vector.broadcast %cst_283 : f32 to vector<2x1xf32>
    %894 = arith.cmpf ogt, %892, %893 : vector<2x1xf32>
    %c0_284 = arith.constant 0 : index
    %c0_285 = arith.constant 0 : index
    %c0_286 = arith.constant 0 : index
    %895 = vector.load %arg1[%c0_284, %c0_285, %c0_286] : memref<10x2x64xf32, #tpu.memory_space<vmem>>, vector<1x2x64xf32>
    %896 = vector.shape_cast %895 : vector<1x2x64xf32> to vector<2x64xf32>
    %cst_287 = arith.constant dense<0.000000e+00> : vector<2x64xf32>
    %897 = tpu.matmul %838, %1, %cst_287 {dimension_numbers = #tpu.dot_dimension_numbers<[1], [0], [0], [1], [0, 0, 1, 1], [], []>} : vector<2x16xf32>, vector<16x64xf32>, vector<2x64xf32> -> vector<2x64xf32>
    %898 = arith.addf %896, %897 : vector<2x64xf32>
    %899 = vector.extract_strided_slice %898 {offsets = [0, 0], sizes = [2, 16], strides = [1, 1]} : vector<2x64xf32> to vector<2x16xf32>
    %900 = arith.negf %899 : vector<2x16xf32>
    %901 = math.exp %900 : vector<2x16xf32>
    %cst_288 = arith.constant 1.000000e+00 : f32
    %902 = vector.broadcast %cst_288 : f32 to vector<2x16xf32>
    %903 = arith.addf %902, %901 : vector<2x16xf32>
    %904 = arith.divf %902, %903 : vector<2x16xf32>
    %905 = vector.extract_strided_slice %898 {offsets = [0, 16], sizes = [2, 16], strides = [1, 1]} : vector<2x64xf32> to vector<2x16xf32>
    %906 = arith.negf %905 : vector<2x16xf32>
    %907 = math.exp %906 : vector<2x16xf32>
    %cst_289 = arith.constant 1.000000e+00 : f32
    %908 = vector.broadcast %cst_289 : f32 to vector<2x16xf32>
    %909 = arith.addf %908, %907 : vector<2x16xf32>
    %910 = arith.divf %908, %909 : vector<2x16xf32>
    %911 = vector.extract_strided_slice %898 {offsets = [0, 32], sizes = [2, 16], strides = [1, 1]} : vector<2x64xf32> to vector<2x16xf32>
    %912 = math.tanh %911 : vector<2x16xf32>
    %913 = vector.extract_strided_slice %898 {offsets = [0, 48], sizes = [2, 16], strides = [1, 1]} : vector<2x64xf32> to vector<2x16xf32>
    %914 = arith.negf %913 : vector<2x16xf32>
    %915 = math.exp %914 : vector<2x16xf32>
    %cst_290 = arith.constant 1.000000e+00 : f32
    %916 = vector.broadcast %cst_290 : f32 to vector<2x16xf32>
    %917 = arith.addf %916, %915 : vector<2x16xf32>
    %918 = arith.divf %916, %917 : vector<2x16xf32>
    %919 = arith.mulf %910, %841 : vector<2x16xf32>
    %920 = arith.mulf %904, %912 : vector<2x16xf32>
    %921 = arith.addf %919, %920 : vector<2x16xf32>
    %922 = math.tanh %921 : vector<2x16xf32>
    %923 = arith.mulf %918, %922 : vector<2x16xf32>
    %cst_291 = arith.constant 0.000000e+00 : f32
    %924 = vector.shape_cast %894 : vector<2x1xi1> to vector<2x1xi1>
    %925 = vector.broadcast %924 : vector<2x1xi1> to vector<2x16xi1>
    %926 = vector.broadcast %cst_291 : f32 to vector<2x16xf32>
    %927 = arith.select %925, %923, %926 : vector<2x16xi1>, vector<2x16xf32>
    %c0_292 = arith.constant 0 : index
    %c0_293 = arith.constant 0 : index
    %c0_294 = arith.constant 0 : index
    %928 = vector.load %arg6[%c0_292, %c0_293, %c0_294] : memref<10x2x16xf32, #tpu.memory_space<vmem>>, vector<1x2x16xf32>
    %929 = vector.shape_cast %928 : vector<1x2x16xf32> to vector<2x16xf32>
    %930 = vector.shape_cast %927 : vector<2x16xf32> to vector<1x2x16xf32>
    tpu.vector_store %arg6[%c0_292, %c0_293, %c0_294], %930 {strides = array<i32>} : memref<10x2x16xf32, #tpu.memory_space<vmem>>, vector<1x2x16xf32>,
    %931 = arith.maximumf %849, %927 : vector<2x16xf32>
    %c0_295 = arith.constant 0 : index
    %c0_296 = arith.constant 0 : index
    %932 = vector.load %arg7[%c0_295, %c0_296] : memref<2x16xf32, #tpu.memory_space<vmem>>, vector<2x16xf32>
    tpu.vector_store %arg7[%c0_295, %c0_296], %890 {strides = array<i32>} : memref<2x16xf32, #tpu.memory_space<vmem>>, vector<2x16xf32>,
    %c0_297 = arith.constant 0 : index
    %c0_298 = arith.constant 0 : index
    %933 = vector.load %arg8[%c0_297, %c0_298] : memref<2x16xf32, #tpu.memory_space<vmem>>, vector<2x16xf32>
    tpu.vector_store %arg8[%c0_297, %c0_298], %931 {strides = array<i32>} : memref<2x16xf32, #tpu.memory_space<vmem>>, vector<2x16xf32>,
    return
  }
}

module attributes {stable_mosaic.version = 11 : i64} {
  func.func @_bilstm_layer_kernel(%arg0: memref<10x2x64xf32, #tpu.memory_space<vmem>>, %arg1: memref<10x2x64xf32, #tpu.memory_space<vmem>>, %arg2: memref<10x2x1xf32, #tpu.memory_space<vmem>>, %arg3: memref<16x64xf32, #tpu.memory_space<vmem>>, %arg4: memref<16x64xf32, #tpu.memory_space<vmem>>, %arg5: memref<10x2x16xf32, #tpu.memory_space<vmem>>, %arg6: memref<10x2x16xf32, #tpu.memory_space<vmem>>, %arg7: memref<2x16xf32, #tpu.memory_space<vmem>>, %arg8: memref<2x16xf32, #tpu.memory_space<vmem>>) attributes {dimension_semantics = [], scalar_prefetch = 0 : i64, scratch_operands = 0 : i64, tpu.core_type = #tpu.core_type<tc>} {
    %c0 = arith.constant 0 : index
    %c0_0 = arith.constant 0 : index
    %0 = vector.load %arg3[%c0, %c0_0] : memref<16x64xf32, #tpu.memory_space<vmem>>, vector<16x64xf32>
    %c0_1 = arith.constant 0 : index
    %c0_2 = arith.constant 0 : index
    %1 = vector.load %arg4[%c0_1, %c0_2] : memref<16x64xf32, #tpu.memory_space<vmem>>, vector<16x64xf32>
    %cst = arith.constant 0.000000e+00 : f32
    %2 = vector.broadcast %cst : f32 to vector<2x16xf32>
    %cst_3 = arith.constant 0xFF800000 : f32
    %3 = vector.broadcast %cst_3 : f32 to vector<2x16xf32>
    %c0_4 = arith.constant 0 : index
    %c0_5 = arith.constant 0 : index
    %c0_6 = arith.constant 0 : index
    %4 = vector.load %arg2[%c0_4, %c0_5, %c0_6] : memref<10x2x1xf32, #tpu.memory_space<vmem>>, vector<1x2x1xf32>
    %5 = vector.shape_cast %4 : vector<1x2x1xf32> to vector<2x1xf32>
    %cst_7 = arith.constant 0.000000e+00 : f32
    %6 = vector.broadcast %cst_7 : f32 to vector<2x1xf32>
    %7 = arith.cmpf ogt, %5, %6 : vector<2x1xf32>
    %c0_8 = arith.constant 0 : index
    %c0_9 = arith.constant 0 : index
    %c0_10 = arith.constant 0 : index
    %8 = vector.load %arg0[%c0_8, %c0_9, %c0_10] : memref<10x2x64xf32, #tpu.memory_space<vmem>>, vector<1x2x64xf32>
    %9 = vector.shape_cast %8 : vector<1x2x64xf32> to vector<2x64xf32>
    %cst_11 = arith.constant dense<0.000000e+00> : vector<2x64xf32>
    %10 = tpu.matmul %2, %0, %cst_11 {dimension_numbers = #tpu.dot_dimension_numbers<[1], [0], [0], [1], [0, 0, 1, 1], [], []>} : vector<2x16xf32>, vector<16x64xf32>, vector<2x64xf32> -> vector<2x64xf32>
    %11 = arith.addf %9, %10 : vector<2x64xf32>
    %12 = vector.extract_strided_slice %11 {offsets = [0, 0], sizes = [2, 16], strides = [1, 1]} : vector<2x64xf32> to vector<2x16xf32>
    %13 = arith.negf %12 : vector<2x16xf32>
    %14 = math.exp %13 : vector<2x16xf32>
    %cst_12 = arith.constant 1.000000e+00 : f32
    %15 = vector.broadcast %cst_12 : f32 to vector<2x16xf32>
    %16 = arith.addf %15, %14 : vector<2x16xf32>
    %17 = arith.divf %15, %16 : vector<2x16xf32>
    %18 = vector.extract_strided_slice %11 {offsets = [0, 16], sizes = [2, 16], strides = [1, 1]} : vector<2x64xf32> to vector<2x16xf32>
    %19 = arith.negf %18 : vector<2x16xf32>
    %20 = math.exp %19 : vector<2x16xf32>
    %cst_13 = arith.constant 1.000000e+00 : f32
    %21 = vector.broadcast %cst_13 : f32 to vector<2x16xf32>
    %22 = arith.addf %21, %20 : vector<2x16xf32>
    %23 = arith.divf %21, %22 : vector<2x16xf32>
    %24 = vector.extract_strided_slice %11 {offsets = [0, 32], sizes = [2, 16], strides = [1, 1]} : vector<2x64xf32> to vector<2x16xf32>
    %25 = math.tanh %24 : vector<2x16xf32>
    %26 = vector.extract_strided_slice %11 {offsets = [0, 48], sizes = [2, 16], strides = [1, 1]} : vector<2x64xf32> to vector<2x16xf32>
    %27 = arith.negf %26 : vector<2x16xf32>
    %28 = math.exp %27 : vector<2x16xf32>
    %cst_14 = arith.constant 1.000000e+00 : f32
    %29 = vector.broadcast %cst_14 : f32 to vector<2x16xf32>
    %30 = arith.addf %29, %28 : vector<2x16xf32>
    %31 = arith.divf %29, %30 : vector<2x16xf32>
    %32 = arith.mulf %23, %2 : vector<2x16xf32>
    %33 = arith.mulf %17, %25 : vector<2x16xf32>
    %34 = arith.addf %32, %33 : vector<2x16xf32>
    %35 = math.tanh %34 : vector<2x16xf32>
    %36 = arith.mulf %31, %35 : vector<2x16xf32>
    %37 = vector.shape_cast %7 : vector<2x1xi1> to vector<2x1xi1>
    %38 = vector.broadcast %37 : vector<2x1xi1> to vector<2x16xi1>
    %39 = arith.select %38, %36, %2 : vector<2x16xi1>, vector<2x16xf32>
    %40 = vector.shape_cast %7 : vector<2x1xi1> to vector<2x1xi1>
    %41 = vector.broadcast %40 : vector<2x1xi1> to vector<2x16xi1>
    %42 = arith.select %41, %34, %2 : vector<2x16xi1>, vector<2x16xf32>
    %cst_15 = arith.constant 0.000000e+00 : f32
    %43 = vector.shape_cast %7 : vector<2x1xi1> to vector<2x1xi1>
    %44 = vector.broadcast %43 : vector<2x1xi1> to vector<2x16xi1>
    %45 = vector.broadcast %cst_15 : f32 to vector<2x16xf32>
    %46 = arith.select %44, %36, %45 : vector<2x16xi1>, vector<2x16xf32>
    %c0_16 = arith.constant 0 : index
    %c0_17 = arith.constant 0 : index
    %c0_18 = arith.constant 0 : index
    %47 = vector.load %arg5[%c0_16, %c0_17, %c0_18] : memref<10x2x16xf32, #tpu.memory_space<vmem>>, vector<1x2x16xf32>
    %48 = vector.shape_cast %47 : vector<1x2x16xf32> to vector<2x16xf32>
    %49 = vector.shape_cast %46 : vector<2x16xf32> to vector<1x2x16xf32>
    tpu.vector_store %arg5[%c0_16, %c0_17, %c0_18], %49 {strides = array<i32>} : memref<10x2x16xf32, #tpu.memory_space<vmem>>, vector<1x2x16xf32>,
    %50 = arith.maximumf %3, %46 : vector<2x16xf32>
    %c9 = arith.constant 9 : index
    %c0_19 = arith.constant 0 : index
    %c0_20 = arith.constant 0 : index
    %51 = vector.load %arg2[%c9, %c0_19, %c0_20] : memref<10x2x1xf32, #tpu.memory_space<vmem>>, vector<1x2x1xf32>
    %52 = vector.shape_cast %51 : vector<1x2x1xf32> to vector<2x1xf32>
    %cst_21 = arith.constant 0.000000e+00 : f32
    %53 = vector.broadcast %cst_21 : f32 to vector<2x1xf32>
    %54 = arith.cmpf ogt, %52, %53 : vector<2x1xf32>
    %c9_22 = arith.constant 9 : index
    %c0_23 = arith.constant 0 : index
    %c0_24 = arith.constant 0 : index
    %55 = vector.load %arg1[%c9_22, %c0_23, %c0_24] : memref<10x2x64xf32, #tpu.memory_space<vmem>>, vector<1x2x64xf32>
    %56 = vector.shape_cast %55 : vector<1x2x64xf32> to vector<2x64xf32>
    %cst_25 = arith.constant dense<0.000000e+00> : vector<2x64xf32>
    %57 = tpu.matmul %2, %1, %cst_25 {dimension_numbers = #tpu.dot_dimension_numbers<[1], [0], [0], [1], [0, 0, 1, 1], [], []>} : vector<2x16xf32>, vector<16x64xf32>, vector<2x64xf32> -> vector<2x64xf32>
    %58 = arith.addf %56, %57 : vector<2x64xf32>
    %59 = vector.extract_strided_slice %58 {offsets = [0, 0], sizes = [2, 16], strides = [1, 1]} : vector<2x64xf32> to vector<2x16xf32>
    %60 = arith.negf %59 : vector<2x16xf32>
    %61 = math.exp %60 : vector<2x16xf32>
    %cst_26 = arith.constant 1.000000e+00 : f32
    %62 = vector.broadcast %cst_26 : f32 to vector<2x16xf32>
    %63 = arith.addf %62, %61 : vector<2x16xf32>
    %64 = arith.divf %62, %63 : vector<2x16xf32>
    %65 = vector.extract_strided_slice %58 {offsets = [0, 16], sizes = [2, 16], strides = [1, 1]} : vector<2x64xf32> to vector<2x16xf32>
    %66 = arith.negf %65 : vector<2x16xf32>
    %67 = math.exp %66 : vector<2x16xf32>
    %cst_27 = arith.constant 1.000000e+00 : f32
    %68 = vector.broadcast %cst_27 : f32 to vector<2x16xf32>
    %69 = arith.addf %68, %67 : vector<2x16xf32>
    %70 = arith.divf %68, %69 : vector<2x16xf32>
    %71 = vector.extract_strided_slice %58 {offsets = [0, 32], sizes = [2, 16], strides = [1, 1]} : vector<2x64xf32> to vector<2x16xf32>
    %72 = math.tanh %71 : vector<2x16xf32>
    %73 = vector.extract_strided_slice %58 {offsets = [0, 48], sizes = [2, 16], strides = [1, 1]} : vector<2x64xf32> to vector<2x16xf32>
    %74 = arith.negf %73 : vector<2x16xf32>
    %75 = math.exp %74 : vector<2x16xf32>
    %cst_28 = arith.constant 1.000000e+00 : f32
    %76 = vector.broadcast %cst_28 : f32 to vector<2x16xf32>
    %77 = arith.addf %76, %75 : vector<2x16xf32>
    %78 = arith.divf %76, %77 : vector<2x16xf32>
    %79 = arith.mulf %70, %2 : vector<2x16xf32>
    %80 = arith.mulf %64, %72 : vector<2x16xf32>
    %81 = arith.addf %79, %80 : vector<2x16xf32>
    %82 = math.tanh %81 : vector<2x16xf32>
    %83 = arith.mulf %78, %82 : vector<2x16xf32>
    %84 = vector.shape_cast %54 : vector<2x1xi1> to vector<2x1xi1>
    %85 = vector.broadcast %84 : vector<2x1xi1> to vector<2x16xi1>
    %86 = arith.select %85, %83, %2 : vector<2x16xi1>, vector<2x16xf32>
    %87 = vector.shape_cast %54 : vector<2x1xi1> to vector<2x1xi1>
    %88 = vector.broadcast %87 : vector<2x1xi1> to vector<2x16xi1>
    %89 = arith.select %88, %81, %2 : vector<2x16xi1>, vector<2x16xf32>
    %cst_29 = arith.constant 0.000000e+00 : f32
    %90 = vector.shape_cast %54 : vector<2x1xi1> to vector<2x1xi1>
    %91 = vector.broadcast %90 : vector<2x1xi1> to vector<2x16xi1>
    %92 = vector.broadcast %cst_29 : f32 to vector<2x16xf32>
    %93 = arith.select %91, %83, %92 : vector<2x16xi1>, vector<2x16xf32>
    %c9_30 = arith.constant 9 : index
    %c0_31 = arith.constant 0 : index
    %c0_32 = arith.constant 0 : index
    %94 = vector.load %arg6[%c9_30, %c0_31, %c0_32] : memref<10x2x16xf32, #tpu.memory_space<vmem>>, vector<1x2x16xf32>
    %95 = vector.shape_cast %94 : vector<1x2x16xf32> to vector<2x16xf32>
    %96 = vector.shape_cast %93 : vector<2x16xf32> to vector<1x2x16xf32>
    tpu.vector_store %arg6[%c9_30, %c0_31, %c0_32], %96 {strides = array<i32>} : memref<10x2x16xf32, #tpu.memory_space<vmem>>, vector<1x2x16xf32>,
    %97 = arith.maximumf %3, %93 : vector<2x16xf32>
    %c1 = arith.constant 1 : index
    %c0_33 = arith.constant 0 : index
    %c0_34 = arith.constant 0 : index
    %98 = vector.load %arg2[%c1, %c0_33, %c0_34] : memref<10x2x1xf32, #tpu.memory_space<vmem>>, vector<1x2x1xf32>
    %99 = vector.shape_cast %98 : vector<1x2x1xf32> to vector<2x1xf32>
    %cst_35 = arith.constant 0.000000e+00 : f32
    %100 = vector.broadcast %cst_35 : f32 to vector<2x1xf32>
    %101 = arith.cmpf ogt, %99, %100 : vector<2x1xf32>
    %c1_36 = arith.constant 1 : index
    %c0_37 = arith.constant 0 : index
    %c0_38 = arith.constant 0 : index
    %102 = vector.load %arg0[%c1_36, %c0_37, %c0_38] : memref<10x2x64xf32, #tpu.memory_space<vmem>>, vector<1x2x64xf32>
    %103 = vector.shape_cast %102 : vector<1x2x64xf32> to vector<2x64xf32>
    %cst_39 = arith.constant dense<0.000000e+00> : vector<2x64xf32>
    %104 = tpu.matmul %39, %0, %cst_39 {dimension_numbers = #tpu.dot_dimension_numbers<[1], [0], [0], [1], [0, 0, 1, 1], [], []>} : vector<2x16xf32>, vector<16x64xf32>, vector<2x64xf32> -> vector<2x64xf32>
    %105 = arith.addf %103, %104 : vector<2x64xf32>
    %106 = vector.extract_strided_slice %105 {offsets = [0, 0], sizes = [2, 16], strides = [1, 1]} : vector<2x64xf32> to vector<2x16xf32>
    %107 = arith.negf %106 : vector<2x16xf32>
    %108 = math.exp %107 : vector<2x16xf32>
    %cst_40 = arith.constant 1.000000e+00 : f32
    %109 = vector.broadcast %cst_40 : f32 to vector<2x16xf32>
    %110 = arith.addf %109, %108 : vector<2x16xf32>
    %111 = arith.divf %109, %110 : vector<2x16xf32>
    %112 = vector.extract_strided_slice %105 {offsets = [0, 16], sizes = [2, 16], strides = [1, 1]} : vector<2x64xf32> to vector<2x16xf32>
    %113 = arith.negf %112 : vector<2x16xf32>
    %114 = math.exp %113 : vector<2x16xf32>
    %cst_41 = arith.constant 1.000000e+00 : f32
    %115 = vector.broadcast %cst_41 : f32 to vector<2x16xf32>
    %116 = arith.addf %115, %114 : vector<2x16xf32>
    %117 = arith.divf %115, %116 : vector<2x16xf32>
    %118 = vector.extract_strided_slice %105 {offsets = [0, 32], sizes = [2, 16], strides = [1, 1]} : vector<2x64xf32> to vector<2x16xf32>
    %119 = math.tanh %118 : vector<2x16xf32>
    %120 = vector.extract_strided_slice %105 {offsets = [0, 48], sizes = [2, 16], strides = [1, 1]} : vector<2x64xf32> to vector<2x16xf32>
    %121 = arith.negf %120 : vector<2x16xf32>
    %122 = math.exp %121 : vector<2x16xf32>
    %cst_42 = arith.constant 1.000000e+00 : f32
    %123 = vector.broadcast %cst_42 : f32 to vector<2x16xf32>
    %124 = arith.addf %123, %122 : vector<2x16xf32>
    %125 = arith.divf %123, %124 : vector<2x16xf32>
    %126 = arith.mulf %117, %42 : vector<2x16xf32>
    %127 = arith.mulf %111, %119 : vector<2x16xf32>
    %128 = arith.addf %126, %127 : vector<2x16xf32>
    %129 = math.tanh %128 : vector<2x16xf32>
    %130 = arith.mulf %125, %129 : vector<2x16xf32>
    %131 = vector.shape_cast %101 : vector<2x1xi1> to vector<2x1xi1>
    %132 = vector.broadcast %131 : vector<2x1xi1> to vector<2x16xi1>
    %133 = arith.select %132, %130, %39 : vector<2x16xi1>, vector<2x16xf32>
    %134 = vector.shape_cast %101 : vector<2x1xi1> to vector<2x1xi1>
    %135 = vector.broadcast %134 : vector<2x1xi1> to vector<2x16xi1>
    %136 = arith.select %135, %128, %42 : vector<2x16xi1>, vector<2x16xf32>
    %cst_43 = arith.constant 0.000000e+00 : f32
    %137 = vector.shape_cast %101 : vector<2x1xi1> to vector<2x1xi1>
    %138 = vector.broadcast %137 : vector<2x1xi1> to vector<2x16xi1>
    %139 = vector.broadcast %cst_43 : f32 to vector<2x16xf32>
    %140 = arith.select %138, %130, %139 : vector<2x16xi1>, vector<2x16xf32>
    %c1_44 = arith.constant 1 : index
    %c0_45 = arith.constant 0 : index
    %c0_46 = arith.constant 0 : index
    %141 = vector.load %arg5[%c1_44, %c0_45, %c0_46] : memref<10x2x16xf32, #tpu.memory_space<vmem>>, vector<1x2x16xf32>
    %142 = vector.shape_cast %141 : vector<1x2x16xf32> to vector<2x16xf32>
    %143 = vector.shape_cast %140 : vector<2x16xf32> to vector<1x2x16xf32>
    tpu.vector_store %arg5[%c1_44, %c0_45, %c0_46], %143 {strides = array<i32>} : memref<10x2x16xf32, #tpu.memory_space<vmem>>, vector<1x2x16xf32>,
    %144 = arith.maximumf %50, %140 : vector<2x16xf32>
    %c8 = arith.constant 8 : index
    %c0_47 = arith.constant 0 : index
    %c0_48 = arith.constant 0 : index
    %145 = vector.load %arg2[%c8, %c0_47, %c0_48] : memref<10x2x1xf32, #tpu.memory_space<vmem>>, vector<1x2x1xf32>
    %146 = vector.shape_cast %145 : vector<1x2x1xf32> to vector<2x1xf32>
    %cst_49 = arith.constant 0.000000e+00 : f32
    %147 = vector.broadcast %cst_49 : f32 to vector<2x1xf32>
    %148 = arith.cmpf ogt, %146, %147 : vector<2x1xf32>
    %c8_50 = arith.constant 8 : index
    %c0_51 = arith.constant 0 : index
    %c0_52 = arith.constant 0 : index
    %149 = vector.load %arg1[%c8_50, %c0_51, %c0_52] : memref<10x2x64xf32, #tpu.memory_space<vmem>>, vector<1x2x64xf32>
    %150 = vector.shape_cast %149 : vector<1x2x64xf32> to vector<2x64xf32>
    %cst_53 = arith.constant dense<0.000000e+00> : vector<2x64xf32>
    %151 = tpu.matmul %86, %1, %cst_53 {dimension_numbers = #tpu.dot_dimension_numbers<[1], [0], [0], [1], [0, 0, 1, 1], [], []>} : vector<2x16xf32>, vector<16x64xf32>, vector<2x64xf32> -> vector<2x64xf32>
    %152 = arith.addf %150, %151 : vector<2x64xf32>
    %153 = vector.extract_strided_slice %152 {offsets = [0, 0], sizes = [2, 16], strides = [1, 1]} : vector<2x64xf32> to vector<2x16xf32>
    %154 = arith.negf %153 : vector<2x16xf32>
    %155 = math.exp %154 : vector<2x16xf32>
    %cst_54 = arith.constant 1.000000e+00 : f32
    %156 = vector.broadcast %cst_54 : f32 to vector<2x16xf32>
    %157 = arith.addf %156, %155 : vector<2x16xf32>
    %158 = arith.divf %156, %157 : vector<2x16xf32>
    %159 = vector.extract_strided_slice %152 {offsets = [0, 16], sizes = [2, 16], strides = [1, 1]} : vector<2x64xf32> to vector<2x16xf32>
    %160 = arith.negf %159 : vector<2x16xf32>
    %161 = math.exp %160 : vector<2x16xf32>
    %cst_55 = arith.constant 1.000000e+00 : f32
    %162 = vector.broadcast %cst_55 : f32 to vector<2x16xf32>
    %163 = arith.addf %162, %161 : vector<2x16xf32>
    %164 = arith.divf %162, %163 : vector<2x16xf32>
    %165 = vector.extract_strided_slice %152 {offsets = [0, 32], sizes = [2, 16], strides = [1, 1]} : vector<2x64xf32> to vector<2x16xf32>
    %166 = math.tanh %165 : vector<2x16xf32>
    %167 = vector.extract_strided_slice %152 {offsets = [0, 48], sizes = [2, 16], strides = [1, 1]} : vector<2x64xf32> to vector<2x16xf32>
    %168 = arith.negf %167 : vector<2x16xf32>
    %169 = math.exp %168 : vector<2x16xf32>
    %cst_56 = arith.constant 1.000000e+00 : f32
    %170 = vector.broadcast %cst_56 : f32 to vector<2x16xf32>
    %171 = arith.addf %170, %169 : vector<2x16xf32>
    %172 = arith.divf %170, %171 : vector<2x16xf32>
    %173 = arith.mulf %164, %89 : vector<2x16xf32>
    %174 = arith.mulf %158, %166 : vector<2x16xf32>
    %175 = arith.addf %173, %174 : vector<2x16xf32>
    %176 = math.tanh %175 : vector<2x16xf32>
    %177 = arith.mulf %172, %176 : vector<2x16xf32>
    %178 = vector.shape_cast %148 : vector<2x1xi1> to vector<2x1xi1>
    %179 = vector.broadcast %178 : vector<2x1xi1> to vector<2x16xi1>
    %180 = arith.select %179, %177, %86 : vector<2x16xi1>, vector<2x16xf32>
    %181 = vector.shape_cast %148 : vector<2x1xi1> to vector<2x1xi1>
    %182 = vector.broadcast %181 : vector<2x1xi1> to vector<2x16xi1>
    %183 = arith.select %182, %175, %89 : vector<2x16xi1>, vector<2x16xf32>
    %cst_57 = arith.constant 0.000000e+00 : f32
    %184 = vector.shape_cast %148 : vector<2x1xi1> to vector<2x1xi1>
    %185 = vector.broadcast %184 : vector<2x1xi1> to vector<2x16xi1>
    %186 = vector.broadcast %cst_57 : f32 to vector<2x16xf32>
    %187 = arith.select %185, %177, %186 : vector<2x16xi1>, vector<2x16xf32>
    %c8_58 = arith.constant 8 : index
    %c0_59 = arith.constant 0 : index
    %c0_60 = arith.constant 0 : index
    %188 = vector.load %arg6[%c8_58, %c0_59, %c0_60] : memref<10x2x16xf32, #tpu.memory_space<vmem>>, vector<1x2x16xf32>
    %189 = vector.shape_cast %188 : vector<1x2x16xf32> to vector<2x16xf32>
    %190 = vector.shape_cast %187 : vector<2x16xf32> to vector<1x2x16xf32>
    tpu.vector_store %arg6[%c8_58, %c0_59, %c0_60], %190 {strides = array<i32>} : memref<10x2x16xf32, #tpu.memory_space<vmem>>, vector<1x2x16xf32>,
    %191 = arith.maximumf %97, %187 : vector<2x16xf32>
    %c2 = arith.constant 2 : index
    %c0_61 = arith.constant 0 : index
    %c0_62 = arith.constant 0 : index
    %192 = vector.load %arg2[%c2, %c0_61, %c0_62] : memref<10x2x1xf32, #tpu.memory_space<vmem>>, vector<1x2x1xf32>
    %193 = vector.shape_cast %192 : vector<1x2x1xf32> to vector<2x1xf32>
    %cst_63 = arith.constant 0.000000e+00 : f32
    %194 = vector.broadcast %cst_63 : f32 to vector<2x1xf32>
    %195 = arith.cmpf ogt, %193, %194 : vector<2x1xf32>
    %c2_64 = arith.constant 2 : index
    %c0_65 = arith.constant 0 : index
    %c0_66 = arith.constant 0 : index
    %196 = vector.load %arg0[%c2_64, %c0_65, %c0_66] : memref<10x2x64xf32, #tpu.memory_space<vmem>>, vector<1x2x64xf32>
    %197 = vector.shape_cast %196 : vector<1x2x64xf32> to vector<2x64xf32>
    %cst_67 = arith.constant dense<0.000000e+00> : vector<2x64xf32>
    %198 = tpu.matmul %133, %0, %cst_67 {dimension_numbers = #tpu.dot_dimension_numbers<[1], [0], [0], [1], [0, 0, 1, 1], [], []>} : vector<2x16xf32>, vector<16x64xf32>, vector<2x64xf32> -> vector<2x64xf32>
    %199 = arith.addf %197, %198 : vector<2x64xf32>
    %200 = vector.extract_strided_slice %199 {offsets = [0, 0], sizes = [2, 16], strides = [1, 1]} : vector<2x64xf32> to vector<2x16xf32>
    %201 = arith.negf %200 : vector<2x16xf32>
    %202 = math.exp %201 : vector<2x16xf32>
    %cst_68 = arith.constant 1.000000e+00 : f32
    %203 = vector.broadcast %cst_68 : f32 to vector<2x16xf32>
    %204 = arith.addf %203, %202 : vector<2x16xf32>
    %205 = arith.divf %203, %204 : vector<2x16xf32>
    %206 = vector.extract_strided_slice %199 {offsets = [0, 16], sizes = [2, 16], strides = [1, 1]} : vector<2x64xf32> to vector<2x16xf32>
    %207 = arith.negf %206 : vector<2x16xf32>
    %208 = math.exp %207 : vector<2x16xf32>
    %cst_69 = arith.constant 1.000000e+00 : f32
    %209 = vector.broadcast %cst_69 : f32 to vector<2x16xf32>
    %210 = arith.addf %209, %208 : vector<2x16xf32>
    %211 = arith.divf %209, %210 : vector<2x16xf32>
    %212 = vector.extract_strided_slice %199 {offsets = [0, 32], sizes = [2, 16], strides = [1, 1]} : vector<2x64xf32> to vector<2x16xf32>
    %213 = math.tanh %212 : vector<2x16xf32>
    %214 = vector.extract_strided_slice %199 {offsets = [0, 48], sizes = [2, 16], strides = [1, 1]} : vector<2x64xf32> to vector<2x16xf32>
    %215 = arith.negf %214 : vector<2x16xf32>
    %216 = math.exp %215 : vector<2x16xf32>
    %cst_70 = arith.constant 1.000000e+00 : f32
    %217 = vector.broadcast %cst_70 : f32 to vector<2x16xf32>
    %218 = arith.addf %217, %216 : vector<2x16xf32>
    %219 = arith.divf %217, %218 : vector<2x16xf32>
    %220 = arith.mulf %211, %136 : vector<2x16xf32>
    %221 = arith.mulf %205, %213 : vector<2x16xf32>
    %222 = arith.addf %220, %221 : vector<2x16xf32>
    %223 = math.tanh %222 : vector<2x16xf32>
    %224 = arith.mulf %219, %223 : vector<2x16xf32>
    %225 = vector.shape_cast %195 : vector<2x1xi1> to vector<2x1xi1>
    %226 = vector.broadcast %225 : vector<2x1xi1> to vector<2x16xi1>
    %227 = arith.select %226, %224, %133 : vector<2x16xi1>, vector<2x16xf32>
    %228 = vector.shape_cast %195 : vector<2x1xi1> to vector<2x1xi1>
    %229 = vector.broadcast %228 : vector<2x1xi1> to vector<2x16xi1>
    %230 = arith.select %229, %222, %136 : vector<2x16xi1>, vector<2x16xf32>
    %cst_71 = arith.constant 0.000000e+00 : f32
    %231 = vector.shape_cast %195 : vector<2x1xi1> to vector<2x1xi1>
    %232 = vector.broadcast %231 : vector<2x1xi1> to vector<2x16xi1>
    %233 = vector.broadcast %cst_71 : f32 to vector<2x16xf32>
    %234 = arith.select %232, %224, %233 : vector<2x16xi1>, vector<2x16xf32>
    %c2_72 = arith.constant 2 : index
    %c0_73 = arith.constant 0 : index
    %c0_74 = arith.constant 0 : index
    %235 = vector.load %arg5[%c2_72, %c0_73, %c0_74] : memref<10x2x16xf32, #tpu.memory_space<vmem>>, vector<1x2x16xf32>
    %236 = vector.shape_cast %235 : vector<1x2x16xf32> to vector<2x16xf32>
    %237 = vector.shape_cast %234 : vector<2x16xf32> to vector<1x2x16xf32>
    tpu.vector_store %arg5[%c2_72, %c0_73, %c0_74], %237 {strides = array<i32>} : memref<10x2x16xf32, #tpu.memory_space<vmem>>, vector<1x2x16xf32>,
    %238 = arith.maximumf %144, %234 : vector<2x16xf32>
    %c7 = arith.constant 7 : index
    %c0_75 = arith.constant 0 : index
    %c0_76 = arith.constant 0 : index
    %239 = vector.load %arg2[%c7, %c0_75, %c0_76] : memref<10x2x1xf32, #tpu.memory_space<vmem>>, vector<1x2x1xf32>
    %240 = vector.shape_cast %239 : vector<1x2x1xf32> to vector<2x1xf32>
    %cst_77 = arith.constant 0.000000e+00 : f32
    %241 = vector.broadcast %cst_77 : f32 to vector<2x1xf32>
    %242 = arith.cmpf ogt, %240, %241 : vector<2x1xf32>
    %c7_78 = arith.constant 7 : index
    %c0_79 = arith.constant 0 : index
    %c0_80 = arith.constant 0 : index
    %243 = vector.load %arg1[%c7_78, %c0_79, %c0_80] : memref<10x2x64xf32, #tpu.memory_space<vmem>>, vector<1x2x64xf32>
    %244 = vector.shape_cast %243 : vector<1x2x64xf32> to vector<2x64xf32>
    %cst_81 = arith.constant dense<0.000000e+00> : vector<2x64xf32>
    %245 = tpu.matmul %180, %1, %cst_81 {dimension_numbers = #tpu.dot_dimension_numbers<[1], [0], [0], [1], [0, 0, 1, 1], [], []>} : vector<2x16xf32>, vector<16x64xf32>, vector<2x64xf32> -> vector<2x64xf32>
    %246 = arith.addf %244, %245 : vector<2x64xf32>
    %247 = vector.extract_strided_slice %246 {offsets = [0, 0], sizes = [2, 16], strides = [1, 1]} : vector<2x64xf32> to vector<2x16xf32>
    %248 = arith.negf %247 : vector<2x16xf32>
    %249 = math.exp %248 : vector<2x16xf32>
    %cst_82 = arith.constant 1.000000e+00 : f32
    %250 = vector.broadcast %cst_82 : f32 to vector<2x16xf32>
    %251 = arith.addf %250, %249 : vector<2x16xf32>
    %252 = arith.divf %250, %251 : vector<2x16xf32>
    %253 = vector.extract_strided_slice %246 {offsets = [0, 16], sizes = [2, 16], strides = [1, 1]} : vector<2x64xf32> to vector<2x16xf32>
    %254 = arith.negf %253 : vector<2x16xf32>
    %255 = math.exp %254 : vector<2x16xf32>
    %cst_83 = arith.constant 1.000000e+00 : f32
    %256 = vector.broadcast %cst_83 : f32 to vector<2x16xf32>
    %257 = arith.addf %256, %255 : vector<2x16xf32>
    %258 = arith.divf %256, %257 : vector<2x16xf32>
    %259 = vector.extract_strided_slice %246 {offsets = [0, 32], sizes = [2, 16], strides = [1, 1]} : vector<2x64xf32> to vector<2x16xf32>
    %260 = math.tanh %259 : vector<2x16xf32>
    %261 = vector.extract_strided_slice %246 {offsets = [0, 48], sizes = [2, 16], strides = [1, 1]} : vector<2x64xf32> to vector<2x16xf32>
    %262 = arith.negf %261 : vector<2x16xf32>
    %263 = math.exp %262 : vector<2x16xf32>
    %cst_84 = arith.constant 1.000000e+00 : f32
    %264 = vector.broadcast %cst_84 : f32 to vector<2x16xf32>
    %265 = arith.addf %264, %263 : vector<2x16xf32>
    %266 = arith.divf %264, %265 : vector<2x16xf32>
    %267 = arith.mulf %258, %183 : vector<2x16xf32>
    %268 = arith.mulf %252, %260 : vector<2x16xf32>
    %269 = arith.addf %267, %268 : vector<2x16xf32>
    %270 = math.tanh %269 : vector<2x16xf32>
    %271 = arith.mulf %266, %270 : vector<2x16xf32>
    %272 = vector.shape_cast %242 : vector<2x1xi1> to vector<2x1xi1>
    %273 = vector.broadcast %272 : vector<2x1xi1> to vector<2x16xi1>
    %274 = arith.select %273, %271, %180 : vector<2x16xi1>, vector<2x16xf32>
    %275 = vector.shape_cast %242 : vector<2x1xi1> to vector<2x1xi1>
    %276 = vector.broadcast %275 : vector<2x1xi1> to vector<2x16xi1>
    %277 = arith.select %276, %269, %183 : vector<2x16xi1>, vector<2x16xf32>
    %cst_85 = arith.constant 0.000000e+00 : f32
    %278 = vector.shape_cast %242 : vector<2x1xi1> to vector<2x1xi1>
    %279 = vector.broadcast %278 : vector<2x1xi1> to vector<2x16xi1>
    %280 = vector.broadcast %cst_85 : f32 to vector<2x16xf32>
    %281 = arith.select %279, %271, %280 : vector<2x16xi1>, vector<2x16xf32>
    %c7_86 = arith.constant 7 : index
    %c0_87 = arith.constant 0 : index
    %c0_88 = arith.constant 0 : index
    %282 = vector.load %arg6[%c7_86, %c0_87, %c0_88] : memref<10x2x16xf32, #tpu.memory_space<vmem>>, vector<1x2x16xf32>
    %283 = vector.shape_cast %282 : vector<1x2x16xf32> to vector<2x16xf32>
    %284 = vector.shape_cast %281 : vector<2x16xf32> to vector<1x2x16xf32>
    tpu.vector_store %arg6[%c7_86, %c0_87, %c0_88], %284 {strides = array<i32>} : memref<10x2x16xf32, #tpu.memory_space<vmem>>, vector<1x2x16xf32>,
    %285 = arith.maximumf %191, %281 : vector<2x16xf32>
    %c3 = arith.constant 3 : index
    %c0_89 = arith.constant 0 : index
    %c0_90 = arith.constant 0 : index
    %286 = vector.load %arg2[%c3, %c0_89, %c0_90] : memref<10x2x1xf32, #tpu.memory_space<vmem>>, vector<1x2x1xf32>
    %287 = vector.shape_cast %286 : vector<1x2x1xf32> to vector<2x1xf32>
    %cst_91 = arith.constant 0.000000e+00 : f32
    %288 = vector.broadcast %cst_91 : f32 to vector<2x1xf32>
    %289 = arith.cmpf ogt, %287, %288 : vector<2x1xf32>
    %c3_92 = arith.constant 3 : index
    %c0_93 = arith.constant 0 : index
    %c0_94 = arith.constant 0 : index
    %290 = vector.load %arg0[%c3_92, %c0_93, %c0_94] : memref<10x2x64xf32, #tpu.memory_space<vmem>>, vector<1x2x64xf32>
    %291 = vector.shape_cast %290 : vector<1x2x64xf32> to vector<2x64xf32>
    %cst_95 = arith.constant dense<0.000000e+00> : vector<2x64xf32>
    %292 = tpu.matmul %227, %0, %cst_95 {dimension_numbers = #tpu.dot_dimension_numbers<[1], [0], [0], [1], [0, 0, 1, 1], [], []>} : vector<2x16xf32>, vector<16x64xf32>, vector<2x64xf32> -> vector<2x64xf32>
    %293 = arith.addf %291, %292 : vector<2x64xf32>
    %294 = vector.extract_strided_slice %293 {offsets = [0, 0], sizes = [2, 16], strides = [1, 1]} : vector<2x64xf32> to vector<2x16xf32>
    %295 = arith.negf %294 : vector<2x16xf32>
    %296 = math.exp %295 : vector<2x16xf32>
    %cst_96 = arith.constant 1.000000e+00 : f32
    %297 = vector.broadcast %cst_96 : f32 to vector<2x16xf32>
    %298 = arith.addf %297, %296 : vector<2x16xf32>
    %299 = arith.divf %297, %298 : vector<2x16xf32>
    %300 = vector.extract_strided_slice %293 {offsets = [0, 16], sizes = [2, 16], strides = [1, 1]} : vector<2x64xf32> to vector<2x16xf32>
    %301 = arith.negf %300 : vector<2x16xf32>
    %302 = math.exp %301 : vector<2x16xf32>
    %cst_97 = arith.constant 1.000000e+00 : f32
    %303 = vector.broadcast %cst_97 : f32 to vector<2x16xf32>
    %304 = arith.addf %303, %302 : vector<2x16xf32>
    %305 = arith.divf %303, %304 : vector<2x16xf32>
    %306 = vector.extract_strided_slice %293 {offsets = [0, 32], sizes = [2, 16], strides = [1, 1]} : vector<2x64xf32> to vector<2x16xf32>
    %307 = math.tanh %306 : vector<2x16xf32>
    %308 = vector.extract_strided_slice %293 {offsets = [0, 48], sizes = [2, 16], strides = [1, 1]} : vector<2x64xf32> to vector<2x16xf32>
    %309 = arith.negf %308 : vector<2x16xf32>
    %310 = math.exp %309 : vector<2x16xf32>
    %cst_98 = arith.constant 1.000000e+00 : f32
    %311 = vector.broadcast %cst_98 : f32 to vector<2x16xf32>
    %312 = arith.addf %311, %310 : vector<2x16xf32>
    %313 = arith.divf %311, %312 : vector<2x16xf32>
    %314 = arith.mulf %305, %230 : vector<2x16xf32>
    %315 = arith.mulf %299, %307 : vector<2x16xf32>
    %316 = arith.addf %314, %315 : vector<2x16xf32>
    %317 = math.tanh %316 : vector<2x16xf32>
    %318 = arith.mulf %313, %317 : vector<2x16xf32>
    %319 = vector.shape_cast %289 : vector<2x1xi1> to vector<2x1xi1>
    %320 = vector.broadcast %319 : vector<2x1xi1> to vector<2x16xi1>
    %321 = arith.select %320, %318, %227 : vector<2x16xi1>, vector<2x16xf32>
    %322 = vector.shape_cast %289 : vector<2x1xi1> to vector<2x1xi1>
    %323 = vector.broadcast %322 : vector<2x1xi1> to vector<2x16xi1>
    %324 = arith.select %323, %316, %230 : vector<2x16xi1>, vector<2x16xf32>
    %cst_99 = arith.constant 0.000000e+00 : f32
    %325 = vector.shape_cast %289 : vector<2x1xi1> to vector<2x1xi1>
    %326 = vector.broadcast %325 : vector<2x1xi1> to vector<2x16xi1>
    %327 = vector.broadcast %cst_99 : f32 to vector<2x16xf32>
    %328 = arith.select %326, %318, %327 : vector<2x16xi1>, vector<2x16xf32>
    %c3_100 = arith.constant 3 : index
    %c0_101 = arith.constant 0 : index
    %c0_102 = arith.constant 0 : index
    %329 = vector.load %arg5[%c3_100, %c0_101, %c0_102] : memref<10x2x16xf32, #tpu.memory_space<vmem>>, vector<1x2x16xf32>
    %330 = vector.shape_cast %329 : vector<1x2x16xf32> to vector<2x16xf32>
    %331 = vector.shape_cast %328 : vector<2x16xf32> to vector<1x2x16xf32>
    tpu.vector_store %arg5[%c3_100, %c0_101, %c0_102], %331 {strides = array<i32>} : memref<10x2x16xf32, #tpu.memory_space<vmem>>, vector<1x2x16xf32>,
    %332 = arith.maximumf %238, %328 : vector<2x16xf32>
    %c6 = arith.constant 6 : index
    %c0_103 = arith.constant 0 : index
    %c0_104 = arith.constant 0 : index
    %333 = vector.load %arg2[%c6, %c0_103, %c0_104] : memref<10x2x1xf32, #tpu.memory_space<vmem>>, vector<1x2x1xf32>
    %334 = vector.shape_cast %333 : vector<1x2x1xf32> to vector<2x1xf32>
    %cst_105 = arith.constant 0.000000e+00 : f32
    %335 = vector.broadcast %cst_105 : f32 to vector<2x1xf32>
    %336 = arith.cmpf ogt, %334, %335 : vector<2x1xf32>
    %c6_106 = arith.constant 6 : index
    %c0_107 = arith.constant 0 : index
    %c0_108 = arith.constant 0 : index
    %337 = vector.load %arg1[%c6_106, %c0_107, %c0_108] : memref<10x2x64xf32, #tpu.memory_space<vmem>>, vector<1x2x64xf32>
    %338 = vector.shape_cast %337 : vector<1x2x64xf32> to vector<2x64xf32>
    %cst_109 = arith.constant dense<0.000000e+00> : vector<2x64xf32>
    %339 = tpu.matmul %274, %1, %cst_109 {dimension_numbers = #tpu.dot_dimension_numbers<[1], [0], [0], [1], [0, 0, 1, 1], [], []>} : vector<2x16xf32>, vector<16x64xf32>, vector<2x64xf32> -> vector<2x64xf32>
    %340 = arith.addf %338, %339 : vector<2x64xf32>
    %341 = vector.extract_strided_slice %340 {offsets = [0, 0], sizes = [2, 16], strides = [1, 1]} : vector<2x64xf32> to vector<2x16xf32>
    %342 = arith.negf %341 : vector<2x16xf32>
    %343 = math.exp %342 : vector<2x16xf32>
    %cst_110 = arith.constant 1.000000e+00 : f32
    %344 = vector.broadcast %cst_110 : f32 to vector<2x16xf32>
    %345 = arith.addf %344, %343 : vector<2x16xf32>
    %346 = arith.divf %344, %345 : vector<2x16xf32>
    %347 = vector.extract_strided_slice %340 {offsets = [0, 16], sizes = [2, 16], strides = [1, 1]} : vector<2x64xf32> to vector<2x16xf32>
    %348 = arith.negf %347 : vector<2x16xf32>
    %349 = math.exp %348 : vector<2x16xf32>
    %cst_111 = arith.constant 1.000000e+00 : f32
    %350 = vector.broadcast %cst_111 : f32 to vector<2x16xf32>
    %351 = arith.addf %350, %349 : vector<2x16xf32>
    %352 = arith.divf %350, %351 : vector<2x16xf32>
    %353 = vector.extract_strided_slice %340 {offsets = [0, 32], sizes = [2, 16], strides = [1, 1]} : vector<2x64xf32> to vector<2x16xf32>
    %354 = math.tanh %353 : vector<2x16xf32>
    %355 = vector.extract_strided_slice %340 {offsets = [0, 48], sizes = [2, 16], strides = [1, 1]} : vector<2x64xf32> to vector<2x16xf32>
    %356 = arith.negf %355 : vector<2x16xf32>
    %357 = math.exp %356 : vector<2x16xf32>
    %cst_112 = arith.constant 1.000000e+00 : f32
    %358 = vector.broadcast %cst_112 : f32 to vector<2x16xf32>
    %359 = arith.addf %358, %357 : vector<2x16xf32>
    %360 = arith.divf %358, %359 : vector<2x16xf32>
    %361 = arith.mulf %352, %277 : vector<2x16xf32>
    %362 = arith.mulf %346, %354 : vector<2x16xf32>
    %363 = arith.addf %361, %362 : vector<2x16xf32>
    %364 = math.tanh %363 : vector<2x16xf32>
    %365 = arith.mulf %360, %364 : vector<2x16xf32>
    %366 = vector.shape_cast %336 : vector<2x1xi1> to vector<2x1xi1>
    %367 = vector.broadcast %366 : vector<2x1xi1> to vector<2x16xi1>
    %368 = arith.select %367, %365, %274 : vector<2x16xi1>, vector<2x16xf32>
    %369 = vector.shape_cast %336 : vector<2x1xi1> to vector<2x1xi1>
    %370 = vector.broadcast %369 : vector<2x1xi1> to vector<2x16xi1>
    %371 = arith.select %370, %363, %277 : vector<2x16xi1>, vector<2x16xf32>
    %cst_113 = arith.constant 0.000000e+00 : f32
    %372 = vector.shape_cast %336 : vector<2x1xi1> to vector<2x1xi1>
    %373 = vector.broadcast %372 : vector<2x1xi1> to vector<2x16xi1>
    %374 = vector.broadcast %cst_113 : f32 to vector<2x16xf32>
    %375 = arith.select %373, %365, %374 : vector<2x16xi1>, vector<2x16xf32>
    %c6_114 = arith.constant 6 : index
    %c0_115 = arith.constant 0 : index
    %c0_116 = arith.constant 0 : index
    %376 = vector.load %arg6[%c6_114, %c0_115, %c0_116] : memref<10x2x16xf32, #tpu.memory_space<vmem>>, vector<1x2x16xf32>
    %377 = vector.shape_cast %376 : vector<1x2x16xf32> to vector<2x16xf32>
    %378 = vector.shape_cast %375 : vector<2x16xf32> to vector<1x2x16xf32>
    tpu.vector_store %arg6[%c6_114, %c0_115, %c0_116], %378 {strides = array<i32>} : memref<10x2x16xf32, #tpu.memory_space<vmem>>, vector<1x2x16xf32>,
    %379 = arith.maximumf %285, %375 : vector<2x16xf32>
    %c4 = arith.constant 4 : index
    %c0_117 = arith.constant 0 : index
    %c0_118 = arith.constant 0 : index
    %380 = vector.load %arg2[%c4, %c0_117, %c0_118] : memref<10x2x1xf32, #tpu.memory_space<vmem>>, vector<1x2x1xf32>
    %381 = vector.shape_cast %380 : vector<1x2x1xf32> to vector<2x1xf32>
    %cst_119 = arith.constant 0.000000e+00 : f32
    %382 = vector.broadcast %cst_119 : f32 to vector<2x1xf32>
    %383 = arith.cmpf ogt, %381, %382 : vector<2x1xf32>
    %c4_120 = arith.constant 4 : index
    %c0_121 = arith.constant 0 : index
    %c0_122 = arith.constant 0 : index
    %384 = vector.load %arg0[%c4_120, %c0_121, %c0_122] : memref<10x2x64xf32, #tpu.memory_space<vmem>>, vector<1x2x64xf32>
    %385 = vector.shape_cast %384 : vector<1x2x64xf32> to vector<2x64xf32>
    %cst_123 = arith.constant dense<0.000000e+00> : vector<2x64xf32>
    %386 = tpu.matmul %321, %0, %cst_123 {dimension_numbers = #tpu.dot_dimension_numbers<[1], [0], [0], [1], [0, 0, 1, 1], [], []>} : vector<2x16xf32>, vector<16x64xf32>, vector<2x64xf32> -> vector<2x64xf32>
    %387 = arith.addf %385, %386 : vector<2x64xf32>
    %388 = vector.extract_strided_slice %387 {offsets = [0, 0], sizes = [2, 16], strides = [1, 1]} : vector<2x64xf32> to vector<2x16xf32>
    %389 = arith.negf %388 : vector<2x16xf32>
    %390 = math.exp %389 : vector<2x16xf32>
    %cst_124 = arith.constant 1.000000e+00 : f32
    %391 = vector.broadcast %cst_124 : f32 to vector<2x16xf32>
    %392 = arith.addf %391, %390 : vector<2x16xf32>
    %393 = arith.divf %391, %392 : vector<2x16xf32>
    %394 = vector.extract_strided_slice %387 {offsets = [0, 16], sizes = [2, 16], strides = [1, 1]} : vector<2x64xf32> to vector<2x16xf32>
    %395 = arith.negf %394 : vector<2x16xf32>
    %396 = math.exp %395 : vector<2x16xf32>
    %cst_125 = arith.constant 1.000000e+00 : f32
    %397 = vector.broadcast %cst_125 : f32 to vector<2x16xf32>
    %398 = arith.addf %397, %396 : vector<2x16xf32>
    %399 = arith.divf %397, %398 : vector<2x16xf32>
    %400 = vector.extract_strided_slice %387 {offsets = [0, 32], sizes = [2, 16], strides = [1, 1]} : vector<2x64xf32> to vector<2x16xf32>
    %401 = math.tanh %400 : vector<2x16xf32>
    %402 = vector.extract_strided_slice %387 {offsets = [0, 48], sizes = [2, 16], strides = [1, 1]} : vector<2x64xf32> to vector<2x16xf32>
    %403 = arith.negf %402 : vector<2x16xf32>
    %404 = math.exp %403 : vector<2x16xf32>
    %cst_126 = arith.constant 1.000000e+00 : f32
    %405 = vector.broadcast %cst_126 : f32 to vector<2x16xf32>
    %406 = arith.addf %405, %404 : vector<2x16xf32>
    %407 = arith.divf %405, %406 : vector<2x16xf32>
    %408 = arith.mulf %399, %324 : vector<2x16xf32>
    %409 = arith.mulf %393, %401 : vector<2x16xf32>
    %410 = arith.addf %408, %409 : vector<2x16xf32>
    %411 = math.tanh %410 : vector<2x16xf32>
    %412 = arith.mulf %407, %411 : vector<2x16xf32>
    %413 = vector.shape_cast %383 : vector<2x1xi1> to vector<2x1xi1>
    %414 = vector.broadcast %413 : vector<2x1xi1> to vector<2x16xi1>
    %415 = arith.select %414, %412, %321 : vector<2x16xi1>, vector<2x16xf32>
    %416 = vector.shape_cast %383 : vector<2x1xi1> to vector<2x1xi1>
    %417 = vector.broadcast %416 : vector<2x1xi1> to vector<2x16xi1>
    %418 = arith.select %417, %410, %324 : vector<2x16xi1>, vector<2x16xf32>
    %cst_127 = arith.constant 0.000000e+00 : f32
    %419 = vector.shape_cast %383 : vector<2x1xi1> to vector<2x1xi1>
    %420 = vector.broadcast %419 : vector<2x1xi1> to vector<2x16xi1>
    %421 = vector.broadcast %cst_127 : f32 to vector<2x16xf32>
    %422 = arith.select %420, %412, %421 : vector<2x16xi1>, vector<2x16xf32>
    %c4_128 = arith.constant 4 : index
    %c0_129 = arith.constant 0 : index
    %c0_130 = arith.constant 0 : index
    %423 = vector.load %arg5[%c4_128, %c0_129, %c0_130] : memref<10x2x16xf32, #tpu.memory_space<vmem>>, vector<1x2x16xf32>
    %424 = vector.shape_cast %423 : vector<1x2x16xf32> to vector<2x16xf32>
    %425 = vector.shape_cast %422 : vector<2x16xf32> to vector<1x2x16xf32>
    tpu.vector_store %arg5[%c4_128, %c0_129, %c0_130], %425 {strides = array<i32>} : memref<10x2x16xf32, #tpu.memory_space<vmem>>, vector<1x2x16xf32>,
    %426 = arith.maximumf %332, %422 : vector<2x16xf32>
    %c5 = arith.constant 5 : index
    %c0_131 = arith.constant 0 : index
    %c0_132 = arith.constant 0 : index
    %427 = vector.load %arg2[%c5, %c0_131, %c0_132] : memref<10x2x1xf32, #tpu.memory_space<vmem>>, vector<1x2x1xf32>
    %428 = vector.shape_cast %427 : vector<1x2x1xf32> to vector<2x1xf32>
    %cst_133 = arith.constant 0.000000e+00 : f32
    %429 = vector.broadcast %cst_133 : f32 to vector<2x1xf32>
    %430 = arith.cmpf ogt, %428, %429 : vector<2x1xf32>
    %c5_134 = arith.constant 5 : index
    %c0_135 = arith.constant 0 : index
    %c0_136 = arith.constant 0 : index
    %431 = vector.load %arg1[%c5_134, %c0_135, %c0_136] : memref<10x2x64xf32, #tpu.memory_space<vmem>>, vector<1x2x64xf32>
    %432 = vector.shape_cast %431 : vector<1x2x64xf32> to vector<2x64xf32>
    %cst_137 = arith.constant dense<0.000000e+00> : vector<2x64xf32>
    %433 = tpu.matmul %368, %1, %cst_137 {dimension_numbers = #tpu.dot_dimension_numbers<[1], [0], [0], [1], [0, 0, 1, 1], [], []>} : vector<2x16xf32>, vector<16x64xf32>, vector<2x64xf32> -> vector<2x64xf32>
    %434 = arith.addf %432, %433 : vector<2x64xf32>
    %435 = vector.extract_strided_slice %434 {offsets = [0, 0], sizes = [2, 16], strides = [1, 1]} : vector<2x64xf32> to vector<2x16xf32>
    %436 = arith.negf %435 : vector<2x16xf32>
    %437 = math.exp %436 : vector<2x16xf32>
    %cst_138 = arith.constant 1.000000e+00 : f32
    %438 = vector.broadcast %cst_138 : f32 to vector<2x16xf32>
    %439 = arith.addf %438, %437 : vector<2x16xf32>
    %440 = arith.divf %438, %439 : vector<2x16xf32>
    %441 = vector.extract_strided_slice %434 {offsets = [0, 16], sizes = [2, 16], strides = [1, 1]} : vector<2x64xf32> to vector<2x16xf32>
    %442 = arith.negf %441 : vector<2x16xf32>
    %443 = math.exp %442 : vector<2x16xf32>
    %cst_139 = arith.constant 1.000000e+00 : f32
    %444 = vector.broadcast %cst_139 : f32 to vector<2x16xf32>
    %445 = arith.addf %444, %443 : vector<2x16xf32>
    %446 = arith.divf %444, %445 : vector<2x16xf32>
    %447 = vector.extract_strided_slice %434 {offsets = [0, 32], sizes = [2, 16], strides = [1, 1]} : vector<2x64xf32> to vector<2x16xf32>
    %448 = math.tanh %447 : vector<2x16xf32>
    %449 = vector.extract_strided_slice %434 {offsets = [0, 48], sizes = [2, 16], strides = [1, 1]} : vector<2x64xf32> to vector<2x16xf32>
    %450 = arith.negf %449 : vector<2x16xf32>
    %451 = math.exp %450 : vector<2x16xf32>
    %cst_140 = arith.constant 1.000000e+00 : f32
    %452 = vector.broadcast %cst_140 : f32 to vector<2x16xf32>
    %453 = arith.addf %452, %451 : vector<2x16xf32>
    %454 = arith.divf %452, %453 : vector<2x16xf32>
    %455 = arith.mulf %446, %371 : vector<2x16xf32>
    %456 = arith.mulf %440, %448 : vector<2x16xf32>
    %457 = arith.addf %455, %456 : vector<2x16xf32>
    %458 = math.tanh %457 : vector<2x16xf32>
    %459 = arith.mulf %454, %458 : vector<2x16xf32>
    %460 = vector.shape_cast %430 : vector<2x1xi1> to vector<2x1xi1>
    %461 = vector.broadcast %460 : vector<2x1xi1> to vector<2x16xi1>
    %462 = arith.select %461, %459, %368 : vector<2x16xi1>, vector<2x16xf32>
    %463 = vector.shape_cast %430 : vector<2x1xi1> to vector<2x1xi1>
    %464 = vector.broadcast %463 : vector<2x1xi1> to vector<2x16xi1>
    %465 = arith.select %464, %457, %371 : vector<2x16xi1>, vector<2x16xf32>
    %cst_141 = arith.constant 0.000000e+00 : f32
    %466 = vector.shape_cast %430 : vector<2x1xi1> to vector<2x1xi1>
    %467 = vector.broadcast %466 : vector<2x1xi1> to vector<2x16xi1>
    %468 = vector.broadcast %cst_141 : f32 to vector<2x16xf32>
    %469 = arith.select %467, %459, %468 : vector<2x16xi1>, vector<2x16xf32>
    %c5_142 = arith.constant 5 : index
    %c0_143 = arith.constant 0 : index
    %c0_144 = arith.constant 0 : index
    %470 = vector.load %arg6[%c5_142, %c0_143, %c0_144] : memref<10x2x16xf32, #tpu.memory_space<vmem>>, vector<1x2x16xf32>
    %471 = vector.shape_cast %470 : vector<1x2x16xf32> to vector<2x16xf32>
    %472 = vector.shape_cast %469 : vector<2x16xf32> to vector<1x2x16xf32>
    tpu.vector_store %arg6[%c5_142, %c0_143, %c0_144], %472 {strides = array<i32>} : memref<10x2x16xf32, #tpu.memory_space<vmem>>, vector<1x2x16xf32>,
    %473 = arith.maximumf %379, %469 : vector<2x16xf32>
    %c5_145 = arith.constant 5 : index
    %c0_146 = arith.constant 0 : index
    %c0_147 = arith.constant 0 : index
    %474 = vector.load %arg2[%c5_145, %c0_146, %c0_147] : memref<10x2x1xf32, #tpu.memory_space<vmem>>, vector<1x2x1xf32>
    %475 = vector.shape_cast %474 : vector<1x2x1xf32> to vector<2x1xf32>
    %cst_148 = arith.constant 0.000000e+00 : f32
    %476 = vector.broadcast %cst_148 : f32 to vector<2x1xf32>
    %477 = arith.cmpf ogt, %475, %476 : vector<2x1xf32>
    %c5_149 = arith.constant 5 : index
    %c0_150 = arith.constant 0 : index
    %c0_151 = arith.constant 0 : index
    %478 = vector.load %arg0[%c5_149, %c0_150, %c0_151] : memref<10x2x64xf32, #tpu.memory_space<vmem>>, vector<1x2x64xf32>
    %479 = vector.shape_cast %478 : vector<1x2x64xf32> to vector<2x64xf32>
    %cst_152 = arith.constant dense<0.000000e+00> : vector<2x64xf32>
    %480 = tpu.matmul %415, %0, %cst_152 {dimension_numbers = #tpu.dot_dimension_numbers<[1], [0], [0], [1], [0, 0, 1, 1], [], []>} : vector<2x16xf32>, vector<16x64xf32>, vector<2x64xf32> -> vector<2x64xf32>
    %481 = arith.addf %479, %480 : vector<2x64xf32>
    %482 = vector.extract_strided_slice %481 {offsets = [0, 0], sizes = [2, 16], strides = [1, 1]} : vector<2x64xf32> to vector<2x16xf32>
    %483 = arith.negf %482 : vector<2x16xf32>
    %484 = math.exp %483 : vector<2x16xf32>
    %cst_153 = arith.constant 1.000000e+00 : f32
    %485 = vector.broadcast %cst_153 : f32 to vector<2x16xf32>
    %486 = arith.addf %485, %484 : vector<2x16xf32>
    %487 = arith.divf %485, %486 : vector<2x16xf32>
    %488 = vector.extract_strided_slice %481 {offsets = [0, 16], sizes = [2, 16], strides = [1, 1]} : vector<2x64xf32> to vector<2x16xf32>
    %489 = arith.negf %488 : vector<2x16xf32>
    %490 = math.exp %489 : vector<2x16xf32>
    %cst_154 = arith.constant 1.000000e+00 : f32
    %491 = vector.broadcast %cst_154 : f32 to vector<2x16xf32>
    %492 = arith.addf %491, %490 : vector<2x16xf32>
    %493 = arith.divf %491, %492 : vector<2x16xf32>
    %494 = vector.extract_strided_slice %481 {offsets = [0, 32], sizes = [2, 16], strides = [1, 1]} : vector<2x64xf32> to vector<2x16xf32>
    %495 = math.tanh %494 : vector<2x16xf32>
    %496 = vector.extract_strided_slice %481 {offsets = [0, 48], sizes = [2, 16], strides = [1, 1]} : vector<2x64xf32> to vector<2x16xf32>
    %497 = arith.negf %496 : vector<2x16xf32>
    %498 = math.exp %497 : vector<2x16xf32>
    %cst_155 = arith.constant 1.000000e+00 : f32
    %499 = vector.broadcast %cst_155 : f32 to vector<2x16xf32>
    %500 = arith.addf %499, %498 : vector<2x16xf32>
    %501 = arith.divf %499, %500 : vector<2x16xf32>
    %502 = arith.mulf %493, %418 : vector<2x16xf32>
    %503 = arith.mulf %487, %495 : vector<2x16xf32>
    %504 = arith.addf %502, %503 : vector<2x16xf32>
    %505 = math.tanh %504 : vector<2x16xf32>
    %506 = arith.mulf %501, %505 : vector<2x16xf32>
    %507 = vector.shape_cast %477 : vector<2x1xi1> to vector<2x1xi1>
    %508 = vector.broadcast %507 : vector<2x1xi1> to vector<2x16xi1>
    %509 = arith.select %508, %506, %415 : vector<2x16xi1>, vector<2x16xf32>
    %510 = vector.shape_cast %477 : vector<2x1xi1> to vector<2x1xi1>
    %511 = vector.broadcast %510 : vector<2x1xi1> to vector<2x16xi1>
    %512 = arith.select %511, %504, %418 : vector<2x16xi1>, vector<2x16xf32>
    %cst_156 = arith.constant 0.000000e+00 : f32
    %513 = vector.shape_cast %477 : vector<2x1xi1> to vector<2x1xi1>
    %514 = vector.broadcast %513 : vector<2x1xi1> to vector<2x16xi1>
    %515 = vector.broadcast %cst_156 : f32 to vector<2x16xf32>
    %516 = arith.select %514, %506, %515 : vector<2x16xi1>, vector<2x16xf32>
    %c5_157 = arith.constant 5 : index
    %c0_158 = arith.constant 0 : index
    %c0_159 = arith.constant 0 : index
    %517 = vector.load %arg5[%c5_157, %c0_158, %c0_159] : memref<10x2x16xf32, #tpu.memory_space<vmem>>, vector<1x2x16xf32>
    %518 = vector.shape_cast %517 : vector<1x2x16xf32> to vector<2x16xf32>
    %519 = vector.shape_cast %516 : vector<2x16xf32> to vector<1x2x16xf32>
    tpu.vector_store %arg5[%c5_157, %c0_158, %c0_159], %519 {strides = array<i32>} : memref<10x2x16xf32, #tpu.memory_space<vmem>>, vector<1x2x16xf32>,
    %520 = arith.maximumf %426, %516 : vector<2x16xf32>
    %c4_160 = arith.constant 4 : index
    %c0_161 = arith.constant 0 : index
    %c0_162 = arith.constant 0 : index
    %521 = vector.load %arg2[%c4_160, %c0_161, %c0_162] : memref<10x2x1xf32, #tpu.memory_space<vmem>>, vector<1x2x1xf32>
    %522 = vector.shape_cast %521 : vector<1x2x1xf32> to vector<2x1xf32>
    %cst_163 = arith.constant 0.000000e+00 : f32
    %523 = vector.broadcast %cst_163 : f32 to vector<2x1xf32>
    %524 = arith.cmpf ogt, %522, %523 : vector<2x1xf32>
    %c4_164 = arith.constant 4 : index
    %c0_165 = arith.constant 0 : index
    %c0_166 = arith.constant 0 : index
    %525 = vector.load %arg1[%c4_164, %c0_165, %c0_166] : memref<10x2x64xf32, #tpu.memory_space<vmem>>, vector<1x2x64xf32>
    %526 = vector.shape_cast %525 : vector<1x2x64xf32> to vector<2x64xf32>
    %cst_167 = arith.constant dense<0.000000e+00> : vector<2x64xf32>
    %527 = tpu.matmul %462, %1, %cst_167 {dimension_numbers = #tpu.dot_dimension_numbers<[1], [0], [0], [1], [0, 0, 1, 1], [], []>} : vector<2x16xf32>, vector<16x64xf32>, vector<2x64xf32> -> vector<2x64xf32>
    %528 = arith.addf %526, %527 : vector<2x64xf32>
    %529 = vector.extract_strided_slice %528 {offsets = [0, 0], sizes = [2, 16], strides = [1, 1]} : vector<2x64xf32> to vector<2x16xf32>
    %530 = arith.negf %529 : vector<2x16xf32>
    %531 = math.exp %530 : vector<2x16xf32>
    %cst_168 = arith.constant 1.000000e+00 : f32
    %532 = vector.broadcast %cst_168 : f32 to vector<2x16xf32>
    %533 = arith.addf %532, %531 : vector<2x16xf32>
    %534 = arith.divf %532, %533 : vector<2x16xf32>
    %535 = vector.extract_strided_slice %528 {offsets = [0, 16], sizes = [2, 16], strides = [1, 1]} : vector<2x64xf32> to vector<2x16xf32>
    %536 = arith.negf %535 : vector<2x16xf32>
    %537 = math.exp %536 : vector<2x16xf32>
    %cst_169 = arith.constant 1.000000e+00 : f32
    %538 = vector.broadcast %cst_169 : f32 to vector<2x16xf32>
    %539 = arith.addf %538, %537 : vector<2x16xf32>
    %540 = arith.divf %538, %539 : vector<2x16xf32>
    %541 = vector.extract_strided_slice %528 {offsets = [0, 32], sizes = [2, 16], strides = [1, 1]} : vector<2x64xf32> to vector<2x16xf32>
    %542 = math.tanh %541 : vector<2x16xf32>
    %543 = vector.extract_strided_slice %528 {offsets = [0, 48], sizes = [2, 16], strides = [1, 1]} : vector<2x64xf32> to vector<2x16xf32>
    %544 = arith.negf %543 : vector<2x16xf32>
    %545 = math.exp %544 : vector<2x16xf32>
    %cst_170 = arith.constant 1.000000e+00 : f32
    %546 = vector.broadcast %cst_170 : f32 to vector<2x16xf32>
    %547 = arith.addf %546, %545 : vector<2x16xf32>
    %548 = arith.divf %546, %547 : vector<2x16xf32>
    %549 = arith.mulf %540, %465 : vector<2x16xf32>
    %550 = arith.mulf %534, %542 : vector<2x16xf32>
    %551 = arith.addf %549, %550 : vector<2x16xf32>
    %552 = math.tanh %551 : vector<2x16xf32>
    %553 = arith.mulf %548, %552 : vector<2x16xf32>
    %554 = vector.shape_cast %524 : vector<2x1xi1> to vector<2x1xi1>
    %555 = vector.broadcast %554 : vector<2x1xi1> to vector<2x16xi1>
    %556 = arith.select %555, %553, %462 : vector<2x16xi1>, vector<2x16xf32>
    %557 = vector.shape_cast %524 : vector<2x1xi1> to vector<2x1xi1>
    %558 = vector.broadcast %557 : vector<2x1xi1> to vector<2x16xi1>
    %559 = arith.select %558, %551, %465 : vector<2x16xi1>, vector<2x16xf32>
    %cst_171 = arith.constant 0.000000e+00 : f32
    %560 = vector.shape_cast %524 : vector<2x1xi1> to vector<2x1xi1>
    %561 = vector.broadcast %560 : vector<2x1xi1> to vector<2x16xi1>
    %562 = vector.broadcast %cst_171 : f32 to vector<2x16xf32>
    %563 = arith.select %561, %553, %562 : vector<2x16xi1>, vector<2x16xf32>
    %c4_172 = arith.constant 4 : index
    %c0_173 = arith.constant 0 : index
    %c0_174 = arith.constant 0 : index
    %564 = vector.load %arg6[%c4_172, %c0_173, %c0_174] : memref<10x2x16xf32, #tpu.memory_space<vmem>>, vector<1x2x16xf32>
    %565 = vector.shape_cast %564 : vector<1x2x16xf32> to vector<2x16xf32>
    %566 = vector.shape_cast %563 : vector<2x16xf32> to vector<1x2x16xf32>
    tpu.vector_store %arg6[%c4_172, %c0_173, %c0_174], %566 {strides = array<i32>} : memref<10x2x16xf32, #tpu.memory_space<vmem>>, vector<1x2x16xf32>,
    %567 = arith.maximumf %473, %563 : vector<2x16xf32>
    %c6_175 = arith.constant 6 : index
    %c0_176 = arith.constant 0 : index
    %c0_177 = arith.constant 0 : index
    %568 = vector.load %arg2[%c6_175, %c0_176, %c0_177] : memref<10x2x1xf32, #tpu.memory_space<vmem>>, vector<1x2x1xf32>
    %569 = vector.shape_cast %568 : vector<1x2x1xf32> to vector<2x1xf32>
    %cst_178 = arith.constant 0.000000e+00 : f32
    %570 = vector.broadcast %cst_178 : f32 to vector<2x1xf32>
    %571 = arith.cmpf ogt, %569, %570 : vector<2x1xf32>
    %c6_179 = arith.constant 6 : index
    %c0_180 = arith.constant 0 : index
    %c0_181 = arith.constant 0 : index
    %572 = vector.load %arg0[%c6_179, %c0_180, %c0_181] : memref<10x2x64xf32, #tpu.memory_space<vmem>>, vector<1x2x64xf32>
    %573 = vector.shape_cast %572 : vector<1x2x64xf32> to vector<2x64xf32>
    %cst_182 = arith.constant dense<0.000000e+00> : vector<2x64xf32>
    %574 = tpu.matmul %509, %0, %cst_182 {dimension_numbers = #tpu.dot_dimension_numbers<[1], [0], [0], [1], [0, 0, 1, 1], [], []>} : vector<2x16xf32>, vector<16x64xf32>, vector<2x64xf32> -> vector<2x64xf32>
    %575 = arith.addf %573, %574 : vector<2x64xf32>
    %576 = vector.extract_strided_slice %575 {offsets = [0, 0], sizes = [2, 16], strides = [1, 1]} : vector<2x64xf32> to vector<2x16xf32>
    %577 = arith.negf %576 : vector<2x16xf32>
    %578 = math.exp %577 : vector<2x16xf32>
    %cst_183 = arith.constant 1.000000e+00 : f32
    %579 = vector.broadcast %cst_183 : f32 to vector<2x16xf32>
    %580 = arith.addf %579, %578 : vector<2x16xf32>
    %581 = arith.divf %579, %580 : vector<2x16xf32>
    %582 = vector.extract_strided_slice %575 {offsets = [0, 16], sizes = [2, 16], strides = [1, 1]} : vector<2x64xf32> to vector<2x16xf32>
    %583 = arith.negf %582 : vector<2x16xf32>
    %584 = math.exp %583 : vector<2x16xf32>
    %cst_184 = arith.constant 1.000000e+00 : f32
    %585 = vector.broadcast %cst_184 : f32 to vector<2x16xf32>
    %586 = arith.addf %585, %584 : vector<2x16xf32>
    %587 = arith.divf %585, %586 : vector<2x16xf32>
    %588 = vector.extract_strided_slice %575 {offsets = [0, 32], sizes = [2, 16], strides = [1, 1]} : vector<2x64xf32> to vector<2x16xf32>
    %589 = math.tanh %588 : vector<2x16xf32>
    %590 = vector.extract_strided_slice %575 {offsets = [0, 48], sizes = [2, 16], strides = [1, 1]} : vector<2x64xf32> to vector<2x16xf32>
    %591 = arith.negf %590 : vector<2x16xf32>
    %592 = math.exp %591 : vector<2x16xf32>
    %cst_185 = arith.constant 1.000000e+00 : f32
    %593 = vector.broadcast %cst_185 : f32 to vector<2x16xf32>
    %594 = arith.addf %593, %592 : vector<2x16xf32>
    %595 = arith.divf %593, %594 : vector<2x16xf32>
    %596 = arith.mulf %587, %512 : vector<2x16xf32>
    %597 = arith.mulf %581, %589 : vector<2x16xf32>
    %598 = arith.addf %596, %597 : vector<2x16xf32>
    %599 = math.tanh %598 : vector<2x16xf32>
    %600 = arith.mulf %595, %599 : vector<2x16xf32>
    %601 = vector.shape_cast %571 : vector<2x1xi1> to vector<2x1xi1>
    %602 = vector.broadcast %601 : vector<2x1xi1> to vector<2x16xi1>
    %603 = arith.select %602, %600, %509 : vector<2x16xi1>, vector<2x16xf32>
    %604 = vector.shape_cast %571 : vector<2x1xi1> to vector<2x1xi1>
    %605 = vector.broadcast %604 : vector<2x1xi1> to vector<2x16xi1>
    %606 = arith.select %605, %598, %512 : vector<2x16xi1>, vector<2x16xf32>
    %cst_186 = arith.constant 0.000000e+00 : f32
    %607 = vector.shape_cast %571 : vector<2x1xi1> to vector<2x1xi1>
    %608 = vector.broadcast %607 : vector<2x1xi1> to vector<2x16xi1>
    %609 = vector.broadcast %cst_186 : f32 to vector<2x16xf32>
    %610 = arith.select %608, %600, %609 : vector<2x16xi1>, vector<2x16xf32>
    %c6_187 = arith.constant 6 : index
    %c0_188 = arith.constant 0 : index
    %c0_189 = arith.constant 0 : index
    %611 = vector.load %arg5[%c6_187, %c0_188, %c0_189] : memref<10x2x16xf32, #tpu.memory_space<vmem>>, vector<1x2x16xf32>
    %612 = vector.shape_cast %611 : vector<1x2x16xf32> to vector<2x16xf32>
    %613 = vector.shape_cast %610 : vector<2x16xf32> to vector<1x2x16xf32>
    tpu.vector_store %arg5[%c6_187, %c0_188, %c0_189], %613 {strides = array<i32>} : memref<10x2x16xf32, #tpu.memory_space<vmem>>, vector<1x2x16xf32>,
    %614 = arith.maximumf %520, %610 : vector<2x16xf32>
    %c3_190 = arith.constant 3 : index
    %c0_191 = arith.constant 0 : index
    %c0_192 = arith.constant 0 : index
    %615 = vector.load %arg2[%c3_190, %c0_191, %c0_192] : memref<10x2x1xf32, #tpu.memory_space<vmem>>, vector<1x2x1xf32>
    %616 = vector.shape_cast %615 : vector<1x2x1xf32> to vector<2x1xf32>
    %cst_193 = arith.constant 0.000000e+00 : f32
    %617 = vector.broadcast %cst_193 : f32 to vector<2x1xf32>
    %618 = arith.cmpf ogt, %616, %617 : vector<2x1xf32>
    %c3_194 = arith.constant 3 : index
    %c0_195 = arith.constant 0 : index
    %c0_196 = arith.constant 0 : index
    %619 = vector.load %arg1[%c3_194, %c0_195, %c0_196] : memref<10x2x64xf32, #tpu.memory_space<vmem>>, vector<1x2x64xf32>
    %620 = vector.shape_cast %619 : vector<1x2x64xf32> to vector<2x64xf32>
    %cst_197 = arith.constant dense<0.000000e+00> : vector<2x64xf32>
    %621 = tpu.matmul %556, %1, %cst_197 {dimension_numbers = #tpu.dot_dimension_numbers<[1], [0], [0], [1], [0, 0, 1, 1], [], []>} : vector<2x16xf32>, vector<16x64xf32>, vector<2x64xf32> -> vector<2x64xf32>
    %622 = arith.addf %620, %621 : vector<2x64xf32>
    %623 = vector.extract_strided_slice %622 {offsets = [0, 0], sizes = [2, 16], strides = [1, 1]} : vector<2x64xf32> to vector<2x16xf32>
    %624 = arith.negf %623 : vector<2x16xf32>
    %625 = math.exp %624 : vector<2x16xf32>
    %cst_198 = arith.constant 1.000000e+00 : f32
    %626 = vector.broadcast %cst_198 : f32 to vector<2x16xf32>
    %627 = arith.addf %626, %625 : vector<2x16xf32>
    %628 = arith.divf %626, %627 : vector<2x16xf32>
    %629 = vector.extract_strided_slice %622 {offsets = [0, 16], sizes = [2, 16], strides = [1, 1]} : vector<2x64xf32> to vector<2x16xf32>
    %630 = arith.negf %629 : vector<2x16xf32>
    %631 = math.exp %630 : vector<2x16xf32>
    %cst_199 = arith.constant 1.000000e+00 : f32
    %632 = vector.broadcast %cst_199 : f32 to vector<2x16xf32>
    %633 = arith.addf %632, %631 : vector<2x16xf32>
    %634 = arith.divf %632, %633 : vector<2x16xf32>
    %635 = vector.extract_strided_slice %622 {offsets = [0, 32], sizes = [2, 16], strides = [1, 1]} : vector<2x64xf32> to vector<2x16xf32>
    %636 = math.tanh %635 : vector<2x16xf32>
    %637 = vector.extract_strided_slice %622 {offsets = [0, 48], sizes = [2, 16], strides = [1, 1]} : vector<2x64xf32> to vector<2x16xf32>
    %638 = arith.negf %637 : vector<2x16xf32>
    %639 = math.exp %638 : vector<2x16xf32>
    %cst_200 = arith.constant 1.000000e+00 : f32
    %640 = vector.broadcast %cst_200 : f32 to vector<2x16xf32>
    %641 = arith.addf %640, %639 : vector<2x16xf32>
    %642 = arith.divf %640, %641 : vector<2x16xf32>
    %643 = arith.mulf %634, %559 : vector<2x16xf32>
    %644 = arith.mulf %628, %636 : vector<2x16xf32>
    %645 = arith.addf %643, %644 : vector<2x16xf32>
    %646 = math.tanh %645 : vector<2x16xf32>
    %647 = arith.mulf %642, %646 : vector<2x16xf32>
    %648 = vector.shape_cast %618 : vector<2x1xi1> to vector<2x1xi1>
    %649 = vector.broadcast %648 : vector<2x1xi1> to vector<2x16xi1>
    %650 = arith.select %649, %647, %556 : vector<2x16xi1>, vector<2x16xf32>
    %651 = vector.shape_cast %618 : vector<2x1xi1> to vector<2x1xi1>
    %652 = vector.broadcast %651 : vector<2x1xi1> to vector<2x16xi1>
    %653 = arith.select %652, %645, %559 : vector<2x16xi1>, vector<2x16xf32>
    %cst_201 = arith.constant 0.000000e+00 : f32
    %654 = vector.shape_cast %618 : vector<2x1xi1> to vector<2x1xi1>
    %655 = vector.broadcast %654 : vector<2x1xi1> to vector<2x16xi1>
    %656 = vector.broadcast %cst_201 : f32 to vector<2x16xf32>
    %657 = arith.select %655, %647, %656 : vector<2x16xi1>, vector<2x16xf32>
    %c3_202 = arith.constant 3 : index
    %c0_203 = arith.constant 0 : index
    %c0_204 = arith.constant 0 : index
    %658 = vector.load %arg6[%c3_202, %c0_203, %c0_204] : memref<10x2x16xf32, #tpu.memory_space<vmem>>, vector<1x2x16xf32>
    %659 = vector.shape_cast %658 : vector<1x2x16xf32> to vector<2x16xf32>
    %660 = vector.shape_cast %657 : vector<2x16xf32> to vector<1x2x16xf32>
    tpu.vector_store %arg6[%c3_202, %c0_203, %c0_204], %660 {strides = array<i32>} : memref<10x2x16xf32, #tpu.memory_space<vmem>>, vector<1x2x16xf32>,
    %661 = arith.maximumf %567, %657 : vector<2x16xf32>
    %c7_205 = arith.constant 7 : index
    %c0_206 = arith.constant 0 : index
    %c0_207 = arith.constant 0 : index
    %662 = vector.load %arg2[%c7_205, %c0_206, %c0_207] : memref<10x2x1xf32, #tpu.memory_space<vmem>>, vector<1x2x1xf32>
    %663 = vector.shape_cast %662 : vector<1x2x1xf32> to vector<2x1xf32>
    %cst_208 = arith.constant 0.000000e+00 : f32
    %664 = vector.broadcast %cst_208 : f32 to vector<2x1xf32>
    %665 = arith.cmpf ogt, %663, %664 : vector<2x1xf32>
    %c7_209 = arith.constant 7 : index
    %c0_210 = arith.constant 0 : index
    %c0_211 = arith.constant 0 : index
    %666 = vector.load %arg0[%c7_209, %c0_210, %c0_211] : memref<10x2x64xf32, #tpu.memory_space<vmem>>, vector<1x2x64xf32>
    %667 = vector.shape_cast %666 : vector<1x2x64xf32> to vector<2x64xf32>
    %cst_212 = arith.constant dense<0.000000e+00> : vector<2x64xf32>
    %668 = tpu.matmul %603, %0, %cst_212 {dimension_numbers = #tpu.dot_dimension_numbers<[1], [0], [0], [1], [0, 0, 1, 1], [], []>} : vector<2x16xf32>, vector<16x64xf32>, vector<2x64xf32> -> vector<2x64xf32>
    %669 = arith.addf %667, %668 : vector<2x64xf32>
    %670 = vector.extract_strided_slice %669 {offsets = [0, 0], sizes = [2, 16], strides = [1, 1]} : vector<2x64xf32> to vector<2x16xf32>
    %671 = arith.negf %670 : vector<2x16xf32>
    %672 = math.exp %671 : vector<2x16xf32>
    %cst_213 = arith.constant 1.000000e+00 : f32
    %673 = vector.broadcast %cst_213 : f32 to vector<2x16xf32>
    %674 = arith.addf %673, %672 : vector<2x16xf32>
    %675 = arith.divf %673, %674 : vector<2x16xf32>
    %676 = vector.extract_strided_slice %669 {offsets = [0, 16], sizes = [2, 16], strides = [1, 1]} : vector<2x64xf32> to vector<2x16xf32>
    %677 = arith.negf %676 : vector<2x16xf32>
    %678 = math.exp %677 : vector<2x16xf32>
    %cst_214 = arith.constant 1.000000e+00 : f32
    %679 = vector.broadcast %cst_214 : f32 to vector<2x16xf32>
    %680 = arith.addf %679, %678 : vector<2x16xf32>
    %681 = arith.divf %679, %680 : vector<2x16xf32>
    %682 = vector.extract_strided_slice %669 {offsets = [0, 32], sizes = [2, 16], strides = [1, 1]} : vector<2x64xf32> to vector<2x16xf32>
    %683 = math.tanh %682 : vector<2x16xf32>
    %684 = vector.extract_strided_slice %669 {offsets = [0, 48], sizes = [2, 16], strides = [1, 1]} : vector<2x64xf32> to vector<2x16xf32>
    %685 = arith.negf %684 : vector<2x16xf32>
    %686 = math.exp %685 : vector<2x16xf32>
    %cst_215 = arith.constant 1.000000e+00 : f32
    %687 = vector.broadcast %cst_215 : f32 to vector<2x16xf32>
    %688 = arith.addf %687, %686 : vector<2x16xf32>
    %689 = arith.divf %687, %688 : vector<2x16xf32>
    %690 = arith.mulf %681, %606 : vector<2x16xf32>
    %691 = arith.mulf %675, %683 : vector<2x16xf32>
    %692 = arith.addf %690, %691 : vector<2x16xf32>
    %693 = math.tanh %692 : vector<2x16xf32>
    %694 = arith.mulf %689, %693 : vector<2x16xf32>
    %695 = vector.shape_cast %665 : vector<2x1xi1> to vector<2x1xi1>
    %696 = vector.broadcast %695 : vector<2x1xi1> to vector<2x16xi1>
    %697 = arith.select %696, %694, %603 : vector<2x16xi1>, vector<2x16xf32>
    %698 = vector.shape_cast %665 : vector<2x1xi1> to vector<2x1xi1>
    %699 = vector.broadcast %698 : vector<2x1xi1> to vector<2x16xi1>
    %700 = arith.select %699, %692, %606 : vector<2x16xi1>, vector<2x16xf32>
    %cst_216 = arith.constant 0.000000e+00 : f32
    %701 = vector.shape_cast %665 : vector<2x1xi1> to vector<2x1xi1>
    %702 = vector.broadcast %701 : vector<2x1xi1> to vector<2x16xi1>
    %703 = vector.broadcast %cst_216 : f32 to vector<2x16xf32>
    %704 = arith.select %702, %694, %703 : vector<2x16xi1>, vector<2x16xf32>
    %c7_217 = arith.constant 7 : index
    %c0_218 = arith.constant 0 : index
    %c0_219 = arith.constant 0 : index
    %705 = vector.load %arg5[%c7_217, %c0_218, %c0_219] : memref<10x2x16xf32, #tpu.memory_space<vmem>>, vector<1x2x16xf32>
    %706 = vector.shape_cast %705 : vector<1x2x16xf32> to vector<2x16xf32>
    %707 = vector.shape_cast %704 : vector<2x16xf32> to vector<1x2x16xf32>
    tpu.vector_store %arg5[%c7_217, %c0_218, %c0_219], %707 {strides = array<i32>} : memref<10x2x16xf32, #tpu.memory_space<vmem>>, vector<1x2x16xf32>,
    %708 = arith.maximumf %614, %704 : vector<2x16xf32>
    %c2_220 = arith.constant 2 : index
    %c0_221 = arith.constant 0 : index
    %c0_222 = arith.constant 0 : index
    %709 = vector.load %arg2[%c2_220, %c0_221, %c0_222] : memref<10x2x1xf32, #tpu.memory_space<vmem>>, vector<1x2x1xf32>
    %710 = vector.shape_cast %709 : vector<1x2x1xf32> to vector<2x1xf32>
    %cst_223 = arith.constant 0.000000e+00 : f32
    %711 = vector.broadcast %cst_223 : f32 to vector<2x1xf32>
    %712 = arith.cmpf ogt, %710, %711 : vector<2x1xf32>
    %c2_224 = arith.constant 2 : index
    %c0_225 = arith.constant 0 : index
    %c0_226 = arith.constant 0 : index
    %713 = vector.load %arg1[%c2_224, %c0_225, %c0_226] : memref<10x2x64xf32, #tpu.memory_space<vmem>>, vector<1x2x64xf32>
    %714 = vector.shape_cast %713 : vector<1x2x64xf32> to vector<2x64xf32>
    %cst_227 = arith.constant dense<0.000000e+00> : vector<2x64xf32>
    %715 = tpu.matmul %650, %1, %cst_227 {dimension_numbers = #tpu.dot_dimension_numbers<[1], [0], [0], [1], [0, 0, 1, 1], [], []>} : vector<2x16xf32>, vector<16x64xf32>, vector<2x64xf32> -> vector<2x64xf32>
    %716 = arith.addf %714, %715 : vector<2x64xf32>
    %717 = vector.extract_strided_slice %716 {offsets = [0, 0], sizes = [2, 16], strides = [1, 1]} : vector<2x64xf32> to vector<2x16xf32>
    %718 = arith.negf %717 : vector<2x16xf32>
    %719 = math.exp %718 : vector<2x16xf32>
    %cst_228 = arith.constant 1.000000e+00 : f32
    %720 = vector.broadcast %cst_228 : f32 to vector<2x16xf32>
    %721 = arith.addf %720, %719 : vector<2x16xf32>
    %722 = arith.divf %720, %721 : vector<2x16xf32>
    %723 = vector.extract_strided_slice %716 {offsets = [0, 16], sizes = [2, 16], strides = [1, 1]} : vector<2x64xf32> to vector<2x16xf32>
    %724 = arith.negf %723 : vector<2x16xf32>
    %725 = math.exp %724 : vector<2x16xf32>
    %cst_229 = arith.constant 1.000000e+00 : f32
    %726 = vector.broadcast %cst_229 : f32 to vector<2x16xf32>
    %727 = arith.addf %726, %725 : vector<2x16xf32>
    %728 = arith.divf %726, %727 : vector<2x16xf32>
    %729 = vector.extract_strided_slice %716 {offsets = [0, 32], sizes = [2, 16], strides = [1, 1]} : vector<2x64xf32> to vector<2x16xf32>
    %730 = math.tanh %729 : vector<2x16xf32>
    %731 = vector.extract_strided_slice %716 {offsets = [0, 48], sizes = [2, 16], strides = [1, 1]} : vector<2x64xf32> to vector<2x16xf32>
    %732 = arith.negf %731 : vector<2x16xf32>
    %733 = math.exp %732 : vector<2x16xf32>
    %cst_230 = arith.constant 1.000000e+00 : f32
    %734 = vector.broadcast %cst_230 : f32 to vector<2x16xf32>
    %735 = arith.addf %734, %733 : vector<2x16xf32>
    %736 = arith.divf %734, %735 : vector<2x16xf32>
    %737 = arith.mulf %728, %653 : vector<2x16xf32>
    %738 = arith.mulf %722, %730 : vector<2x16xf32>
    %739 = arith.addf %737, %738 : vector<2x16xf32>
    %740 = math.tanh %739 : vector<2x16xf32>
    %741 = arith.mulf %736, %740 : vector<2x16xf32>
    %742 = vector.shape_cast %712 : vector<2x1xi1> to vector<2x1xi1>
    %743 = vector.broadcast %742 : vector<2x1xi1> to vector<2x16xi1>
    %744 = arith.select %743, %741, %650 : vector<2x16xi1>, vector<2x16xf32>
    %745 = vector.shape_cast %712 : vector<2x1xi1> to vector<2x1xi1>
    %746 = vector.broadcast %745 : vector<2x1xi1> to vector<2x16xi1>
    %747 = arith.select %746, %739, %653 : vector<2x16xi1>, vector<2x16xf32>
    %cst_231 = arith.constant 0.000000e+00 : f32
    %748 = vector.shape_cast %712 : vector<2x1xi1> to vector<2x1xi1>
    %749 = vector.broadcast %748 : vector<2x1xi1> to vector<2x16xi1>
    %750 = vector.broadcast %cst_231 : f32 to vector<2x16xf32>
    %751 = arith.select %749, %741, %750 : vector<2x16xi1>, vector<2x16xf32>
    %c2_232 = arith.constant 2 : index
    %c0_233 = arith.constant 0 : index
    %c0_234 = arith.constant 0 : index
    %752 = vector.load %arg6[%c2_232, %c0_233, %c0_234] : memref<10x2x16xf32, #tpu.memory_space<vmem>>, vector<1x2x16xf32>
    %753 = vector.shape_cast %752 : vector<1x2x16xf32> to vector<2x16xf32>
    %754 = vector.shape_cast %751 : vector<2x16xf32> to vector<1x2x16xf32>
    tpu.vector_store %arg6[%c2_232, %c0_233, %c0_234], %754 {strides = array<i32>} : memref<10x2x16xf32, #tpu.memory_space<vmem>>, vector<1x2x16xf32>,
    %755 = arith.maximumf %661, %751 : vector<2x16xf32>
    %c8_235 = arith.constant 8 : index
    %c0_236 = arith.constant 0 : index
    %c0_237 = arith.constant 0 : index
    %756 = vector.load %arg2[%c8_235, %c0_236, %c0_237] : memref<10x2x1xf32, #tpu.memory_space<vmem>>, vector<1x2x1xf32>
    %757 = vector.shape_cast %756 : vector<1x2x1xf32> to vector<2x1xf32>
    %cst_238 = arith.constant 0.000000e+00 : f32
    %758 = vector.broadcast %cst_238 : f32 to vector<2x1xf32>
    %759 = arith.cmpf ogt, %757, %758 : vector<2x1xf32>
    %c8_239 = arith.constant 8 : index
    %c0_240 = arith.constant 0 : index
    %c0_241 = arith.constant 0 : index
    %760 = vector.load %arg0[%c8_239, %c0_240, %c0_241] : memref<10x2x64xf32, #tpu.memory_space<vmem>>, vector<1x2x64xf32>
    %761 = vector.shape_cast %760 : vector<1x2x64xf32> to vector<2x64xf32>
    %cst_242 = arith.constant dense<0.000000e+00> : vector<2x64xf32>
    %762 = tpu.matmul %697, %0, %cst_242 {dimension_numbers = #tpu.dot_dimension_numbers<[1], [0], [0], [1], [0, 0, 1, 1], [], []>} : vector<2x16xf32>, vector<16x64xf32>, vector<2x64xf32> -> vector<2x64xf32>
    %763 = arith.addf %761, %762 : vector<2x64xf32>
    %764 = vector.extract_strided_slice %763 {offsets = [0, 0], sizes = [2, 16], strides = [1, 1]} : vector<2x64xf32> to vector<2x16xf32>
    %765 = arith.negf %764 : vector<2x16xf32>
    %766 = math.exp %765 : vector<2x16xf32>
    %cst_243 = arith.constant 1.000000e+00 : f32
    %767 = vector.broadcast %cst_243 : f32 to vector<2x16xf32>
    %768 = arith.addf %767, %766 : vector<2x16xf32>
    %769 = arith.divf %767, %768 : vector<2x16xf32>
    %770 = vector.extract_strided_slice %763 {offsets = [0, 16], sizes = [2, 16], strides = [1, 1]} : vector<2x64xf32> to vector<2x16xf32>
    %771 = arith.negf %770 : vector<2x16xf32>
    %772 = math.exp %771 : vector<2x16xf32>
    %cst_244 = arith.constant 1.000000e+00 : f32
    %773 = vector.broadcast %cst_244 : f32 to vector<2x16xf32>
    %774 = arith.addf %773, %772 : vector<2x16xf32>
    %775 = arith.divf %773, %774 : vector<2x16xf32>
    %776 = vector.extract_strided_slice %763 {offsets = [0, 32], sizes = [2, 16], strides = [1, 1]} : vector<2x64xf32> to vector<2x16xf32>
    %777 = math.tanh %776 : vector<2x16xf32>
    %778 = vector.extract_strided_slice %763 {offsets = [0, 48], sizes = [2, 16], strides = [1, 1]} : vector<2x64xf32> to vector<2x16xf32>
    %779 = arith.negf %778 : vector<2x16xf32>
    %780 = math.exp %779 : vector<2x16xf32>
    %cst_245 = arith.constant 1.000000e+00 : f32
    %781 = vector.broadcast %cst_245 : f32 to vector<2x16xf32>
    %782 = arith.addf %781, %780 : vector<2x16xf32>
    %783 = arith.divf %781, %782 : vector<2x16xf32>
    %784 = arith.mulf %775, %700 : vector<2x16xf32>
    %785 = arith.mulf %769, %777 : vector<2x16xf32>
    %786 = arith.addf %784, %785 : vector<2x16xf32>
    %787 = math.tanh %786 : vector<2x16xf32>
    %788 = arith.mulf %783, %787 : vector<2x16xf32>
    %789 = vector.shape_cast %759 : vector<2x1xi1> to vector<2x1xi1>
    %790 = vector.broadcast %789 : vector<2x1xi1> to vector<2x16xi1>
    %791 = arith.select %790, %788, %697 : vector<2x16xi1>, vector<2x16xf32>
    %792 = vector.shape_cast %759 : vector<2x1xi1> to vector<2x1xi1>
    %793 = vector.broadcast %792 : vector<2x1xi1> to vector<2x16xi1>
    %794 = arith.select %793, %786, %700 : vector<2x16xi1>, vector<2x16xf32>
    %cst_246 = arith.constant 0.000000e+00 : f32
    %795 = vector.shape_cast %759 : vector<2x1xi1> to vector<2x1xi1>
    %796 = vector.broadcast %795 : vector<2x1xi1> to vector<2x16xi1>
    %797 = vector.broadcast %cst_246 : f32 to vector<2x16xf32>
    %798 = arith.select %796, %788, %797 : vector<2x16xi1>, vector<2x16xf32>
    %c8_247 = arith.constant 8 : index
    %c0_248 = arith.constant 0 : index
    %c0_249 = arith.constant 0 : index
    %799 = vector.load %arg5[%c8_247, %c0_248, %c0_249] : memref<10x2x16xf32, #tpu.memory_space<vmem>>, vector<1x2x16xf32>
    %800 = vector.shape_cast %799 : vector<1x2x16xf32> to vector<2x16xf32>
    %801 = vector.shape_cast %798 : vector<2x16xf32> to vector<1x2x16xf32>
    tpu.vector_store %arg5[%c8_247, %c0_248, %c0_249], %801 {strides = array<i32>} : memref<10x2x16xf32, #tpu.memory_space<vmem>>, vector<1x2x16xf32>,
    %802 = arith.maximumf %708, %798 : vector<2x16xf32>
    %c1_250 = arith.constant 1 : index
    %c0_251 = arith.constant 0 : index
    %c0_252 = arith.constant 0 : index
    %803 = vector.load %arg2[%c1_250, %c0_251, %c0_252] : memref<10x2x1xf32, #tpu.memory_space<vmem>>, vector<1x2x1xf32>
    %804 = vector.shape_cast %803 : vector<1x2x1xf32> to vector<2x1xf32>
    %cst_253 = arith.constant 0.000000e+00 : f32
    %805 = vector.broadcast %cst_253 : f32 to vector<2x1xf32>
    %806 = arith.cmpf ogt, %804, %805 : vector<2x1xf32>
    %c1_254 = arith.constant 1 : index
    %c0_255 = arith.constant 0 : index
    %c0_256 = arith.constant 0 : index
    %807 = vector.load %arg1[%c1_254, %c0_255, %c0_256] : memref<10x2x64xf32, #tpu.memory_space<vmem>>, vector<1x2x64xf32>
    %808 = vector.shape_cast %807 : vector<1x2x64xf32> to vector<2x64xf32>
    %cst_257 = arith.constant dense<0.000000e+00> : vector<2x64xf32>
    %809 = tpu.matmul %744, %1, %cst_257 {dimension_numbers = #tpu.dot_dimension_numbers<[1], [0], [0], [1], [0, 0, 1, 1], [], []>} : vector<2x16xf32>, vector<16x64xf32>, vector<2x64xf32> -> vector<2x64xf32>
    %810 = arith.addf %808, %809 : vector<2x64xf32>
    %811 = vector.extract_strided_slice %810 {offsets = [0, 0], sizes = [2, 16], strides = [1, 1]} : vector<2x64xf32> to vector<2x16xf32>
    %812 = arith.negf %811 : vector<2x16xf32>
    %813 = math.exp %812 : vector<2x16xf32>
    %cst_258 = arith.constant 1.000000e+00 : f32
    %814 = vector.broadcast %cst_258 : f32 to vector<2x16xf32>
    %815 = arith.addf %814, %813 : vector<2x16xf32>
    %816 = arith.divf %814, %815 : vector<2x16xf32>
    %817 = vector.extract_strided_slice %810 {offsets = [0, 16], sizes = [2, 16], strides = [1, 1]} : vector<2x64xf32> to vector<2x16xf32>
    %818 = arith.negf %817 : vector<2x16xf32>
    %819 = math.exp %818 : vector<2x16xf32>
    %cst_259 = arith.constant 1.000000e+00 : f32
    %820 = vector.broadcast %cst_259 : f32 to vector<2x16xf32>
    %821 = arith.addf %820, %819 : vector<2x16xf32>
    %822 = arith.divf %820, %821 : vector<2x16xf32>
    %823 = vector.extract_strided_slice %810 {offsets = [0, 32], sizes = [2, 16], strides = [1, 1]} : vector<2x64xf32> to vector<2x16xf32>
    %824 = math.tanh %823 : vector<2x16xf32>
    %825 = vector.extract_strided_slice %810 {offsets = [0, 48], sizes = [2, 16], strides = [1, 1]} : vector<2x64xf32> to vector<2x16xf32>
    %826 = arith.negf %825 : vector<2x16xf32>
    %827 = math.exp %826 : vector<2x16xf32>
    %cst_260 = arith.constant 1.000000e+00 : f32
    %828 = vector.broadcast %cst_260 : f32 to vector<2x16xf32>
    %829 = arith.addf %828, %827 : vector<2x16xf32>
    %830 = arith.divf %828, %829 : vector<2x16xf32>
    %831 = arith.mulf %822, %747 : vector<2x16xf32>
    %832 = arith.mulf %816, %824 : vector<2x16xf32>
    %833 = arith.addf %831, %832 : vector<2x16xf32>
    %834 = math.tanh %833 : vector<2x16xf32>
    %835 = arith.mulf %830, %834 : vector<2x16xf32>
    %836 = vector.shape_cast %806 : vector<2x1xi1> to vector<2x1xi1>
    %837 = vector.broadcast %836 : vector<2x1xi1> to vector<2x16xi1>
    %838 = arith.select %837, %835, %744 : vector<2x16xi1>, vector<2x16xf32>
    %839 = vector.shape_cast %806 : vector<2x1xi1> to vector<2x1xi1>
    %840 = vector.broadcast %839 : vector<2x1xi1> to vector<2x16xi1>
    %841 = arith.select %840, %833, %747 : vector<2x16xi1>, vector<2x16xf32>
    %cst_261 = arith.constant 0.000000e+00 : f32
    %842 = vector.shape_cast %806 : vector<2x1xi1> to vector<2x1xi1>
    %843 = vector.broadcast %842 : vector<2x1xi1> to vector<2x16xi1>
    %844 = vector.broadcast %cst_261 : f32 to vector<2x16xf32>
    %845 = arith.select %843, %835, %844 : vector<2x16xi1>, vector<2x16xf32>
    %c1_262 = arith.constant 1 : index
    %c0_263 = arith.constant 0 : index
    %c0_264 = arith.constant 0 : index
    %846 = vector.load %arg6[%c1_262, %c0_263, %c0_264] : memref<10x2x16xf32, #tpu.memory_space<vmem>>, vector<1x2x16xf32>
    %847 = vector.shape_cast %846 : vector<1x2x16xf32> to vector<2x16xf32>
    %848 = vector.shape_cast %845 : vector<2x16xf32> to vector<1x2x16xf32>
    tpu.vector_store %arg6[%c1_262, %c0_263, %c0_264], %848 {strides = array<i32>} : memref<10x2x16xf32, #tpu.memory_space<vmem>>, vector<1x2x16xf32>,
    %849 = arith.maximumf %755, %845 : vector<2x16xf32>
    %c9_265 = arith.constant 9 : index
    %c0_266 = arith.constant 0 : index
    %c0_267 = arith.constant 0 : index
    %850 = vector.load %arg2[%c9_265, %c0_266, %c0_267] : memref<10x2x1xf32, #tpu.memory_space<vmem>>, vector<1x2x1xf32>
    %851 = vector.shape_cast %850 : vector<1x2x1xf32> to vector<2x1xf32>
    %cst_268 = arith.constant 0.000000e+00 : f32
    %852 = vector.broadcast %cst_268 : f32 to vector<2x1xf32>
    %853 = arith.cmpf ogt, %851, %852 : vector<2x1xf32>
    %c9_269 = arith.constant 9 : index
    %c0_270 = arith.constant 0 : index
    %c0_271 = arith.constant 0 : index
    %854 = vector.load %arg0[%c9_269, %c0_270, %c0_271] : memref<10x2x64xf32, #tpu.memory_space<vmem>>, vector<1x2x64xf32>
    %855 = vector.shape_cast %854 : vector<1x2x64xf32> to vector<2x64xf32>
    %cst_272 = arith.constant dense<0.000000e+00> : vector<2x64xf32>
    %856 = tpu.matmul %791, %0, %cst_272 {dimension_numbers = #tpu.dot_dimension_numbers<[1], [0], [0], [1], [0, 0, 1, 1], [], []>} : vector<2x16xf32>, vector<16x64xf32>, vector<2x64xf32> -> vector<2x64xf32>
    %857 = arith.addf %855, %856 : vector<2x64xf32>
    %858 = vector.extract_strided_slice %857 {offsets = [0, 0], sizes = [2, 16], strides = [1, 1]} : vector<2x64xf32> to vector<2x16xf32>
    %859 = arith.negf %858 : vector<2x16xf32>
    %860 = math.exp %859 : vector<2x16xf32>
    %cst_273 = arith.constant 1.000000e+00 : f32
    %861 = vector.broadcast %cst_273 : f32 to vector<2x16xf32>
    %862 = arith.addf %861, %860 : vector<2x16xf32>
    %863 = arith.divf %861, %862 : vector<2x16xf32>
    %864 = vector.extract_strided_slice %857 {offsets = [0, 16], sizes = [2, 16], strides = [1, 1]} : vector<2x64xf32> to vector<2x16xf32>
    %865 = arith.negf %864 : vector<2x16xf32>
    %866 = math.exp %865 : vector<2x16xf32>
    %cst_274 = arith.constant 1.000000e+00 : f32
    %867 = vector.broadcast %cst_274 : f32 to vector<2x16xf32>
    %868 = arith.addf %867, %866 : vector<2x16xf32>
    %869 = arith.divf %867, %868 : vector<2x16xf32>
    %870 = vector.extract_strided_slice %857 {offsets = [0, 32], sizes = [2, 16], strides = [1, 1]} : vector<2x64xf32> to vector<2x16xf32>
    %871 = math.tanh %870 : vector<2x16xf32>
    %872 = vector.extract_strided_slice %857 {offsets = [0, 48], sizes = [2, 16], strides = [1, 1]} : vector<2x64xf32> to vector<2x16xf32>
    %873 = arith.negf %872 : vector<2x16xf32>
    %874 = math.exp %873 : vector<2x16xf32>
    %cst_275 = arith.constant 1.000000e+00 : f32
    %875 = vector.broadcast %cst_275 : f32 to vector<2x16xf32>
    %876 = arith.addf %875, %874 : vector<2x16xf32>
    %877 = arith.divf %875, %876 : vector<2x16xf32>
    %878 = arith.mulf %869, %794 : vector<2x16xf32>
    %879 = arith.mulf %863, %871 : vector<2x16xf32>
    %880 = arith.addf %878, %879 : vector<2x16xf32>
    %881 = math.tanh %880 : vector<2x16xf32>
    %882 = arith.mulf %877, %881 : vector<2x16xf32>
    %cst_276 = arith.constant 0.000000e+00 : f32
    %883 = vector.shape_cast %853 : vector<2x1xi1> to vector<2x1xi1>
    %884 = vector.broadcast %883 : vector<2x1xi1> to vector<2x16xi1>
    %885 = vector.broadcast %cst_276 : f32 to vector<2x16xf32>
    %886 = arith.select %884, %882, %885 : vector<2x16xi1>, vector<2x16xf32>
    %c9_277 = arith.constant 9 : index
    %c0_278 = arith.constant 0 : index
    %c0_279 = arith.constant 0 : index
    %887 = vector.load %arg5[%c9_277, %c0_278, %c0_279] : memref<10x2x16xf32, #tpu.memory_space<vmem>>, vector<1x2x16xf32>
    %888 = vector.shape_cast %887 : vector<1x2x16xf32> to vector<2x16xf32>
    %889 = vector.shape_cast %886 : vector<2x16xf32> to vector<1x2x16xf32>
    tpu.vector_store %arg5[%c9_277, %c0_278, %c0_279], %889 {strides = array<i32>} : memref<10x2x16xf32, #tpu.memory_space<vmem>>, vector<1x2x16xf32>,
    %890 = arith.maximumf %802, %886 : vector<2x16xf32>
    %c0_280 = arith.constant 0 : index
    %c0_281 = arith.constant 0 : index
    %c0_282 = arith.constant 0 : index
    %891 = vector.load %arg2[%c0_280, %c0_281, %c0_282] : memref<10x2x1xf32, #tpu.memory_space<vmem>>, vector<1x2x1xf32>
    %892 = vector.shape_cast %891 : vector<1x2x1xf32> to vector<2x1xf32>
    %cst_283 = arith.constant 0.000000e+00 : f32
    %893 = vector.broadcast %cst_283 : f32 to vector<2x1xf32>
    %894 = arith.cmpf ogt, %892, %893 : vector<2x1xf32>
    %c0_284 = arith.constant 0 : index
    %c0_285 = arith.constant 0 : index
    %c0_286 = arith.constant 0 : index
    %895 = vector.load %arg1[%c0_284, %c0_285, %c0_286] : memref<10x2x64xf32, #tpu.memory_space<vmem>>, vector<1x2x64xf32>
    %896 = vector.shape_cast %895 : vector<1x2x64xf32> to vector<2x64xf32>
    %cst_287 = arith.constant dense<0.000000e+00> : vector<2x64xf32>
    %897 = tpu.matmul %838, %1, %cst_287 {dimension_numbers = #tpu.dot_dimension_numbers<[1], [0], [0], [1], [0, 0, 1, 1], [], []>} : vector<2x16xf32>, vector<16x64xf32>, vector<2x64xf32> -> vector<2x64xf32>
    %898 = arith.addf %896, %897 : vector<2x64xf32>
    %899 = vector.extract_strided_slice %898 {offsets = [0, 0], sizes = [2, 16], strides = [1, 1]} : vector<2x64xf32> to vector<2x16xf32>
    %900 = arith.negf %899 : vector<2x16xf32>
    %901 = math.exp %900 : vector<2x16xf32>
    %cst_288 = arith.constant 1.000000e+00 : f32
    %902 = vector.broadcast %cst_288 : f32 to vector<2x16xf32>
    %903 = arith.addf %902, %901 : vector<2x16xf32>
    %904 = arith.divf %902, %903 : vector<2x16xf32>
    %905 = vector.extract_strided_slice %898 {offsets = [0, 16], sizes = [2, 16], strides = [1, 1]} : vector<2x64xf32> to vector<2x16xf32>
    %906 = arith.negf %905 : vector<2x16xf32>
    %907 = math.exp %906 : vector<2x16xf32>
    %cst_289 = arith.constant 1.000000e+00 : f32
    %908 = vector.broadcast %cst_289 : f32 to vector<2x16xf32>
    %909 = arith.addf %908, %907 : vector<2x16xf32>
    %910 = arith.divf %908, %909 : vector<2x16xf32>
    %911 = vector.extract_strided_slice %898 {offsets = [0, 32], sizes = [2, 16], strides = [1, 1]} : vector<2x64xf32> to vector<2x16xf32>
    %912 = math.tanh %911 : vector<2x16xf32>
    %913 = vector.extract_strided_slice %898 {offsets = [0, 48], sizes = [2, 16], strides = [1, 1]} : vector<2x64xf32> to vector<2x16xf32>
    %914 = arith.negf %913 : vector<2x16xf32>
    %915 = math.exp %914 : vector<2x16xf32>
    %cst_290 = arith.constant 1.000000e+00 : f32
    %916 = vector.broadcast %cst_290 : f32 to vector<2x16xf32>
    %917 = arith.addf %916, %915 : vector<2x16xf32>
    %918 = arith.divf %916, %917 : vector<2x16xf32>
    %919 = arith.mulf %910, %841 : vector<2x16xf32>
    %920 = arith.mulf %904, %912 : vector<2x16xf32>
    %921 = arith.addf %919, %920 : vector<2x16xf32>
    %922 = math.tanh %921 : vector<2x16xf32>
    %923 = arith.mulf %918, %922 : vector<2x16xf32>
    %cst_291 = arith.constant 0.000000e+00 : f32
    %924 = vector.shape_cast %894 : vector<2x1xi1> to vector<2x1xi1>
    %925 = vector.broadcast %924 : vector<2x1xi1> to vector<2x16xi1>
    %926 = vector.broadcast %cst_291 : f32 to vector<2x16xf32>
    %927 = arith.select %925, %923, %926 : vector<2x16xi1>, vector<2x16xf32>
    %c0_292 = arith.constant 0 : index
    %c0_293 = arith.constant 0 : index
    %c0_294 = arith.constant 0 : index
    %928 = vector.load %arg6[%c0_292, %c0_293, %c0_294] : memref<10x2x16xf32, #tpu.memory_space<vmem>>, vector<1x2x16xf32>
    %929 = vector.shape_cast %928 : vector<1x2x16xf32> to vector<2x16xf32>
    %930 = vector.shape_cast %927 : vector<2x16xf32> to vector<1x2x16xf32>
    tpu.vector_store %arg6[%c0_292, %c0_293, %c0_294], %930 {strides = array<i32>} : memref<10x2x16xf32, #tpu.memory_space<vmem>>, vector<1x2x16xf32>,
    %931 = arith.maximumf %849, %927 : vector<2x16xf32>
    %c0_295 = arith.constant 0 : index
    %c0_296 = arith.constant 0 : index
    %932 = vector.load %arg7[%c0_295, %c0_296] : memref<2x16xf32, #tpu.memory_space<vmem>>, vector<2x16xf32>
    tpu.vector_store %arg7[%c0_295, %c0_296], %890 {strides = array<i32>} : memref<2x16xf32, #tpu.memory_space<vmem>>, vector<2x16xf32>,
    %c0_297 = arith.constant 0 : index
    %c0_298 = arith.constant 0 : index
    %933 = vector.load %arg8[%c0_297, %c0_298] : memref<2x16xf32, #tpu.memory_space<vmem>>, vector<2x16xf32>
    tpu.vector_store %arg8[%c0_297, %c0_298], %931 {strides = array<i32>} : memref<2x16xf32, #tpu.memory_space<vmem>>, vector<2x16xf32>,
    return
  }
}

</mosaic_0001>

<bundles_post_ra>
// kernel: residual_stacked_encoder_forward.5
= control target key start
LH: loop header
LB: loop body
LE: loop exit
PB: predicated region body
PF: predicated region fallthrough
CT: control target
= control target key end

     0   :  { %14 = vsyncpa [#allocation3], 0  ;;  %v2940_v2 = vmov 0.0   ;;  %s3887_s0 = inlined_call_operand.vmem [shape: f32[10,2,64], index: 0, kind: input, shape index: {}]   ;;  %s3888_s1 = inlined_call_operand.vmem [shape: f32[10,2,64], index: 1, kind: input, shape index: {}]   ;;  %s3889_s2 = inlined_call_operand.vmem [shape: f32[10,2,1], index: 2, kind: input, shape index: {}]   ;;  %s3890_s3 = inlined_call_operand.vmem [shape: f32[16,64], index: 3, kind: input, shape index: {}]   ;;  %s3891_s4 = inlined_call_operand.vmem [shape: f32[16,64], index: 4, kind: input, shape index: {}]   ;;  %s3892_s5 = inlined_call_operand.hbm [shape: f32[10,2,16], index: 5, kind: output, shape index: {0}]   ;;  %s3893_s6 = inlined_call_operand.hbm [shape: f32[10,2,16], index: 6, kind: output, shape index: {1}]   ;;  %s3894_s7 = inlined_call_operand.vmem [shape: f32[2,16], index: 7, kind: output, shape index: {2}]   ;;  %s3895_s8 = inlined_call_operand.vmem [shape: f32[2,16], index: 8, kind: output, shape index: {3}]  }
   0x1   :  { %v2998_v0 = vld [vmem:[%s3890_s3 + $0x8] sm:$0xff]  ;;  %2580 = vmatprep.subr.mxu0 %v2940_v2  ;;  %2587 = vmatprep.subr.mxu1 %v2940_v2  ;;  %v3010_v3 = vld [vmem:[%s3890_s3] sm:$0xff] }
   0x2   :  { %v3003_v1 = vld [vmem:[%s3891_s4 + $0x8] sm:$0xff] }
   0x3   :  { %15 = vsyncpa [#allocation5], 0  ;;  %2581 = vmatpush3.msra.mxu0 %v2998_v0  ;;  %vm2941_vm0 = vmmov 0   ;;  %v3018_v4 = vld [vmem:[%s3891_s4] sm:$0xff]  ;;  %2588 = vmatpush3.msra.mxu1 %v3003_v1  ;;  %v2942_v5 = vmov 0   ;;  %s2943_s19 = smov 96  }
   0x4   :  { %2584 = vmatprep.mubr.msk.f32.mxu0 %vm2941_vm0, %v2940_v2  ;;  %2582 = vmatprep.subr.mxu0 %v2940_v2  ;;  %v32_v6 = vld [vmem:[%s3887_s0] sm:$0x3]  ;;  %v2448_v8 = vld [vmem:[%s3888_s1 + $0x12] sm:$0x3]  ;;  %s2944_s22 = smov 16   ;;  %s2945_s23 = smov 32  }
   0x5   :  { %2583 = vmatpush3.msra.mxu0 %v3010_v3  ;;  %2589 = vmatprep.subr.mxu1 %v2940_v2  ;;  %v30_v15 = vld [vmem:[%s3889_s2] sm:$0x3]  ;;  %v2447_v27 = vld [vmem:[%s3889_s2 + $0x12] sm:$0x3]  ;;  %s2946_s24 = smov 80   ;;  %vm3896_vm5 = vcmask 123904  }
   0x6   :  { %2585 = vmatmul.mubr.f32.vlgmr.msra.gmra.mxu0 %v2940_v2  ;;  %2590 = vmatpush3.msra.mxu1 %v3018_v4  ;;  %vm31_vm1 = vcmp.gt.f32.partialorder %v30_v15, 0.0  ;;  %vm147_vm2 = vcmp.gt.f32.partialorder %v2447_v27, 0.0  ;;  %vm33_vm6 = vcmask 130048   ;;  %v2451_v50 = vld [vmem:[%s3887_s0 + $0x2] sm:$0x3] }
   0x7   :  { %2591 = vmatprep.mubr.msk.f32.mxu1 %vm2941_vm0, %v2940_v2  ;;  %2594 = vmatprep.subr.mxu0 %v2940_v2  ;;  %v132_v17 = vsel %vm31_vm1, 1, %v2942_v5  ;;  %v245_v31 = vsel %vm147_vm2, 1, %v2942_v5  ;;  %v2455_v54 = vld [vmem:[%s3888_s1 + $0x10] sm:$0x3] }
   0x8   :  { %2592 = vmatmul.mubr.f32.vlgmr.msra.gmra.mxu1 %v2940_v2  ;;  %2595 = vmatpush3.msra.mxu0 %v2998_v0 }
   0x9   :  { %2596 = vmatprep.subr.mxu0 %v2940_v2  ;;  %2598 = vmatprep.mubr.msk.f32.mxu0 %vm2941_vm0, %v2940_v2 }
   0xa   :  { %2597 = vmatpush3.msra.mxu0 %v3010_v3  ;;  %2601 = vmatprep.subr.mxu1 %v2940_v2 }
   0xb   :  { %2602 = vmatpush3.msra.mxu1 %v3003_v1  ;;  %2605 = vmatprep.mubr.msk.f32.mxu1 %vm2941_vm0, %v2940_v2 }
   0xc   :  { %2603 = vmatprep.subr.mxu1 %v2940_v2  ;;  %2608 = vmatprep.subr.mxu0 %v2940_v2 }
   0xd   :  { %2604 = vmatpush3.msra.mxu1 %v3018_v4  ;;  %2730 = vset.pattern.permute.xlu0 %v2942_v5 }
   0xe   :  { %2615 = vmatprep.subr.mxu1 %v2940_v2  ;;  %2731 = vset.pattern.permute.xlu1 %v2942_v5 }
  0xc6   :  { %v103_v7 = vpop.f32.mrf.mxu0 }
  0xc7   :  { %v107_v9 = vadd.f32 %v103_v7, %v32_v6 }
  0xc8   :  { %v2586_v10 = vpop.f32.mrf.mxu0  ;;  %v216_v11 = vpop.f32.mrf.mxu1 }
  0xc9   :  { %2732 = vtanh.f32 %v107_v9  ;;  %v220_v12 = vadd.f32 %v2448_v8, %v216_v11  ;;  %v2446_v18 = vmul.f32 -1.442695, %v107_v9  ;;  %v2450_v8 = vld [vmem:[%s3889_s2 + $0x2] sm:$0x3] }
  0xca   :  { %v2593_v13 = vpop.f32.mrf.mxu1  ;;  %vm260_vm7 = vcmp.gt.f32.partialorder %v2450_v8, 0.0 }
  0xcb   :  { %2734 = vtanh.f32 %v220_v12  ;;  %v2449_v19 = vmul.f32 -1.442695, %v220_v12  ;;  %v2454_v12 = vld [vmem:[%s3889_s2 + $0x10] sm:$0x3]  ;;  %v360_v15 = vsel %vm260_vm7, 1, %v2942_v5 }
  0xcc   :  { %2736 = vpow2.f32 %v2446_v18  ;;  %vm377_vm8 = vcmp.gt.f32.partialorder %v2454_v12, 0.0 }
  0xcd   :  { %2738 = vpow2.f32 %v2449_v19 }
  0xd6   :  { %v2733_v14 = vpop.eup %2732 }
  0xd7   :  { %117 = vrot.lane.b32.xlu0 %v2733_v14, %s2943_s19 }
  0xd8   :  { %v2735_v16 = vpop.eup %2734 }
  0xd9   :  { %v2737_v20 = vpop.eup %2736 }
  0xda   :  { %v111_v21 = vadd.f32 1.0, %v2737_v20  ;;  %v2739_v22 = vpop.eup %2738 }
  0xdb   :  { %230 = vrot.lane.b32.xlu0 %v2735_v16, %s2943_s19  ;;  %v224_v23 = vadd.f32 1.0, %v2739_v22 }
  0xdc   :  { %2740 = vrcp.f32 %v111_v21 }
  0xdd   :  { %2742 = vrcp.f32 %v224_v23 }
  0xdf   :  { %134 = vperm.xlu0 %2730, %v132_v17   ;;  %v477_v17 = vsel %vm377_vm8, 1, %v2942_v5 }
  0xe9   :  { %v2741_v24 = vpop.eup %2740 }
  0xea   :  { %v2743_v28 = vpop.eup %2742  ;;  %v115_v32 = vmul.f32 0.0, %v2741_v24 }
  0xeb   :  { %v228_v35 = vmul.f32 0.0, %v2743_v28 }
 0x149   :  { %v118_v25 = vpop.permute.xlu0 %117 }
 0x14a   :  { %v120_v26 = vmul.f32 %v2741_v24, %v118_v25 }
 0x14c   :  { %122 = vrot.lane.b32.xlu1 %v120_v26, %s2944_s22 }
 0x14d   :  { %v231_v29 = vpop.permute.xlu0 %230 }
 0x14e   :  { %v233_v30 = vmul.f32 %v2743_v28, %v231_v29 }
 0x150   :  { %235 = vrot.lane.b32.xlu1 %v233_v30, %s2944_s22 }
 0x154   :  { %247 = vperm.xlu1 %2731, %v245_v31  }
 0x15a   :  { %v3073_v41 = vpop.permute.xlu0 %134 }
 0x15b   :  { %vm136_vm3 = vcmp.eq.s32.totalorder %v3073_v41, 1 }
 0x1be   :  { %v123_v33 = vpop.permute.xlu1 %122 }
 0x1bf   :  { %v3063_v34 = vadd.f32 %v123_v33, %v115_v32 }
 0x1c1   :  { %2744 = vtanh.f32 %v3063_v34  ;;  %v3126_v18 = vsel %vm136_vm3, %v3063_v34, 0.0 }
 0x1c2   :  { %v236_v36 = vpop.permute.xlu1 %235 }
 0x1c3   :  { %v3066_v37 = vadd.f32 %v236_v36, %v228_v35 }
 0x1c5   :  { %2746 = vtanh.f32 %v3066_v37 }
 0x1ce   :  { %v2745_v38 = vpop.eup %2744 }
 0x1cf   :  { %128 = vrot.lane.b32.xlu1 %v2745_v38, %s2945_s23  ;;  %v3071_v40 = vpop.permute.xlu1 %247  ;;  %v2459_v38 = vld [vmem:[%s3887_s0 + $0x4] sm:$0x3] }
 0x1d0   :  { %vm249_vm4 = vcmp.eq.s32.totalorder %v3071_v40, 1 }
 0x1d1   :  { %v3134_v22 = vsel %vm249_vm4, %v3066_v37, 0.0 }
 0x1d2   :  { %v2747_v39 = vpop.eup %2746 }
 0x1d3   :  { %241 = vrot.lane.b32.xlu0 %v2747_v39, %s2945_s23 }
 0x241   :  { %v129_v42 = vpop.permute.xlu1 %128 }
 0x242   :  { %v131_v43 = vmul.f32 %v2741_v24, %v129_v42  ;;  %v2463_v42 = vld [vmem:[%s3888_s1 + $0xe] sm:$0x3] }
 0x244   :  { %v3078_v44 = vsel %vm136_vm3, %v131_v43, 0.0 }
 0x245   :  { %v242_v45 = vpop.permute.xlu0 %241  ;;  %140 = vrot.lane.b32.xlu1 %v3078_v44, %s2946_s24 }
 0x246   :  { %v244_v46 = vmul.f32 %v2743_v28, %v242_v45 }
 0x248   :  { %v3085_v47 = vsel %vm249_vm4, %v244_v46, 0.0 }
 0x249   :  { %253 = vrot.lane.b32.xlu0 %v3085_v47, %s2946_s24 }
 0x2b7   :  { %v141_v48 = vpop.permute.xlu1 %140 }
 0x2b8   :  { %144 = vst.msk [vmem:[#allocation2] sm:$0x3] %vm3896_vm5, %v141_v48  ;;  %2599 = vmatmul.mubr.msk.f32.vlgmr.msra.gmra.mxu0 %vm33_vm6, %v141_v48 }
 0x2b9   :  { %2609 = vmatpush3.msra.mxu0 %v2998_v0  ;;  %2612 = vmatprep.mubr.msk.f32.mxu0 %vm2941_vm0, %v2940_v2 }
 0x2ba   :  { %2610 = vmatprep.subr.mxu0 %v2940_v2 }
 0x2bb   :  { %v254_v49 = vpop.permute.xlu0 %253  ;;  %2611 = vmatpush3.msra.mxu0 %v3010_v3 }
 0x2bc   :  { %257 = vst.msk [vmem:[#allocation4 + $0x12] sm:$0x3] %vm3896_vm5, %v254_v49  ;;  %2606 = vmatmul.mubr.msk.f32.vlgmr.msra.gmra.mxu1 %vm33_vm6, %v254_v49  ;;  %2622 = vmatprep.subr.mxu0 %v2940_v2 }
 0x2bd   :  { %2616 = vmatpush3.msra.mxu1 %v3003_v1  ;;  %2619 = vmatprep.mubr.msk.f32.mxu1 %vm2941_vm0, %v2940_v2 }
 0x2be   :  { %2617 = vmatprep.subr.mxu1 %v2940_v2 }
 0x2bf   :  { %2618 = vmatpush3.msra.mxu1 %v3018_v4 }
 0x2c0   :  { %2629 = vmatprep.subr.mxu1 %v2940_v2 }
 0x378   :  { %v331_v51 = vpop.f32.mrf.mxu0 }
 0x379   :  { %v335_v52 = vadd.f32 %v2451_v50, %v331_v51 }
 0x37a   :  { %v2600_v53 = vpop.f32.mrf.mxu0 }
 0x37b   :  { %2748 = vtanh.f32 %v335_v52  ;;  %v2453_v60 = vmul.f32 -1.442695, %v335_v52 }
 0x37c   :  { %v448_v55 = vpop.f32.mrf.mxu1 }
 0x37d   :  { %v452_v56 = vadd.f32 %v2455_v54, %v448_v55 }
 0x37e   :  { %v2607_v57 = vpop.f32.mrf.mxu1 }
 0x37f   :  { %2750 = vtanh.f32 %v452_v56  ;;  %v2457_v61 = vmul.f32 -1.442695, %v452_v56  ;;  %v2458_v56 = vld [vmem:[%s3889_s2 + $0x4] sm:$0x3] }
 0x380   :  { %2752 = vpow2.f32 %v2453_v60  ;;  %vm494_vm11 = vcmp.gt.f32.partialorder %v2458_v56, 0.0  ;;  %v2462_v60 = vld [vmem:[%s3889_s2 + $0xe] sm:$0x3] }
 0x381   :  { %2754 = vpow2.f32 %v2457_v61  ;;  %vm614_vm12 = vcmp.gt.f32.partialorder %v2462_v60, 0.0 }
 0x388   :  { %v2749_v58 = vpop.eup %2748 }
 0x389   :  { %345 = vrot.lane.b32.xlu1 %v2749_v58, %s2943_s19 }
 0x38c   :  { %v2751_v59 = vpop.eup %2750 }
 0x38d   :  { %462 = vrot.lane.b32.xlu0 %v2751_v59, %s2943_s19  ;;  %v2753_v62 = vpop.eup %2752 }
 0x38e   :  { %v339_v63 = vadd.f32 1.0, %v2753_v62  ;;  %v2755_v6 = vpop.eup %2754 }
 0x38f   :  { %v456_v7 = vadd.f32 1.0, %v2755_v6 }
 0x390   :  { %2756 = vrcp.f32 %v339_v63  ;;  %v597_v63 = vsel %vm494_vm11, 1, %v2942_v5 }
 0x391   :  { %2758 = vrcp.f32 %v456_v7  ;;  %v717_v7 = vsel %vm614_vm12, 1, %v2942_v5 }
 0x39d   :  { %v2757_v9 = vpop.eup %2756 }
 0x39e   :  { %v2759_v13 = vpop.eup %2758  ;;  %v343_v19 = vmul.f32 %v2757_v9, %v3126_v18 }
 0x39f   :  { %v460_v23 = vmul.f32 %v2759_v13, %v3134_v22 }
 0x3fb   :  { %v346_v10 = vpop.permute.xlu1 %345 }
 0x3fc   :  { %v348_v11 = vmul.f32 %v2757_v9, %v346_v10 }
 0x3fe   :  { %350 = vrot.lane.b32.xlu1 %v348_v11, %s2944_s22 }
 0x3ff   :  { %v463_v14 = vpop.permute.xlu0 %462 }
 0x400   :  { %v465_v16 = vmul.f32 %v2759_v13, %v463_v14 }
 0x402   :  { %467 = vrot.lane.b32.xlu0 %v465_v16, %s2944_s22  ;;  %362 = vperm.xlu1 %2731, %v360_v15  }
 0x406   :  { %479 = vperm.xlu0 %2730, %v477_v17  }
 0x470   :  { %v351_v20 = vpop.permute.xlu1 %350 }
 0x471   :  { %v3129_v21 = vadd.f32 %v351_v20, %v343_v19 }
 0x473   :  { %2760 = vtanh.f32 %v3129_v21 }
 0x474   :  { %v468_v24 = vpop.permute.xlu0 %467 }
 0x475   :  { %v3138_v25 = vadd.f32 %v468_v24, %v460_v23 }
 0x477   :  { %2762 = vtanh.f32 %v3138_v25 }
 0x47d   :  { %v3143_v28 = vpop.permute.xlu1 %362 }
 0x47e   :  { %vm364_vm9 = vcmp.eq.s32.totalorder %v3143_v28, 1 }
 0x47f   :  { %v3205_v8 = vsel %vm364_vm9, %v3129_v21, %v3126_v18 }
 0x480   :  { %v2761_v26 = vpop.eup %2760 }
 0x481   :  { %356 = vrot.lane.b32.xlu1 %v2761_v26, %s2945_s23  ;;  %v3145_v29 = vpop.permute.xlu0 %479 }
 0x482   :  { %vm481_vm10 = vcmp.eq.s32.totalorder %v3145_v29, 1 }
 0x483   :  { %v3214_v12 = vsel %vm481_vm10, %v3138_v25, %v3134_v22 }
 0x484   :  { %v2763_v27 = vpop.eup %2762 }
 0x485   :  { %473 = vrot.lane.b32.xlu0 %v2763_v27, %s2945_s23 }
 0x4f3   :  { %v357_v30 = vpop.permute.xlu1 %356 }
 0x4f4   :  { %v3147_v31 = vmul.f32 %v2757_v9, %v357_v30  ;;  %v2467_v30 = vld [vmem:[%s3887_s0 + $0x6] sm:$0x3] }
 0x4f6   :  { %v3154_v32 = vsel %vm364_vm9, %v3147_v31, %v3078_v44 }
 0x4f7   :  { %v474_v33 = vpop.permute.xlu0 %473  ;;  %498 = vrot.lane.b32.xlu1 %v3154_v32, %s2946_s24 }
 0x4f8   :  { %v3158_v34 = vmul.f32 %v2759_v13, %v474_v33 }
 0x4fa   :  { %v3165_v35 = vsel %vm481_vm10, %v3158_v34, %v3085_v47 }
 0x4fb   :  { %618 = vrot.lane.b32.xlu0 %v3165_v35, %s2946_s24 }
 0x569   :  { %v499_v36 = vpop.permute.xlu1 %498 }
 0x56a   :  { %2613 = vmatmul.mubr.msk.f32.vlgmr.msra.gmra.mxu0 %vm33_vm6, %v499_v36  ;;  %v2471_v36 = vld [vmem:[%s3888_s1 + $0xc] sm:$0x3] }
 0x56b   :  { %2623 = vmatpush3.msra.mxu0 %v2998_v0  ;;  %2626 = vmatprep.mubr.msk.f32.mxu0 %vm2941_vm0, %v2940_v2 }
 0x56c   :  { %2624 = vmatprep.subr.mxu0 %v2940_v2 }
 0x56d   :  { %v619_v37 = vpop.permute.xlu0 %618  ;;  %2625 = vmatpush3.msra.mxu0 %v3010_v3 }
 0x56e   :  { %2620 = vmatmul.mubr.msk.f32.vlgmr.msra.gmra.mxu1 %vm33_vm6, %v619_v37  ;;  %2636 = vmatprep.subr.mxu0 %v2940_v2 }
 0x56f   :  { %2630 = vmatpush3.msra.mxu1 %v3003_v1  ;;  %2633 = vmatprep.mubr.msk.f32.mxu1 %vm2941_vm0, %v2940_v2 }
 0x570   :  { %2631 = vmatprep.subr.mxu1 %v2940_v2 }
 0x571   :  { %2632 = vmatpush3.msra.mxu1 %v3018_v4 }
 0x572   :  { %2643 = vmatprep.subr.mxu1 %v2940_v2 }
 0x62a   :  { %v568_v39 = vpop.f32.mrf.mxu0 }
 0x62b   :  { %v572_v40 = vadd.f32 %v2459_v38, %v568_v39 }
 0x62c   :  { %v2614_v41 = vpop.f32.mrf.mxu0 }
 0x62d   :  { %2764 = vtanh.f32 %v572_v40  ;;  %v2461_v50 = vmul.f32 -1.442695, %v572_v40 }
 0x62e   :  { %v688_v43 = vpop.f32.mrf.mxu1 }
 0x62f   :  { %v692_v45 = vadd.f32 %v2463_v42, %v688_v43 }
 0x630   :  { %v2621_v46 = vpop.f32.mrf.mxu1 }
 0x631   :  { %2766 = vtanh.f32 %v692_v45  ;;  %v2465_v51 = vmul.f32 -1.442695, %v692_v45 }
 0x632   :  { %2768 = vpow2.f32 %v2461_v50  ;;  %v2466_v50 = vld [vmem:[%s3889_s2 + $0x6] sm:$0x3] }
 0x633   :  { %2770 = vpow2.f32 %v2465_v51  ;;  %vm734_vm15 = vcmp.gt.f32.partialorder %v2466_v50, 0.0 }
 0x63a   :  { %v2765_v48 = vpop.eup %2764 }
 0x63b   :  { %582 = vrot.lane.b32.xlu1 %v2765_v48, %s2943_s19 }
 0x63e   :  { %v2767_v49 = vpop.eup %2766 }
 0x63f   :  { %702 = vrot.lane.b32.xlu0 %v2767_v49, %s2943_s19  ;;  %v2769_v52 = vpop.eup %2768 }
 0x640   :  { %v576_v53 = vadd.f32 1.0, %v2769_v52  ;;  %v2771_v54 = vpop.eup %2770 }
 0x641   :  { %v696_v55 = vadd.f32 1.0, %v2771_v54  ;;  %v2470_v54 = vld [vmem:[%s3889_s2 + $0xc] sm:$0x3] }
 0x642   :  { %2772 = vrcp.f32 %v576_v53  ;;  %vm854_vm1 = vcmp.gt.f32.partialorder %v2470_v54, 0.0 }
 0x643   :  { %2774 = vrcp.f32 %v696_v55 }
 0x64f   :  { %v2773_v57 = vpop.eup %2772 }
 0x650   :  { %v2775_v61 = vpop.eup %2774  ;;  %v580_v9 = vmul.f32 %v2773_v57, %v3205_v8 }
 0x651   :  { %v700_v13 = vmul.f32 %v2775_v61, %v3214_v12 }
 0x6ad   :  { %v583_v58 = vpop.permute.xlu1 %582 }
 0x6ae   :  { %v585_v59 = vmul.f32 %v2773_v57, %v583_v58 }
 0x6b0   :  { %587 = vrot.lane.b32.xlu1 %v585_v59, %s2944_s22  ;;  %v957_v59 = vsel %vm854_vm1, 1, %v2942_v5 }
 0x6b1   :  { %v703_v62 = vpop.permute.xlu0 %702 }
 0x6b2   :  { %v705_v6 = vmul.f32 %v2775_v61, %v703_v62 }
 0x6b4   :  { %707 = vrot.lane.b32.xlu0 %v705_v6, %s2944_s22  ;;  %599 = vperm.xlu1 %2731, %v597_v63  }
 0x6b8   :  { %719 = vperm.xlu0 %2730, %v717_v7  }
 0x722   :  { %v588_v10 = vpop.permute.xlu1 %587 }
 0x723   :  { %v3208_v11 = vadd.f32 %v588_v10, %v580_v9 }
 0x725   :  { %2776 = vtanh.f32 %v3208_v11 }
 0x726   :  { %v708_v14 = vpop.permute.xlu0 %707 }
 0x727   :  { %v3218_v15 = vadd.f32 %v708_v14, %v700_v13 }
 0x729   :  { %2778 = vtanh.f32 %v3218_v15 }
 0x72f   :  { %v3223_v18 = vpop.permute.xlu1 %599 }
 0x730   :  { %vm601_vm13 = vcmp.eq.s32.totalorder %v3223_v18, 1 }
 0x731   :  { %v3285_v60 = vsel %vm601_vm13, %v3208_v11, %v3205_v8 }
 0x732   :  { %v2777_v16 = vpop.eup %2776 }
 0x733   :  { %593 = vrot.lane.b32.xlu1 %v2777_v16, %s2945_s23  ;;  %v3225_v19 = vpop.permute.xlu0 %719 }
 0x734   :  { %vm721_vm14 = vcmp.eq.s32.totalorder %v3225_v19, 1 }
 0x735   :  { %v3294_v6 = vsel %vm721_vm14, %v3218_v15, %v3214_v12 }
 0x736   :  { %v2779_v17 = vpop.eup %2778 }
 0x737   :  { %713 = vrot.lane.b32.xlu0 %v2779_v17, %s2945_s23 }
 0x7a5   :  { %v594_v20 = vpop.permute.xlu1 %593 }
 0x7a6   :  { %v3227_v21 = vmul.f32 %v2773_v57, %v594_v20  ;;  %v837_v57 = vsel %vm734_vm15, 1, %v2942_v5 }
 0x7a8   :  { %v3234_v22 = vsel %vm601_vm13, %v3227_v21, %v3154_v32 }
 0x7a9   :  { %v714_v23 = vpop.permute.xlu0 %713  ;;  %738 = vrot.lane.b32.xlu1 %v3234_v22, %s2946_s24 }
 0x7aa   :  { %v3238_v24 = vmul.f32 %v2775_v61, %v714_v23 }
 0x7ac   :  { %v3245_v25 = vsel %vm721_vm14, %v3238_v24, %v3165_v35  ;;  %v724_v28 = vsel %vm721_vm14, %v3238_v24, 0.0  ;;  %vm3901_vm14 = vcmask 123904  }
 0x7ad   :  { %858 = vrot.lane.b32.xlu0 %v3245_v25, %s2946_s24 }
 0x81b   :  { %v739_v26 = vpop.permute.xlu1 %738 }
 0x81c   :  { %2627 = vmatmul.mubr.msk.f32.vlgmr.msra.gmra.mxu0 %vm33_vm6, %v739_v26 }
 0x81d   :  { %2637 = vmatpush3.msra.mxu0 %v2998_v0  ;;  %2640 = vmatprep.mubr.msk.f32.mxu0 %vm2941_vm0, %v2940_v2 }
 0x81e   :  { %2638 = vmatprep.subr.mxu0 %v2940_v2 }
 0x81f   :  { %v859_v27 = vpop.permute.xlu0 %858  ;;  %2639 = vmatpush3.msra.mxu0 %v3010_v3 }
 0x820   :  { %2634 = vmatmul.mubr.msk.f32.vlgmr.msra.gmra.mxu1 %vm33_vm6, %v859_v27  ;;  %2650 = vmatprep.subr.mxu0 %v2940_v2 }
 0x821   :  { %2644 = vmatpush3.msra.mxu1 %v3003_v1  ;;  %2647 = vmatprep.mubr.msk.f32.mxu1 %vm2941_vm0, %v2940_v2 }
 0x822   :  { %2645 = vmatprep.subr.mxu1 %v2940_v2 }
 0x823   :  { %2646 = vmatpush3.msra.mxu1 %v3018_v4 }
 0x824   :  { %2657 = vmatprep.subr.mxu1 %v2940_v2 }
 0x8dc   :  { %v808_v32 = vpop.f32.mrf.mxu0 }
 0x8dd   :  { %v812_v33 = vadd.f32 %v2467_v30, %v808_v32 }
 0x8de   :  { %v2628_v35 = vpop.f32.mrf.mxu0 }
 0x8df   :  { %2780 = vtanh.f32 %v812_v33  ;;  %v2469_v42 = vmul.f32 -1.442695, %v812_v33  ;;  %v2479_v33 = vld [vmem:[%s3888_s1 + $0xa] sm:$0x3] }
 0x8e0   :  { %v928_v37 = vpop.f32.mrf.mxu1 }
 0x8e1   :  { %v932_v38 = vadd.f32 %v2471_v36, %v928_v37 }
 0x8e2   :  { %v2635_v39 = vpop.f32.mrf.mxu1 }
 0x8e3   :  { %2782 = vtanh.f32 %v932_v38  ;;  %v2473_v43 = vmul.f32 -1.442695, %v932_v38 }
 0x8e4   :  { %2784 = vpow2.f32 %v2469_v42 }
 0x8e5   :  { %2786 = vpow2.f32 %v2473_v43 }
 0x8ec   :  { %v2781_v40 = vpop.eup %2780 }
 0x8ed   :  { %822 = vrot.lane.b32.xlu1 %v2781_v40, %s2943_s19 }
 0x8f0   :  { %v2783_v41 = vpop.eup %2782 }
 0x8f1   :  { %942 = vrot.lane.b32.xlu0 %v2783_v41, %s2943_s19  ;;  %v2785_v45 = vpop.eup %2784 }
 0x8f2   :  { %v816_v46 = vadd.f32 1.0, %v2785_v45  ;;  %v2787_v48 = vpop.eup %2786 }
 0x8f3   :  { %v936_v49 = vadd.f32 1.0, %v2787_v48  ;;  %v2474_v48 = vld [vmem:[%s3889_s2 + $0x8] sm:$0x3] }
 0x8f4   :  { %2788 = vrcp.f32 %v816_v46  ;;  %vm974_vm4 = vcmp.gt.f32.partialorder %v2474_v48, 0.0 }
 0x8f5   :  { %2790 = vrcp.f32 %v936_v49 }
 0x901   :  { %v2789_v51 = vpop.eup %2788 }
 0x902   :  { %v2791_v55 = vpop.eup %2790  ;;  %v820_v61 = vmul.f32 %v2789_v51, %v3285_v60 }
 0x903   :  { %v940_v7 = vmul.f32 %v2791_v55, %v3294_v6 }
 0x95f   :  { %v823_v52 = vpop.permute.xlu1 %822 }
 0x960   :  { %v825_v53 = vmul.f32 %v2789_v51, %v823_v52  ;;  %v2478_v52 = vld [vmem:[%s3889_s2 + $0xa] sm:$0x3] }
 0x961   :  { %vm1094_vm7 = vcmp.gt.f32.partialorder %v2478_v52, 0.0 }
 0x962   :  { %827 = vrot.lane.b32.xlu1 %v825_v53, %s2944_s22 }
 0x963   :  { %v943_v56 = vpop.permute.xlu0 %942 }
 0x964   :  { %v945_v58 = vmul.f32 %v2791_v55, %v943_v56 }
 0x966   :  { %947 = vrot.lane.b32.xlu0 %v945_v58, %s2944_s22  ;;  %839 = vperm.xlu1 %2731, %v837_v57   ;;  %v1197_v57 = vsel %vm1094_vm7, 1, %v2942_v5 }
 0x96a   :  { %959 = vperm.xlu0 %2730, %v957_v59  }
 0x9d4   :  { %v828_v62 = vpop.permute.xlu1 %827 }
 0x9d5   :  { %v3288_v63 = vadd.f32 %v828_v62, %v820_v61 }
 0x9d7   :  { %2792 = vtanh.f32 %v3288_v63 }
 0x9d8   :  { %v948_v9 = vpop.permute.xlu0 %947 }
 0x9d9   :  { %v3298_v10 = vadd.f32 %v948_v9, %v940_v7 }
 0x9db   :  { %2794 = vtanh.f32 %v3298_v10 }
 0x9e1   :  { %v3303_v13 = vpop.permute.xlu1 %839 }
 0x9e2   :  { %vm841_vm2 = vcmp.eq.s32.totalorder %v3303_v13, 1 }
 0x9e3   :  { %v3365_v58 = vsel %vm841_vm2, %v3288_v63, %v3285_v60 }
 0x9e4   :  { %v2793_v8 = vpop.eup %2792 }
 0x9e5   :  { %833 = vrot.lane.b32.xlu1 %v2793_v8, %s2945_s23  ;;  %v3305_v14 = vpop.permute.xlu0 %959 }
 0x9e6   :  { %vm961_vm3 = vcmp.eq.s32.totalorder %v3305_v14, 1 }
 0x9e7   :  { %v3374_v7 = vsel %vm961_vm3, %v3298_v10, %v3294_v6 }
 0x9e8   :  { %v2795_v11 = vpop.eup %2794 }
 0x9e9   :  { %953 = vrot.lane.b32.xlu0 %v2795_v11, %s2945_s23 }
 0xa57   :  { %v834_v12 = vpop.permute.xlu1 %833 }
 0xa58   :  { %v3307_v15 = vmul.f32 %v2789_v51, %v834_v12 }
 0xa5a   :  { %v3314_v16 = vsel %vm841_vm2, %v3307_v15, %v3234_v22 }
 0xa5b   :  { %v954_v17 = vpop.permute.xlu0 %953  ;;  %978 = vrot.lane.b32.xlu1 %v3314_v16, %s2946_s24 }
 0xa5c   :  { %v3318_v20 = vmul.f32 %v2791_v55, %v954_v17  ;;  %v1077_v55 = vsel %vm974_vm4, 1, %v2942_v5 }
 0xa5e   :  { %v3325_v23 = vsel %vm961_vm3, %v3318_v20, %v3245_v25  ;;  %v2475_v25 = vld [vmem:[%s3887_s0 + $0x8] sm:$0x3]  ;;  %v964_v29 = vsel %vm961_vm3, %v3318_v20, 0.0  ;;  %vm3902_vm3 = vmmov %vm3901_vm14 }
 0xa5f   :  { %1098 = vrot.lane.b32.xlu0 %v3325_v23, %s2946_s24 }
 0xacd   :  { %v979_v26 = vpop.permute.xlu1 %978 }
 0xace   :  { %2641 = vmatmul.mubr.msk.f32.vlgmr.msra.gmra.mxu0 %vm33_vm6, %v979_v26 }
 0xacf   :  { %2651 = vmatpush3.msra.mxu0 %v2998_v0  ;;  %2654 = vmatprep.mubr.msk.f32.mxu0 %vm2941_vm0, %v2940_v2 }
 0xad0   :  { %2652 = vmatprep.subr.mxu0 %v2940_v2 }
 0xad1   :  { %v1099_v22 = vpop.permute.xlu0 %1098  ;;  %2653 = vmatpush3.msra.mxu0 %v3010_v3 }
 0xad2   :  { %2648 = vmatmul.mubr.msk.f32.vlgmr.msra.gmra.mxu1 %vm33_vm6, %v1099_v22  ;;  %2664 = vmatprep.subr.mxu0 %v2940_v2 }
 0xad3   :  { %2658 = vmatpush3.msra.mxu1 %v3003_v1  ;;  %2661 = vmatprep.mubr.msk.f32.mxu1 %vm2941_vm0, %v2940_v2 }
 0xad4   :  { %2659 = vmatprep.subr.mxu1 %v2940_v2 }
 0xad5   :  { %2660 = vmatpush3.msra.mxu1 %v3018_v4 }
 0xad6   :  { %2671 = vmatprep.subr.mxu1 %v2940_v2 }
 0xb8e   :  { %v1048_v27 = vpop.f32.mrf.mxu0 }
 0xb8f   :  { %v1052_v30 = vadd.f32 %v2475_v25, %v1048_v27 }
 0xb90   :  { %v2642_v32 = vpop.f32.mrf.mxu0 }
 0xb91   :  { %2796 = vtanh.f32 %v1052_v30  ;;  %v2477_v40 = vmul.f32 -1.442695, %v1052_v30 }
 0xb92   :  { %v1168_v35 = vpop.f32.mrf.mxu1 }
 0xb93   :  { %v1172_v36 = vadd.f32 %v2479_v33, %v1168_v35 }
 0xb94   :  { %v2649_v37 = vpop.f32.mrf.mxu1 }
 0xb95   :  { %2798 = vtanh.f32 %v1172_v36  ;;  %v2481_v41 = vmul.f32 -1.442695, %v1172_v36 }
 0xb96   :  { %2800 = vpow2.f32 %v2477_v40 }
 0xb97   :  { %2802 = vpow2.f32 %v2481_v41 }
 0xb9e   :  { %v2797_v38 = vpop.eup %2796 }
 0xb9f   :  { %1062 = vrot.lane.b32.xlu1 %v2797_v38, %s2943_s19 }
 0xba2   :  { %v2799_v39 = vpop.eup %2798 }
 0xba3   :  { %1182 = vrot.lane.b32.xlu0 %v2799_v39, %s2943_s19  ;;  %v2801_v42 = vpop.eup %2800 }
 0xba4   :  { %v1056_v43 = vadd.f32 1.0, %v2801_v42  ;;  %v2803_v45 = vpop.eup %2802 }
 0xba5   :  { %v1176_v46 = vadd.f32 1.0, %v2803_v45 }
 0xba6   :  { %2804 = vrcp.f32 %v1056_v43 }
 0xba7   :  { %2806 = vrcp.f32 %v1176_v46 }
 0xbb3   :  { %v2805_v49 = vpop.eup %2804 }
 0xbb4   :  { %v2807_v53 = vpop.eup %2806  ;;  %v1060_v59 = vmul.f32 %v2805_v49, %v3365_v58 }
 0xbb5   :  { %v1180_v9 = vmul.f32 %v2807_v53, %v3374_v7 }
 0xc11   :  { %v1063_v50 = vpop.permute.xlu1 %1062 }
 0xc12   :  { %v1065_v51 = vmul.f32 %v2805_v49, %v1063_v50 }
 0xc14   :  { %1067 = vrot.lane.b32.xlu1 %v1065_v51, %s2944_s22 }
 0xc15   :  { %v1183_v54 = vpop.permute.xlu0 %1182 }
 0xc16   :  { %v1185_v56 = vmul.f32 %v2807_v53, %v1183_v54 }
 0xc18   :  { %1187 = vrot.lane.b32.xlu0 %v1185_v56, %s2944_s22  ;;  %1079 = vperm.xlu1 %2731, %v1077_v55  }
 0xc1c   :  { %1199 = vperm.xlu0 %2730, %v1197_v57  }
 0xc86   :  { %v1068_v61 = vpop.permute.xlu1 %1067 }
 0xc87   :  { %v3368_v62 = vadd.f32 %v1068_v61, %v1060_v59 }
 0xc89   :  { %2808 = vtanh.f32 %v3368_v62 }
 0xc8a   :  { %v1188_v8 = vpop.permute.xlu0 %1187 }
 0xc8b   :  { %v3378_v11 = vadd.f32 %v1188_v8, %v1180_v9 }
 0xc8d   :  { %2810 = vtanh.f32 %v3378_v11 }
 0xc93   :  { %v3383_v12 = vpop.permute.xlu1 %1079 }
 0xc94   :  { %vm1081_vm8 = vcmp.eq.s32.totalorder %v3383_v12, 1 }
 0xc95   :  { %v3445_v61 = vsel %vm1081_vm8, %v3368_v62, %v3365_v58 }
 0xc96   :  { %v2809_v60 = vpop.eup %2808 }
 0xc97   :  { %1073 = vrot.lane.b32.xlu1 %v2809_v60, %s2945_s23  ;;  %v3385_v17 = vpop.permute.xlu0 %1199 }
 0xc98   :  { %vm1201_vm11 = vcmp.eq.s32.totalorder %v3385_v17, 1 }
 0xc9a   :  { %v2811_v63 = vpop.eup %2810 }
 0xc9b   :  { %1193 = vrot.lane.b32.xlu0 %v2811_v63, %s2945_s23  ;;  %v3454_v63 = vsel %vm1201_vm11, %v3378_v11, %v3374_v7 }
 0xd09   :  { %v1074_v6 = vpop.permute.xlu1 %1073 }
 0xd0a   :  { %v3387_v10 = vmul.f32 %v2805_v49, %v1074_v6  ;;  %v2482_v49 = vld [vmem:[%s3889_s2 + $0xa] sm:$0x3] }
 0xd0b   :  { %vm1213_vm12 = vcmp.gt.f32.partialorder %v2482_v49, 0.0 }
 0xd0c   :  { %v3394_v26 = vsel %vm1081_vm8, %v3387_v10, %v3314_v16  ;;  %v1316_v56 = vsel %vm1213_vm12, 1, %v2942_v5 }
 0xd0d   :  { %v1194_v22 = vpop.permute.xlu0 %1193  ;;  %1217 = vrot.lane.b32.xlu1 %v3394_v26, %s2946_s24 }
 0xd0e   :  { %v3398_v25 = vmul.f32 %v2807_v53, %v1194_v22  ;;  %v2486_v53 = vld [vmem:[%s3889_s2 + $0x8] sm:$0x3] }
 0xd0f   :  { %vm1332_vm15 = vcmp.gt.f32.partialorder %v2486_v53, 0.0 }
 0xd10   :  { %v3405_v27 = vsel %vm1201_vm11, %v3398_v25, %v3325_v23  ;;  %v2483_v23 = vld [vmem:[%s3887_s0 + $0xa] sm:$0x3]  ;;  %v1435_v59 = vsel %vm1332_vm15, 1, %v2942_v5  ;;  %v1204_v18 = vsel %vm1201_vm11, %v3398_v25, 0.0  ;;  %vm3904_vm11 = vmmov %vm3902_vm3 }
 0xd11   :  { %1336 = vrot.lane.b32.xlu0 %v3405_v27, %s2946_s24 }
 0xd7f   :  { %v1218_v30 = vpop.permute.xlu1 %1217 }
 0xd80   :  { %2655 = vmatmul.mubr.msk.f32.vlgmr.msra.gmra.mxu0 %vm33_vm6, %v1218_v30 }
 0xd81   :  { %2665 = vmatpush3.msra.mxu0 %v2998_v0  ;;  %2668 = vmatprep.mubr.msk.f32.mxu0 %vm2941_vm0, %v2940_v2 }
 0xd82   :  { %2666 = vmatprep.subr.mxu0 %v2940_v2 }
 0xd83   :  { %v1337_v16 = vpop.permute.xlu0 %1336  ;;  %2667 = vmatpush3.msra.mxu0 %v3010_v3 }
 0xd84   :  { %2662 = vmatmul.mubr.msk.f32.vlgmr.msra.gmra.mxu1 %vm33_vm6, %v1337_v16  ;;  %2678 = vmatprep.subr.mxu0 %v2940_v2 }
 0xd85   :  { %2672 = vmatpush3.msra.mxu1 %v3003_v1  ;;  %2675 = vmatprep.mubr.msk.f32.mxu1 %vm2941_vm0, %v2940_v2  ;;  %v2487_v1 = vld [vmem:[%s3888_s1 + $0x8] sm:$0x3] }
 0xd86   :  { %2673 = vmatprep.subr.mxu1 %v2940_v2 }
 0xd87   :  { %2674 = vmatpush3.msra.mxu1 %v3018_v4 }
 0xd88   :  { %2685 = vmatprep.subr.mxu1 %v2940_v2 }
 0xe40   :  { %v1287_v32 = vpop.f32.mrf.mxu0 }
 0xe41   :  { %v1291_v33 = vadd.f32 %v2483_v23, %v1287_v32 }
 0xe42   :  { %v2656_v35 = vpop.f32.mrf.mxu0 }
 0xe43   :  { %2812 = vtanh.f32 %v1291_v33  ;;  %v2485_v41 = vmul.f32 -1.442695, %v1291_v33 }
 0xe44   :  { %v1406_v36 = vpop.f32.mrf.mxu1 }
 0xe45   :  { %v1410_v37 = vadd.f32 %v2487_v1, %v1406_v36 }
 0xe46   :  { %v2663_v38 = vpop.f32.mrf.mxu1 }
 0xe47   :  { %2814 = vtanh.f32 %v1410_v37  ;;  %v2489_v42 = vmul.f32 -1.442695, %v1410_v37 }
 0xe48   :  { %2816 = vpow2.f32 %v2485_v41 }
 0xe49   :  { %2818 = vpow2.f32 %v2489_v42 }
 0xe50   :  { %v2813_v39 = vpop.eup %2812 }
 0xe51   :  { %1301 = vrot.lane.b32.xlu1 %v2813_v39, %s2943_s19  ;;  %v2495_v39 = vld [vmem:[%s3888_s1 + $0x6] sm:$0x3] }
 0xe54   :  { %v2815_v40 = vpop.eup %2814 }
 0xe55   :  { %1420 = vrot.lane.b32.xlu0 %v2815_v40, %s2943_s19  ;;  %v2817_v43 = vpop.eup %2816 }
 0xe56   :  { %v1295_v45 = vadd.f32 1.0, %v2817_v43  ;;  %v2819_v46 = vpop.eup %2818 }
 0xe57   :  { %v1414_v48 = vadd.f32 1.0, %v2819_v46 }
 0xe58   :  { %2820 = vrcp.f32 %v1295_v45 }
 0xe59   :  { %2822 = vrcp.f32 %v1414_v48 }
 0xe65   :  { %v2821_v50 = vpop.eup %2820 }
 0xe66   :  { %v2823_v54 = vpop.eup %2822  ;;  %v1299_v9 = vmul.f32 %v2821_v50, %v3445_v61 }
 0xe67   :  { %v1418_v6 = vmul.f32 %v2823_v54, %v3454_v63 }
 0xec3   :  { %v1302_v51 = vpop.permute.xlu1 %1301 }
 0xec4   :  { %v1304_v52 = vmul.f32 %v2821_v50, %v1302_v51 }
 0xec6   :  { %1306 = vrot.lane.b32.xlu1 %v1304_v52, %s2944_s22  ;;  %v2490_v52 = vld [vmem:[%s3889_s2 + $0xc] sm:$0x3] }
 0xec7   :  { %v1421_v55 = vpop.permute.xlu0 %1420  ;;  %vm1451_vm7 = vcmp.gt.f32.partialorder %v2490_v52, 0.0 }
 0xec8   :  { %v1423_v57 = vmul.f32 %v2823_v54, %v1421_v55 }
 0xeca   :  { %1425 = vrot.lane.b32.xlu0 %v1423_v57, %s2944_s22  ;;  %1318 = vperm.xlu1 %2731, %v1316_v56   ;;  %v2494_v56 = vld [vmem:[%s3889_s2 + $0x6] sm:$0x3] }
 0xecb   :  { %vm1570_vm12 = vcmp.gt.f32.partialorder %v2494_v56, 0.0 }
 0xece   :  { %1437 = vperm.xlu0 %2730, %v1435_v59  }
 0xf38   :  { %v1307_v8 = vpop.permute.xlu1 %1306 }
 0xf39   :  { %v3448_v60 = vadd.f32 %v1307_v8, %v1299_v9  ;;  %v1554_v9 = vsel %vm1451_vm7, 1, %v2942_v5 }
 0xf3b   :  { %2824 = vtanh.f32 %v3448_v60 }
 0xf3c   :  { %v1426_v22 = vpop.permute.xlu0 %1425 }
 0xf3d   :  { %v3458_v30 = vadd.f32 %v1426_v22, %v1418_v6  ;;  %v1673_v6 = vsel %vm1570_vm12, 1, %v2942_v5 }
 0xf3f   :  { %2826 = vtanh.f32 %v3458_v30 }
 0xf45   :  { %v3463_v16 = vpop.permute.xlu1 %1318 }
 0xf46   :  { %vm1320_vm1 = vcmp.eq.s32.totalorder %v3463_v16, 1 }
 0xf47   :  { %v3530_v22 = vsel %vm1320_vm1, %v3448_v60, %v3445_v61 }
 0xf48   :  { %v2825_v58 = vpop.eup %2824 }
 0xf49   :  { %1312 = vrot.lane.b32.xlu1 %v2825_v58, %s2945_s23  ;;  %v3465_v23 = vpop.permute.xlu0 %1437 }
 0xf4a   :  { %vm1439_vm4 = vcmp.eq.s32.totalorder %v3465_v23, 1 }
 0xf4c   :  { %v2827_v62 = vpop.eup %2826 }
 0xf4d   :  { %1431 = vrot.lane.b32.xlu0 %v2827_v62, %s2945_s23 }
 0xfbb   :  { %v1313_v7 = vpop.permute.xlu1 %1312 }
 0xfbc   :  { %v3467_v11 = vmul.f32 %v2821_v50, %v1313_v7 }
 0xfbe   :  { %v3474_v32 = vsel %vm1320_vm1, %v3467_v11, %v3394_v26  ;;  %v1323_v19 = vsel %vm1320_vm1, %v3467_v11, 0.0  ;;  %vm3905_vm1 = vmmov %vm3902_vm3 }
 0xfbf   :  { %v1432_v33 = vpop.permute.xlu0 %1431  ;;  %1455 = vrot.lane.b32.xlu1 %v3474_v32, %s2946_s24 }
 0xfc0   :  { %v3478_v35 = vmul.f32 %v2823_v54, %v1432_v33  ;;  %v3539_v33 = vsel %vm1439_vm4, %v3458_v30, %v3454_v63 }
 0xfc2   :  { %v3485_v1 = vsel %vm1439_vm4, %v3478_v35, %v3405_v27  ;;  %v3500_v27 = vld [vmem:[%s3891_s4 + $0x8] sm:$0xff] }
 0xfc3   :  { %1574 = vrot.lane.b32.xlu0 %v3485_v1, %s2946_s24 }
0x1031   :  { %v1456_v36 = vpop.permute.xlu1 %1455 }
0x1032   :  { %2669 = vmatmul.mubr.msk.f32.vlgmr.msra.gmra.mxu0 %vm33_vm6, %v1456_v36 }
0x1033   :  { %2679 = vmatpush3.msra.mxu0 %v2998_v0  ;;  %2682 = vmatprep.mubr.msk.f32.mxu0 %vm2941_vm0, %v2940_v2  ;;  %v2491_v0 = vld [vmem:[%s3887_s0 + $0xc] sm:$0x3] }
0x1034   :  { %2680 = vmatprep.subr.mxu0 %v2940_v2 }
0x1035   :  { %v1575_v26 = vpop.permute.xlu0 %1574  ;;  %2681 = vmatpush3.msra.mxu0 %v3010_v3 }
0x1036   :  { %2676 = vmatmul.mubr.msk.f32.vlgmr.msra.gmra.mxu1 %vm33_vm6, %v1575_v26  ;;  %2692 = vmatprep.subr.mxu0 %v2940_v2 }
0x1037   :  { %2686 = vmatpush3.msra.mxu1 %v3500_v27  ;;  %2689 = vmatprep.mubr.msk.f32.mxu1 %vm2941_vm0, %v2940_v2 }
0x1038   :  { %2687 = vmatprep.subr.mxu1 %v2940_v2 }
0x1039   :  { %2688 = vmatpush3.msra.mxu1 %v3018_v4 }
0x103a   :  { %2699 = vmatprep.subr.mxu1 %v2940_v2 }
0x10f2   :  { %v1525_v3 = vpop.f32.mrf.mxu0 }
0x10f3   :  { %v1529_v37 = vadd.f32 %v2491_v0, %v1525_v3 }
0x10f4   :  { %v2670_v38 = vpop.f32.mrf.mxu0 }
0x10f5   :  { %2828 = vtanh.f32 %v1529_v37  ;;  %v2493_v45 = vmul.f32 -1.442695, %v1529_v37 }
0x10f6   :  { %v1644_v40 = vpop.f32.mrf.mxu1 }
0x10f7   :  { %v1648_v41 = vadd.f32 %v2495_v39, %v1644_v40 }
0x10f8   :  { %v2677_v42 = vpop.f32.mrf.mxu1 }
0x10f9   :  { %2830 = vtanh.f32 %v1648_v41  ;;  %v2497_v46 = vmul.f32 -1.442695, %v1648_v41 }
0x10fa   :  { %2832 = vpow2.f32 %v2493_v45  ;;  %v2499_v45 = vld [vmem:[%s3887_s0 + $0xe] sm:$0x3] }
0x10fb   :  { %2834 = vpow2.f32 %v2497_v46 }
0x1102   :  { %v2829_v43 = vpop.eup %2828 }
0x1103   :  { %1539 = vrot.lane.b32.xlu1 %v2829_v43, %s2943_s19  ;;  %v3587_v43 = vld [vmem:[%s3890_s3] sm:$0xff] }
0x1106   :  { %v2831_v4 = vpop.eup %2830 }
0x1107   :  { %1658 = vrot.lane.b32.xlu0 %v2831_v4, %s2943_s19  ;;  %v2833_v48 = vpop.eup %2832  ;;  %v3599_v4 = vld [vmem:[%s3891_s4] sm:$0xff] }
0x1108   :  { %v1533_v49 = vadd.f32 1.0, %v2833_v48  ;;  %v2835_v50 = vpop.eup %2834 }
0x1109   :  { %v1652_v51 = vadd.f32 1.0, %v2835_v50  ;;  %v2503_v50 = vld [vmem:[%s3888_s1 + $0x4] sm:$0x3] }
0x110a   :  { %2836 = vrcp.f32 %v1533_v49 }
0x110b   :  { %2838 = vrcp.f32 %v1652_v51 }
0x1117   :  { %v2837_v53 = vpop.eup %2836 }
0x1118   :  { %v2839_v57 = vpop.eup %2838  ;;  %v1537_v58 = vmul.f32 %v2837_v53, %v3530_v22 }
0x1119   :  { %v1656_v36 = vmul.f32 %v2839_v57, %v3539_v33 }
0x1175   :  { %v1540_v54 = vpop.permute.xlu1 %1539 }
0x1176   :  { %v1542_v55 = vmul.f32 %v2837_v53, %v1540_v54 }
0x1178   :  { %1544 = vrot.lane.b32.xlu1 %v1542_v55, %s2944_s22 }
0x1179   :  { %v1659_v59 = vpop.permute.xlu0 %1658 }
0x117a   :  { %v1661_v8 = vmul.f32 %v2839_v57, %v1659_v59 }
0x117c   :  { %1663 = vrot.lane.b32.xlu0 %v1661_v8, %s2944_s22  ;;  %1556 = vperm.xlu1 %2731, %v1554_v9  }
0x1180   :  { %1675 = vperm.xlu0 %2730, %v1673_v6  }
0x11ea   :  { %v1545_v62 = vpop.permute.xlu1 %1544 }
0x11eb   :  { %v3533_v7 = vadd.f32 %v1545_v62, %v1537_v58  ;;  %v2498_v58 = vld [vmem:[%s3889_s2 + $0xe] sm:$0x3] }
0x11ec   :  { %vm1689_vm12 = vcmp.gt.f32.partialorder %v2498_v58, 0.0 }
0x11ed   :  { %2840 = vtanh.f32 %v3533_v7 }
0x11ee   :  { %v1664_v26 = vpop.permute.xlu0 %1663 }
0x11ef   :  { %v3543_v0 = vadd.f32 %v1664_v26, %v1656_v36 }
0x11f1   :  { %2842 = vtanh.f32 %v3543_v0 }
0x11f7   :  { %v3548_v3 = vpop.permute.xlu1 %1556 }
0x11f8   :  { %vm1558_vm15 = vcmp.eq.s32.totalorder %v3548_v3, 1 }
0x11fa   :  { %v2841_v61 = vpop.eup %2840 }
0x11fb   :  { %1550 = vrot.lane.b32.xlu1 %v2841_v61, %s2945_s23  ;;  %v3550_v37 = vpop.permute.xlu0 %1675  ;;  %v2502_v61 = vld [vmem:[%s3889_s2 + $0x4] sm:$0x3] }
0x11fc   :  { %vm3897_vm7 = vcmp.eq.s32.totalorder %v3550_v37, 1  ;;  %vm1808_vm5 = vcmp.gt.f32.partialorder %v2502_v61, 0.0 }
0x11fe   :  { %v2843_v60 = vpop.eup %2842 }
0x11ff   :  { %1669 = vrot.lane.b32.xlu0 %v2843_v60, %s2945_s23 }
0x126d   :  { %v1551_v63 = vpop.permute.xlu1 %1550 }
0x126e   :  { %v3552_v30 = vmul.f32 %v2837_v53, %v1551_v63 }
0x1270   :  { %v3559_v38 = vsel %vm1558_vm15, %v3552_v30, %v3474_v32  ;;  %v3578_v32 = vld [vmem:[%s3890_s3 + $0x8] sm:$0xff]  ;;  %v1561_v24 = vsel %vm1558_vm15, %v3552_v30, 0.0 }
0x1271   :  { %v1670_v39 = vpop.permute.xlu0 %1669  ;;  %1693 = vrot.lane.b32.xlu1 %v3559_v38, %s2946_s24 }
0x1272   :  { %v3563_v40 = vmul.f32 %v2839_v57, %v1670_v39  ;;  %v1792_v39 = vsel %vm1689_vm12, 1, %v2942_v5 }
0x1274   :  { %v3570_v41 = vsel %vm3897_vm7, %v3563_v40, %v3485_v1 }
0x1275   :  { %1812 = vrot.lane.b32.xlu0 %v3570_v41, %s2946_s24 }
0x12e3   :  { %v1694_v42 = vpop.permute.xlu1 %1693 }
0x12e4   :  { %2683 = vmatmul.mubr.msk.f32.vlgmr.msra.gmra.mxu0 %vm33_vm6, %v1694_v42 }
0x12e5   :  { %2693 = vmatpush3.msra.mxu0 %v3578_v32  ;;  %2696 = vmatprep.mubr.msk.f32.mxu0 %vm2941_vm0, %v2940_v2 }
0x12e6   :  { %2694 = vmatprep.subr.mxu0 %v2940_v2 }
0x12e7   :  { %v1813_v1 = vpop.permute.xlu0 %1812  ;;  %2695 = vmatpush3.msra.mxu0 %v3587_v43 }
0x12e8   :  { %2690 = vmatmul.mubr.msk.f32.vlgmr.msra.gmra.mxu1 %vm33_vm6, %v1813_v1  ;;  %2706 = vmatprep.subr.mxu0 %v2940_v2  ;;  %v1911_v1 = vsel %vm1808_vm5, 1, %v2942_v5 }
0x12e9   :  { %2700 = vmatpush3.msra.mxu1 %v3500_v27  ;;  %2703 = vmatprep.mubr.msk.f32.mxu1 %vm2941_vm0, %v2940_v2 }
0x12ea   :  { %2701 = vmatprep.subr.mxu1 %v2940_v2 }
0x12eb   :  { %2702 = vmatpush3.msra.mxu1 %v3599_v4 }
0x12ec   :  { %2713 = vmatprep.subr.mxu1 %v2940_v2 }
0x13a4   :  { %v1763_v46 = vpop.f32.mrf.mxu0 }
0x13a5   :  { %v1767_v48 = vadd.f32 %v2499_v45, %v1763_v46  ;;  %v3625_v45 = vsel %vm1558_vm15, %v3533_v7, %v3530_v22  ;;  %vm3907_vm15 = vmmov %vm3905_vm1 }
0x13a6   :  { %v2684_v49 = vpop.f32.mrf.mxu0 }
0x13a7   :  { %2844 = vtanh.f32 %v1767_v48  ;;  %v2501_v56 = vmul.f32 -1.442695, %v1767_v48 }
0x13a8   :  { %v1882_v51 = vpop.f32.mrf.mxu1 }
0x13a9   :  { %v1886_v52 = vadd.f32 %v2503_v50, %v1882_v51  ;;  %v3634_v50 = vsel %vm3897_vm7, %v3543_v0, %v3539_v33 }
0x13aa   :  { %v2691_v53 = vpop.f32.mrf.mxu1 }
0x13ab   :  { %2846 = vtanh.f32 %v1886_v52  ;;  %v2505_v57 = vmul.f32 -1.442695, %v1886_v52 }
0x13ac   :  { %2848 = vpow2.f32 %v2501_v56 }
0x13ad   :  { %2850 = vpow2.f32 %v2505_v57 }
0x13b4   :  { %v2845_v54 = vpop.eup %2844 }
0x13b5   :  { %1777 = vrot.lane.b32.xlu1 %v2845_v54, %s2943_s19 }
0x13b8   :  { %v2847_v55 = vpop.eup %2846 }
0x13b9   :  { %1896 = vrot.lane.b32.xlu0 %v2847_v55, %s2943_s19  ;;  %v2849_v59 = vpop.eup %2848 }
0x13ba   :  { %v1771_v9 = vadd.f32 1.0, %v2849_v59  ;;  %v2851_v8 = vpop.eup %2850 }
0x13bb   :  { %v1890_v6 = vadd.f32 1.0, %v2851_v8 }
0x13bc   :  { %2852 = vrcp.f32 %v1771_v9 }
0x13bd   :  { %2854 = vrcp.f32 %v1890_v6 }
0x13c9   :  { %v2853_v62 = vpop.eup %2852 }
0x13ca   :  { %v2855_v60 = vpop.eup %2854  ;;  %v1775_v46 = vmul.f32 %v2853_v62, %v3625_v45 }
0x13cb   :  { %v1894_v51 = vmul.f32 %v2855_v60, %v3634_v50 }
0x1427   :  { %v1778_v36 = vpop.permute.xlu1 %1777 }
0x1428   :  { %v1780_v26 = vmul.f32 %v2853_v62, %v1778_v36 }
0x142a   :  { %1782 = vrot.lane.b32.xlu1 %v1780_v26, %s2944_s22 }
0x142b   :  { %v1897_v63 = vpop.permute.xlu0 %1896 }
0x142c   :  { %v1899_v42 = vmul.f32 %v2855_v60, %v1897_v63 }
0x142e   :  { %1901 = vrot.lane.b32.xlu0 %v1899_v42, %s2944_s22  ;;  %1794 = vperm.xlu1 %2731, %v1792_v39  }
0x1432   :  { %1913 = vperm.xlu0 %2730, %v1911_v1   ;;  %v2506_v1 = vld [vmem:[%s3889_s2 + $0x10] sm:$0x3] }
0x149c   :  { %v1783_v48 = vpop.permute.xlu1 %1782 }
0x149d   :  { %v3628_v49 = vadd.f32 %v1783_v48, %v1775_v46 }
0x149f   :  { %2856 = vtanh.f32 %v3628_v49 }
0x14a0   :  { %v1902_v52 = vpop.permute.xlu0 %1901 }
0x14a1   :  { %v3638_v53 = vadd.f32 %v1902_v52, %v1894_v51  ;;  %v2510_v52 = vld [vmem:[%s3889_s2 + $0x2] sm:$0x3] }
0x14a2   :  { %vm2046_vm7 = vcmp.gt.f32.partialorder %v2510_v52, 0.0 }
0x14a3   :  { %2858 = vtanh.f32 %v3638_v53 }
0x14a9   :  { %v3643_v54 = vpop.permute.xlu1 %1794 }
0x14aa   :  { %vm1796_vm5 = vcmp.eq.s32.totalorder %v3643_v54, 1 }
0x14ac   :  { %v2857_v22 = vpop.eup %2856 }
0x14ad   :  { %1788 = vrot.lane.b32.xlu1 %v2857_v22, %s2945_s23  ;;  %v3645_v55 = vpop.permute.xlu0 %1913 }
0x14ae   :  { %vm3898_vm12 = vcmp.eq.s32.totalorder %v3645_v55, 1 }
0x14b0   :  { %v2859_v7 = vpop.eup %2858 }
0x14b1   :  { %1907 = vrot.lane.b32.xlu0 %v2859_v7, %s2945_s23 }
0x151f   :  { %v1789_v33 = vpop.permute.xlu1 %1788 }
0x1520   :  { %v3647_v0 = vmul.f32 %v2853_v62, %v1789_v33 }
0x1522   :  { %v3654_v56 = vsel %vm1796_vm5, %v3647_v0, %v3559_v38  ;;  %v1799_v14 = vsel %vm1796_vm5, %v3647_v0, 0.0 }
0x1523   :  { %v1908_v57 = vpop.permute.xlu0 %1907  ;;  %1931 = vrot.lane.b32.xlu1 %v3654_v56, %s2946_s24 }
0x1524   :  { %v3658_v59 = vmul.f32 %v2855_v60, %v1908_v57 }
0x1526   :  { %v3665_v9 = vsel %vm3898_vm12, %v3658_v59, %v3570_v41  ;;  %v2507_v41 = vld [vmem:[%s3887_s0 + $0x10] sm:$0x3] }
0x1527   :  { %2050 = vrot.lane.b32.xlu0 %v3665_v9, %s2946_s24 }
0x1595   :  { %v1932_v8 = vpop.permute.xlu1 %1931 }
0x1596   :  { %2697 = vmatmul.mubr.msk.f32.vlgmr.msra.gmra.mxu0 %vm33_vm6, %v1932_v8  ;;  %v2149_v8 = vsel %vm2046_vm7, 1, %v2942_v5 }
0x1597   :  { %2707 = vmatpush3.msra.mxu0 %v3578_v32  ;;  %2710 = vmatprep.mubr.msk.f32.mxu0 %vm2941_vm0, %v2940_v2 }
0x1598   :  { %2708 = vmatprep.subr.mxu0 %v2940_v2 }
0x1599   :  { %v2051_v38 = vpop.permute.xlu0 %2050  ;;  %2709 = vmatpush3.msra.mxu0 %v3587_v43  ;;  %v2511_v43 = vld [vmem:[%s3888_s1 + $0x2] sm:$0x3] }
0x159a   :  { %2704 = vmatmul.mubr.msk.f32.vlgmr.msra.gmra.mxu1 %vm33_vm6, %v2051_v38  ;;  %v3703_v38 = vsel %vm1796_vm5, %v3628_v49, %v3625_v45  ;;  %vm3908_vm5 = vmmov %vm3905_vm1 }
0x159b   :  { %2714 = vmatpush3.msra.mxu1 %v3500_v27  ;;  %2717 = vmatprep.mubr.msk.f32.mxu1 %vm2941_vm0, %v2940_v2  ;;  %vm1927_vm0 = vcmp.gt.f32.partialorder %v2506_v1, 0.0 }
0x159c   :  { %2715 = vmatprep.subr.mxu1 %v2940_v2  ;;  %v2030_v33 = vsel %vm1927_vm0, 1, %v2942_v5 }
0x159d   :  { %2716 = vmatpush3.msra.mxu1 %v3599_v4 }
0x1656   :  { %v2001_v32 = vpop.f32.mrf.mxu0 }
0x1657   :  { %v2005_v6 = vadd.f32 %v2507_v41, %v2001_v32 }
0x1658   :  { %v2698_v58 = vpop.f32.mrf.mxu0 }
0x1659   :  { %2860 = vtanh.f32 %v2005_v6  ;;  %v2509_v4 = vmul.f32 -1.442695, %v2005_v6  ;;  %v3712_v58 = vsel %vm3898_vm12, %v3638_v53, %v3634_v50 }
0x165a   :  { %v2120_v27 = vpop.f32.mrf.mxu1 }
0x165b   :  { %v2124_v62 = vadd.f32 %v2511_v43, %v2120_v27 }
0x165c   :  { %v2705_v36 = vpop.f32.mrf.mxu1 }
0x165d   :  { %2862 = vtanh.f32 %v2124_v62  ;;  %v2513_v61 = vmul.f32 -1.442695, %v2124_v62 }
0x165e   :  { %2864 = vpow2.f32 %v2509_v4 }
0x165f   :  { %2866 = vpow2.f32 %v2513_v61 }
0x1666   :  { %v2861_v26 = vpop.eup %2860 }
0x1667   :  { %2015 = vrot.lane.b32.xlu1 %v2861_v26, %s2943_s19 }
0x166a   :  { %v2863_v2 = vpop.eup %2862 }
0x166b   :  { %2134 = vrot.lane.b32.xlu0 %v2863_v2, %s2943_s19  ;;  %v2865_v60 = vpop.eup %2864 }
0x166c   :  { %v2009_v63 = vadd.f32 1.0, %v2865_v60  ;;  %v2867_v39 = vpop.eup %2866 }
0x166d   :  { %v2128_v42 = vadd.f32 1.0, %v2867_v39 }
0x166e   :  { %2868 = vrcp.f32 %v2009_v63 }
0x166f   :  { %2870 = vrcp.f32 %v2128_v42 }
0x167b   :  { %v2869_v46 = vpop.eup %2868 }
0x167c   :  { %v2871_v22 = vpop.eup %2870  ;;  %v2013_v41 = vmul.f32 %v2869_v46, %v3703_v38 }
0x167d   :  { %v2132_v43 = vmul.f32 %v2871_v22, %v3712_v58 }
0x16d9   :  { %v2016_v48 = vpop.permute.xlu1 %2015 }
0x16da   :  { %v2018_v51 = vmul.f32 %v2869_v46, %v2016_v48  ;;  %v2283_v48 = vld [vmem:[%s3888_s1] sm:$0x3] }
0x16dc   :  { %2020 = vrot.lane.b32.xlu1 %v2018_v51, %s2944_s22 }
0x16dd   :  { %v2135_v7 = vpop.permute.xlu0 %2134 }
0x16de   :  { %v2137_v57 = vmul.f32 %v2871_v22, %v2135_v7 }
0x16e0   :  { %2139 = vrot.lane.b32.xlu0 %v2137_v57, %s2944_s22  ;;  %2032 = vperm.xlu1 %2731, %v2030_v33  }
0x16e4   :  { %2151 = vperm.xlu0 %2730, %v2149_v8  }
0x174e   :  { %v2021_v32 = vpop.permute.xlu1 %2020 }
0x174f   :  { %v3706_v6 = vadd.f32 %v2021_v32, %v2013_v41 }
0x1751   :  { %2872 = vtanh.f32 %v3706_v6 }
0x1752   :  { %v2140_v27 = vpop.permute.xlu0 %2139 }
0x1753   :  { %v3716_v62 = vadd.f32 %v2140_v27, %v2132_v43  ;;  %v2514_v27 = vld [vmem:[%s3889_s2 + $0x12] sm:$0x3] }
0x1755   :  { %2874 = vtanh.f32 %v3716_v62 }
0x175b   :  { %v3721_v36 = vpop.permute.xlu1 %2032 }
0x175c   :  { %vm2034_vm7 = vcmp.eq.s32.totalorder %v3721_v36, 1 }
0x175e   :  { %v2873_v45 = vpop.eup %2872 }
0x175f   :  { %2026 = vrot.lane.b32.xlu1 %v2873_v45, %s2945_s23  ;;  %v3723_v26 = vpop.permute.xlu0 %2151 }
0x1760   :  { %vm2153_vm0 = vcmp.eq.s32.totalorder %v3723_v26, 1 }
0x1762   :  { %v2875_v49 = vpop.eup %2874 }
0x1763   :  { %2145 = vrot.lane.b32.xlu0 %v2875_v49, %s2945_s23 }
0x17d1   :  { %v2027_v50 = vpop.permute.xlu1 %2026 }
0x17d2   :  { %v3725_v53 = vmul.f32 %v2869_v46, %v2027_v50 }
0x17d4   :  { %v2035_v2 = vsel %vm2034_vm7, %v3725_v53, %v3654_v56  ;;  %v2515_v56 = vld [vmem:[%s3887_s0 + $0x12] sm:$0x3]  ;;  %v2037_v20 = vsel %vm2034_vm7, %v3725_v53, 0.0 }
0x17d5   :  { %v2146_v4 = vpop.permute.xlu0 %2145  ;;  %2169 = vrot.lane.b32.xlu1 %v2035_v2, %s2946_s24  ;;  %v2281_v2 = vld [vmem:[%s3889_s2] sm:$0x3]  ;;  %s2947_s2 = smov [#allocation2]  }
0x17d6   :  { %v3733_v61 = vmul.f32 %v2871_v22, %v2146_v4  ;;  %vm2282_vm12 = vcmp.gt.f32.partialorder %v2281_v2, 0.0 }
0x17d8   :  { %v2154_v60 = vsel %vm2153_vm0, %v3733_v61, %v3665_v9  ;;  %v2156_v12 = vsel %vm2153_vm0, %v3733_v61, 0.0 }
0x17d9   :  { %2285 = vrot.lane.b32.xlu0 %v2154_v60, %s2946_s24 }
0x1847   :  { %v2170_v63 = vpop.permute.xlu1 %2169 }
0x1848   :  { %2711 = vmatmul.mubr.msk.f32.vlgmr.msra.gmra.mxu0 %vm33_vm6, %v2170_v63 }
0x184b   :  { %v2286_v39 = vpop.permute.xlu0 %2285 }
0x184c   :  { %2718 = vmatmul.mubr.msk.f32.vlgmr.msra.gmra.mxu1 %vm33_vm6, %v2286_v39  ;;  %vm2165_vm6 = vcmp.gt.f32.partialorder %v2514_v27, 0.0 }
0x184d   :  { %v2268_v63 = vsel %vm2165_vm6, 1, %v2942_v5 }
0x1908   :  { %v2239_v42 = vpop.f32.mrf.mxu0 }
0x1909   :  { %v2243_v1 = vadd.f32 %v2515_v56, %v2239_v42  ;;  %v2384_v56 = vsel %vm2282_vm12, 1, %v2942_v5  ;;  %v2036_v42 = vsel %vm2034_vm7, %v3706_v6, %v3703_v38  ;;  %v367_v38 = vsel %vm364_vm9, %v3147_v31, 0.0  ;;  %vm3909_vm12 = vmmov %vm3905_vm1 }
0x190a   :  { %v2712_v46 = vpop.f32.mrf.mxu0  ;;  %v484_v6 = vsel %vm481_vm10, %v3158_v34, 0.0  ;;  %v844_v31 = vsel %vm841_vm2, %v3307_v15, 0.0  ;;  %v1084_v34 = vsel %vm1081_vm8, %v3387_v10, 0.0  ;;  %vm3899_vm9 = vcmp.eq.s32.totalorder %v3550_v37, 1  ;;  %vm3903_vm8 = vmmov %vm3902_vm3 }
0x190b   :  { %2876 = vtanh.f32 %v2243_v1  ;;  %v2517_v33 = vmul.f32 -1.442695, %v2243_v1  ;;  %v1680_v13 = vsel %vm3899_vm9, %v3563_v40, 0.0  ;;  %vm3900_vm10 = vcmp.eq.s32.totalorder %v3645_v55, 1  ;;  %vm3910_vm7 = vmmov %vm3905_vm1 }
0x190c   :  { %v2355_v9 = vpop.f32.mrf.mxu1  ;;  %v1918_v15 = vsel %vm3900_vm10, %v3658_v59, 0.0  ;;  %v374_v17 = vmax.f32 %v3078_v44, %v367_v38  ;;  %v491_v25 = vmax.f32 %v3085_v47, %v484_v6 }
0x190d   :  { %v2359_v51 = vadd.f32 %v2355_v9, %v2283_v48  ;;  %v2155_v9 = vsel %vm2153_vm0, %v3716_v62, %v3712_v58  ;;  %v604_v58 = vsel %vm601_vm13, %v3227_v21, 0.0  ;;  %v1442_v21 = vsel %vm1439_vm4, %v3478_v35, 0.0  ;;  %vm3906_vm4 = vmmov %vm3905_vm1 }
0x190e   :  { %v2719_v52 = vpop.f32.mrf.mxu1  ;;  %v611_v10 = vmax.f32 %v374_v17, %v604_v58  ;;  %v731_v23 = vmax.f32 %v491_v25, %v724_v28  ;;  %vm3911_vm0 = vmmov %vm3905_vm1 }
0x190f   :  { %2878 = vtanh.f32 %v2359_v51  ;;  %v2519_v57 = vmul.f32 -1.442695, %v2359_v51  ;;  %vm3912_vm6 = vmmov %vm3911_vm0 }
0x1910   :  { %2880 = vpow2.f32 %v2517_v33  ;;  %v851_v16 = vmax.f32 %v611_v10, %v844_v31  ;;  %v971_v3 = vmax.f32 %v731_v23, %v964_v29  ;;  %vm3913_vm9 = vmmov %vm3911_vm0 }
0x1911   :  { %2882 = vpow2.f32 %v2519_v57  ;;  %vm3914_vm10 = vmmov %vm3911_vm0 }
0x1912   :  { %v1091_v11 = vmax.f32 %v851_v16, %v1084_v34  ;;  %v1211_v30 = vmax.f32 %v971_v3, %v1204_v18 }
0x1914   :  { %v1330_v37 = vmax.f32 %v1091_v11, %v1323_v19  ;;  %v1449_v59 = vmax.f32 %v1211_v30, %v1442_v21 }
0x1916   :  { %v1568_v40 = vmax.f32 %v1330_v37, %v1561_v24  ;;  %v1687_v44 = vmax.f32 %v1449_v59, %v1680_v13 }
0x1918   :  { %v2877_v22 = vpop.eup %2876  ;;  %v1806_v62 = vmax.f32 %v1568_v40, %v1799_v14  ;;  %v1925_v33 = vmax.f32 %v1687_v44, %v1918_v15 }
0x1919   :  { %2253 = vrot.lane.b32.xlu1 %v2877_v22, %s2943_s19 }
0x191a   :  { %v2044_v26 = vmax.f32 %v1806_v62, %v2037_v20 }
0x191c   :  { %v2879_v7 = vpop.eup %2878 }
0x191d   :  { %2369 = vrot.lane.b32.xlu0 %v2879_v7, %s2943_s19  ;;  %v2881_v8 = vpop.eup %2880 }
0x191e   :  { %v2247_v41 = vadd.f32 1.0, %v2881_v8  ;;  %v2883_v32 = vpop.eup %2882 }
0x191f   :  { %v2363_v43 = vadd.f32 1.0, %v2883_v32 }
0x1920   :  { %2884 = vrcp.f32 %v2247_v41  ;;  %v2163_v41 = vmax.f32 %v1925_v33, %v2156_v12 }
0x1921   :  { %2886 = vrcp.f32 %v2363_v43 }
0x192d   :  { %v3754_v45 = vpop.eup %2884 }
0x192e   :  { %v3761_v4 = vpop.eup %2886  ;;  %v2251_v1 = vmul.f32 %v3754_v45, %v2036_v42 }
0x192f   :  { %v2367_v51 = vmul.f32 %v3761_v4, %v2155_v9 }
0x198b   :  { %v2254_v49 = vpop.permute.xlu1 %2253 }
0x198c   :  { %v2256_v50 = vmul.f32 %v3754_v45, %v2254_v49 }
0x198e   :  { %2258 = vrot.lane.b32.xlu1 %v2256_v50, %s2944_s22 }
0x198f   :  { %v2370_v60 = vpop.permute.xlu0 %2369 }
0x1990   :  { %v2372_v39 = vmul.f32 %v3761_v4, %v2370_v60 }
0x1992   :  { %2374 = vrot.lane.b32.xlu0 %v2372_v39, %s2944_s22  ;;  %2270 = vperm.xlu1 %2731, %v2268_v63   ;;  %s2411_s22 = sshll.u32 %s2947_s2, 4  ;;  %s2412_s22 = int_to_ptr.vmem [resolvable:$true] %s2411_s22 }
0x1993   :  { %s2896_s28 = scalar_lea.vmem %s2412_s22, 320  ;;  %p2901_p1 = scmp.lt.s32.totalorder %s2412_s22, %s2412_s22 }
0x1994   :  { %p2897_p0 = scmp.ne.s32.totalorder %s2412_s22, %s2896_s28  ;;  %p2902_p2 = scmp.lt.s32.totalorder %s2896_s28, %s2896_s28 }
0x1996   :  { %2386 = vperm.xlu0 %2730, %v2384_v56   ;;  %p2903_p3 = por %p2902_p2, %p2901_p1 }
0x1998   :  { %p2904_p4 = pnand %p2903_p3, %p2897_p0 }
0x1a00   :  { %v2259_v46 = vpop.permute.xlu1 %2258 }
0x1a01   :  { %v2261_v48 = vadd.f32 %v2259_v46, %v2251_v1 }
0x1a03   :  { %2888 = vtanh.f32 %v2261_v48 }
0x1a04   :  { %v2375_v52 = vpop.permute.xlu0 %2374 }
0x1a05   :  { %v2377_v5 = vadd.f32 %v2375_v52, %v2367_v51 }
0x1a07   :  { %2890 = vtanh.f32 %v2377_v5 }
0x1a0d   :  { %v2271_v35 = vpop.permute.xlu1 %2270 }
0x1a0e   :  { %vm2272_vm13 = vcmp.eq.s32.totalorder %v2271_v35, 1 }
0x1a10   :  { %v2889_v22 = vpop.eup %2888 }
0x1a11   :  { %2264 = vrot.lane.b32.xlu1 %v2889_v22, %s2945_s23  ;;  %v2387_v54 = vpop.permute.xlu0 %2386 }
0x1a12   :  { %vm2388_vm2 = vcmp.eq.s32.totalorder %v2387_v54, 1 }
0x1a14   :  { %v2891_v7 = vpop.eup %2890 }
0x1a15   :  { %2380 = vrot.lane.b32.xlu0 %v2891_v7, %s2945_s23  ;;  %369 = vrot.lane.b32.xlu1 %v367_v38, %s2946_s24 }
0x1a19   :  { %486 = vrot.lane.b32.xlu0 %v484_v6, %s2946_s24  ;;  %606 = vrot.lane.b32.xlu1 %v604_v58, %s2946_s24 }
0x1a1d   :  { %726 = vrot.lane.b32.xlu0 %v724_v28, %s2946_s24  ;;  %846 = vrot.lane.b32.xlu1 %v844_v31, %s2946_s24 }
0x1a21   :  { %966 = vrot.lane.b32.xlu0 %v964_v29, %s2946_s24  ;;  %1086 = vrot.lane.b32.xlu1 %v1084_v34, %s2946_s24 }
0x1a25   :  { %1206 = vrot.lane.b32.xlu0 %v1204_v18, %s2946_s24  ;;  %1325 = vrot.lane.b32.xlu1 %v1323_v19, %s2946_s24 }
0x1a29   :  { %1444 = vrot.lane.b32.xlu0 %v1442_v21, %s2946_s24  ;;  %1563 = vrot.lane.b32.xlu1 %v1561_v24, %s2946_s24 }
0x1a2d   :  { %1682 = vrot.lane.b32.xlu0 %v1680_v13, %s2946_s24  ;;  %1801 = vrot.lane.b32.xlu1 %v1799_v14, %s2946_s24 }
0x1a31   :  { %1920 = vrot.lane.b32.xlu0 %v1918_v15, %s2946_s24  ;;  %2039 = vrot.lane.b32.xlu1 %v2037_v20, %s2946_s24 }
0x1a35   :  { %2158 = vrot.lane.b32.xlu0 %v2156_v12, %s2946_s24 }
0x1a83   :  { %v2265_v55 = vpop.permute.xlu1 %2264 }
0x1a84   :  { %v2267_v0 = vmul.f32 %v3754_v45, %v2265_v55 }
0x1a86   :  { %v2273_v36 = vsel %vm2272_vm13, %v2267_v0, 0.0  ;;  %vm3915_vm13 = vmmov %vm3911_vm0 }
0x1a87   :  { %v2381_v53 = vpop.permute.xlu0 %2380  ;;  %2275 = vrot.lane.b32.xlu1 %v2273_v36, %s2946_s24  ;;  %v370_v47 = vpop.permute.xlu1 %369  ;;  %v2280_v57 = vmax.f32 %v2044_v26, %v2273_v36 }
0x1a88   :  { %v2383_v61 = vmul.f32 %v3761_v4, %v2381_v53  ;;  %373 = vst.msk [vmem:[#allocation2 + $0x2] sm:$0x3] %vm3901_vm14, %v370_v47  ;;  %vm3916_vm14 = vmmov %vm3911_vm0 }
0x1a8a   :  { %v2389_v8 = vsel %vm2388_vm2, %v2383_v61, 0.0  ;;  %vm3917_vm2 = vmmov %vm3911_vm0 }
0x1a8b   :  { %2391 = vrot.lane.b32.xlu0 %v2389_v8, %s2946_s24  ;;  %v487_v32 = vpop.permute.xlu0 %486  ;;  %2397 = vrot.lane.b32.xlu1 %v2280_v57, %s2946_s24  ;;  %v607_v43 = vpop.permute.xlu1 %606  ;;  %v2395_v27 = vmax.f32 %v2163_v41, %v2389_v8 }
0x1a8c   :  { %490 = vst.msk [vmem:[#allocation4 + $0x10] sm:$0x3] %vm3902_vm3, %v487_v32 }
0x1a8d   :  { %610 = vst.msk [vmem:[#allocation2 + $0x4] sm:$0x3] %vm3903_vm8, %v607_v43 }
0x1a8f   :  { %2402 = vrot.lane.b32.xlu0 %v2395_v27, %s2946_s24  ;;  %v727_v45 = vpop.permute.xlu0 %726  ;;  %v847_v49 = vpop.permute.xlu1 %846  ;;  %s2948_s24 = smov [#allocation4]  }
0x1a90   :  { %730 = vst.msk [vmem:[#allocation4 + $0xe] sm:$0x3] %vm3904_vm11, %v727_v45  ;;  %s2423_s27 = sshll.u32 %s2948_s24, 4  ;;  %s2424_s27 = int_to_ptr.vmem [resolvable:$true] %s2423_s27 }
0x1a91   :  { %850 = vst.msk [vmem:[#allocation2 + $0x6] sm:$0x3] %vm3905_vm1, %v847_v49 }
0x1a93   :  { %v967_v50 = vpop.permute.xlu0 %966  ;;  %v1087_v2 = vpop.permute.xlu1 %1086 }
0x1a94   :  { %970 = vst.msk [vmem:[#allocation4 + $0xc] sm:$0x3] %vm3906_vm4, %v967_v50 }
0x1a95   :  { %1090 = vst.msk [vmem:[#allocation2 + $0x8] sm:$0x3] %vm3907_vm15, %v1087_v2 }
0x1a97   :  { %v1207_v4 = vpop.permute.xlu0 %1206  ;;  %v1326_v60 = vpop.permute.xlu1 %1325 }
0x1a98   :  { %1210 = vst.msk [vmem:[#allocation4 + $0xa] sm:$0x3] %vm3908_vm5, %v1207_v4 }
0x1a99   :  { %1329 = vst.msk [vmem:[#allocation2 + $0xa] sm:$0x3] %vm3909_vm12, %v1326_v60 }
0x1a9b   :  { %v1445_v63 = vpop.permute.xlu0 %1444  ;;  %v1564_v39 = vpop.permute.xlu1 %1563 }
0x1a9c   :  { %1448 = vst.msk [vmem:[#allocation4 + $0x8] sm:$0x3] %vm3910_vm7, %v1445_v63 }
0x1a9d   :  { %1567 = vst.msk [vmem:[#allocation2 + $0xc] sm:$0x3] %vm3911_vm0, %v1564_v39 }
0x1a9f   :  { %v1683_v56 = vpop.permute.xlu0 %1682  ;;  %v1802_v42 = vpop.permute.xlu1 %1801 }
0x1aa0   :  { %1686 = vst.msk [vmem:[#allocation4 + $0x6] sm:$0x3] %vm3912_vm6, %v1683_v56 }
0x1aa1   :  { %1805 = vst.msk [vmem:[#allocation2 + $0xe] sm:$0x3] %vm3913_vm9, %v1802_v42 }
0x1aa3   :  { %v1921_v1 = vpop.permute.xlu0 %1920  ;;  %v2040_v46 = vpop.permute.xlu1 %2039 }
0x1aa4   :  { %1924 = vst.msk [vmem:[#allocation4 + $0x4] sm:$0x3] %vm3914_vm10, %v1921_v1 }
0x1aa5   :  { %2043 = vst.msk [vmem:[#allocation2 + $0x10] sm:$0x3] %vm3915_vm13, %v2040_v46 }
0x1aa7   :  { %v2159_v48 = vpop.permute.xlu0 %2158 }
0x1aa8   :  { %2162 = vst.msk [vmem:[#allocation4 + $0x2] sm:$0x3] %vm3916_vm14, %v2159_v48 }
0x1af9   :  { %v2276_v9 = vpop.permute.xlu1 %2275 }
0x1afa   :  { %2279 = vst.msk [vmem:[#allocation2 + $0x12] sm:$0x3] %vm3917_vm2, %v2276_v9 }
0x1afb   :  { %2907 = shalt.err (!%p2904_p4)
}
0x1afc   :  { %s2949_s29 = smov 2   ;;  %vm3918_vm3 = vmmov %vm3911_vm0  ;;  %s2916_s11 = scalar_lea.vmem %s2424_s27, 320 }
0x1afd   :  { %2417 = dma.vmem_to_hbm [thread:$0]  %s2412_s22, 320, %s3892_s5, [#allocation3], %s2945_s23, %s2945_s23, %s2949_s29   ;;  %v2392_v51 = vpop.permute.xlu0 %2391  ;;  %v2398_v52 = vpop.permute.xlu1 %2397  ;;  %vm3919_vm8 = vmmov %vm3911_vm0 }
0x1afe   :  { %2394 = vst.msk [vmem:[#allocation4] sm:$0x3] %vm3918_vm3, %v2392_v51  ;;  %p2917_p5 = scmp.ne.s32.totalorder %s2424_s27, %s2916_s11  ;;  %p2921_p6 = scmp.lt.s32.totalorder %s2424_s27, %s2424_s27 }
0x1aff   :  { %2400 = vst.msk [vmem:[%s3894_s7] sm:$0x3] %vm3919_vm8, %v2398_v52  ;;  %p2922_p7 = scmp.lt.s32.totalorder %s2916_s11, %s2916_s11 }
0x1b01   :  { %p2923_p8 = por %p2922_p7, %p2921_p6 }
0x1b03   :  { %p2924_p9 = pnand %p2923_p8, %p2917_p5 }
0x1b05   :  { %2927 = shalt.err (!%p2924_p9)
}
0x1b06   :  { %2429 = dma.vmem_to_hbm [thread:$0]  %s2424_s27, 320, %s3893_s6, [#allocation5], %s2945_s23, %s2945_s23, %s2949_s29   ;;  %v2403_v5 = vpop.permute.xlu0 %2402  ;;  %vm3920_vm11 = vmmov %vm3911_vm0 }
0x1b07   :  { %2405 = vst.msk [vmem:[%s3895_s8] sm:$0x3] %vm3920_vm11, %v2403_v5 }
0x1b08   :  { %2936 = dma.done.wait [#allocation3], 320  }
0x1b09   :  { %2937 = vsyncadd [#allocation3], 4294966976 }
0x1b0a   :  { %2938 = dma.done.wait [#allocation5], 320  }
0x1b0b   :  { %2939 = vsyncadd [#allocation5], 4294966976 }
0x1b0c   :  { %2444 = vsyncpa [#allocation3], 1 }
0x1b0d   :  { %2445 = vsyncpa [#allocation5], 1 }

// kernel: residual_stacked_encoder_forward.3
= control target key start
LH: loop header
LB: loop body
LE: loop exit
PB: predicated region body
PF: predicated region fallthrough
CT: control target
= control target key end

     0   :  { %14 = vsyncpa [#allocation3], 0  ;;  %v2953_v2 = vmov 0.0   ;;  %s3949_s0 = inlined_call_operand.vmem [shape: f32[10,2,64], index: 0, kind: input, shape index: {}]   ;;  %s3950_s1 = inlined_call_operand.vmem [shape: f32[10,2,64], index: 1, kind: input, shape index: {}]   ;;  %s3951_s2 = inlined_call_operand.vmem [shape: f32[10,2,1], index: 2, kind: input, shape index: {}]   ;;  %s3952_s3 = inlined_call_operand.vmem [shape: f32[16,64], index: 3, kind: input, shape index: {}]   ;;  %s3953_s4 = inlined_call_operand.vmem [shape: f32[16,64], index: 4, kind: input, shape index: {}]   ;;  %s3954_s5 = inlined_call_operand.vmem [shape: f32[10,2,16], index: 5, kind: output, shape index: {0}]   ;;  %s3955_s6 = inlined_call_operand.vmem [shape: f32[10,2,16], index: 6, kind: output, shape index: {1}]   ;;  %s3956_s7 = inlined_call_operand.hbm [shape: f32[2,16], index: 7, kind: output, shape index: {2}]   ;;  %s3957_s8 = inlined_call_operand.hbm [shape: f32[2,16], index: 8, kind: output, shape index: {3}]  }
   0x1   :  { %v3010_v0 = vld [vmem:[%s3952_s3 + $0x8] sm:$0xff]  ;;  %2594 = vmatprep.subr.mxu0 %v2953_v2  ;;  %2601 = vmatprep.subr.mxu1 %v2953_v2  ;;  %v3022_v3 = vld [vmem:[%s3952_s3] sm:$0xff] }
   0x2   :  { %v3015_v1 = vld [vmem:[%s3953_s4 + $0x8] sm:$0xff] }
   0x3   :  { %15 = vsyncpa [#allocation5], 0  ;;  %2595 = vmatpush3.msra.mxu0 %v3010_v0  ;;  %vm2954_vm0 = vmmov 0   ;;  %v3030_v4 = vld [vmem:[%s3953_s4] sm:$0xff]  ;;  %2602 = vmatpush3.msra.mxu1 %v3015_v1  ;;  %v2955_v5 = vmov 0   ;;  %s2956_s19 = smov 96  }
   0x4   :  { %2598 = vmatprep.mubr.msk.f32.mxu0 %vm2954_vm0, %v2953_v2  ;;  %2596 = vmatprep.subr.mxu0 %v2953_v2  ;;  %v32_v6 = vld [vmem:[%s3949_s0] sm:$0x3]  ;;  %v2444_v8 = vld [vmem:[%s3950_s1 + $0x12] sm:$0x3]  ;;  %s2957_s22 = smov 16   ;;  %s2958_s23 = smov 32  }
   0x5   :  { %2597 = vmatpush3.msra.mxu0 %v3022_v3  ;;  %2603 = vmatprep.subr.mxu1 %v2953_v2  ;;  %v30_v15 = vld [vmem:[%s3951_s2] sm:$0x3]  ;;  %v2443_v27 = vld [vmem:[%s3951_s2 + $0x12] sm:$0x3]  ;;  %s2959_s24 = smov 80   ;;  %vm3958_vm5 = vcmask 123904  }
   0x6   :  { %2599 = vmatmul.mubr.f32.vlgmr.msra.gmra.mxu0 %v2953_v2  ;;  %2604 = vmatpush3.msra.mxu1 %v3030_v4  ;;  %vm31_vm1 = vcmp.gt.f32.partialorder %v30_v15, 0.0  ;;  %vm147_vm2 = vcmp.gt.f32.partialorder %v2443_v27, 0.0  ;;  %vm33_vm6 = vcmask 130048   ;;  %v2448_v50 = vld [vmem:[%s3949_s0 + $0x2] sm:$0x3]  ;;  %s2960_s11 = smov [#allocation2]  }
   0x7   :  { %2605 = vmatprep.mubr.msk.f32.mxu1 %vm2954_vm0, %v2953_v2  ;;  %2608 = vmatprep.subr.mxu0 %v2953_v2  ;;  %v132_v17 = vsel %vm31_vm1, 1, %v2955_v5  ;;  %v245_v31 = vsel %vm147_vm2, 1, %v2955_v5  ;;  %v2453_v54 = vld [vmem:[%s3950_s1 + $0x10] sm:$0x3]  ;;  %s2961_s12 = smov [#allocation4]  }
   0x8   :  { %2606 = vmatmul.mubr.f32.vlgmr.msra.gmra.mxu1 %v2953_v2  ;;  %2609 = vmatpush3.msra.mxu0 %v3010_v0  ;;  %s2426_s13 = sshll.u32 %s2961_s12, 4  ;;  %s2427_s13 = int_to_ptr.vmem [resolvable:$true] %s2426_s13 }
   0x9   :  { %2610 = vmatprep.subr.mxu0 %v2953_v2  ;;  %2612 = vmatprep.mubr.msk.f32.mxu0 %vm2954_vm0, %v2953_v2 }
   0xa   :  { %2611 = vmatpush3.msra.mxu0 %v3022_v3  ;;  %2615 = vmatprep.subr.mxu1 %v2953_v2 }
   0xb   :  { %2616 = vmatpush3.msra.mxu1 %v3015_v1  ;;  %2619 = vmatprep.mubr.msk.f32.mxu1 %vm2954_vm0, %v2953_v2 }
   0xc   :  { %2617 = vmatprep.subr.mxu1 %v2953_v2  ;;  %2622 = vmatprep.subr.mxu0 %v2953_v2 }
   0xd   :  { %2618 = vmatpush3.msra.mxu1 %v3030_v4  ;;  %2743 = vset.pattern.permute.xlu0 %v2955_v5 }
   0xe   :  { %2629 = vmatprep.subr.mxu1 %v2953_v2  ;;  %2744 = vset.pattern.permute.xlu1 %v2955_v5 }
  0xc6   :  { %v103_v7 = vpop.f32.mrf.mxu0 }
  0xc7   :  { %v107_v9 = vadd.f32 %v103_v7, %v32_v6 }
  0xc8   :  { %v2600_v10 = vpop.f32.mrf.mxu0  ;;  %v216_v11 = vpop.f32.mrf.mxu1 }
  0xc9   :  { %2745 = vtanh.f32 %v107_v9  ;;  %v220_v12 = vadd.f32 %v2444_v8, %v216_v11  ;;  %v2442_v18 = vmul.f32 -1.442695, %v107_v9  ;;  %v2447_v8 = vld [vmem:[%s3951_s2 + $0x2] sm:$0x3] }
  0xca   :  { %v2607_v13 = vpop.f32.mrf.mxu1  ;;  %vm260_vm7 = vcmp.gt.f32.partialorder %v2447_v8, 0.0 }
  0xcb   :  { %2747 = vtanh.f32 %v220_v12  ;;  %v2445_v19 = vmul.f32 -1.442695, %v220_v12  ;;  %v2452_v12 = vld [vmem:[%s3951_s2 + $0x10] sm:$0x3]  ;;  %v360_v15 = vsel %vm260_vm7, 1, %v2955_v5 }
  0xcc   :  { %2749 = vpow2.f32 %v2442_v18  ;;  %vm377_vm8 = vcmp.gt.f32.partialorder %v2452_v12, 0.0 }
  0xcd   :  { %2751 = vpow2.f32 %v2445_v19 }
  0xd6   :  { %v2746_v14 = vpop.eup %2745 }
  0xd7   :  { %117 = vrot.lane.b32.xlu0 %v2746_v14, %s2956_s19 }
  0xd8   :  { %v2748_v16 = vpop.eup %2747 }
  0xd9   :  { %v2750_v20 = vpop.eup %2749 }
  0xda   :  { %v111_v21 = vadd.f32 1.0, %v2750_v20  ;;  %v2752_v22 = vpop.eup %2751 }
  0xdb   :  { %230 = vrot.lane.b32.xlu0 %v2748_v16, %s2956_s19  ;;  %v224_v23 = vadd.f32 1.0, %v2752_v22 }
  0xdc   :  { %2753 = vrcp.f32 %v111_v21 }
  0xdd   :  { %2755 = vrcp.f32 %v224_v23 }
  0xdf   :  { %134 = vperm.xlu0 %2743, %v132_v17   ;;  %v477_v17 = vsel %vm377_vm8, 1, %v2955_v5 }
  0xe9   :  { %v2754_v24 = vpop.eup %2753 }
  0xea   :  { %v2756_v28 = vpop.eup %2755  ;;  %v115_v32 = vmul.f32 0.0, %v2754_v24 }
  0xeb   :  { %v228_v35 = vmul.f32 0.0, %v2756_v28 }
 0x149   :  { %v118_v25 = vpop.permute.xlu0 %117 }
 0x14a   :  { %v120_v26 = vmul.f32 %v2754_v24, %v118_v25 }
 0x14c   :  { %122 = vrot.lane.b32.xlu1 %v120_v26, %s2957_s22 }
 0x14d   :  { %v231_v29 = vpop.permute.xlu0 %230 }
 0x14e   :  { %v233_v30 = vmul.f32 %v2756_v28, %v231_v29 }
 0x150   :  { %235 = vrot.lane.b32.xlu1 %v233_v30, %s2957_s22 }
 0x154   :  { %247 = vperm.xlu1 %2744, %v245_v31  }
 0x15a   :  { %v3085_v41 = vpop.permute.xlu0 %134 }
 0x15b   :  { %vm136_vm3 = vcmp.eq.s32.totalorder %v3085_v41, 1 }
 0x1be   :  { %v123_v33 = vpop.permute.xlu1 %122 }
 0x1bf   :  { %v3075_v34 = vadd.f32 %v123_v33, %v115_v32 }
 0x1c1   :  { %2757 = vtanh.f32 %v3075_v34  ;;  %v3144_v18 = vsel %vm136_vm3, %v3075_v34, 0.0 }
 0x1c2   :  { %v236_v36 = vpop.permute.xlu1 %235 }
 0x1c3   :  { %v3078_v37 = vadd.f32 %v236_v36, %v228_v35 }
 0x1c5   :  { %2759 = vtanh.f32 %v3078_v37 }
 0x1ce   :  { %v2758_v38 = vpop.eup %2757 }
 0x1cf   :  { %128 = vrot.lane.b32.xlu1 %v2758_v38, %s2958_s23  ;;  %v3083_v40 = vpop.permute.xlu1 %247  ;;  %v2458_v38 = vld [vmem:[%s3949_s0 + $0x4] sm:$0x3] }
 0x1d0   :  { %vm249_vm4 = vcmp.eq.s32.totalorder %v3083_v40, 1 }
 0x1d1   :  { %v3152_v22 = vsel %vm249_vm4, %v3078_v37, 0.0 }
 0x1d2   :  { %v2760_v39 = vpop.eup %2759 }
 0x1d3   :  { %241 = vrot.lane.b32.xlu0 %v2760_v39, %s2958_s23 }
 0x241   :  { %v129_v42 = vpop.permute.xlu1 %128 }
 0x242   :  { %v131_v43 = vmul.f32 %v2754_v24, %v129_v42  ;;  %v2463_v42 = vld [vmem:[%s3950_s1 + $0xe] sm:$0x3] }
 0x244   :  { %v3090_v44 = vsel %vm136_vm3, %v131_v43, 0.0 }
 0x245   :  { %v242_v45 = vpop.permute.xlu0 %241  ;;  %140 = vrot.lane.b32.xlu1 %v3090_v44, %s2959_s24 }
 0x246   :  { %v244_v46 = vmul.f32 %v2756_v28, %v242_v45 }
 0x248   :  { %v3097_v47 = vsel %vm249_vm4, %v244_v46, 0.0 }
 0x249   :  { %253 = vrot.lane.b32.xlu0 %v3097_v47, %s2959_s24 }
 0x2b7   :  { %v141_v48 = vpop.permute.xlu1 %140 }
 0x2b8   :  { %144 = vst.msk [vmem:[%s3954_s5] sm:$0x3] %vm3958_vm5, %v141_v48  ;;  %2613 = vmatmul.mubr.msk.f32.vlgmr.msra.gmra.mxu0 %vm33_vm6, %v141_v48 }
 0x2b9   :  { %2623 = vmatpush3.msra.mxu0 %v3010_v0  ;;  %2626 = vmatprep.mubr.msk.f32.mxu0 %vm2954_vm0, %v2953_v2 }
 0x2ba   :  { %2624 = vmatprep.subr.mxu0 %v2953_v2 }
 0x2bb   :  { %v254_v49 = vpop.permute.xlu0 %253  ;;  %2625 = vmatpush3.msra.mxu0 %v3022_v3 }
 0x2bc   :  { %2446 = vst.msk [vmem:[%s3955_s6 + $0x12] sm:$0x3] %vm3958_vm5, %v254_v49  ;;  %2620 = vmatmul.mubr.msk.f32.vlgmr.msra.gmra.mxu1 %vm33_vm6, %v254_v49  ;;  %2636 = vmatprep.subr.mxu0 %v2953_v2 }
 0x2bd   :  { %2630 = vmatpush3.msra.mxu1 %v3015_v1  ;;  %2633 = vmatprep.mubr.msk.f32.mxu1 %vm2954_vm0, %v2953_v2 }
 0x2be   :  { %2631 = vmatprep.subr.mxu1 %v2953_v2 }
 0x2bf   :  { %2632 = vmatpush3.msra.mxu1 %v3030_v4 }
 0x2c0   :  { %2643 = vmatprep.subr.mxu1 %v2953_v2 }
 0x378   :  { %v331_v51 = vpop.f32.mrf.mxu0 }
 0x379   :  { %v335_v52 = vadd.f32 %v2448_v50, %v331_v51 }
 0x37a   :  { %v2614_v53 = vpop.f32.mrf.mxu0 }
 0x37b   :  { %2761 = vtanh.f32 %v335_v52  ;;  %v2450_v60 = vmul.f32 -1.442695, %v335_v52 }
 0x37c   :  { %v448_v55 = vpop.f32.mrf.mxu1 }
 0x37d   :  { %v452_v56 = vadd.f32 %v2453_v54, %v448_v55 }
 0x37e   :  { %v2621_v57 = vpop.f32.mrf.mxu1 }
 0x37f   :  { %2763 = vtanh.f32 %v452_v56  ;;  %v2455_v61 = vmul.f32 -1.442695, %v452_v56  ;;  %v2457_v56 = vld [vmem:[%s3951_s2 + $0x4] sm:$0x3] }
 0x380   :  { %2765 = vpow2.f32 %v2450_v60  ;;  %vm494_vm11 = vcmp.gt.f32.partialorder %v2457_v56, 0.0  ;;  %v2462_v60 = vld [vmem:[%s3951_s2 + $0xe] sm:$0x3] }
 0x381   :  { %2767 = vpow2.f32 %v2455_v61  ;;  %vm614_vm12 = vcmp.gt.f32.partialorder %v2462_v60, 0.0 }
 0x388   :  { %v2762_v58 = vpop.eup %2761 }
 0x389   :  { %345 = vrot.lane.b32.xlu1 %v2762_v58, %s2956_s19 }
 0x38c   :  { %v2764_v59 = vpop.eup %2763 }
 0x38d   :  { %462 = vrot.lane.b32.xlu0 %v2764_v59, %s2956_s19  ;;  %v2766_v62 = vpop.eup %2765 }
 0x38e   :  { %v339_v63 = vadd.f32 1.0, %v2766_v62  ;;  %v2768_v6 = vpop.eup %2767 }
 0x38f   :  { %v456_v7 = vadd.f32 1.0, %v2768_v6 }
 0x390   :  { %2769 = vrcp.f32 %v339_v63  ;;  %v597_v63 = vsel %vm494_vm11, 1, %v2955_v5 }
 0x391   :  { %2771 = vrcp.f32 %v456_v7  ;;  %v717_v7 = vsel %vm614_vm12, 1, %v2955_v5 }
 0x39d   :  { %v2770_v9 = vpop.eup %2769 }
 0x39e   :  { %v2772_v13 = vpop.eup %2771  ;;  %v343_v19 = vmul.f32 %v2770_v9, %v3144_v18 }
 0x39f   :  { %v460_v23 = vmul.f32 %v2772_v13, %v3152_v22 }
 0x3fb   :  { %v346_v10 = vpop.permute.xlu1 %345 }
 0x3fc   :  { %v348_v11 = vmul.f32 %v2770_v9, %v346_v10 }
 0x3fe   :  { %350 = vrot.lane.b32.xlu1 %v348_v11, %s2957_s22 }
 0x3ff   :  { %v463_v14 = vpop.permute.xlu0 %462 }
 0x400   :  { %v465_v16 = vmul.f32 %v2772_v13, %v463_v14 }
 0x402   :  { %467 = vrot.lane.b32.xlu0 %v465_v16, %s2957_s22  ;;  %362 = vperm.xlu1 %2744, %v360_v15  }
 0x406   :  { %479 = vperm.xlu0 %2743, %v477_v17  }
 0x470   :  { %v351_v20 = vpop.permute.xlu1 %350 }
 0x471   :  { %v3147_v21 = vadd.f32 %v351_v20, %v343_v19 }
 0x473   :  { %2773 = vtanh.f32 %v3147_v21 }
 0x474   :  { %v468_v24 = vpop.permute.xlu0 %467 }
 0x475   :  { %v3156_v25 = vadd.f32 %v468_v24, %v460_v23 }
 0x477   :  { %2775 = vtanh.f32 %v3156_v25 }
 0x47d   :  { %v3161_v28 = vpop.permute.xlu1 %362 }
 0x47e   :  { %vm364_vm9 = vcmp.eq.s32.totalorder %v3161_v28, 1 }
 0x47f   :  { %v3223_v8 = vsel %vm364_vm9, %v3147_v21, %v3144_v18 }
 0x480   :  { %v2774_v26 = vpop.eup %2773 }
 0x481   :  { %356 = vrot.lane.b32.xlu1 %v2774_v26, %s2958_s23  ;;  %v3163_v29 = vpop.permute.xlu0 %479 }
 0x482   :  { %vm481_vm10 = vcmp.eq.s32.totalorder %v3163_v29, 1 }
 0x483   :  { %v3232_v12 = vsel %vm481_vm10, %v3156_v25, %v3152_v22 }
 0x484   :  { %v2776_v27 = vpop.eup %2775 }
 0x485   :  { %473 = vrot.lane.b32.xlu0 %v2776_v27, %s2958_s23 }
 0x4f3   :  { %v357_v30 = vpop.permute.xlu1 %356 }
 0x4f4   :  { %v3165_v31 = vmul.f32 %v2770_v9, %v357_v30  ;;  %v2468_v30 = vld [vmem:[%s3949_s0 + $0x6] sm:$0x3] }
 0x4f6   :  { %v3172_v32 = vsel %vm364_vm9, %v3165_v31, %v3090_v44 }
 0x4f7   :  { %v474_v33 = vpop.permute.xlu0 %473  ;;  %498 = vrot.lane.b32.xlu1 %v3172_v32, %s2959_s24 }
 0x4f8   :  { %v3176_v34 = vmul.f32 %v2772_v13, %v474_v33 }
 0x4fa   :  { %v3183_v35 = vsel %vm481_vm10, %v3176_v34, %v3097_v47 }
 0x4fb   :  { %618 = vrot.lane.b32.xlu0 %v3183_v35, %s2959_s24 }
 0x569   :  { %v499_v36 = vpop.permute.xlu1 %498 }
 0x56a   :  { %2627 = vmatmul.mubr.msk.f32.vlgmr.msra.gmra.mxu0 %vm33_vm6, %v499_v36  ;;  %v2473_v36 = vld [vmem:[%s3950_s1 + $0xc] sm:$0x3] }
 0x56b   :  { %2637 = vmatpush3.msra.mxu0 %v3010_v0  ;;  %2640 = vmatprep.mubr.msk.f32.mxu0 %vm2954_vm0, %v2953_v2 }
 0x56c   :  { %2638 = vmatprep.subr.mxu0 %v2953_v2 }
 0x56d   :  { %v619_v37 = vpop.permute.xlu0 %618  ;;  %2639 = vmatpush3.msra.mxu0 %v3022_v3 }
 0x56e   :  { %2634 = vmatmul.mubr.msk.f32.vlgmr.msra.gmra.mxu1 %vm33_vm6, %v619_v37  ;;  %2650 = vmatprep.subr.mxu0 %v2953_v2 }
 0x56f   :  { %2644 = vmatpush3.msra.mxu1 %v3015_v1  ;;  %2647 = vmatprep.mubr.msk.f32.mxu1 %vm2954_vm0, %v2953_v2 }
 0x570   :  { %2645 = vmatprep.subr.mxu1 %v2953_v2 }
 0x571   :  { %2646 = vmatpush3.msra.mxu1 %v3030_v4 }
 0x572   :  { %2657 = vmatprep.subr.mxu1 %v2953_v2 }
 0x62a   :  { %v568_v39 = vpop.f32.mrf.mxu0 }
 0x62b   :  { %v572_v40 = vadd.f32 %v2458_v38, %v568_v39 }
 0x62c   :  { %v2628_v41 = vpop.f32.mrf.mxu0 }
 0x62d   :  { %2777 = vtanh.f32 %v572_v40  ;;  %v2460_v50 = vmul.f32 -1.442695, %v572_v40 }
 0x62e   :  { %v688_v43 = vpop.f32.mrf.mxu1 }
 0x62f   :  { %v692_v45 = vadd.f32 %v2463_v42, %v688_v43 }
 0x630   :  { %v2635_v46 = vpop.f32.mrf.mxu1 }
 0x631   :  { %2779 = vtanh.f32 %v692_v45  ;;  %v2465_v51 = vmul.f32 -1.442695, %v692_v45 }
 0x632   :  { %2781 = vpow2.f32 %v2460_v50  ;;  %v2467_v50 = vld [vmem:[%s3951_s2 + $0x6] sm:$0x3] }
 0x633   :  { %2783 = vpow2.f32 %v2465_v51  ;;  %vm734_vm15 = vcmp.gt.f32.partialorder %v2467_v50, 0.0 }
 0x63a   :  { %v2778_v48 = vpop.eup %2777 }
 0x63b   :  { %582 = vrot.lane.b32.xlu1 %v2778_v48, %s2956_s19 }
 0x63e   :  { %v2780_v49 = vpop.eup %2779 }
 0x63f   :  { %702 = vrot.lane.b32.xlu0 %v2780_v49, %s2956_s19  ;;  %v2782_v52 = vpop.eup %2781 }
 0x640   :  { %v576_v53 = vadd.f32 1.0, %v2782_v52  ;;  %v2784_v54 = vpop.eup %2783 }
 0x641   :  { %v696_v55 = vadd.f32 1.0, %v2784_v54  ;;  %v2472_v54 = vld [vmem:[%s3951_s2 + $0xc] sm:$0x3] }
 0x642   :  { %2785 = vrcp.f32 %v576_v53  ;;  %vm854_vm1 = vcmp.gt.f32.partialorder %v2472_v54, 0.0 }
 0x643   :  { %2787 = vrcp.f32 %v696_v55 }
 0x64f   :  { %v2786_v57 = vpop.eup %2785 }
 0x650   :  { %v2788_v61 = vpop.eup %2787  ;;  %v580_v9 = vmul.f32 %v2786_v57, %v3223_v8 }
 0x651   :  { %v700_v13 = vmul.f32 %v2788_v61, %v3232_v12 }
 0x6ad   :  { %v583_v58 = vpop.permute.xlu1 %582 }
 0x6ae   :  { %v585_v59 = vmul.f32 %v2786_v57, %v583_v58 }
 0x6b0   :  { %587 = vrot.lane.b32.xlu1 %v585_v59, %s2957_s22  ;;  %v957_v59 = vsel %vm854_vm1, 1, %v2955_v5 }
 0x6b1   :  { %v703_v62 = vpop.permute.xlu0 %702 }
 0x6b2   :  { %v705_v6 = vmul.f32 %v2788_v61, %v703_v62 }
 0x6b4   :  { %707 = vrot.lane.b32.xlu0 %v705_v6, %s2957_s22  ;;  %599 = vperm.xlu1 %2744, %v597_v63  }
 0x6b8   :  { %719 = vperm.xlu0 %2743, %v717_v7  }
 0x722   :  { %v588_v10 = vpop.permute.xlu1 %587 }
 0x723   :  { %v3226_v11 = vadd.f32 %v588_v10, %v580_v9 }
 0x725   :  { %2789 = vtanh.f32 %v3226_v11 }
 0x726   :  { %v708_v14 = vpop.permute.xlu0 %707 }
 0x727   :  { %v3236_v15 = vadd.f32 %v708_v14, %v700_v13 }
 0x729   :  { %2791 = vtanh.f32 %v3236_v15 }
 0x72f   :  { %v3241_v18 = vpop.permute.xlu1 %599 }
 0x730   :  { %vm601_vm13 = vcmp.eq.s32.totalorder %v3241_v18, 1 }
 0x731   :  { %v3303_v60 = vsel %vm601_vm13, %v3226_v11, %v3223_v8 }
 0x732   :  { %v2790_v16 = vpop.eup %2789 }
 0x733   :  { %593 = vrot.lane.b32.xlu1 %v2790_v16, %s2958_s23  ;;  %v3243_v19 = vpop.permute.xlu0 %719 }
 0x734   :  { %vm721_vm14 = vcmp.eq.s32.totalorder %v3243_v19, 1 }
 0x735   :  { %v3312_v6 = vsel %vm721_vm14, %v3236_v15, %v3232_v12 }
 0x736   :  { %v2792_v17 = vpop.eup %2791 }
 0x737   :  { %713 = vrot.lane.b32.xlu0 %v2792_v17, %s2958_s23 }
 0x7a5   :  { %v594_v20 = vpop.permute.xlu1 %593 }
 0x7a6   :  { %v3245_v21 = vmul.f32 %v2786_v57, %v594_v20  ;;  %v837_v57 = vsel %vm734_vm15, 1, %v2955_v5 }
 0x7a8   :  { %v3252_v22 = vsel %vm601_vm13, %v3245_v21, %v3172_v32 }
 0x7a9   :  { %v714_v23 = vpop.permute.xlu0 %713  ;;  %738 = vrot.lane.b32.xlu1 %v3252_v22, %s2959_s24 }
 0x7aa   :  { %v3256_v24 = vmul.f32 %v2788_v61, %v714_v23 }
 0x7ac   :  { %v3263_v25 = vsel %vm721_vm14, %v3256_v24, %v3183_v35  ;;  %v724_v28 = vsel %vm721_vm14, %v3256_v24, 0.0  ;;  %vm3963_vm14 = vcmask 123904  }
 0x7ad   :  { %858 = vrot.lane.b32.xlu0 %v3263_v25, %s2959_s24 }
 0x81b   :  { %v739_v26 = vpop.permute.xlu1 %738 }
 0x81c   :  { %2641 = vmatmul.mubr.msk.f32.vlgmr.msra.gmra.mxu0 %vm33_vm6, %v739_v26 }
 0x81d   :  { %2651 = vmatpush3.msra.mxu0 %v3010_v0  ;;  %2654 = vmatprep.mubr.msk.f32.mxu0 %vm2954_vm0, %v2953_v2 }
 0x81e   :  { %2652 = vmatprep.subr.mxu0 %v2953_v2 }
 0x81f   :  { %v859_v27 = vpop.permute.xlu0 %858  ;;  %2653 = vmatpush3.msra.mxu0 %v3022_v3 }
 0x820   :  { %2648 = vmatmul.mubr.msk.f32.vlgmr.msra.gmra.mxu1 %vm33_vm6, %v859_v27  ;;  %2664 = vmatprep.subr.mxu0 %v2953_v2 }
 0x821   :  { %2658 = vmatpush3.msra.mxu1 %v3015_v1  ;;  %2661 = vmatprep.mubr.msk.f32.mxu1 %vm2954_vm0, %v2953_v2 }
 0x822   :  { %2659 = vmatprep.subr.mxu1 %v2953_v2 }
 0x823   :  { %2660 = vmatpush3.msra.mxu1 %v3030_v4 }
 0x824   :  { %2671 = vmatprep.subr.mxu1 %v2953_v2 }
 0x8dc   :  { %v808_v32 = vpop.f32.mrf.mxu0 }
 0x8dd   :  { %v812_v33 = vadd.f32 %v2468_v30, %v808_v32 }
 0x8de   :  { %v2642_v35 = vpop.f32.mrf.mxu0 }
 0x8df   :  { %2793 = vtanh.f32 %v812_v33  ;;  %v2470_v42 = vmul.f32 -1.442695, %v812_v33  ;;  %v2483_v33 = vld [vmem:[%s3950_s1 + $0xa] sm:$0x3] }
 0x8e0   :  { %v928_v37 = vpop.f32.mrf.mxu1 }
 0x8e1   :  { %v932_v38 = vadd.f32 %v2473_v36, %v928_v37 }
 0x8e2   :  { %v2649_v39 = vpop.f32.mrf.mxu1 }
 0x8e3   :  { %2795 = vtanh.f32 %v932_v38  ;;  %v2475_v43 = vmul.f32 -1.442695, %v932_v38 }
 0x8e4   :  { %2797 = vpow2.f32 %v2470_v42 }
 0x8e5   :  { %2799 = vpow2.f32 %v2475_v43 }
 0x8ec   :  { %v2794_v40 = vpop.eup %2793 }
 0x8ed   :  { %822 = vrot.lane.b32.xlu1 %v2794_v40, %s2956_s19 }
 0x8f0   :  { %v2796_v41 = vpop.eup %2795 }
 0x8f1   :  { %942 = vrot.lane.b32.xlu0 %v2796_v41, %s2956_s19  ;;  %v2798_v45 = vpop.eup %2797 }
 0x8f2   :  { %v816_v46 = vadd.f32 1.0, %v2798_v45  ;;  %v2800_v48 = vpop.eup %2799 }
 0x8f3   :  { %v936_v49 = vadd.f32 1.0, %v2800_v48  ;;  %v2477_v48 = vld [vmem:[%s3951_s2 + $0x8] sm:$0x3] }
 0x8f4   :  { %2801 = vrcp.f32 %v816_v46  ;;  %vm974_vm4 = vcmp.gt.f32.partialorder %v2477_v48, 0.0 }
 0x8f5   :  { %2803 = vrcp.f32 %v936_v49 }
 0x901   :  { %v2802_v51 = vpop.eup %2801 }
 0x902   :  { %v2804_v55 = vpop.eup %2803  ;;  %v820_v61 = vmul.f32 %v2802_v51, %v3303_v60 }
 0x903   :  { %v940_v7 = vmul.f32 %v2804_v55, %v3312_v6 }
 0x95f   :  { %v823_v52 = vpop.permute.xlu1 %822 }
 0x960   :  { %v825_v53 = vmul.f32 %v2802_v51, %v823_v52  ;;  %v2482_v52 = vld [vmem:[%s3951_s2 + $0xa] sm:$0x3] }
 0x961   :  { %vm1094_vm7 = vcmp.gt.f32.partialorder %v2482_v52, 0.0 }
 0x962   :  { %827 = vrot.lane.b32.xlu1 %v825_v53, %s2957_s22 }
 0x963   :  { %v943_v56 = vpop.permute.xlu0 %942 }
 0x964   :  { %v945_v58 = vmul.f32 %v2804_v55, %v943_v56 }
 0x966   :  { %947 = vrot.lane.b32.xlu0 %v945_v58, %s2957_s22  ;;  %839 = vperm.xlu1 %2744, %v837_v57   ;;  %v1197_v57 = vsel %vm1094_vm7, 1, %v2955_v5 }
 0x96a   :  { %959 = vperm.xlu0 %2743, %v957_v59  }
 0x9d4   :  { %v828_v62 = vpop.permute.xlu1 %827 }
 0x9d5   :  { %v3306_v63 = vadd.f32 %v828_v62, %v820_v61 }
 0x9d7   :  { %2805 = vtanh.f32 %v3306_v63 }
 0x9d8   :  { %v948_v9 = vpop.permute.xlu0 %947 }
 0x9d9   :  { %v3316_v10 = vadd.f32 %v948_v9, %v940_v7 }
 0x9db   :  { %2807 = vtanh.f32 %v3316_v10 }
 0x9e1   :  { %v3321_v13 = vpop.permute.xlu1 %839 }
 0x9e2   :  { %vm841_vm2 = vcmp.eq.s32.totalorder %v3321_v13, 1 }
 0x9e3   :  { %v3383_v58 = vsel %vm841_vm2, %v3306_v63, %v3303_v60 }
 0x9e4   :  { %v2806_v8 = vpop.eup %2805 }
 0x9e5   :  { %833 = vrot.lane.b32.xlu1 %v2806_v8, %s2958_s23  ;;  %v3323_v14 = vpop.permute.xlu0 %959 }
 0x9e6   :  { %vm961_vm3 = vcmp.eq.s32.totalorder %v3323_v14, 1 }
 0x9e7   :  { %v3392_v7 = vsel %vm961_vm3, %v3316_v10, %v3312_v6 }
 0x9e8   :  { %v2808_v11 = vpop.eup %2807 }
 0x9e9   :  { %953 = vrot.lane.b32.xlu0 %v2808_v11, %s2958_s23 }
 0xa57   :  { %v834_v12 = vpop.permute.xlu1 %833 }
 0xa58   :  { %v3325_v15 = vmul.f32 %v2802_v51, %v834_v12 }
 0xa5a   :  { %v3332_v16 = vsel %vm841_vm2, %v3325_v15, %v3252_v22 }
 0xa5b   :  { %v954_v17 = vpop.permute.xlu0 %953  ;;  %978 = vrot.lane.b32.xlu1 %v3332_v16, %s2959_s24 }
 0xa5c   :  { %v3336_v20 = vmul.f32 %v2804_v55, %v954_v17  ;;  %v1077_v55 = vsel %vm974_vm4, 1, %v2955_v5 }
 0xa5e   :  { %v3343_v23 = vsel %vm961_vm3, %v3336_v20, %v3263_v25  ;;  %v2478_v25 = vld [vmem:[%s3949_s0 + $0x8] sm:$0x3]  ;;  %v964_v29 = vsel %vm961_vm3, %v3336_v20, 0.0  ;;  %vm3964_vm3 = vmmov %vm3963_vm14 }
 0xa5f   :  { %1098 = vrot.lane.b32.xlu0 %v3343_v23, %s2959_s24 }
 0xacd   :  { %v979_v26 = vpop.permute.xlu1 %978 }
 0xace   :  { %2655 = vmatmul.mubr.msk.f32.vlgmr.msra.gmra.mxu0 %vm33_vm6, %v979_v26 }
 0xacf   :  { %2665 = vmatpush3.msra.mxu0 %v3010_v0  ;;  %2668 = vmatprep.mubr.msk.f32.mxu0 %vm2954_vm0, %v2953_v2 }
 0xad0   :  { %2666 = vmatprep.subr.mxu0 %v2953_v2 }
 0xad1   :  { %v1099_v22 = vpop.permute.xlu0 %1098  ;;  %2667 = vmatpush3.msra.mxu0 %v3022_v3 }
 0xad2   :  { %2662 = vmatmul.mubr.msk.f32.vlgmr.msra.gmra.mxu1 %vm33_vm6, %v1099_v22  ;;  %2678 = vmatprep.subr.mxu0 %v2953_v2 }
 0xad3   :  { %2672 = vmatpush3.msra.mxu1 %v3015_v1  ;;  %2675 = vmatprep.mubr.msk.f32.mxu1 %vm2954_vm0, %v2953_v2 }
 0xad4   :  { %2673 = vmatprep.subr.mxu1 %v2953_v2 }
 0xad5   :  { %2674 = vmatpush3.msra.mxu1 %v3030_v4 }
 0xad6   :  { %2685 = vmatprep.subr.mxu1 %v2953_v2 }
 0xb8e   :  { %v1048_v27 = vpop.f32.mrf.mxu0 }
 0xb8f   :  { %v1052_v30 = vadd.f32 %v2478_v25, %v1048_v27 }
 0xb90   :  { %v2656_v32 = vpop.f32.mrf.mxu0 }
 0xb91   :  { %2809 = vtanh.f32 %v1052_v30  ;;  %v2480_v40 = vmul.f32 -1.442695, %v1052_v30 }
 0xb92   :  { %v1168_v35 = vpop.f32.mrf.mxu1 }
 0xb93   :  { %v1172_v36 = vadd.f32 %v2483_v33, %v1168_v35 }
 0xb94   :  { %v2663_v37 = vpop.f32.mrf.mxu1 }
 0xb95   :  { %2811 = vtanh.f32 %v1172_v36  ;;  %v2485_v41 = vmul.f32 -1.442695, %v1172_v36 }
 0xb96   :  { %2813 = vpow2.f32 %v2480_v40 }
 0xb97   :  { %2815 = vpow2.f32 %v2485_v41 }
 0xb9e   :  { %v2810_v38 = vpop.eup %2809 }
 0xb9f   :  { %1062 = vrot.lane.b32.xlu1 %v2810_v38, %s2956_s19 }
 0xba2   :  { %v2812_v39 = vpop.eup %2811 }
 0xba3   :  { %1182 = vrot.lane.b32.xlu0 %v2812_v39, %s2956_s19  ;;  %v2814_v42 = vpop.eup %2813 }
 0xba4   :  { %v1056_v43 = vadd.f32 1.0, %v2814_v42  ;;  %v2816_v45 = vpop.eup %2815 }
 0xba5   :  { %v1176_v46 = vadd.f32 1.0, %v2816_v45 }
 0xba6   :  { %2817 = vrcp.f32 %v1056_v43 }
 0xba7   :  { %2819 = vrcp.f32 %v1176_v46 }
 0xbb3   :  { %v2818_v49 = vpop.eup %2817 }
 0xbb4   :  { %v2820_v53 = vpop.eup %2819  ;;  %v1060_v59 = vmul.f32 %v2818_v49, %v3383_v58 }
 0xbb5   :  { %v1180_v9 = vmul.f32 %v2820_v53, %v3392_v7 }
 0xc11   :  { %v1063_v50 = vpop.permute.xlu1 %1062 }
 0xc12   :  { %v1065_v51 = vmul.f32 %v2818_v49, %v1063_v50 }
 0xc14   :  { %1067 = vrot.lane.b32.xlu1 %v1065_v51, %s2957_s22 }
 0xc15   :  { %v1183_v54 = vpop.permute.xlu0 %1182 }
 0xc16   :  { %v1185_v56 = vmul.f32 %v2820_v53, %v1183_v54 }
 0xc18   :  { %1187 = vrot.lane.b32.xlu0 %v1185_v56, %s2957_s22  ;;  %1079 = vperm.xlu1 %2744, %v1077_v55  }
 0xc1c   :  { %1199 = vperm.xlu0 %2743, %v1197_v57  }
 0xc86   :  { %v1068_v61 = vpop.permute.xlu1 %1067 }
 0xc87   :  { %v3386_v62 = vadd.f32 %v1068_v61, %v1060_v59 }
 0xc89   :  { %2821 = vtanh.f32 %v3386_v62 }
 0xc8a   :  { %v1188_v8 = vpop.permute.xlu0 %1187 }
 0xc8b   :  { %v3396_v11 = vadd.f32 %v1188_v8, %v1180_v9 }
 0xc8d   :  { %2823 = vtanh.f32 %v3396_v11 }
 0xc93   :  { %v3401_v12 = vpop.permute.xlu1 %1079 }
 0xc94   :  { %vm1081_vm8 = vcmp.eq.s32.totalorder %v3401_v12, 1 }
 0xc95   :  { %v3463_v61 = vsel %vm1081_vm8, %v3386_v62, %v3383_v58 }
 0xc96   :  { %v2822_v60 = vpop.eup %2821 }
 0xc97   :  { %1073 = vrot.lane.b32.xlu1 %v2822_v60, %s2958_s23  ;;  %v3403_v17 = vpop.permute.xlu0 %1199 }
 0xc98   :  { %vm1201_vm11 = vcmp.eq.s32.totalorder %v3403_v17, 1 }
 0xc9a   :  { %v2824_v63 = vpop.eup %2823 }
 0xc9b   :  { %1193 = vrot.lane.b32.xlu0 %v2824_v63, %s2958_s23  ;;  %v3472_v63 = vsel %vm1201_vm11, %v3396_v11, %v3392_v7 }
 0xd09   :  { %v1074_v6 = vpop.permute.xlu1 %1073 }
 0xd0a   :  { %v3405_v10 = vmul.f32 %v2818_v49, %v1074_v6  ;;  %v2487_v49 = vld [vmem:[%s3951_s2 + $0xa] sm:$0x3] }
 0xd0b   :  { %vm1213_vm12 = vcmp.gt.f32.partialorder %v2487_v49, 0.0 }
 0xd0c   :  { %v3412_v26 = vsel %vm1081_vm8, %v3405_v10, %v3332_v16  ;;  %v1316_v56 = vsel %vm1213_vm12, 1, %v2955_v5 }
 0xd0d   :  { %v1194_v22 = vpop.permute.xlu0 %1193  ;;  %1217 = vrot.lane.b32.xlu1 %v3412_v26, %s2959_s24 }
 0xd0e   :  { %v3416_v25 = vmul.f32 %v2820_v53, %v1194_v22  ;;  %v2492_v53 = vld [vmem:[%s3951_s2 + $0x8] sm:$0x3] }
 0xd0f   :  { %vm1332_vm15 = vcmp.gt.f32.partialorder %v2492_v53, 0.0 }
 0xd10   :  { %v3423_v27 = vsel %vm1201_vm11, %v3416_v25, %v3343_v23  ;;  %v2488_v23 = vld [vmem:[%s3949_s0 + $0xa] sm:$0x3]  ;;  %v1435_v59 = vsel %vm1332_vm15, 1, %v2955_v5  ;;  %v1204_v18 = vsel %vm1201_vm11, %v3416_v25, 0.0  ;;  %vm3966_vm11 = vmmov %vm3964_vm3 }
 0xd11   :  { %1336 = vrot.lane.b32.xlu0 %v3423_v27, %s2959_s24 }
 0xd7f   :  { %v1218_v30 = vpop.permute.xlu1 %1217 }
 0xd80   :  { %2669 = vmatmul.mubr.msk.f32.vlgmr.msra.gmra.mxu0 %vm33_vm6, %v1218_v30 }
 0xd81   :  { %2679 = vmatpush3.msra.mxu0 %v3010_v0  ;;  %2682 = vmatprep.mubr.msk.f32.mxu0 %vm2954_vm0, %v2953_v2 }
 0xd82   :  { %2680 = vmatprep.subr.mxu0 %v2953_v2 }
 0xd83   :  { %v1337_v16 = vpop.permute.xlu0 %1336  ;;  %2681 = vmatpush3.msra.mxu0 %v3022_v3 }
 0xd84   :  { %2676 = vmatmul.mubr.msk.f32.vlgmr.msra.gmra.mxu1 %vm33_vm6, %v1337_v16  ;;  %2692 = vmatprep.subr.mxu0 %v2953_v2 }
 0xd85   :  { %2686 = vmatpush3.msra.mxu1 %v3015_v1  ;;  %2689 = vmatprep.mubr.msk.f32.mxu1 %vm2954_vm0, %v2953_v2  ;;  %v2493_v1 = vld [vmem:[%s3950_s1 + $0x8] sm:$0x3] }
 0xd86   :  { %2687 = vmatprep.subr.mxu1 %v2953_v2 }
 0xd87   :  { %2688 = vmatpush3.msra.mxu1 %v3030_v4 }
 0xd88   :  { %2699 = vmatprep.subr.mxu1 %v2953_v2 }
 0xe40   :  { %v1287_v32 = vpop.f32.mrf.mxu0 }
 0xe41   :  { %v1291_v33 = vadd.f32 %v2488_v23, %v1287_v32 }
 0xe42   :  { %v2670_v35 = vpop.f32.mrf.mxu0 }
 0xe43   :  { %2825 = vtanh.f32 %v1291_v33  ;;  %v2490_v41 = vmul.f32 -1.442695, %v1291_v33 }
 0xe44   :  { %v1406_v36 = vpop.f32.mrf.mxu1 }
 0xe45   :  { %v1410_v37 = vadd.f32 %v2493_v1, %v1406_v36 }
 0xe46   :  { %v2677_v38 = vpop.f32.mrf.mxu1 }
 0xe47   :  { %2827 = vtanh.f32 %v1410_v37  ;;  %v2495_v42 = vmul.f32 -1.442695, %v1410_v37 }
 0xe48   :  { %2829 = vpow2.f32 %v2490_v41 }
 0xe49   :  { %2831 = vpow2.f32 %v2495_v42 }
 0xe50   :  { %v2826_v39 = vpop.eup %2825 }
 0xe51   :  { %1301 = vrot.lane.b32.xlu1 %v2826_v39, %s2956_s19  ;;  %v2503_v39 = vld [vmem:[%s3950_s1 + $0x6] sm:$0x3] }
 0xe54   :  { %v2828_v40 = vpop.eup %2827 }
 0xe55   :  { %1420 = vrot.lane.b32.xlu0 %v2828_v40, %s2956_s19  ;;  %v2830_v43 = vpop.eup %2829 }
 0xe56   :  { %v1295_v45 = vadd.f32 1.0, %v2830_v43  ;;  %v2832_v46 = vpop.eup %2831 }
 0xe57   :  { %v1414_v48 = vadd.f32 1.0, %v2832_v46 }
 0xe58   :  { %2833 = vrcp.f32 %v1295_v45 }
 0xe59   :  { %2835 = vrcp.f32 %v1414_v48 }
 0xe65   :  { %v2834_v50 = vpop.eup %2833 }
 0xe66   :  { %v2836_v54 = vpop.eup %2835  ;;  %v1299_v9 = vmul.f32 %v2834_v50, %v3463_v61 }
 0xe67   :  { %v1418_v6 = vmul.f32 %v2836_v54, %v3472_v63 }
 0xec3   :  { %v1302_v51 = vpop.permute.xlu1 %1301 }
 0xec4   :  { %v1304_v52 = vmul.f32 %v2834_v50, %v1302_v51 }
 0xec6   :  { %1306 = vrot.lane.b32.xlu1 %v1304_v52, %s2957_s22  ;;  %v2497_v52 = vld [vmem:[%s3951_s2 + $0xc] sm:$0x3] }
 0xec7   :  { %v1421_v55 = vpop.permute.xlu0 %1420  ;;  %vm1451_vm7 = vcmp.gt.f32.partialorder %v2497_v52, 0.0 }
 0xec8   :  { %v1423_v57 = vmul.f32 %v2836_v54, %v1421_v55 }
 0xeca   :  { %1425 = vrot.lane.b32.xlu0 %v1423_v57, %s2957_s22  ;;  %1318 = vperm.xlu1 %2744, %v1316_v56   ;;  %v2502_v56 = vld [vmem:[%s3951_s2 + $0x6] sm:$0x3] }
 0xecb   :  { %vm1570_vm12 = vcmp.gt.f32.partialorder %v2502_v56, 0.0 }
 0xece   :  { %1437 = vperm.xlu0 %2743, %v1435_v59  }
 0xf38   :  { %v1307_v8 = vpop.permute.xlu1 %1306 }
 0xf39   :  { %v3466_v60 = vadd.f32 %v1307_v8, %v1299_v9  ;;  %v1554_v9 = vsel %vm1451_vm7, 1, %v2955_v5 }
 0xf3b   :  { %2837 = vtanh.f32 %v3466_v60 }
 0xf3c   :  { %v1426_v22 = vpop.permute.xlu0 %1425 }
 0xf3d   :  { %v3476_v30 = vadd.f32 %v1426_v22, %v1418_v6  ;;  %v1673_v6 = vsel %vm1570_vm12, 1, %v2955_v5 }
 0xf3f   :  { %2839 = vtanh.f32 %v3476_v30 }
 0xf45   :  { %v3481_v16 = vpop.permute.xlu1 %1318 }
 0xf46   :  { %vm1320_vm1 = vcmp.eq.s32.totalorder %v3481_v16, 1 }
 0xf47   :  { %v3548_v22 = vsel %vm1320_vm1, %v3466_v60, %v3463_v61 }
 0xf48   :  { %v2838_v58 = vpop.eup %2837 }
 0xf49   :  { %1312 = vrot.lane.b32.xlu1 %v2838_v58, %s2958_s23  ;;  %v3483_v23 = vpop.permute.xlu0 %1437 }
 0xf4a   :  { %vm1439_vm4 = vcmp.eq.s32.totalorder %v3483_v23, 1 }
 0xf4c   :  { %v2840_v62 = vpop.eup %2839 }
 0xf4d   :  { %1431 = vrot.lane.b32.xlu0 %v2840_v62, %s2958_s23 }
 0xfbb   :  { %v1313_v7 = vpop.permute.xlu1 %1312 }
 0xfbc   :  { %v3485_v11 = vmul.f32 %v2834_v50, %v1313_v7 }
 0xfbe   :  { %v3492_v32 = vsel %vm1320_vm1, %v3485_v11, %v3412_v26  ;;  %v1323_v19 = vsel %vm1320_vm1, %v3485_v11, 0.0  ;;  %vm3967_vm1 = vmmov %vm3964_vm3 }
 0xfbf   :  { %v1432_v33 = vpop.permute.xlu0 %1431  ;;  %1455 = vrot.lane.b32.xlu1 %v3492_v32, %s2959_s24 }
 0xfc0   :  { %v3496_v35 = vmul.f32 %v2836_v54, %v1432_v33  ;;  %v3557_v33 = vsel %vm1439_vm4, %v3476_v30, %v3472_v63 }
 0xfc2   :  { %v3503_v1 = vsel %vm1439_vm4, %v3496_v35, %v3423_v27  ;;  %v3518_v27 = vld [vmem:[%s3953_s4 + $0x8] sm:$0xff] }
 0xfc3   :  { %1574 = vrot.lane.b32.xlu0 %v3503_v1, %s2959_s24 }
0x1031   :  { %v1456_v36 = vpop.permute.xlu1 %1455 }
0x1032   :  { %2683 = vmatmul.mubr.msk.f32.vlgmr.msra.gmra.mxu0 %vm33_vm6, %v1456_v36 }
0x1033   :  { %2693 = vmatpush3.msra.mxu0 %v3010_v0  ;;  %2696 = vmatprep.mubr.msk.f32.mxu0 %vm2954_vm0, %v2953_v2  ;;  %v2498_v0 = vld [vmem:[%s3949_s0 + $0xc] sm:$0x3] }
0x1034   :  { %2694 = vmatprep.subr.mxu0 %v2953_v2 }
0x1035   :  { %v1575_v26 = vpop.permute.xlu0 %1574  ;;  %2695 = vmatpush3.msra.mxu0 %v3022_v3 }
0x1036   :  { %2690 = vmatmul.mubr.msk.f32.vlgmr.msra.gmra.mxu1 %vm33_vm6, %v1575_v26  ;;  %2706 = vmatprep.subr.mxu0 %v2953_v2 }
0x1037   :  { %2700 = vmatpush3.msra.mxu1 %v3518_v27  ;;  %2703 = vmatprep.mubr.msk.f32.mxu1 %vm2954_vm0, %v2953_v2 }
0x1038   :  { %2701 = vmatprep.subr.mxu1 %v2953_v2 }
0x1039   :  { %2702 = vmatpush3.msra.mxu1 %v3030_v4 }
0x103a   :  { %2713 = vmatprep.subr.mxu1 %v2953_v2 }
0x10f2   :  { %v1525_v3 = vpop.f32.mrf.mxu0 }
0x10f3   :  { %v1529_v37 = vadd.f32 %v2498_v0, %v1525_v3 }
0x10f4   :  { %v2684_v38 = vpop.f32.mrf.mxu0 }
0x10f5   :  { %2841 = vtanh.f32 %v1529_v37  ;;  %v2500_v45 = vmul.f32 -1.442695, %v1529_v37 }
0x10f6   :  { %v1644_v40 = vpop.f32.mrf.mxu1 }
0x10f7   :  { %v1648_v41 = vadd.f32 %v2503_v39, %v1644_v40 }
0x10f8   :  { %v2691_v42 = vpop.f32.mrf.mxu1 }
0x10f9   :  { %2843 = vtanh.f32 %v1648_v41  ;;  %v2505_v46 = vmul.f32 -1.442695, %v1648_v41 }
0x10fa   :  { %2845 = vpow2.f32 %v2500_v45  ;;  %v2508_v45 = vld [vmem:[%s3949_s0 + $0xe] sm:$0x3] }
0x10fb   :  { %2847 = vpow2.f32 %v2505_v46 }
0x1102   :  { %v2842_v43 = vpop.eup %2841 }
0x1103   :  { %1539 = vrot.lane.b32.xlu1 %v2842_v43, %s2956_s19  ;;  %v3605_v43 = vld [vmem:[%s3952_s3] sm:$0xff] }
0x1106   :  { %v2844_v4 = vpop.eup %2843 }
0x1107   :  { %1658 = vrot.lane.b32.xlu0 %v2844_v4, %s2956_s19  ;;  %v2846_v48 = vpop.eup %2845  ;;  %v3617_v4 = vld [vmem:[%s3953_s4] sm:$0xff]  ;;  %s2416_s4 = sshll.u32 %s2960_s11, 4  ;;  %s2417_s4 = int_to_ptr.vmem [resolvable:$true] %s2416_s4 }
0x1108   :  { %v1533_v49 = vadd.f32 1.0, %v2846_v48  ;;  %v2848_v50 = vpop.eup %2847  ;;  %s2909_s14 = scalar_lea.vmem %s2417_s4, 32  ;;  %p2914_p1 = scmp.lt.s32.totalorder %s2417_s4, %s2417_s4 }
0x1109   :  { %v1652_v51 = vadd.f32 1.0, %v2848_v50  ;;  %v2513_v50 = vld [vmem:[%s3950_s1 + $0x4] sm:$0x3]  ;;  %p2910_p0 = scmp.ne.s32.totalorder %s2417_s4, %s2909_s14  ;;  %p2915_p2 = scmp.lt.s32.totalorder %s2909_s14, %s2909_s14 }
0x110a   :  { %2849 = vrcp.f32 %v1533_v49 }
0x110b   :  { %2851 = vrcp.f32 %v1652_v51  ;;  %p2916_p3 = por %p2915_p2, %p2914_p1 }
0x110d   :  { %p2917_p4 = pnand %p2916_p3, %p2910_p0 }
0x1117   :  { %v2850_v53 = vpop.eup %2849 }
0x1118   :  { %v2852_v57 = vpop.eup %2851  ;;  %v1537_v58 = vmul.f32 %v2850_v53, %v3548_v22 }
0x1119   :  { %v1656_v36 = vmul.f32 %v2852_v57, %v3557_v33 }
0x1175   :  { %v1540_v54 = vpop.permute.xlu1 %1539 }
0x1176   :  { %v1542_v55 = vmul.f32 %v2850_v53, %v1540_v54 }
0x1178   :  { %1544 = vrot.lane.b32.xlu1 %v1542_v55, %s2957_s22 }
0x1179   :  { %v1659_v59 = vpop.permute.xlu0 %1658 }
0x117a   :  { %v1661_v8 = vmul.f32 %v2852_v57, %v1659_v59 }
0x117c   :  { %1663 = vrot.lane.b32.xlu0 %v1661_v8, %s2957_s22  ;;  %1556 = vperm.xlu1 %2744, %v1554_v9  }
0x1180   :  { %1675 = vperm.xlu0 %2743, %v1673_v6  }
0x11ea   :  { %v1545_v62 = vpop.permute.xlu1 %1544 }
0x11eb   :  { %v3551_v7 = vadd.f32 %v1545_v62, %v1537_v58  ;;  %v2507_v58 = vld [vmem:[%s3951_s2 + $0xe] sm:$0x3] }
0x11ec   :  { %vm1689_vm12 = vcmp.gt.f32.partialorder %v2507_v58, 0.0 }
0x11ed   :  { %2853 = vtanh.f32 %v3551_v7 }
0x11ee   :  { %v1664_v26 = vpop.permute.xlu0 %1663 }
0x11ef   :  { %v3561_v0 = vadd.f32 %v1664_v26, %v1656_v36 }
0x11f1   :  { %2855 = vtanh.f32 %v3561_v0 }
0x11f7   :  { %v3566_v3 = vpop.permute.xlu1 %1556 }
0x11f8   :  { %vm1558_vm15 = vcmp.eq.s32.totalorder %v3566_v3, 1 }
0x11fa   :  { %v2854_v61 = vpop.eup %2853 }
0x11fb   :  { %1550 = vrot.lane.b32.xlu1 %v2854_v61, %s2958_s23  ;;  %v3568_v37 = vpop.permute.xlu0 %1675  ;;  %v2512_v61 = vld [vmem:[%s3951_s2 + $0x4] sm:$0x3] }
0x11fc   :  { %vm3959_vm7 = vcmp.eq.s32.totalorder %v3568_v37, 1  ;;  %vm1808_vm5 = vcmp.gt.f32.partialorder %v2512_v61, 0.0 }
0x11fe   :  { %v2856_v60 = vpop.eup %2855 }
0x11ff   :  { %1669 = vrot.lane.b32.xlu0 %v2856_v60, %s2958_s23 }
0x126d   :  { %v1551_v63 = vpop.permute.xlu1 %1550 }
0x126e   :  { %v3570_v30 = vmul.f32 %v2850_v53, %v1551_v63 }
0x1270   :  { %v3577_v38 = vsel %vm1558_vm15, %v3570_v30, %v3492_v32  ;;  %v3596_v32 = vld [vmem:[%s3952_s3 + $0x8] sm:$0xff]  ;;  %v1561_v24 = vsel %vm1558_vm15, %v3570_v30, 0.0 }
0x1271   :  { %v1670_v39 = vpop.permute.xlu0 %1669  ;;  %1693 = vrot.lane.b32.xlu1 %v3577_v38, %s2959_s24 }
0x1272   :  { %v3581_v40 = vmul.f32 %v2852_v57, %v1670_v39  ;;  %v1792_v39 = vsel %vm1689_vm12, 1, %v2955_v5 }
0x1274   :  { %v3588_v41 = vsel %vm3959_vm7, %v3581_v40, %v3503_v1 }
0x1275   :  { %1812 = vrot.lane.b32.xlu0 %v3588_v41, %s2959_s24 }
0x12e3   :  { %v1694_v42 = vpop.permute.xlu1 %1693 }
0x12e4   :  { %2697 = vmatmul.mubr.msk.f32.vlgmr.msra.gmra.mxu0 %vm33_vm6, %v1694_v42 }
0x12e5   :  { %2707 = vmatpush3.msra.mxu0 %v3596_v32  ;;  %2710 = vmatprep.mubr.msk.f32.mxu0 %vm2954_vm0, %v2953_v2 }
0x12e6   :  { %2708 = vmatprep.subr.mxu0 %v2953_v2 }
0x12e7   :  { %v1813_v1 = vpop.permute.xlu0 %1812  ;;  %2709 = vmatpush3.msra.mxu0 %v3605_v43 }
0x12e8   :  { %2704 = vmatmul.mubr.msk.f32.vlgmr.msra.gmra.mxu1 %vm33_vm6, %v1813_v1  ;;  %2720 = vmatprep.subr.mxu0 %v2953_v2  ;;  %v1911_v1 = vsel %vm1808_vm5, 1, %v2955_v5 }
0x12e9   :  { %2714 = vmatpush3.msra.mxu1 %v3518_v27  ;;  %2717 = vmatprep.mubr.msk.f32.mxu1 %vm2954_vm0, %v2953_v2 }
0x12ea   :  { %2715 = vmatprep.subr.mxu1 %v2953_v2 }
0x12eb   :  { %2716 = vmatpush3.msra.mxu1 %v3617_v4 }
0x12ec   :  { %2727 = vmatprep.subr.mxu1 %v2953_v2 }
0x13a4   :  { %v1763_v46 = vpop.f32.mrf.mxu0 }
0x13a5   :  { %v1767_v48 = vadd.f32 %v2508_v45, %v1763_v46  ;;  %v3643_v45 = vsel %vm1558_vm15, %v3551_v7, %v3548_v22  ;;  %vm3969_vm15 = vmmov %vm3967_vm1 }
0x13a6   :  { %v2698_v49 = vpop.f32.mrf.mxu0 }
0x13a7   :  { %2857 = vtanh.f32 %v1767_v48  ;;  %v2510_v56 = vmul.f32 -1.442695, %v1767_v48 }
0x13a8   :  { %v1882_v51 = vpop.f32.mrf.mxu1 }
0x13a9   :  { %v1886_v52 = vadd.f32 %v2513_v50, %v1882_v51  ;;  %v3652_v50 = vsel %vm3959_vm7, %v3561_v0, %v3557_v33 }
0x13aa   :  { %v2705_v53 = vpop.f32.mrf.mxu1 }
0x13ab   :  { %2859 = vtanh.f32 %v1886_v52  ;;  %v2515_v57 = vmul.f32 -1.442695, %v1886_v52 }
0x13ac   :  { %2861 = vpow2.f32 %v2510_v56 }
0x13ad   :  { %2863 = vpow2.f32 %v2515_v57 }
0x13b4   :  { %v2858_v54 = vpop.eup %2857 }
0x13b5   :  { %1777 = vrot.lane.b32.xlu1 %v2858_v54, %s2956_s19 }
0x13b8   :  { %v2860_v55 = vpop.eup %2859 }
0x13b9   :  { %1896 = vrot.lane.b32.xlu0 %v2860_v55, %s2956_s19  ;;  %v2862_v59 = vpop.eup %2861 }
0x13ba   :  { %v1771_v9 = vadd.f32 1.0, %v2862_v59  ;;  %v2864_v8 = vpop.eup %2863 }
0x13bb   :  { %v1890_v6 = vadd.f32 1.0, %v2864_v8 }
0x13bc   :  { %2865 = vrcp.f32 %v1771_v9 }
0x13bd   :  { %2867 = vrcp.f32 %v1890_v6 }
0x13c9   :  { %v2866_v62 = vpop.eup %2865 }
0x13ca   :  { %v2868_v60 = vpop.eup %2867  ;;  %v1775_v46 = vmul.f32 %v2866_v62, %v3643_v45 }
0x13cb   :  { %v1894_v51 = vmul.f32 %v2868_v60, %v3652_v50 }
0x1427   :  { %v1778_v36 = vpop.permute.xlu1 %1777 }
0x1428   :  { %v1780_v26 = vmul.f32 %v2866_v62, %v1778_v36 }
0x142a   :  { %1782 = vrot.lane.b32.xlu1 %v1780_v26, %s2957_s22 }
0x142b   :  { %v1897_v63 = vpop.permute.xlu0 %1896 }
0x142c   :  { %v1899_v42 = vmul.f32 %v2868_v60, %v1897_v63 }
0x142e   :  { %1901 = vrot.lane.b32.xlu0 %v1899_v42, %s2957_s22  ;;  %1794 = vperm.xlu1 %2744, %v1792_v39  }
0x1432   :  { %1913 = vperm.xlu0 %2743, %v1911_v1   ;;  %v2517_v1 = vld [vmem:[%s3951_s2 + $0x10] sm:$0x3] }
0x149c   :  { %v1783_v48 = vpop.permute.xlu1 %1782 }
0x149d   :  { %v3646_v49 = vadd.f32 %v1783_v48, %v1775_v46 }
0x149f   :  { %2869 = vtanh.f32 %v3646_v49 }
0x14a0   :  { %v1902_v52 = vpop.permute.xlu0 %1901 }
0x14a1   :  { %v3656_v53 = vadd.f32 %v1902_v52, %v1894_v51  ;;  %v2522_v52 = vld [vmem:[%s3951_s2 + $0x2] sm:$0x3] }
0x14a2   :  { %vm2046_vm7 = vcmp.gt.f32.partialorder %v2522_v52, 0.0 }
0x14a3   :  { %2871 = vtanh.f32 %v3656_v53 }
0x14a9   :  { %v3661_v54 = vpop.permute.xlu1 %1794 }
0x14aa   :  { %vm1796_vm5 = vcmp.eq.s32.totalorder %v3661_v54, 1 }
0x14ac   :  { %v2870_v22 = vpop.eup %2869 }
0x14ad   :  { %1788 = vrot.lane.b32.xlu1 %v2870_v22, %s2958_s23  ;;  %v3663_v55 = vpop.permute.xlu0 %1913 }
0x14ae   :  { %vm3960_vm12 = vcmp.eq.s32.totalorder %v3663_v55, 1 }
0x14b0   :  { %v2872_v7 = vpop.eup %2871 }
0x14b1   :  { %1907 = vrot.lane.b32.xlu0 %v2872_v7, %s2958_s23 }
0x151f   :  { %v1789_v33 = vpop.permute.xlu1 %1788 }
0x1520   :  { %v3665_v0 = vmul.f32 %v2866_v62, %v1789_v33 }
0x1522   :  { %v3672_v56 = vsel %vm1796_vm5, %v3665_v0, %v3577_v38  ;;  %v1799_v14 = vsel %vm1796_vm5, %v3665_v0, 0.0 }
0x1523   :  { %v1908_v57 = vpop.permute.xlu0 %1907  ;;  %1931 = vrot.lane.b32.xlu1 %v3672_v56, %s2959_s24 }
0x1524   :  { %v3676_v59 = vmul.f32 %v2868_v60, %v1908_v57 }
0x1526   :  { %v3683_v9 = vsel %vm3960_vm12, %v3676_v59, %v3588_v41  ;;  %v2518_v41 = vld [vmem:[%s3949_s0 + $0x10] sm:$0x3] }
0x1527   :  { %2050 = vrot.lane.b32.xlu0 %v3683_v9, %s2959_s24 }
0x1595   :  { %v1932_v8 = vpop.permute.xlu1 %1931 }
0x1596   :  { %2711 = vmatmul.mubr.msk.f32.vlgmr.msra.gmra.mxu0 %vm33_vm6, %v1932_v8  ;;  %v2149_v8 = vsel %vm2046_vm7, 1, %v2955_v5 }
0x1597   :  { %2721 = vmatpush3.msra.mxu0 %v3596_v32  ;;  %2724 = vmatprep.mubr.msk.f32.mxu0 %vm2954_vm0, %v2953_v2 }
0x1598   :  { %2722 = vmatprep.subr.mxu0 %v2953_v2 }
0x1599   :  { %v2051_v38 = vpop.permute.xlu0 %2050  ;;  %2723 = vmatpush3.msra.mxu0 %v3605_v43  ;;  %v2523_v43 = vld [vmem:[%s3950_s1 + $0x2] sm:$0x3] }
0x159a   :  { %2718 = vmatmul.mubr.msk.f32.vlgmr.msra.gmra.mxu1 %vm33_vm6, %v2051_v38  ;;  %v3721_v38 = vsel %vm1796_vm5, %v3646_v49, %v3643_v45  ;;  %vm3970_vm5 = vmmov %vm3967_vm1 }
0x159b   :  { %2728 = vmatpush3.msra.mxu1 %v3518_v27  ;;  %2731 = vmatprep.mubr.msk.f32.mxu1 %vm2954_vm0, %v2953_v2  ;;  %vm1927_vm0 = vcmp.gt.f32.partialorder %v2517_v1, 0.0 }
0x159c   :  { %2729 = vmatprep.subr.mxu1 %v2953_v2  ;;  %v2030_v33 = vsel %vm1927_vm0, 1, %v2955_v5 }
0x159d   :  { %2730 = vmatpush3.msra.mxu1 %v3617_v4 }
0x1656   :  { %v2001_v32 = vpop.f32.mrf.mxu0 }
0x1657   :  { %v2005_v6 = vadd.f32 %v2518_v41, %v2001_v32 }
0x1658   :  { %v2712_v58 = vpop.f32.mrf.mxu0 }
0x1659   :  { %2873 = vtanh.f32 %v2005_v6  ;;  %v2520_v4 = vmul.f32 -1.442695, %v2005_v6  ;;  %v3730_v58 = vsel %vm3960_vm12, %v3656_v53, %v3652_v50 }
0x165a   :  { %v2120_v27 = vpop.f32.mrf.mxu1 }
0x165b   :  { %v2124_v62 = vadd.f32 %v2523_v43, %v2120_v27 }
0x165c   :  { %v2719_v36 = vpop.f32.mrf.mxu1 }
0x165d   :  { %2875 = vtanh.f32 %v2124_v62  ;;  %v2525_v61 = vmul.f32 -1.442695, %v2124_v62 }
0x165e   :  { %2877 = vpow2.f32 %v2520_v4 }
0x165f   :  { %2879 = vpow2.f32 %v2525_v61 }
0x1666   :  { %v2874_v26 = vpop.eup %2873 }
0x1667   :  { %2015 = vrot.lane.b32.xlu1 %v2874_v26, %s2956_s19 }
0x166a   :  { %v2876_v2 = vpop.eup %2875 }
0x166b   :  { %2134 = vrot.lane.b32.xlu0 %v2876_v2, %s2956_s19  ;;  %v2878_v60 = vpop.eup %2877 }
0x166c   :  { %v2009_v63 = vadd.f32 1.0, %v2878_v60  ;;  %v2880_v39 = vpop.eup %2879 }
0x166d   :  { %v2128_v42 = vadd.f32 1.0, %v2880_v39 }
0x166e   :  { %2881 = vrcp.f32 %v2009_v63 }
0x166f   :  { %2883 = vrcp.f32 %v2128_v42 }
0x167b   :  { %v2882_v46 = vpop.eup %2881 }
0x167c   :  { %v2884_v22 = vpop.eup %2883  ;;  %v2013_v41 = vmul.f32 %v2882_v46, %v3721_v38 }
0x167d   :  { %v2132_v43 = vmul.f32 %v2884_v22, %v3730_v58 }
0x16d9   :  { %v2016_v48 = vpop.permute.xlu1 %2015 }
0x16da   :  { %v2018_v51 = vmul.f32 %v2882_v46, %v2016_v48  ;;  %v2283_v48 = vld [vmem:[%s3950_s1] sm:$0x3] }
0x16dc   :  { %2020 = vrot.lane.b32.xlu1 %v2018_v51, %s2957_s22 }
0x16dd   :  { %v2135_v7 = vpop.permute.xlu0 %2134 }
0x16de   :  { %v2137_v57 = vmul.f32 %v2884_v22, %v2135_v7 }
0x16e0   :  { %2139 = vrot.lane.b32.xlu0 %v2137_v57, %s2957_s22  ;;  %2032 = vperm.xlu1 %2744, %v2030_v33  }
0x16e4   :  { %2151 = vperm.xlu0 %2743, %v2149_v8  }
0x174e   :  { %v2021_v32 = vpop.permute.xlu1 %2020 }
0x174f   :  { %v3724_v6 = vadd.f32 %v2021_v32, %v2013_v41 }
0x1751   :  { %2885 = vtanh.f32 %v3724_v6 }
0x1752   :  { %v2140_v27 = vpop.permute.xlu0 %2139 }
0x1753   :  { %v3734_v62 = vadd.f32 %v2140_v27, %v2132_v43  ;;  %v2527_v27 = vld [vmem:[%s3951_s2 + $0x12] sm:$0x3] }
0x1755   :  { %2887 = vtanh.f32 %v3734_v62 }
0x175b   :  { %v3739_v36 = vpop.permute.xlu1 %2032 }
0x175c   :  { %vm2034_vm7 = vcmp.eq.s32.totalorder %v3739_v36, 1 }
0x175e   :  { %v2886_v45 = vpop.eup %2885 }
0x175f   :  { %2026 = vrot.lane.b32.xlu1 %v2886_v45, %s2958_s23  ;;  %v3741_v26 = vpop.permute.xlu0 %2151 }
0x1760   :  { %vm2153_vm0 = vcmp.eq.s32.totalorder %v3741_v26, 1 }
0x1762   :  { %v2888_v49 = vpop.eup %2887 }
0x1763   :  { %2145 = vrot.lane.b32.xlu0 %v2888_v49, %s2958_s23 }
0x17d1   :  { %v2027_v50 = vpop.permute.xlu1 %2026 }
0x17d2   :  { %v3743_v53 = vmul.f32 %v2882_v46, %v2027_v50 }
0x17d4   :  { %v2035_v2 = vsel %vm2034_vm7, %v3743_v53, %v3672_v56  ;;  %v2528_v56 = vld [vmem:[%s3949_s0 + $0x12] sm:$0x3]  ;;  %v2037_v20 = vsel %vm2034_vm7, %v3743_v53, 0.0 }
0x17d5   :  { %v2146_v4 = vpop.permute.xlu0 %2145  ;;  %2169 = vrot.lane.b32.xlu1 %v2035_v2, %s2959_s24  ;;  %v2281_v2 = vld [vmem:[%s3951_s2] sm:$0x3] }
0x17d6   :  { %v3751_v61 = vmul.f32 %v2884_v22, %v2146_v4  ;;  %vm2282_vm12 = vcmp.gt.f32.partialorder %v2281_v2, 0.0 }
0x17d8   :  { %v2154_v60 = vsel %vm2153_vm0, %v3751_v61, %v3683_v9  ;;  %v2156_v12 = vsel %vm2153_vm0, %v3751_v61, 0.0 }
0x17d9   :  { %2285 = vrot.lane.b32.xlu0 %v2154_v60, %s2959_s24 }
0x1847   :  { %v2170_v63 = vpop.permute.xlu1 %2169 }
0x1848   :  { %2725 = vmatmul.mubr.msk.f32.vlgmr.msra.gmra.mxu0 %vm33_vm6, %v2170_v63 }
0x184b   :  { %v2286_v39 = vpop.permute.xlu0 %2285 }
0x184c   :  { %2732 = vmatmul.mubr.msk.f32.vlgmr.msra.gmra.mxu1 %vm33_vm6, %v2286_v39  ;;  %vm2165_vm6 = vcmp.gt.f32.partialorder %v2527_v27, 0.0 }
0x184d   :  { %v2268_v63 = vsel %vm2165_vm6, 1, %v2955_v5 }
0x1908   :  { %v2239_v42 = vpop.f32.mrf.mxu0 }
0x1909   :  { %v2243_v1 = vadd.f32 %v2528_v56, %v2239_v42  ;;  %v2384_v56 = vsel %vm2282_vm12, 1, %v2955_v5  ;;  %v2036_v42 = vsel %vm2034_vm7, %v3724_v6, %v3721_v38  ;;  %v367_v38 = vsel %vm364_vm9, %v3165_v31, 0.0  ;;  %vm3971_vm12 = vmmov %vm3967_vm1 }
0x190a   :  { %v2726_v46 = vpop.f32.mrf.mxu0  ;;  %v484_v6 = vsel %vm481_vm10, %v3176_v34, 0.0  ;;  %v844_v31 = vsel %vm841_vm2, %v3325_v15, 0.0  ;;  %v1084_v34 = vsel %vm1081_vm8, %v3405_v10, 0.0  ;;  %vm3961_vm9 = vcmp.eq.s32.totalorder %v3568_v37, 1  ;;  %vm3965_vm8 = vmmov %vm3964_vm3 }
0x190b   :  { %2889 = vtanh.f32 %v2243_v1  ;;  %v2530_v33 = vmul.f32 -1.442695, %v2243_v1  ;;  %v1680_v13 = vsel %vm3961_vm9, %v3581_v40, 0.0  ;;  %vm3962_vm10 = vcmp.eq.s32.totalorder %v3663_v55, 1  ;;  %vm3972_vm7 = vmmov %vm3967_vm1 }
0x190c   :  { %v2355_v9 = vpop.f32.mrf.mxu1  ;;  %v1918_v15 = vsel %vm3962_vm10, %v3676_v59, 0.0  ;;  %v374_v17 = vmax.f32 %v3090_v44, %v367_v38  ;;  %v491_v25 = vmax.f32 %v3097_v47, %v484_v6 }
0x190d   :  { %v2359_v51 = vadd.f32 %v2355_v9, %v2283_v48  ;;  %v2155_v9 = vsel %vm2153_vm0, %v3734_v62, %v3730_v58  ;;  %v604_v58 = vsel %vm601_vm13, %v3245_v21, 0.0  ;;  %v1442_v21 = vsel %vm1439_vm4, %v3496_v35, 0.0  ;;  %vm3968_vm4 = vmmov %vm3967_vm1 }
0x190e   :  { %v2733_v52 = vpop.f32.mrf.mxu1  ;;  %v611_v10 = vmax.f32 %v374_v17, %v604_v58  ;;  %v731_v23 = vmax.f32 %v491_v25, %v724_v28  ;;  %vm3973_vm0 = vmmov %vm3967_vm1 }
0x190f   :  { %2891 = vtanh.f32 %v2359_v51  ;;  %v2533_v57 = vmul.f32 -1.442695, %v2359_v51  ;;  %vm3974_vm6 = vmmov %vm3973_vm0 }
0x1910   :  { %2893 = vpow2.f32 %v2530_v33  ;;  %v851_v16 = vmax.f32 %v611_v10, %v844_v31  ;;  %v971_v35 = vmax.f32 %v731_v23, %v964_v29  ;;  %vm3975_vm9 = vmmov %vm3973_vm0 }
0x1911   :  { %2895 = vpow2.f32 %v2533_v57  ;;  %vm3976_vm10 = vmmov %vm3973_vm0 }
0x1912   :  { %v1091_v11 = vmax.f32 %v851_v16, %v1084_v34  ;;  %v1211_v30 = vmax.f32 %v971_v35, %v1204_v18 }
0x1914   :  { %v1330_v3 = vmax.f32 %v1091_v11, %v1323_v19  ;;  %v1449_v54 = vmax.f32 %v1211_v30, %v1442_v21 }
0x1916   :  { %v1568_v40 = vmax.f32 %v1330_v3, %v1561_v24  ;;  %v1687_v36 = vmax.f32 %v1449_v54, %v1680_v13 }
0x1918   :  { %v2890_v22 = vpop.eup %2889  ;;  %v1806_v55 = vmax.f32 %v1568_v40, %v1799_v14  ;;  %v1925_v53 = vmax.f32 %v1687_v36, %v1918_v15 }
0x1919   :  { %2253 = vrot.lane.b32.xlu1 %v2890_v22, %s2956_s19 }
0x191a   :  { %v2044_v26 = vmax.f32 %v1806_v55, %v2037_v20 }
0x191c   :  { %v2892_v7 = vpop.eup %2891 }
0x191d   :  { %2369 = vrot.lane.b32.xlu0 %v2892_v7, %s2956_s19  ;;  %v2894_v8 = vpop.eup %2893 }
0x191e   :  { %v2247_v41 = vadd.f32 1.0, %v2894_v8  ;;  %v2896_v32 = vpop.eup %2895  ;;  %v2163_v8 = vmax.f32 %v1925_v53, %v2156_v12 }
0x191f   :  { %v2363_v43 = vadd.f32 1.0, %v2896_v32 }
0x1920   :  { %2897 = vrcp.f32 %v2247_v41 }
0x1921   :  { %2899 = vrcp.f32 %v2363_v43 }
0x192d   :  { %v3772_v45 = vpop.eup %2897 }
0x192e   :  { %v3779_v4 = vpop.eup %2899  ;;  %v2251_v1 = vmul.f32 %v3772_v45, %v2036_v42 }
0x192f   :  { %v2367_v51 = vmul.f32 %v3779_v4, %v2155_v9 }
0x198b   :  { %v2254_v49 = vpop.permute.xlu1 %2253 }
0x198c   :  { %v2256_v50 = vmul.f32 %v3772_v45, %v2254_v49 }
0x198e   :  { %2258 = vrot.lane.b32.xlu1 %v2256_v50, %s2957_s22 }
0x198f   :  { %v2370_v60 = vpop.permute.xlu0 %2369 }
0x1990   :  { %v2372_v39 = vmul.f32 %v3779_v4, %v2370_v60 }
0x1992   :  { %2374 = vrot.lane.b32.xlu0 %v2372_v39, %s2957_s22  ;;  %2270 = vperm.xlu1 %2744, %v2268_v63  }
0x1996   :  { %2386 = vperm.xlu0 %2743, %v2384_v56  }
0x1a00   :  { %v2259_v46 = vpop.permute.xlu1 %2258 }
0x1a01   :  { %v2261_v48 = vadd.f32 %v2259_v46, %v2251_v1 }
0x1a03   :  { %2901 = vtanh.f32 %v2261_v48 }
0x1a04   :  { %v2375_v52 = vpop.permute.xlu0 %2374 }
0x1a05   :  { %v2377_v5 = vadd.f32 %v2375_v52, %v2367_v51 }
0x1a07   :  { %2903 = vtanh.f32 %v2377_v5 }
0x1a0d   :  { %v2271_v37 = vpop.permute.xlu1 %2270 }
0x1a0e   :  { %vm2272_vm13 = vcmp.eq.s32.totalorder %v2271_v37, 1 }
0x1a10   :  { %v2902_v22 = vpop.eup %2901 }
0x1a11   :  { %2264 = vrot.lane.b32.xlu1 %v2902_v22, %s2958_s23  ;;  %v2387_v0 = vpop.permute.xlu0 %2386 }
0x1a12   :  { %vm2388_vm2 = vcmp.eq.s32.totalorder %v2387_v0, 1 }
0x1a14   :  { %v2904_v7 = vpop.eup %2903 }
0x1a15   :  { %2380 = vrot.lane.b32.xlu0 %v2904_v7, %s2958_s23  ;;  %369 = vrot.lane.b32.xlu1 %v367_v38, %s2959_s24 }
0x1a19   :  { %486 = vrot.lane.b32.xlu0 %v484_v6, %s2959_s24  ;;  %606 = vrot.lane.b32.xlu1 %v604_v58, %s2959_s24 }
0x1a1d   :  { %726 = vrot.lane.b32.xlu0 %v724_v28, %s2959_s24  ;;  %846 = vrot.lane.b32.xlu1 %v844_v31, %s2959_s24 }
0x1a21   :  { %966 = vrot.lane.b32.xlu0 %v964_v29, %s2959_s24  ;;  %1086 = vrot.lane.b32.xlu1 %v1084_v34, %s2959_s24 }
0x1a25   :  { %1206 = vrot.lane.b32.xlu0 %v1204_v18, %s2959_s24  ;;  %1325 = vrot.lane.b32.xlu1 %v1323_v19, %s2959_s24 }
0x1a29   :  { %1444 = vrot.lane.b32.xlu0 %v1442_v21, %s2959_s24  ;;  %1563 = vrot.lane.b32.xlu1 %v1561_v24, %s2959_s24 }
0x1a2d   :  { %1682 = vrot.lane.b32.xlu0 %v1680_v13, %s2959_s24  ;;  %1801 = vrot.lane.b32.xlu1 %v1799_v14, %s2959_s24 }
0x1a31   :  { %1920 = vrot.lane.b32.xlu0 %v1918_v15, %s2959_s24  ;;  %2039 = vrot.lane.b32.xlu1 %v2037_v20, %s2959_s24 }
0x1a35   :  { %2158 = vrot.lane.b32.xlu0 %v2156_v12, %s2959_s24 }
0x1a83   :  { %v2265_v59 = vpop.permute.xlu1 %2264 }
0x1a84   :  { %v2267_v62 = vmul.f32 %v3772_v45, %v2265_v59 }
0x1a86   :  { %v2273_v44 = vsel %vm2272_vm13, %v2267_v62, 0.0  ;;  %vm3977_vm13 = vmmov %vm3973_vm0 }
0x1a87   :  { %v2280_v47 = vmax.f32 %v2044_v26, %v2273_v44  ;;  %v2381_v61 = vpop.permute.xlu0 %2380  ;;  %v370_v33 = vpop.permute.xlu1 %369 }
0x1a88   :  { %v2383_v57 = vmul.f32 %v3779_v4, %v2381_v61  ;;  %2451 = vst.msk [vmem:[%s3954_s5 + $0x2] sm:$0x3] %vm3963_vm14, %v370_v33  ;;  %vm3978_vm14 = vmmov %vm3973_vm0 }
0x1a89   :  { %2397 = vrot.lane.b32.xlu1 %v2280_v47, %s2959_s24 }
0x1a8a   :  { %v2389_v41 = vsel %vm2388_vm2, %v2383_v57, 0.0  ;;  %vm3979_vm2 = vmmov %vm3973_vm0 }
0x1a8b   :  { %v2395_v32 = vmax.f32 %v2163_v8, %v2389_v41  ;;  %v487_v43 = vpop.permute.xlu0 %486  ;;  %v607_v27 = vpop.permute.xlu1 %606 }
0x1a8c   :  { %2456 = vst.msk [vmem:[%s3955_s6 + $0x10] sm:$0x3] %vm3964_vm3, %v487_v43 }
0x1a8d   :  { %2461 = vst.msk [vmem:[%s3954_s5 + $0x4] sm:$0x3] %vm3965_vm8, %v607_v27  ;;  %2402 = vrot.lane.b32.xlu0 %v2395_v32, %s2959_s24  ;;  %2275 = vrot.lane.b32.xlu1 %v2273_v44, %s2959_s24 }
0x1a8f   :  { %v727_v45 = vpop.permute.xlu0 %726  ;;  %v847_v49 = vpop.permute.xlu1 %846 }
0x1a90   :  { %2466 = vst.msk [vmem:[%s3955_s6 + $0xe] sm:$0x3] %vm3966_vm11, %v727_v45 }
0x1a91   :  { %2471 = vst.msk [vmem:[%s3954_s5 + $0x6] sm:$0x3] %vm3967_vm1, %v847_v49  ;;  %2391 = vrot.lane.b32.xlu0 %v2389_v41, %s2959_s24 }
0x1a93   :  { %v967_v50 = vpop.permute.xlu0 %966  ;;  %v1087_v2 = vpop.permute.xlu1 %1086 }
0x1a94   :  { %2476 = vst.msk [vmem:[%s3955_s6 + $0xc] sm:$0x3] %vm3968_vm4, %v967_v50 }
0x1a95   :  { %2481 = vst.msk [vmem:[%s3954_s5 + $0x8] sm:$0x3] %vm3969_vm15, %v1087_v2 }
0x1a97   :  { %v1207_v4 = vpop.permute.xlu0 %1206  ;;  %v1326_v60 = vpop.permute.xlu1 %1325 }
0x1a98   :  { %2486 = vst.msk [vmem:[%s3955_s6 + $0xa] sm:$0x3] %vm3970_vm5, %v1207_v4 }
0x1a99   :  { %2491 = vst.msk [vmem:[%s3954_s5 + $0xa] sm:$0x3] %vm3971_vm12, %v1326_v60 }
0x1a9b   :  { %v1445_v63 = vpop.permute.xlu0 %1444  ;;  %v1564_v39 = vpop.permute.xlu1 %1563 }
0x1a9c   :  { %2496 = vst.msk [vmem:[%s3955_s6 + $0x8] sm:$0x3] %vm3972_vm7, %v1445_v63 }
0x1a9d   :  { %2501 = vst.msk [vmem:[%s3954_s5 + $0xc] sm:$0x3] %vm3973_vm0, %v1564_v39 }
0x1a9f   :  { %v1683_v56 = vpop.permute.xlu0 %1682  ;;  %v1802_v42 = vpop.permute.xlu1 %1801 }
0x1aa0   :  { %2506 = vst.msk [vmem:[%s3955_s6 + $0x6] sm:$0x3] %vm3974_vm6, %v1683_v56 }
0x1aa1   :  { %2511 = vst.msk [vmem:[%s3954_s5 + $0xe] sm:$0x3] %vm3975_vm9, %v1802_v42 }
0x1aa3   :  { %v1921_v1 = vpop.permute.xlu0 %1920  ;;  %v2040_v46 = vpop.permute.xlu1 %2039 }
0x1aa4   :  { %2516 = vst.msk [vmem:[%s3955_s6 + $0x4] sm:$0x3] %vm3976_vm10, %v1921_v1 }
0x1aa5   :  { %2521 = vst.msk [vmem:[%s3954_s5 + $0x10] sm:$0x3] %vm3977_vm13, %v2040_v46 }
0x1aa7   :  { %v2159_v48 = vpop.permute.xlu0 %2158 }
0x1aa8   :  { %2526 = vst.msk [vmem:[%s3955_s6 + $0x2] sm:$0x3] %vm3978_vm14, %v2159_v48 }
0x1afb   :  { %v2398_v9 = vpop.permute.xlu1 %2397 }
0x1afc   :  { %2400 = vst.msk [vmem:[#allocation2] sm:$0x3] %vm3979_vm2, %v2398_v9 }
0x1afd   :  { %2920 = shalt.err (!%p2917_p4)
}
0x1afe   :  { %2419 = dma.vmem_to_hbm [thread:$0]  %s2417_s4, 32, %s3956_s7, [#allocation3]   ;;  %vm3980_vm3 = vmmov %vm3973_vm0 }
0x1aff   :  { %v2403_v51 = vpop.permute.xlu0 %2402  ;;  %v2276_v52 = vpop.permute.xlu1 %2275  ;;  %vm3981_vm8 = vmmov %vm3973_vm0  ;;  %s2929_s20 = scalar_lea.vmem %s2427_s13, 32  ;;  %p2934_p6 = scmp.lt.s32.totalorder %s2427_s13, %s2427_s13 }
0x1b00   :  { %2405 = vst.msk [vmem:[#allocation4] sm:$0x3] %vm3980_vm3, %v2403_v51  ;;  %p2930_p5 = scmp.ne.s32.totalorder %s2427_s13, %s2929_s20  ;;  %p2935_p7 = scmp.lt.s32.totalorder %s2929_s20, %s2929_s20 }
0x1b01   :  { %2531 = vst.msk [vmem:[%s3954_s5 + $0x12] sm:$0x3] %vm3981_vm8, %v2276_v52 }
0x1b02   :  { %p2936_p8 = por %p2935_p7, %p2934_p6 }
0x1b04   :  { %p2937_p9 = pnand %p2936_p8, %p2930_p5 }
0x1b06   :  { %2940 = shalt.err (!%p2937_p9)
}
0x1b07   :  { %2429 = dma.vmem_to_hbm [thread:$0]  %s2427_s13, 32, %s3957_s8, [#allocation5]   ;;  %v2392_v5 = vpop.permute.xlu0 %2391  ;;  %vm3982_vm11 = vmmov %vm3973_vm0 }
0x1b08   :  { %2394 = vst.msk [vmem:[%s3955_s6] sm:$0x3] %vm3982_vm11, %v2392_v5 }
0x1b09   :  { %2949 = dma.done.wait [#allocation3], 32  }
0x1b0a   :  { %2950 = vsyncadd [#allocation3], 4294967264 }
0x1b0b   :  { %2951 = dma.done.wait [#allocation5], 32  }
0x1b0c   :  { %2952 = vsyncadd [#allocation5], 4294967264 }
0x1b0d   :  { %2440 = vsyncpa [#allocation3], 1 }
0x1b0e   :  { %2441 = vsyncpa [#allocation5], 1 }

</bundles_post_ra>
